<compile_context>
chip_gen: v5e
topology: v5e:2x2
jax: 0.10.0
libtpu: 0.0.40
codegen_flags: <defaults>
</compile_context>

<pallas_src>
import functools
import math

import jax
import jax.numpy as jnp
from jax import lax
from jax.experimental import pallas as pl
from jax.experimental.pallas import tpu as pltpu


def _vmem_specs(n):
    return [pl.BlockSpec(memory_space=pltpu.MemorySpace.VMEM) for _ in range(n)]


def _vmem_out():
    return pl.BlockSpec(memory_space=pltpu.MemorySpace.VMEM)


# ----------------------------------------------------------------------------
# In-kernel helpers
# ----------------------------------------------------------------------------
def _ln(x, g, b, eps):
    mu = jnp.mean(x, axis=-1, keepdims=True)
    var = jnp.mean(jnp.square(x - mu), axis=-1, keepdims=True)
    return (x - mu) * lax.rsqrt(var + eps) * g + b


def _gelu(x):
    # TODO(synk): BertConfig default act is exact (erf) GELU; tanh approximation is
    # used because erf has no guaranteed Mosaic lowering.
    return 0.5 * x * (1.0 + jnp.tanh(0.7978845608028654 * (x + 0.044715 * x * x * x)))


# ----------------------------------------------------------------------------
# Kernel 1: fused dual GRU (pinyin + stroke EmbeddingNetworks) + embedding sum + LayerNorm
# ----------------------------------------------------------------------------
def _embed_kernel(xp_ref, wih_p_ref, whh_p_ref, bih_p_ref, bhh_p_ref,
                  xs_ref, wih_s_ref, whh_s_ref, bih_s_ref, bhh_s_ref,
                  base_ref, ln_g_ref, ln_b_ref,
                  o_ref, gi_p_ref, gi_s_ref, *, eps):
    n, hsz = o_ref.shape

    def run_gru(x_ref, wih_ref, whh_ref, bih_ref, bhh_ref, gi_ref):
        t_steps, _, d = x_ref.shape
        # Hoist the input projection out of the serial recurrence: one (T*N, D) matmul.
        x_flat = x_ref[...].reshape(t_steps * n, d)
        gi_ref[...] = (jnp.dot(x_flat, wih_ref[...], preferred_element_type=jnp.float32)
                       + bih_ref[...]).reshape(t_steps, n, 3 * hsz)

        def step(t, h):
            gi = gi_ref[t]
            gh = (jnp.dot(h, whh_ref[...], preferred_element_type=jnp.float32)
                  + bhh_ref[...])
            r = jax.nn.sigmoid(gi[:, :hsz] + gh[:, :hsz])
            z = jax.nn.sigmoid(gi[:, hsz:2 * hsz] + gh[:, hsz:2 * hsz])
            nn_ = jnp.tanh(gi[:, 2 * hsz:] + r * gh[:, 2 * hsz:])
            return (1.0 - z) * nn_ + z * h

        # Short fixed trip count -> fully unroll for LLO scheduling visibility.
        return lax.fori_loop(0, t_steps, step, jnp.zeros((n, hsz), jnp.float32),
                             unroll=True)

    h_py = run_gru(xp_ref, wih_p_ref, whh_p_ref, bih_p_ref, bhh_p_ref, gi_p_ref)
    h_sk = run_gru(xs_ref, wih_s_ref, whh_s_ref, bih_s_ref, bhh_s_ref, gi_s_ref)
    # word + token_type + position embeddings (precomputed gathers) + (py + sk) GRU
    # embedding, then the BertEmbeddings LayerNorm, all without leaving VMEM.
    emb = base_ref[...] + h_py + h_sk
    o_ref[...] = _ln(emb, ln_g_ref[...], ln_b_ref[...], eps)


def embed_pallas(xp_t, py, xs_t, sk, base_emb, ln_g, ln_b, hidden, eps):
    tp, n, _ = xp_t.shape
    ts = xs_t.shape[0]
    return pl.pallas_call(
        functools.partial(_embed_kernel, eps=eps),
        out_shape=jax.ShapeDtypeStruct((n, hidden), jnp.float32),
        in_specs=_vmem_specs(13),
        out_specs=_vmem_out(),
        scratch_shapes=[pltpu.VMEM((tp, n, 3 * hidden), jnp.float32),
                        pltpu.VMEM((ts, n, 3 * hidden), jnp.float32)],
    )(xp_t, py["wih"], py["whh"], py["bih"].reshape(1, -1), py["bhh"].reshape(1, -1),
      xs_t, sk["wih"], sk["whh"], sk["bih"].reshape(1, -1), sk["bhh"].reshape(1, -1),
      base_emb, ln_g.reshape(1, hidden), ln_b.reshape(1, hidden))


# ----------------------------------------------------------------------------
# Kernel 2: fully fused BERT layer (QKV + attention + output proj + LN + FFN + LN)
# ----------------------------------------------------------------------------
def _bert_layer_kernel(x_ref, mask_ref, wqkv_ref, bqkv_ref, wo_ref, bo_ref,
                       ln1g_ref, ln1b_ref, w1_ref, b1_ref, w2_ref, b2_ref,
                       ln2g_ref, ln2b_ref, o_ref, *, batch, seq, n_heads, d_head, eps):
    hidden = n_heads * d_head
    scale = 1.0 / math.sqrt(d_head)
    x = x_ref[...]                                               # (B*S, H)

    # Merged Q|K|V projection: one (B*S, H) @ (H, 3H) matmul.
    qkv = jnp.dot(x, wqkv_ref[...], preferred_element_type=jnp.float32) + bqkv_ref[...]
    mask = mask_ref[...]                                         # (B, 1, S) additive

    ctx_heads = []
    for h in range(n_heads):                                     # static unroll; no transposes
        qh = qkv[:, h * d_head:(h + 1) * d_head].reshape(batch, seq, d_head)
        kh = qkv[:, hidden + h * d_head:hidden + (h + 1) * d_head].reshape(batch, seq, d_head)
        vh = qkv[:, 2 * hidden + h * d_head:2 * hidden + (h + 1) * d_head] \
               .reshape(batch, seq, d_head)
        s = jnp.einsum("bqd,bkd->bqk", qh, kh,
                       preferred_element_type=jnp.float32) * scale + mask
        s_max = jnp.max(s, axis=-1, keepdims=True)
        p = jnp.exp(s - s_max)
        p = p * pl.reciprocal(jnp.sum(p, axis=-1, keepdims=True), approx=True)
        ctx_heads.append(
            jnp.einsum("bqk,bkd->bqd", p, vh,
                       preferred_element_type=jnp.float32).reshape(batch * seq, d_head))
    ctx = jnp.concatenate(ctx_heads, axis=-1)                    # (B*S, H), lane concat

    attn_out = jnp.dot(ctx, wo_ref[...], preferred_element_type=jnp.float32) + bo_ref[...]
    h1 = _ln(attn_out + x, ln1g_ref[...], ln1b_ref[...], eps)
    inter = _gelu(jnp.dot(h1, w1_ref[...], preferred_element_type=jnp.float32) + b1_ref[...])
    ffn = jnp.dot(inter, w2_ref[...], preferred_element_type=jnp.float32) + b2_ref[...]
    o_ref[...] = _ln(ffn + h1, ln2g_ref[...], ln2b_ref[...], eps)


def bert_layer_pallas(x2, p, ext_mask, batch, seq, n_heads, d_head, eps):
    hidden = n_heads * d_head
    wqkv = jnp.concatenate([p["wq"], p["wk"], p["wv"]], axis=1)            # (H, 3H)
    bqkv = jnp.concatenate([p["bq"], p["bk"], p["bv"]], axis=0).reshape(1, 3 * hidden)
    return pl.pallas_call(
        functools.partial(_bert_layer_kernel, batch=batch, seq=seq,
                          n_heads=n_heads, d_head=d_head, eps=eps),
        out_shape=jax.ShapeDtypeStruct((batch * seq, hidden), jnp.float32),
        in_specs=_vmem_specs(14),
        out_specs=_vmem_out(),
    )(x2, ext_mask, wqkv, bqkv, p["wo"], p["bo"].reshape(1, -1),
      p["ln1_g"].reshape(1, -1), p["ln1_b"].reshape(1, -1),
      p["w1"], p["b1"].reshape(1, -1), p["w2"], p["b2"].reshape(1, -1),
      p["ln2_g"].reshape(1, -1), p["ln2_b"].reshape(1, -1))


# ----------------------------------------------------------------------------
# Kernel 3: fused head — BiLSTM (both directions) + mask + classifier + CRF focal NLL
# ----------------------------------------------------------------------------
def _head_kernel(x_ref, mask_ref,
                 wih_ref, bih_ref, whh_f_ref, bhh_f_ref, whh_b_ref, bhh_b_ref,
                 cls_wf_ref, cls_wb_ref, cls_b_ref,
                 tags_ref, lmask_ref, last_ref, start_ref, end_ref, trans_ref, w_ref,
                 out_ref,
                 gi_ref, yf_ref, yb_ref, emis_ref, *, use_focal):
    s_len, n, hidden = x_ref.shape
    lh = whh_f_ref.shape[0]
    num_labels = trans_ref.shape[0]

    # --- hoisted input projection for BOTH LSTM directions: (S*N, H) @ (H, 8*lh) ---
    x_flat = x_ref[...].reshape(s_len * n, hidden)
    gi_ref[...] = (jnp.dot(x_flat, wih_ref[...], preferred_element_type=jnp.float32)
                   + bih_ref[...]).reshape(s_len, n, 8 * lh)

    def lstm_step(gi, h, c, whh, bhh):
        g = gi + jnp.dot(h, whh, preferred_element_type=jnp.float32) + bhh
        i = jax.nn.sigmoid(g[:, :lh])
        f = jax.nn.sigmoid(g[:, lh:2 * lh])
        gg = jnp.tanh(g[:, 2 * lh:3 * lh])
        o = jax.nn.sigmoid(g[:, 3 * lh:])
        c = f * c + i * gg
        h = o * jnp.tanh(c)
        return h, c

    def step(t, carry):
        hf, cf, hb, cb = carry
        tb = s_len - 1 - t
        gi_f = gi_ref[t]
        hf, cf = lstm_step(gi_f[:, :4 * lh], hf, cf, whh_f_ref[...], bhh_f_ref[...])
        yf_ref[t] = hf
        gi_b = gi_ref[tb]                            # backward: reversed time index
        hb, cb = lstm_step(gi_b[:, 4 * lh:], hb, cb, whh_b_ref[...], bhh_b_ref[...])
        yb_ref[tb] = hb
        return hf, cf, hb, cb

    z = jnp.zeros((n, lh), jnp.float32)
    lax.fori_loop(0, s_len, step, (z, z, z, z), unroll=True)

    # --- mask + classifier: emissions stay resident in VMEM ---
    m = mask_ref[...]                                            # (S, N, 1)
    yf = (yf_ref[...] * m).reshape(s_len * n, lh)
    yb = (yb_ref[...] * m).reshape(s_len * n, lh)
    logits = (jnp.dot(yf, cls_wf_ref[...], preferred_element_type=jnp.float32)
              + jnp.dot(yb, cls_wb_ref[...], preferred_element_type=jnp.float32)
              + cls_b_ref[...])
    emis_ref[...] = logits.reshape(s_len, n, num_labels)

    # --- CRF NLL (forward algorithm) + sample weights + focal factor, summed ---
    trans = trans_ref[...]
    e0 = emis_ref[0]
    t0 = tags_ref[0]
    alpha0 = start_ref[...] + e0                                 # (N, L)
    num0 = jnp.sum((start_ref[...] + e0) * t0, axis=-1, keepdims=True)

    def crf_step(t, carry):
        alpha, num = carry
        e_t = emis_ref[t]
        tg_t = tags_ref[t]
        tg_p = tags_ref[t - 1]
        m_t = lmask_ref[t]                                       # (N, 1)
        # log-partition
        score = alpha[:, :, None] + trans[None, :, :] + e_t[:, None, :]   # (N, L, L)
        mx = jnp.max(score, axis=1, keepdims=True)
        new_alpha = jnp.log(jnp.sum(jnp.exp(score - mx), axis=1)) + mx[:, 0, :]
        alpha = jnp.where(m_t > 0.5, new_alpha, alpha)
        # gold transition score on the VPU (no MXU push inside the serial loop)
        trans_sc = jnp.sum(jnp.sum(tg_p[:, :, None] * trans[None, :, :] * tg_t[:, None, :],
                                   axis=2), axis=1, keepdims=True)
        emit_sc = jnp.sum(e_t * tg_t, axis=-1, keepdims=True)
        num = num + (trans_sc + emit_sc) * m_t
        return alpha, num

    alpha, num = lax.fori_loop(1, s_len, crf_step, (alpha0, num0), unroll=True)
    num = num + jnp.sum(end_ref[...] * last_ref[...], axis=-1, keepdims=True)
    fin = alpha + end_ref[...]
    mx = jnp.max(fin, axis=-1, keepdims=True)
    denom = jnp.log(jnp.sum(jnp.exp(fin - mx), axis=-1, keepdims=True)) + mx
    nll = denom - num                                            # (N, 1)
    loss = nll * w_ref[...]                                      # sample weights first
    if use_focal:
        fw = jnp.square(1.0 - jnp.exp(-loss))                    # focal applied after (as ref)
        loss = loss * fw
    out_ref[...] = jnp.sum(loss, axis=(0, 1), keepdims=True)


def head_crf_pallas(seq_out, lstm_p, cls_w, cls_b, mask_f, tags_1h, lmask_f, last_1h,
                    crf_start, crf_end, crf_trans, weights, use_focal):
    b, s, hidden = seq_out.shape
    lh = lstm_p["whh_f"].shape[0]
    num_labels = crf_trans.shape[0]
    x_t = jnp.transpose(seq_out, (1, 0, 2))                      # (S, B, H) time-major
    mask_t = jnp.transpose(mask_f, (1, 0))[:, :, None]           # (S, B, 1)
    tags_t = jnp.transpose(tags_1h, (1, 0, 2))                   # (S, B, L)
    lmask_t = jnp.transpose(lmask_f, (1, 0))[:, :, None]         # (S, B, 1)
    wih = jnp.concatenate([lstm_p["wih_f"], lstm_p["wih_b"]], axis=1)        # (H, 8*lh)
    bih = jnp.concatenate([lstm_p["bih_f"], lstm_p["bih_b"]], axis=0).reshape(1, -1)
    out = pl.pallas_call(
        functools.partial(_head_kernel, use_focal=use_focal),
        out_shape=jax.ShapeDtypeStruct((1, 1), jnp.float32),
        in_specs=_vmem_specs(18),
        out_specs=_vmem_out(),
        scratch_shapes=[pltpu.VMEM((s, b, 8 * lh), jnp.float32),
                        pltpu.VMEM((s, b, lh), jnp.float32),
                        pltpu.VMEM((s, b, lh), jnp.float32),
                        pltpu.VMEM((s, b, num_labels), jnp.float32)],
    )(x_t, mask_t,
      wih, bih, lstm_p["whh_f"], lstm_p["bhh_f"].reshape(1, -1),
      lstm_p["whh_b"], lstm_p["bhh_b"].reshape(1, -1),
      cls_w[:lh], cls_w[lh:], cls_b.reshape(1, -1),
      tags_t, lmask_t, last_1h,
      crf_start.reshape(1, -1), crf_end.reshape(1, -1), crf_trans,
      weights.reshape(b, 1))
    return out[0, 0]


# ----------------------------------------------------------------------------
# Model glue (embedding lookups, reshapes, parameter plumbing)
# ----------------------------------------------------------------------------
def jdner_forward(params, cfg, input_ids, input_mask, pinyin_ids, stroke_ids,
                  lmask, labelids, weights, max_sen_len):
    batch, seq = input_ids.shape
    hidden = cfg["hidden"]
    n_heads = cfg["heads"]
    d_head = hidden // n_heads
    mask_f = input_mask.astype(jnp.float32)

    # --- pinyin / stroke EmbeddingNetwork inputs: embedding gathers stay in XLA ---
    def prep(ids, table, seq_len):
        ids2 = ids.reshape(-1, seq_len)                          # (B*max_sen_len, T)
        emb = jnp.take(table, ids2, axis=0).astype(jnp.float32)  # (N, T, PYDIM)
        return jnp.transpose(emb, (1, 0, 2))                     # (T, N, PYDIM) time-major

    xp = prep(pinyin_ids, params["py"]["table"], cfg["pylen"])
    xs = prep(stroke_ids, params["sk"]["table"], cfg["sklen"])

    # --- BertEmbeddings gathers (dropout == identity) ---
    word_e = jnp.take(params["word_emb"], input_ids, axis=0)
    tok_e = jnp.take(params["tok_type_emb"], jnp.zeros((batch, seq), jnp.int32), axis=0)
    pos_e = jnp.take(params["pos_emb"], jnp.arange(seq), axis=0)[None, :, :]
    base_emb = (word_e + tok_e + pos_e).reshape(batch * seq, hidden)

    # --- one fused kernel: dual GRU + (base + py + sk) sum + embeddings LayerNorm ---
    # nn.GRU h_n has shape (1, N, H); .mean(0, keepdim=True) is identity for 1 layer.
    x2 = embed_pallas(xp, params["py"], xs, params["sk"], base_emb,
                      params["emb_ln_g"], params["emb_ln_b"], hidden, cfg["ln_eps"])

    # --- extended attention mask: (1 - mask) * -10000, shape (B, 1, S) ---
    ext_mask = (1.0 - mask_f)[:, None, :] * -10000.0

    # --- BertEncoder: one fused kernel per layer ---
    # TODO(synk): at real BERT sizes, cast matmul operands to bf16 (v6e/v7x) and add
    # row-tiled grids + vmem_limit_bytes for v7x's smaller VMEM.
    for layer in params["layers"]:
        x2 = bert_layer_pallas(x2, layer, ext_mask, batch, seq, n_heads, d_head,
                               cfg["ln_eps"])
    seq_out = x2.reshape(batch, seq, hidden)

    # --- BiLSTM + mask + classifier + CRF focal NLL, all in one fused kernel ---
    num_labels = cfg["num_labels"]
    lmask_f = lmask.astype(jnp.float32)
    tags_1h = jax.nn.one_hot(labelids, num_labels, dtype=jnp.float32)
    seq_ends = jnp.sum(lmask.astype(jnp.int32), axis=1) - 1
    last_tags = labelids[jnp.arange(batch), seq_ends]
    last_1h = jax.nn.one_hot(last_tags, num_labels, dtype=jnp.float32)

    loss = head_crf_pallas(seq_out, params["lstm"], params["cls_w"], params["cls_b"],
                           mask_f, tags_1h, lmask_f, last_1h,
                           params["crf_start"], params["crf_end"], params["crf_trans"],
                           weights.astype(jnp.float32), cfg["use_focal"])
    return loss


# ----------------------------------------------------------------------------
# Deterministic parameter init (synthetic, no checkpoint loading)
# ----------------------------------------------------------------------------
def init_params(key, cfg):
    keys = list(jax.random.split(key, 128))
    idx = [0]

    def nrm(shape, scale=0.02):
        k = keys[idx[0]]
        idx[0] += 1
        return scale * jax.random.normal(k, shape, dtype=jnp.float32)

    hidden = cfg["hidden"]
    inter = cfg["intermediate"]
    lh = cfg["lstm_hidden"]
    num_labels = cfg["num_labels"]

    def gru_net(vocab):
        return {
            "table": nrm((vocab, cfg["pydim"])),
            "wih": nrm((cfg["pydim"], 3 * hidden)),
            "whh": nrm((hidden, 3 * hidden)),
            "bih": jnp.zeros((3 * hidden,), jnp.float32),
            "bhh": jnp.zeros((3 * hidden,), jnp.float32),
        }

    params = {
        "word_emb": nrm((cfg["vocab"], hidden)),
        "tok_type_emb": nrm((cfg["type_vocab"], hidden)),
        "pos_emb": nrm((cfg["max_pos"], hidden)),
        "emb_ln_g": jnp.ones((hidden,), jnp.float32),
        "emb_ln_b": jnp.zeros((hidden,), jnp.float32),
        "py": gru_net(cfg["py_vocab"]),
        "sk": gru_net(cfg["sk_vocab"]),
        "layers": [],
    }
    for _ in range(cfg["layers"]):
        params["layers"].append({
            "wq": nrm((hidden, hidden)), "bq": jnp.zeros((hidden,), jnp.float32),
            "wk": nrm((hidden, hidden)), "bk": jnp.zeros((hidden,), jnp.float32),
            "wv": nrm((hidden, hidden)), "bv": jnp.zeros((hidden,), jnp.float32),
            "wo": nrm((hidden, hidden)), "bo": jnp.zeros((hidden,), jnp.float32),
            "ln1_g": jnp.ones((hidden,), jnp.float32), "ln1_b": jnp.zeros((hidden,), jnp.float32),
            "w1": nrm((hidden, inter)), "b1": jnp.zeros((inter,), jnp.float32),
            "w2": nrm((inter, hidden)), "b2": jnp.zeros((hidden,), jnp.float32),
            "ln2_g": jnp.ones((hidden,), jnp.float32), "ln2_b": jnp.zeros((hidden,), jnp.float32),
        })
    params["lstm"] = {
        "wih_f": nrm((hidden, 4 * lh)), "whh_f": nrm((lh, 4 * lh)),
        "bih_f": jnp.zeros((4 * lh,), jnp.float32), "bhh_f": jnp.zeros((4 * lh,), jnp.float32),
        "wih_b": nrm((hidden, 4 * lh)), "whh_b": nrm((lh, 4 * lh)),
        "bih_b": jnp.zeros((4 * lh,), jnp.float32), "bhh_b": jnp.zeros((4 * lh,), jnp.float32),
    }
    linear_hidden = 2 * lh if cfg["is_bilstm"] else lh
    params["cls_w"] = nrm((linear_hidden, num_labels))
    params["cls_b"] = jnp.zeros((num_labels,), jnp.float32)
    params["crf_start"] = nrm((num_labels,), scale=0.1)
    params["crf_end"] = nrm((num_labels,), scale=0.1)
    params["crf_trans"] = nrm((num_labels, num_labels), scale=0.1)
    return params


# ----------------------------------------------------------------------------
if __name__ == "__main__":
    cfg = dict(hidden=32, heads=2, intermediate=64, layers=2,
               vocab=50, type_vocab=2, max_pos=64,
               pydim=32, pylen=4, sklen=4, py_vocab=30, sk_vocab=7,
               num_labels=5, lstm_hidden=16, is_bilstm=True,
               use_focal=True, ln_eps=1e-12)

    key = jax.random.PRNGKey(0)
    pkey, dkey = jax.random.split(key)
    params = init_params(pkey, cfg)

    B, S = 2, 8
    k1, k2, k3, k4 = jax.random.split(dkey, 4)
    input_ids = jax.random.randint(k1, (B, S), 0, cfg["vocab"], dtype=jnp.int32)
    pinyin_ids = jax.random.randint(k2, (B, S, cfg["pylen"]), 0, cfg["py_vocab"], dtype=jnp.int32)
    stroke_ids = jax.random.randint(k3, (B, S, cfg["sklen"]), 0, cfg["sk_vocab"], dtype=jnp.int32)
    labelids = jax.random.randint(k4, (B, S), 0, cfg["num_labels"], dtype=jnp.int32)
    input_mask = jnp.array([[1, 1, 1, 1, 1, 1, 0, 0],
                            [1, 1, 1, 1, 0, 0, 0, 0]], dtype=jnp.float32)
    lmask = input_mask.astype(jnp.int32)     # CRF mask; first timestep must be on
    weights = jnp.array([1.0, 0.7], dtype=jnp.float32)

    @jax.jit
    def fwd(p, iid, imask, pyid, skid, lm, lbl, w):
        return jdner_forward(p, cfg, iid, imask, pyid, skid, lm, lbl, w, max_sen_len=S)

    loss = fwd(params, input_ids, input_mask, pinyin_ids, stroke_ids,
               lmask, labelids, weights)
    loss = jax.block_until_ready(loss)
    assert bool(jnp.isfinite(loss))
    print("KERNEL_OK")
</pallas_src>

<mosaic_0001>
module attributes {stable_mosaic.version = 11 : i64} {
  func.func @_bert_layer_kernel(%arg0: memref<16x32xf32, #tpu.memory_space<vmem>>, %arg1: memref<2x1x8xf32, #tpu.memory_space<vmem>>, %arg2: memref<32x96xf32, #tpu.memory_space<vmem>>, %arg3: memref<1x96xf32, #tpu.memory_space<vmem>>, %arg4: memref<32x32xf32, #tpu.memory_space<vmem>>, %arg5: memref<1x32xf32, #tpu.memory_space<vmem>>, %arg6: memref<1x32xf32, #tpu.memory_space<vmem>>, %arg7: memref<1x32xf32, #tpu.memory_space<vmem>>, %arg8: memref<32x64xf32, #tpu.memory_space<vmem>>, %arg9: memref<1x64xf32, #tpu.memory_space<vmem>>, %arg10: memref<64x32xf32, #tpu.memory_space<vmem>>, %arg11: memref<1x32xf32, #tpu.memory_space<vmem>>, %arg12: memref<1x32xf32, #tpu.memory_space<vmem>>, %arg13: memref<1x32xf32, #tpu.memory_space<vmem>>, %arg14: memref<16x32xf32, #tpu.memory_space<vmem>>) attributes {dimension_semantics = [], scalar_prefetch = 0 : i64, scratch_operands = 0 : i64, tpu.core_type = #tpu.core_type<tc>} {
    %c0 = arith.constant 0 : index
    %c0_0 = arith.constant 0 : index
    %0 = vector.load %arg0[%c0, %c0_0] : memref<16x32xf32, #tpu.memory_space<vmem>>, vector<16x32xf32>
    %c0_1 = arith.constant 0 : index
    %c0_2 = arith.constant 0 : index
    %1 = vector.load %arg2[%c0_1, %c0_2] : memref<32x96xf32, #tpu.memory_space<vmem>>, vector<32x96xf32>
    %cst = arith.constant dense<0.000000e+00> : vector<16x96xf32>
    %2 = tpu.matmul %0, %1, %cst {dimension_numbers = #tpu.dot_dimension_numbers<[1], [0], [0], [1], [0, 0, 1, 1], [], []>} : vector<16x32xf32>, vector<32x96xf32>, vector<16x96xf32> -> vector<16x96xf32>
    %c0_3 = arith.constant 0 : index
    %c0_4 = arith.constant 0 : index
    %3 = vector.load %arg3[%c0_3, %c0_4] : memref<1x96xf32, #tpu.memory_space<vmem>>, vector<1x96xf32>
    %4 = vector.broadcast %3 : vector<1x96xf32> to vector<16x96xf32>
    %5 = arith.addf %2, %4 : vector<16x96xf32>
    %c0_5 = arith.constant 0 : index
    %c0_6 = arith.constant 0 : index
    %c0_7 = arith.constant 0 : index
    %6 = vector.load %arg1[%c0_5, %c0_6, %c0_7] : memref<2x1x8xf32, #tpu.memory_space<vmem>>, vector<2x1x8xf32>
    %7 = vector.extract_strided_slice %5 {offsets = [0, 0], sizes = [16, 16], strides = [1, 1]} : vector<16x96xf32> to vector<16x16xf32>
    %8 = vector.shape_cast %7 : vector<16x16xf32> to vector<2x8x16xf32>
    %9 = vector.extract_strided_slice %5 {offsets = [0, 32], sizes = [16, 16], strides = [1, 1]} : vector<16x96xf32> to vector<16x16xf32>
    %10 = vector.shape_cast %9 : vector<16x16xf32> to vector<2x8x16xf32>
    %11 = vector.extract_strided_slice %5 {offsets = [0, 64], sizes = [16, 16], strides = [1, 1]} : vector<16x96xf32> to vector<16x16xf32>
    %12 = vector.shape_cast %11 : vector<16x16xf32> to vector<2x8x16xf32>
    "tpu.trace_start"() <{level = 10 : i32, message = "bqd,bkd->bqk"}> : () -> ()
    %cst_8 = arith.constant dense<0.000000e+00> : vector<2x8x8xf32>
    %13 = tpu.matmul %8, %10, %cst_8 {dimension_numbers = #tpu.dot_dimension_numbers<[2], [2], [1], [1], [0, 0, 0, 1, 1, 1], [0], [0]>} : vector<2x8x16xf32>, vector<2x8x16xf32>, vector<2x8x8xf32> -> vector<2x8x8xf32>
    "tpu.trace_stop"() : () -> ()
    %cst_9 = arith.constant 2.500000e-01 : f32
    %14 = vector.broadcast %cst_9 : f32 to vector<2x8x8xf32>
    %15 = arith.mulf %13, %14 : vector<2x8x8xf32>
    %16 = vector.broadcast %6 : vector<2x1x8xf32> to vector<2x8x8xf32>
    %17 = arith.addf %15, %16 : vector<2x8x8xf32>
    %cst_10 = arith.constant dense<0xFF800000> : vector<2x8xf32>
    %18 = vector.multi_reduction <maximumf>, %17, %cst_10 [2] : vector<2x8x8xf32> to vector<2x8xf32>
    %19 = vector.shape_cast %18 : vector<2x8xf32> to vector<2x8x1xf32>
    %20 = vector.broadcast %19 : vector<2x8x1xf32> to vector<2x8x8xf32>
    %21 = arith.subf %17, %20 : vector<2x8x8xf32>
    %22 = math.exp %21 : vector<2x8x8xf32>
    %cst_11 = arith.constant dense<0.000000e+00> : vector<2x8xf32>
    %23 = vector.multi_reduction <add>, %22, %cst_11 [2] : vector<2x8x8xf32> to vector<2x8xf32>
    %24 = vector.shape_cast %23 : vector<2x8xf32> to vector<2x8x1xf32>
    %25 = tpu.reciprocal %24 {approx = true} : vector<2x8x1xf32> -> vector<2x8x1xf32>
    %26 = vector.broadcast %25 : vector<2x8x1xf32> to vector<2x8x8xf32>
    %27 = arith.mulf %22, %26 : vector<2x8x8xf32>
    "tpu.trace_start"() <{level = 10 : i32, message = "bqk,bkd->bqd"}> : () -> ()
    %cst_12 = arith.constant dense<0.000000e+00> : vector<2x8x16xf32>
    %28 = tpu.matmul %27, %12, %cst_12 {dimension_numbers = #tpu.dot_dimension_numbers<[2], [1], [1], [2], [0, 0, 0, 1, 1, 2], [0], [0]>} : vector<2x8x8xf32>, vector<2x8x16xf32>, vector<2x8x16xf32> -> vector<2x8x16xf32>
    "tpu.trace_stop"() : () -> ()
    %29 = vector.shape_cast %28 : vector<2x8x16xf32> to vector<16x16xf32>
    %30 = vector.extract_strided_slice %5 {offsets = [0, 16], sizes = [16, 16], strides = [1, 1]} : vector<16x96xf32> to vector<16x16xf32>
    %31 = vector.shape_cast %30 : vector<16x16xf32> to vector<2x8x16xf32>
    %32 = vector.extract_strided_slice %5 {offsets = [0, 48], sizes = [16, 16], strides = [1, 1]} : vector<16x96xf32> to vector<16x16xf32>
    %33 = vector.shape_cast %32 : vector<16x16xf32> to vector<2x8x16xf32>
    %34 = vector.extract_strided_slice %5 {offsets = [0, 80], sizes = [16, 16], strides = [1, 1]} : vector<16x96xf32> to vector<16x16xf32>
    %35 = vector.shape_cast %34 : vector<16x16xf32> to vector<2x8x16xf32>
    "tpu.trace_start"() <{level = 10 : i32, message = "bqd,bkd->bqk"}> : () -> ()
    %cst_13 = arith.constant dense<0.000000e+00> : vector<2x8x8xf32>
    %36 = tpu.matmul %31, %33, %cst_13 {dimension_numbers = #tpu.dot_dimension_numbers<[2], [2], [1], [1], [0, 0, 0, 1, 1, 1], [0], [0]>} : vector<2x8x16xf32>, vector<2x8x16xf32>, vector<2x8x8xf32> -> vector<2x8x8xf32>
    "tpu.trace_stop"() : () -> ()
    %cst_14 = arith.constant 2.500000e-01 : f32
    %37 = vector.broadcast %cst_14 : f32 to vector<2x8x8xf32>
    %38 = arith.mulf %36, %37 : vector<2x8x8xf32>
    %39 = vector.broadcast %6 : vector<2x1x8xf32> to vector<2x8x8xf32>
    %40 = arith.addf %38, %39 : vector<2x8x8xf32>
    %cst_15 = arith.constant dense<0xFF800000> : vector<2x8xf32>
    %41 = vector.multi_reduction <maximumf>, %40, %cst_15 [2] : vector<2x8x8xf32> to vector<2x8xf32>
    %42 = vector.shape_cast %41 : vector<2x8xf32> to vector<2x8x1xf32>
    %43 = vector.broadcast %42 : vector<2x8x1xf32> to vector<2x8x8xf32>
    %44 = arith.subf %40, %43 : vector<2x8x8xf32>
    %45 = math.exp %44 : vector<2x8x8xf32>
    %cst_16 = arith.constant dense<0.000000e+00> : vector<2x8xf32>
    %46 = vector.multi_reduction <add>, %45, %cst_16 [2] : vector<2x8x8xf32> to vector<2x8xf32>
    %47 = vector.shape_cast %46 : vector<2x8xf32> to vector<2x8x1xf32>
    %48 = tpu.reciprocal %47 {approx = true} : vector<2x8x1xf32> -> vector<2x8x1xf32>
    %49 = vector.broadcast %48 : vector<2x8x1xf32> to vector<2x8x8xf32>
    %50 = arith.mulf %45, %49 : vector<2x8x8xf32>
    "tpu.trace_start"() <{level = 10 : i32, message = "bqk,bkd->bqd"}> : () -> ()
    %cst_17 = arith.constant dense<0.000000e+00> : vector<2x8x16xf32>
    %51 = tpu.matmul %50, %35, %cst_17 {dimension_numbers = #tpu.dot_dimension_numbers<[2], [1], [1], [2], [0, 0, 0, 1, 1, 2], [0], [0]>} : vector<2x8x8xf32>, vector<2x8x16xf32>, vector<2x8x16xf32> -> vector<2x8x16xf32>
    "tpu.trace_stop"() : () -> ()
    %52 = vector.shape_cast %51 : vector<2x8x16xf32> to vector<16x16xf32>
    %53 = tpu.concatenate %29, %52 in 1 : vector<16x16xf32>, vector<16x16xf32> -> vector<16x32xf32>
    %c0_18 = arith.constant 0 : index
    %c0_19 = arith.constant 0 : index
    %54 = vector.load %arg4[%c0_18, %c0_19] : memref<32x32xf32, #tpu.memory_space<vmem>>, vector<32x32xf32>
    %cst_20 = arith.constant dense<0.000000e+00> : vector<16x32xf32>
    %55 = tpu.matmul %53, %54, %cst_20 {dimension_numbers = #tpu.dot_dimension_numbers<[1], [0], [0], [1], [0, 0, 1, 1], [], []>} : vector<16x32xf32>, vector<32x32xf32>, vector<16x32xf32> -> vector<16x32xf32>
    %c0_21 = arith.constant 0 : index
    %c0_22 = arith.constant 0 : index
    %56 = vector.load %arg5[%c0_21, %c0_22] : memref<1x32xf32, #tpu.memory_space<vmem>>, vector<1x32xf32>
    %57 = vector.broadcast %56 : vector<1x32xf32> to vector<16x32xf32>
    %58 = arith.addf %55, %57 : vector<16x32xf32>
    %59 = arith.addf %58, %0 : vector<16x32xf32>
    %c0_23 = arith.constant 0 : index
    %c0_24 = arith.constant 0 : index
    %60 = vector.load %arg6[%c0_23, %c0_24] : memref<1x32xf32, #tpu.memory_space<vmem>>, vector<1x32xf32>
    %c0_25 = arith.constant 0 : index
    %c0_26 = arith.constant 0 : index
    %61 = vector.load %arg7[%c0_25, %c0_26] : memref<1x32xf32, #tpu.memory_space<vmem>>, vector<1x32xf32>
    %cst_27 = arith.constant dense<0.000000e+00> : vector<16xf32>
    %62 = vector.multi_reduction <add>, %59, %cst_27 [1] : vector<16x32xf32> to vector<16xf32>
    %63 = vector.shape_cast %62 : vector<16xf32> to vector<16x1xf32>
    %cst_28 = arith.constant 3.200000e+01 : f32
    %64 = vector.broadcast %cst_28 : f32 to vector<16x1xf32>
    %65 = arith.divf %63, %64 : vector<16x1xf32>
    %66 = vector.broadcast %65 : vector<16x1xf32> to vector<16x32xf32>
    %67 = arith.subf %59, %66 : vector<16x32xf32>
    %68 = arith.mulf %67, %67 : vector<16x32xf32>
    %cst_29 = arith.constant dense<0.000000e+00> : vector<16xf32>
    %69 = vector.multi_reduction <add>, %68, %cst_29 [1] : vector<16x32xf32> to vector<16xf32>
    %70 = vector.shape_cast %69 : vector<16xf32> to vector<16x1xf32>
    %cst_30 = arith.constant 3.200000e+01 : f32
    %71 = vector.broadcast %cst_30 : f32 to vector<16x1xf32>
    %72 = arith.divf %70, %71 : vector<16x1xf32>
    %73 = vector.broadcast %65 : vector<16x1xf32> to vector<16x32xf32>
    %74 = arith.subf %59, %73 : vector<16x32xf32>
    %cst_31 = arith.constant 9.99999996E-13 : f32
    %75 = vector.broadcast %cst_31 : f32 to vector<16x1xf32>
    %76 = arith.addf %72, %75 : vector<16x1xf32>
    %77 = math.rsqrt %76 : vector<16x1xf32>
    %78 = vector.broadcast %77 : vector<16x1xf32> to vector<16x32xf32>
    %79 = arith.mulf %74, %78 : vector<16x32xf32>
    %80 = vector.broadcast %60 : vector<1x32xf32> to vector<16x32xf32>
    %81 = arith.mulf %79, %80 : vector<16x32xf32>
    %82 = vector.broadcast %61 : vector<1x32xf32> to vector<16x32xf32>
    %83 = arith.addf %81, %82 : vector<16x32xf32>
    %c0_32 = arith.constant 0 : index
    %c0_33 = arith.constant 0 : index
    %84 = vector.load %arg8[%c0_32, %c0_33] : memref<32x64xf32, #tpu.memory_space<vmem>>, vector<32x64xf32>
    %cst_34 = arith.constant dense<0.000000e+00> : vector<16x64xf32>
    %85 = tpu.matmul %83, %84, %cst_34 {dimension_numbers = #tpu.dot_dimension_numbers<[1], [0], [0], [1], [0, 0, 1, 1], [], []>} : vector<16x32xf32>, vector<32x64xf32>, vector<16x64xf32> -> vector<16x64xf32>
    %c0_35 = arith.constant 0 : index
    %c0_36 = arith.constant 0 : index
    %86 = vector.load %arg9[%c0_35, %c0_36] : memref<1x64xf32, #tpu.memory_space<vmem>>, vector<1x64xf32>
    %87 = vector.broadcast %86 : vector<1x64xf32> to vector<16x64xf32>
    %88 = arith.addf %85, %87 : vector<16x64xf32>
    %cst_37 = arith.constant 5.000000e-01 : f32
    %89 = vector.broadcast %cst_37 : f32 to vector<16x64xf32>
    %90 = arith.mulf %89, %88 : vector<16x64xf32>
    %cst_38 = arith.constant 4.471500e-02 : f32
    %91 = vector.broadcast %cst_38 : f32 to vector<16x64xf32>
    %92 = arith.mulf %91, %88 : vector<16x64xf32>
    %93 = arith.mulf %92, %88 : vector<16x64xf32>
    %94 = arith.mulf %93, %88 : vector<16x64xf32>
    %95 = arith.addf %88, %94 : vector<16x64xf32>
    %cst_39 = arith.constant 0.797884583 : f32
    %96 = vector.broadcast %cst_39 : f32 to vector<16x64xf32>
    %97 = arith.mulf %96, %95 : vector<16x64xf32>
    %98 = math.tanh %97 : vector<16x64xf32>
    %cst_40 = arith.constant 1.000000e+00 : f32
    %99 = vector.broadcast %cst_40 : f32 to vector<16x64xf32>
    %100 = arith.addf %99, %98 : vector<16x64xf32>
    %101 = arith.mulf %90, %100 : vector<16x64xf32>
    %c0_41 = arith.constant 0 : index
    %c0_42 = arith.constant 0 : index
    %102 = vector.load %arg10[%c0_41, %c0_42] : memref<64x32xf32, #tpu.memory_space<vmem>>, vector<64x32xf32>
    %cst_43 = arith.constant dense<0.000000e+00> : vector<16x32xf32>
    %103 = tpu.matmul %101, %102, %cst_43 {dimension_numbers = #tpu.dot_dimension_numbers<[1], [0], [0], [1], [0, 0, 1, 1], [], []>} : vector<16x64xf32>, vector<64x32xf32>, vector<16x32xf32> -> vector<16x32xf32>
    %c0_44 = arith.constant 0 : index
    %c0_45 = arith.constant 0 : index
    %104 = vector.load %arg11[%c0_44, %c0_45] : memref<1x32xf32, #tpu.memory_space<vmem>>, vector<1x32xf32>
    %105 = vector.broadcast %104 : vector<1x32xf32> to vector<16x32xf32>
    %106 = arith.addf %103, %105 : vector<16x32xf32>
    %107 = arith.addf %106, %83 : vector<16x32xf32>
    %c0_46 = arith.constant 0 : index
    %c0_47 = arith.constant 0 : index
    %108 = vector.load %arg12[%c0_46, %c0_47] : memref<1x32xf32, #tpu.memory_space<vmem>>, vector<1x32xf32>
    %c0_48 = arith.constant 0 : index
    %c0_49 = arith.constant 0 : index
    %109 = vector.load %arg13[%c0_48, %c0_49] : memref<1x32xf32, #tpu.memory_space<vmem>>, vector<1x32xf32>
    %cst_50 = arith.constant dense<0.000000e+00> : vector<16xf32>
    %110 = vector.multi_reduction <add>, %107, %cst_50 [1] : vector<16x32xf32> to vector<16xf32>
    %111 = vector.shape_cast %110 : vector<16xf32> to vector<16x1xf32>
    %cst_51 = arith.constant 3.200000e+01 : f32
    %112 = vector.broadcast %cst_51 : f32 to vector<16x1xf32>
    %113 = arith.divf %111, %112 : vector<16x1xf32>
    %114 = vector.broadcast %113 : vector<16x1xf32> to vector<16x32xf32>
    %115 = arith.subf %107, %114 : vector<16x32xf32>
    %116 = arith.mulf %115, %115 : vector<16x32xf32>
    %cst_52 = arith.constant dense<0.000000e+00> : vector<16xf32>
    %117 = vector.multi_reduction <add>, %116, %cst_52 [1] : vector<16x32xf32> to vector<16xf32>
    %118 = vector.shape_cast %117 : vector<16xf32> to vector<16x1xf32>
    %cst_53 = arith.constant 3.200000e+01 : f32
    %119 = vector.broadcast %cst_53 : f32 to vector<16x1xf32>
    %120 = arith.divf %118, %119 : vector<16x1xf32>
    %121 = vector.broadcast %113 : vector<16x1xf32> to vector<16x32xf32>
    %122 = arith.subf %107, %121 : vector<16x32xf32>
    %cst_54 = arith.constant 9.99999996E-13 : f32
    %123 = vector.broadcast %cst_54 : f32 to vector<16x1xf32>
    %124 = arith.addf %120, %123 : vector<16x1xf32>
    %125 = math.rsqrt %124 : vector<16x1xf32>
    %126 = vector.broadcast %125 : vector<16x1xf32> to vector<16x32xf32>
    %127 = arith.mulf %122, %126 : vector<16x32xf32>
    %128 = vector.broadcast %108 : vector<1x32xf32> to vector<16x32xf32>
    %129 = arith.mulf %127, %128 : vector<16x32xf32>
    %130 = vector.broadcast %109 : vector<1x32xf32> to vector<16x32xf32>
    %131 = arith.addf %129, %130 : vector<16x32xf32>
    %c0_55 = arith.constant 0 : index
    %c0_56 = arith.constant 0 : index
    %132 = vector.load %arg14[%c0_55, %c0_56] : memref<16x32xf32, #tpu.memory_space<vmem>>, vector<16x32xf32>
    tpu.vector_store %arg14[%c0_55, %c0_56], %131 {strides = array<i32>} : memref<16x32xf32, #tpu.memory_space<vmem>>, vector<16x32xf32>,
    return
  }
}

module attributes {stable_mosaic.version = 11 : i64} {
  func.func @_embed_kernel(%arg0: memref<4x16x32xf32, #tpu.memory_space<vmem>>, %arg1: memref<32x96xf32, #tpu.memory_space<vmem>>, %arg2: memref<32x96xf32, #tpu.memory_space<vmem>>, %arg3: memref<1x96xf32, #tpu.memory_space<vmem>>, %arg4: memref<1x96xf32, #tpu.memory_space<vmem>>, %arg5: memref<4x16x32xf32, #tpu.memory_space<vmem>>, %arg6: memref<32x96xf32, #tpu.memory_space<vmem>>, %arg7: memref<32x96xf32, #tpu.memory_space<vmem>>, %arg8: memref<1x96xf32, #tpu.memory_space<vmem>>, %arg9: memref<1x96xf32, #tpu.memory_space<vmem>>, %arg10: memref<16x32xf32, #tpu.memory_space<vmem>>, %arg11: memref<1x32xf32, #tpu.memory_space<vmem>>, %arg12: memref<1x32xf32, #tpu.memory_space<vmem>>, %arg13: memref<16x32xf32, #tpu.memory_space<vmem>>, %arg14: memref<4x16x96xf32, #tpu.memory_space<vmem>>, %arg15: memref<4x16x96xf32, #tpu.memory_space<vmem>>) attributes {dimension_semantics = [], scalar_prefetch = 0 : i64, scratch_operands = 2 : i64, tpu.core_type = #tpu.core_type<tc>} {
    %c0 = arith.constant 0 : index
    %c0_0 = arith.constant 0 : index
    %c0_1 = arith.constant 0 : index
    %0 = vector.load %arg0[%c0, %c0_0, %c0_1] : memref<4x16x32xf32, #tpu.memory_space<vmem>>, vector<4x16x32xf32>
    %1 = vector.shape_cast %0 : vector<4x16x32xf32> to vector<64x32xf32>
    %c0_2 = arith.constant 0 : index
    %c0_3 = arith.constant 0 : index
    %2 = vector.load %arg1[%c0_2, %c0_3] : memref<32x96xf32, #tpu.memory_space<vmem>>, vector<32x96xf32>
    %cst = arith.constant dense<0.000000e+00> : vector<64x96xf32>
    %3 = tpu.matmul %1, %2, %cst {dimension_numbers = #tpu.dot_dimension_numbers<[1], [0], [0], [1], [0, 0, 1, 1], [], []>} : vector<64x32xf32>, vector<32x96xf32>, vector<64x96xf32> -> vector<64x96xf32>
    %c0_4 = arith.constant 0 : index
    %c0_5 = arith.constant 0 : index
    %4 = vector.load %arg3[%c0_4, %c0_5] : memref<1x96xf32, #tpu.memory_space<vmem>>, vector<1x96xf32>
    %5 = vector.broadcast %4 : vector<1x96xf32> to vector<64x96xf32>
    %6 = arith.addf %3, %5 : vector<64x96xf32>
    %7 = vector.shape_cast %6 : vector<64x96xf32> to vector<4x16x96xf32>
    %c0_6 = arith.constant 0 : index
    %c0_7 = arith.constant 0 : index
    %c0_8 = arith.constant 0 : index
    %8 = vector.load %arg14[%c0_6, %c0_7, %c0_8] : memref<4x16x96xf32, #tpu.memory_space<vmem>>, vector<4x16x96xf32>
    tpu.vector_store %arg14[%c0_6, %c0_7, %c0_8], %7 {strides = array<i32>} : memref<4x16x96xf32, #tpu.memory_space<vmem>>, vector<4x16x96xf32>,
    %cst_9 = arith.constant 0.000000e+00 : f32
    %9 = vector.broadcast %cst_9 : f32 to vector<16x32xf32>
    %c0_i32 = arith.constant 0 : i32
    %10 = arith.index_cast %c0_i32 : i32 to index
    %c0_10 = arith.constant 0 : index
    %c0_11 = arith.constant 0 : index
    %11 = vector.load %arg14[%10, %c0_10, %c0_11] : memref<4x16x96xf32, #tpu.memory_space<vmem>>, vector<1x16x96xf32>
    %12 = vector.shape_cast %11 : vector<1x16x96xf32> to vector<16x96xf32>
    %c0_12 = arith.constant 0 : index
    %c0_13 = arith.constant 0 : index
    %13 = vector.load %arg2[%c0_12, %c0_13] : memref<32x96xf32, #tpu.memory_space<vmem>>, vector<32x96xf32>
    %cst_14 = arith.constant dense<0.000000e+00> : vector<16x96xf32>
    %14 = tpu.matmul %9, %13, %cst_14 {dimension_numbers = #tpu.dot_dimension_numbers<[1], [0], [0], [1], [0, 0, 1, 1], [], []>} : vector<16x32xf32>, vector<32x96xf32>, vector<16x96xf32> -> vector<16x96xf32>
    %c0_15 = arith.constant 0 : index
    %c0_16 = arith.constant 0 : index
    %15 = vector.load %arg4[%c0_15, %c0_16] : memref<1x96xf32, #tpu.memory_space<vmem>>, vector<1x96xf32>
    %16 = vector.broadcast %15 : vector<1x96xf32> to vector<16x96xf32>
    %17 = arith.addf %14, %16 : vector<16x96xf32>
    %18 = vector.extract_strided_slice %12 {offsets = [0, 0], sizes = [16, 32], strides = [1, 1]} : vector<16x96xf32> to vector<16x32xf32>
    %19 = vector.extract_strided_slice %17 {offsets = [0, 0], sizes = [16, 32], strides = [1, 1]} : vector<16x96xf32> to vector<16x32xf32>
    %20 = arith.addf %18, %19 : vector<16x32xf32>
    %21 = arith.negf %20 : vector<16x32xf32>
    %22 = math.exp %21 : vector<16x32xf32>
    %cst_17 = arith.constant 1.000000e+00 : f32
    %23 = vector.broadcast %cst_17 : f32 to vector<16x32xf32>
    %24 = arith.addf %23, %22 : vector<16x32xf32>
    %25 = arith.divf %23, %24 : vector<16x32xf32>
    %26 = vector.extract_strided_slice %12 {offsets = [0, 32], sizes = [16, 32], strides = [1, 1]} : vector<16x96xf32> to vector<16x32xf32>
    %27 = vector.extract_strided_slice %17 {offsets = [0, 32], sizes = [16, 32], strides = [1, 1]} : vector<16x96xf32> to vector<16x32xf32>
    %28 = arith.addf %26, %27 : vector<16x32xf32>
    %29 = arith.negf %28 : vector<16x32xf32>
    %30 = math.exp %29 : vector<16x32xf32>
    %cst_18 = arith.constant 1.000000e+00 : f32
    %31 = vector.broadcast %cst_18 : f32 to vector<16x32xf32>
    %32 = arith.addf %31, %30 : vector<16x32xf32>
    %33 = arith.divf %31, %32 : vector<16x32xf32>
    %34 = vector.extract_strided_slice %12 {offsets = [0, 64], sizes = [16, 32], strides = [1, 1]} : vector<16x96xf32> to vector<16x32xf32>
    %35 = vector.extract_strided_slice %17 {offsets = [0, 64], sizes = [16, 32], strides = [1, 1]} : vector<16x96xf32> to vector<16x32xf32>
    %36 = arith.mulf %25, %35 : vector<16x32xf32>
    %37 = arith.addf %34, %36 : vector<16x32xf32>
    %38 = math.tanh %37 : vector<16x32xf32>
    %cst_19 = arith.constant 1.000000e+00 : f32
    %39 = vector.broadcast %cst_19 : f32 to vector<16x32xf32>
    %40 = arith.subf %39, %33 : vector<16x32xf32>
    %41 = arith.mulf %40, %38 : vector<16x32xf32>
    %42 = arith.mulf %33, %9 : vector<16x32xf32>
    %43 = arith.addf %41, %42 : vector<16x32xf32>
    %c1_i32 = arith.constant 1 : i32
    %44 = arith.index_cast %c1_i32 : i32 to index
    %c0_20 = arith.constant 0 : index
    %c0_21 = arith.constant 0 : index
    %45 = vector.load %arg14[%44, %c0_20, %c0_21] : memref<4x16x96xf32, #tpu.memory_space<vmem>>, vector<1x16x96xf32>
    %46 = vector.shape_cast %45 : vector<1x16x96xf32> to vector<16x96xf32>
    %c0_22 = arith.constant 0 : index
    %c0_23 = arith.constant 0 : index
    %47 = vector.load %arg2[%c0_22, %c0_23] : memref<32x96xf32, #tpu.memory_space<vmem>>, vector<32x96xf32>
    %cst_24 = arith.constant dense<0.000000e+00> : vector<16x96xf32>
    %48 = tpu.matmul %43, %47, %cst_24 {dimension_numbers = #tpu.dot_dimension_numbers<[1], [0], [0], [1], [0, 0, 1, 1], [], []>} : vector<16x32xf32>, vector<32x96xf32>, vector<16x96xf32> -> vector<16x96xf32>
    %c0_25 = arith.constant 0 : index
    %c0_26 = arith.constant 0 : index
    %49 = vector.load %arg4[%c0_25, %c0_26] : memref<1x96xf32, #tpu.memory_space<vmem>>, vector<1x96xf32>
    %50 = vector.broadcast %49 : vector<1x96xf32> to vector<16x96xf32>
    %51 = arith.addf %48, %50 : vector<16x96xf32>
    %52 = vector.extract_strided_slice %46 {offsets = [0, 0], sizes = [16, 32], strides = [1, 1]} : vector<16x96xf32> to vector<16x32xf32>
    %53 = vector.extract_strided_slice %51 {offsets = [0, 0], sizes = [16, 32], strides = [1, 1]} : vector<16x96xf32> to vector<16x32xf32>
    %54 = arith.addf %52, %53 : vector<16x32xf32>
    %55 = arith.negf %54 : vector<16x32xf32>
    %56 = math.exp %55 : vector<16x32xf32>
    %cst_27 = arith.constant 1.000000e+00 : f32
    %57 = vector.broadcast %cst_27 : f32 to vector<16x32xf32>
    %58 = arith.addf %57, %56 : vector<16x32xf32>
    %59 = arith.divf %57, %58 : vector<16x32xf32>
    %60 = vector.extract_strided_slice %46 {offsets = [0, 32], sizes = [16, 32], strides = [1, 1]} : vector<16x96xf32> to vector<16x32xf32>
    %61 = vector.extract_strided_slice %51 {offsets = [0, 32], sizes = [16, 32], strides = [1, 1]} : vector<16x96xf32> to vector<16x32xf32>
    %62 = arith.addf %60, %61 : vector<16x32xf32>
    %63 = arith.negf %62 : vector<16x32xf32>
    %64 = math.exp %63 : vector<16x32xf32>
    %cst_28 = arith.constant 1.000000e+00 : f32
    %65 = vector.broadcast %cst_28 : f32 to vector<16x32xf32>
    %66 = arith.addf %65, %64 : vector<16x32xf32>
    %67 = arith.divf %65, %66 : vector<16x32xf32>
    %68 = vector.extract_strided_slice %46 {offsets = [0, 64], sizes = [16, 32], strides = [1, 1]} : vector<16x96xf32> to vector<16x32xf32>
    %69 = vector.extract_strided_slice %51 {offsets = [0, 64], sizes = [16, 32], strides = [1, 1]} : vector<16x96xf32> to vector<16x32xf32>
    %70 = arith.mulf %59, %69 : vector<16x32xf32>
    %71 = arith.addf %68, %70 : vector<16x32xf32>
    %72 = math.tanh %71 : vector<16x32xf32>
    %cst_29 = arith.constant 1.000000e+00 : f32
    %73 = vector.broadcast %cst_29 : f32 to vector<16x32xf32>
    %74 = arith.subf %73, %67 : vector<16x32xf32>
    %75 = arith.mulf %74, %72 : vector<16x32xf32>
    %76 = arith.mulf %67, %43 : vector<16x32xf32>
    %77 = arith.addf %75, %76 : vector<16x32xf32>
    %c2_i32 = arith.constant 2 : i32
    %78 = arith.index_cast %c2_i32 : i32 to index
    %c0_30 = arith.constant 0 : index
    %c0_31 = arith.constant 0 : index
    %79 = vector.load %arg14[%78, %c0_30, %c0_31] : memref<4x16x96xf32, #tpu.memory_space<vmem>>, vector<1x16x96xf32>
    %80 = vector.shape_cast %79 : vector<1x16x96xf32> to vector<16x96xf32>
    %c0_32 = arith.constant 0 : index
    %c0_33 = arith.constant 0 : index
    %81 = vector.load %arg2[%c0_32, %c0_33] : memref<32x96xf32, #tpu.memory_space<vmem>>, vector<32x96xf32>
    %cst_34 = arith.constant dense<0.000000e+00> : vector<16x96xf32>
    %82 = tpu.matmul %77, %81, %cst_34 {dimension_numbers = #tpu.dot_dimension_numbers<[1], [0], [0], [1], [0, 0, 1, 1], [], []>} : vector<16x32xf32>, vector<32x96xf32>, vector<16x96xf32> -> vector<16x96xf32>
    %c0_35 = arith.constant 0 : index
    %c0_36 = arith.constant 0 : index
    %83 = vector.load %arg4[%c0_35, %c0_36] : memref<1x96xf32, #tpu.memory_space<vmem>>, vector<1x96xf32>
    %84 = vector.broadcast %83 : vector<1x96xf32> to vector<16x96xf32>
    %85 = arith.addf %82, %84 : vector<16x96xf32>
    %86 = vector.extract_strided_slice %80 {offsets = [0, 0], sizes = [16, 32], strides = [1, 1]} : vector<16x96xf32> to vector<16x32xf32>
    %87 = vector.extract_strided_slice %85 {offsets = [0, 0], sizes = [16, 32], strides = [1, 1]} : vector<16x96xf32> to vector<16x32xf32>
    %88 = arith.addf %86, %87 : vector<16x32xf32>
    %89 = arith.negf %88 : vector<16x32xf32>
    %90 = math.exp %89 : vector<16x32xf32>
    %cst_37 = arith.constant 1.000000e+00 : f32
    %91 = vector.broadcast %cst_37 : f32 to vector<16x32xf32>
    %92 = arith.addf %91, %90 : vector<16x32xf32>
    %93 = arith.divf %91, %92 : vector<16x32xf32>
    %94 = vector.extract_strided_slice %80 {offsets = [0, 32], sizes = [16, 32], strides = [1, 1]} : vector<16x96xf32> to vector<16x32xf32>
    %95 = vector.extract_strided_slice %85 {offsets = [0, 32], sizes = [16, 32], strides = [1, 1]} : vector<16x96xf32> to vector<16x32xf32>
    %96 = arith.addf %94, %95 : vector<16x32xf32>
    %97 = arith.negf %96 : vector<16x32xf32>
    %98 = math.exp %97 : vector<16x32xf32>
    %cst_38 = arith.constant 1.000000e+00 : f32
    %99 = vector.broadcast %cst_38 : f32 to vector<16x32xf32>
    %100 = arith.addf %99, %98 : vector<16x32xf32>
    %101 = arith.divf %99, %100 : vector<16x32xf32>
    %102 = vector.extract_strided_slice %80 {offsets = [0, 64], sizes = [16, 32], strides = [1, 1]} : vector<16x96xf32> to vector<16x32xf32>
    %103 = vector.extract_strided_slice %85 {offsets = [0, 64], sizes = [16, 32], strides = [1, 1]} : vector<16x96xf32> to vector<16x32xf32>
    %104 = arith.mulf %93, %103 : vector<16x32xf32>
    %105 = arith.addf %102, %104 : vector<16x32xf32>
    %106 = math.tanh %105 : vector<16x32xf32>
    %cst_39 = arith.constant 1.000000e+00 : f32
    %107 = vector.broadcast %cst_39 : f32 to vector<16x32xf32>
    %108 = arith.subf %107, %101 : vector<16x32xf32>
    %109 = arith.mulf %108, %106 : vector<16x32xf32>
    %110 = arith.mulf %101, %77 : vector<16x32xf32>
    %111 = arith.addf %109, %110 : vector<16x32xf32>
    %c3_i32 = arith.constant 3 : i32
    %112 = arith.index_cast %c3_i32 : i32 to index
    %c0_40 = arith.constant 0 : index
    %c0_41 = arith.constant 0 : index
    %113 = vector.load %arg14[%112, %c0_40, %c0_41] : memref<4x16x96xf32, #tpu.memory_space<vmem>>, vector<1x16x96xf32>
    %114 = vector.shape_cast %113 : vector<1x16x96xf32> to vector<16x96xf32>
    %c0_42 = arith.constant 0 : index
    %c0_43 = arith.constant 0 : index
    %115 = vector.load %arg2[%c0_42, %c0_43] : memref<32x96xf32, #tpu.memory_space<vmem>>, vector<32x96xf32>
    %cst_44 = arith.constant dense<0.000000e+00> : vector<16x96xf32>
    %116 = tpu.matmul %111, %115, %cst_44 {dimension_numbers = #tpu.dot_dimension_numbers<[1], [0], [0], [1], [0, 0, 1, 1], [], []>} : vector<16x32xf32>, vector<32x96xf32>, vector<16x96xf32> -> vector<16x96xf32>
    %c0_45 = arith.constant 0 : index
    %c0_46 = arith.constant 0 : index
    %117 = vector.load %arg4[%c0_45, %c0_46] : memref<1x96xf32, #tpu.memory_space<vmem>>, vector<1x96xf32>
    %118 = vector.broadcast %117 : vector<1x96xf32> to vector<16x96xf32>
    %119 = arith.addf %116, %118 : vector<16x96xf32>
    %120 = vector.extract_strided_slice %114 {offsets = [0, 0], sizes = [16, 32], strides = [1, 1]} : vector<16x96xf32> to vector<16x32xf32>
    %121 = vector.extract_strided_slice %119 {offsets = [0, 0], sizes = [16, 32], strides = [1, 1]} : vector<16x96xf32> to vector<16x32xf32>
    %122 = arith.addf %120, %121 : vector<16x32xf32>
    %123 = arith.negf %122 : vector<16x32xf32>
    %124 = math.exp %123 : vector<16x32xf32>
    %cst_47 = arith.constant 1.000000e+00 : f32
    %125 = vector.broadcast %cst_47 : f32 to vector<16x32xf32>
    %126 = arith.addf %125, %124 : vector<16x32xf32>
    %127 = arith.divf %125, %126 : vector<16x32xf32>
    %128 = vector.extract_strided_slice %114 {offsets = [0, 32], sizes = [16, 32], strides = [1, 1]} : vector<16x96xf32> to vector<16x32xf32>
    %129 = vector.extract_strided_slice %119 {offsets = [0, 32], sizes = [16, 32], strides = [1, 1]} : vector<16x96xf32> to vector<16x32xf32>
    %130 = arith.addf %128, %129 : vector<16x32xf32>
    %131 = arith.negf %130 : vector<16x32xf32>
    %132 = math.exp %131 : vector<16x32xf32>
    %cst_48 = arith.constant 1.000000e+00 : f32
    %133 = vector.broadcast %cst_48 : f32 to vector<16x32xf32>
    %134 = arith.addf %133, %132 : vector<16x32xf32>
    %135 = arith.divf %133, %134 : vector<16x32xf32>
    %136 = vector.extract_strided_slice %114 {offsets = [0, 64], sizes = [16, 32], strides = [1, 1]} : vector<16x96xf32> to vector<16x32xf32>
    %137 = vector.extract_strided_slice %119 {offsets = [0, 64], sizes = [16, 32], strides = [1, 1]} : vector<16x96xf32> to vector<16x32xf32>
    %138 = arith.mulf %127, %137 : vector<16x32xf32>
    %139 = arith.addf %136, %138 : vector<16x32xf32>
    %140 = math.tanh %139 : vector<16x32xf32>
    %cst_49 = arith.constant 1.000000e+00 : f32
    %141 = vector.broadcast %cst_49 : f32 to vector<16x32xf32>
    %142 = arith.subf %141, %135 : vector<16x32xf32>
    %143 = arith.mulf %142, %140 : vector<16x32xf32>
    %144 = arith.mulf %135, %111 : vector<16x32xf32>
    %145 = arith.addf %143, %144 : vector<16x32xf32>
    %c4_i32 = arith.constant 4 : i32
    %c0_50 = arith.constant 0 : index
    %c0_51 = arith.constant 0 : index
    %c0_52 = arith.constant 0 : index
    %146 = vector.load %arg5[%c0_50, %c0_51, %c0_52] : memref<4x16x32xf32, #tpu.memory_space<vmem>>, vector<4x16x32xf32>
    %147 = vector.shape_cast %146 : vector<4x16x32xf32> to vector<64x32xf32>
    %c0_53 = arith.constant 0 : index
    %c0_54 = arith.constant 0 : index
    %148 = vector.load %arg6[%c0_53, %c0_54] : memref<32x96xf32, #tpu.memory_space<vmem>>, vector<32x96xf32>
    %cst_55 = arith.constant dense<0.000000e+00> : vector<64x96xf32>
    %149 = tpu.matmul %147, %148, %cst_55 {dimension_numbers = #tpu.dot_dimension_numbers<[1], [0], [0], [1], [0, 0, 1, 1], [], []>} : vector<64x32xf32>, vector<32x96xf32>, vector<64x96xf32> -> vector<64x96xf32>
    %c0_56 = arith.constant 0 : index
    %c0_57 = arith.constant 0 : index
    %150 = vector.load %arg8[%c0_56, %c0_57] : memref<1x96xf32, #tpu.memory_space<vmem>>, vector<1x96xf32>
    %151 = vector.broadcast %150 : vector<1x96xf32> to vector<64x96xf32>
    %152 = arith.addf %149, %151 : vector<64x96xf32>
    %153 = vector.shape_cast %152 : vector<64x96xf32> to vector<4x16x96xf32>
    %c0_58 = arith.constant 0 : index
    %c0_59 = arith.constant 0 : index
    %c0_60 = arith.constant 0 : index
    %154 = vector.load %arg15[%c0_58, %c0_59, %c0_60] : memref<4x16x96xf32, #tpu.memory_space<vmem>>, vector<4x16x96xf32>
    tpu.vector_store %arg15[%c0_58, %c0_59, %c0_60], %153 {strides = array<i32>} : memref<4x16x96xf32, #tpu.memory_space<vmem>>, vector<4x16x96xf32>,
    %cst_61 = arith.constant 0.000000e+00 : f32
    %155 = vector.broadcast %cst_61 : f32 to vector<16x32xf32>
    %c0_i32_62 = arith.constant 0 : i32
    %156 = arith.index_cast %c0_i32_62 : i32 to index
    %c0_63 = arith.constant 0 : index
    %c0_64 = arith.constant 0 : index
    %157 = vector.load %arg15[%156, %c0_63, %c0_64] : memref<4x16x96xf32, #tpu.memory_space<vmem>>, vector<1x16x96xf32>
    %158 = vector.shape_cast %157 : vector<1x16x96xf32> to vector<16x96xf32>
    %c0_65 = arith.constant 0 : index
    %c0_66 = arith.constant 0 : index
    %159 = vector.load %arg7[%c0_65, %c0_66] : memref<32x96xf32, #tpu.memory_space<vmem>>, vector<32x96xf32>
    %cst_67 = arith.constant dense<0.000000e+00> : vector<16x96xf32>
    %160 = tpu.matmul %155, %159, %cst_67 {dimension_numbers = #tpu.dot_dimension_numbers<[1], [0], [0], [1], [0, 0, 1, 1], [], []>} : vector<16x32xf32>, vector<32x96xf32>, vector<16x96xf32> -> vector<16x96xf32>
    %c0_68 = arith.constant 0 : index
    %c0_69 = arith.constant 0 : index
    %161 = vector.load %arg9[%c0_68, %c0_69] : memref<1x96xf32, #tpu.memory_space<vmem>>, vector<1x96xf32>
    %162 = vector.broadcast %161 : vector<1x96xf32> to vector<16x96xf32>
    %163 = arith.addf %160, %162 : vector<16x96xf32>
    %164 = vector.extract_strided_slice %158 {offsets = [0, 0], sizes = [16, 32], strides = [1, 1]} : vector<16x96xf32> to vector<16x32xf32>
    %165 = vector.extract_strided_slice %163 {offsets = [0, 0], sizes = [16, 32], strides = [1, 1]} : vector<16x96xf32> to vector<16x32xf32>
    %166 = arith.addf %164, %165 : vector<16x32xf32>
    %167 = arith.negf %166 : vector<16x32xf32>
    %168 = math.exp %167 : vector<16x32xf32>
    %cst_70 = arith.constant 1.000000e+00 : f32
    %169 = vector.broadcast %cst_70 : f32 to vector<16x32xf32>
    %170 = arith.addf %169, %168 : vector<16x32xf32>
    %171 = arith.divf %169, %170 : vector<16x32xf32>
    %172 = vector.extract_strided_slice %158 {offsets = [0, 32], sizes = [16, 32], strides = [1, 1]} : vector<16x96xf32> to vector<16x32xf32>
    %173 = vector.extract_strided_slice %163 {offsets = [0, 32], sizes = [16, 32], strides = [1, 1]} : vector<16x96xf32> to vector<16x32xf32>
    %174 = arith.addf %172, %173 : vector<16x32xf32>
    %175 = arith.negf %174 : vector<16x32xf32>
    %176 = math.exp %175 : vector<16x32xf32>
    %cst_71 = arith.constant 1.000000e+00 : f32
    %177 = vector.broadcast %cst_71 : f32 to vector<16x32xf32>
    %178 = arith.addf %177, %176 : vector<16x32xf32>
    %179 = arith.divf %177, %178 : vector<16x32xf32>
    %180 = vector.extract_strided_slice %158 {offsets = [0, 64], sizes = [16, 32], strides = [1, 1]} : vector<16x96xf32> to vector<16x32xf32>
    %181 = vector.extract_strided_slice %163 {offsets = [0, 64], sizes = [16, 32], strides = [1, 1]} : vector<16x96xf32> to vector<16x32xf32>
    %182 = arith.mulf %171, %181 : vector<16x32xf32>
    %183 = arith.addf %180, %182 : vector<16x32xf32>
    %184 = math.tanh %183 : vector<16x32xf32>
    %cst_72 = arith.constant 1.000000e+00 : f32
    %185 = vector.broadcast %cst_72 : f32 to vector<16x32xf32>
    %186 = arith.subf %185, %179 : vector<16x32xf32>
    %187 = arith.mulf %186, %184 : vector<16x32xf32>
    %188 = arith.mulf %179, %155 : vector<16x32xf32>
    %189 = arith.addf %187, %188 : vector<16x32xf32>
    %c1_i32_73 = arith.constant 1 : i32
    %190 = arith.index_cast %c1_i32_73 : i32 to index
    %c0_74 = arith.constant 0 : index
    %c0_75 = arith.constant 0 : index
    %191 = vector.load %arg15[%190, %c0_74, %c0_75] : memref<4x16x96xf32, #tpu.memory_space<vmem>>, vector<1x16x96xf32>
    %192 = vector.shape_cast %191 : vector<1x16x96xf32> to vector<16x96xf32>
    %c0_76 = arith.constant 0 : index
    %c0_77 = arith.constant 0 : index
    %193 = vector.load %arg7[%c0_76, %c0_77] : memref<32x96xf32, #tpu.memory_space<vmem>>, vector<32x96xf32>
    %cst_78 = arith.constant dense<0.000000e+00> : vector<16x96xf32>
    %194 = tpu.matmul %189, %193, %cst_78 {dimension_numbers = #tpu.dot_dimension_numbers<[1], [0], [0], [1], [0, 0, 1, 1], [], []>} : vector<16x32xf32>, vector<32x96xf32>, vector<16x96xf32> -> vector<16x96xf32>
    %c0_79 = arith.constant 0 : index
    %c0_80 = arith.constant 0 : index
    %195 = vector.load %arg9[%c0_79, %c0_80] : memref<1x96xf32, #tpu.memory_space<vmem>>, vector<1x96xf32>
    %196 = vector.broadcast %195 : vector<1x96xf32> to vector<16x96xf32>
    %197 = arith.addf %194, %196 : vector<16x96xf32>
    %198 = vector.extract_strided_slice %192 {offsets = [0, 0], sizes = [16, 32], strides = [1, 1]} : vector<16x96xf32> to vector<16x32xf32>
    %199 = vector.extract_strided_slice %197 {offsets = [0, 0], sizes = [16, 32], strides = [1, 1]} : vector<16x96xf32> to vector<16x32xf32>
    %200 = arith.addf %198, %199 : vector<16x32xf32>
    %201 = arith.negf %200 : vector<16x32xf32>
    %202 = math.exp %201 : vector<16x32xf32>
    %cst_81 = arith.constant 1.000000e+00 : f32
    %203 = vector.broadcast %cst_81 : f32 to vector<16x32xf32>
    %204 = arith.addf %203, %202 : vector<16x32xf32>
    %205 = arith.divf %203, %204 : vector<16x32xf32>
    %206 = vector.extract_strided_slice %192 {offsets = [0, 32], sizes = [16, 32], strides = [1, 1]} : vector<16x96xf32> to vector<16x32xf32>
    %207 = vector.extract_strided_slice %197 {offsets = [0, 32], sizes = [16, 32], strides = [1, 1]} : vector<16x96xf32> to vector<16x32xf32>
    %208 = arith.addf %206, %207 : vector<16x32xf32>
    %209 = arith.negf %208 : vector<16x32xf32>
    %210 = math.exp %209 : vector<16x32xf32>
    %cst_82 = arith.constant 1.000000e+00 : f32
    %211 = vector.broadcast %cst_82 : f32 to vector<16x32xf32>
    %212 = arith.addf %211, %210 : vector<16x32xf32>
    %213 = arith.divf %211, %212 : vector<16x32xf32>
    %214 = vector.extract_strided_slice %192 {offsets = [0, 64], sizes = [16, 32], strides = [1, 1]} : vector<16x96xf32> to vector<16x32xf32>
    %215 = vector.extract_strided_slice %197 {offsets = [0, 64], sizes = [16, 32], strides = [1, 1]} : vector<16x96xf32> to vector<16x32xf32>
    %216 = arith.mulf %205, %215 : vector<16x32xf32>
    %217 = arith.addf %214, %216 : vector<16x32xf32>
    %218 = math.tanh %217 : vector<16x32xf32>
    %cst_83 = arith.constant 1.000000e+00 : f32
    %219 = vector.broadcast %cst_83 : f32 to vector<16x32xf32>
    %220 = arith.subf %219, %213 : vector<16x32xf32>
    %221 = arith.mulf %220, %218 : vector<16x32xf32>
    %222 = arith.mulf %213, %189 : vector<16x32xf32>
    %223 = arith.addf %221, %222 : vector<16x32xf32>
    %c2_i32_84 = arith.constant 2 : i32
    %224 = arith.index_cast %c2_i32_84 : i32 to index
    %c0_85 = arith.constant 0 : index
    %c0_86 = arith.constant 0 : index
    %225 = vector.load %arg15[%224, %c0_85, %c0_86] : memref<4x16x96xf32, #tpu.memory_space<vmem>>, vector<1x16x96xf32>
    %226 = vector.shape_cast %225 : vector<1x16x96xf32> to vector<16x96xf32>
    %c0_87 = arith.constant 0 : index
    %c0_88 = arith.constant 0 : index
    %227 = vector.load %arg7[%c0_87, %c0_88] : memref<32x96xf32, #tpu.memory_space<vmem>>, vector<32x96xf32>
    %cst_89 = arith.constant dense<0.000000e+00> : vector<16x96xf32>
    %228 = tpu.matmul %223, %227, %cst_89 {dimension_numbers = #tpu.dot_dimension_numbers<[1], [0], [0], [1], [0, 0, 1, 1], [], []>} : vector<16x32xf32>, vector<32x96xf32>, vector<16x96xf32> -> vector<16x96xf32>
    %c0_90 = arith.constant 0 : index
    %c0_91 = arith.constant 0 : index
    %229 = vector.load %arg9[%c0_90, %c0_91] : memref<1x96xf32, #tpu.memory_space<vmem>>, vector<1x96xf32>
    %230 = vector.broadcast %229 : vector<1x96xf32> to vector<16x96xf32>
    %231 = arith.addf %228, %230 : vector<16x96xf32>
    %232 = vector.extract_strided_slice %226 {offsets = [0, 0], sizes = [16, 32], strides = [1, 1]} : vector<16x96xf32> to vector<16x32xf32>
    %233 = vector.extract_strided_slice %231 {offsets = [0, 0], sizes = [16, 32], strides = [1, 1]} : vector<16x96xf32> to vector<16x32xf32>
    %234 = arith.addf %232, %233 : vector<16x32xf32>
    %235 = arith.negf %234 : vector<16x32xf32>
    %236 = math.exp %235 : vector<16x32xf32>
    %cst_92 = arith.constant 1.000000e+00 : f32
    %237 = vector.broadcast %cst_92 : f32 to vector<16x32xf32>
    %238 = arith.addf %237, %236 : vector<16x32xf32>
    %239 = arith.divf %237, %238 : vector<16x32xf32>
    %240 = vector.extract_strided_slice %226 {offsets = [0, 32], sizes = [16, 32], strides = [1, 1]} : vector<16x96xf32> to vector<16x32xf32>
    %241 = vector.extract_strided_slice %231 {offsets = [0, 32], sizes = [16, 32], strides = [1, 1]} : vector<16x96xf32> to vector<16x32xf32>
    %242 = arith.addf %240, %241 : vector<16x32xf32>
    %243 = arith.negf %242 : vector<16x32xf32>
    %244 = math.exp %243 : vector<16x32xf32>
    %cst_93 = arith.constant 1.000000e+00 : f32
    %245 = vector.broadcast %cst_93 : f32 to vector<16x32xf32>
    %246 = arith.addf %245, %244 : vector<16x32xf32>
    %247 = arith.divf %245, %246 : vector<16x32xf32>
    %248 = vector.extract_strided_slice %226 {offsets = [0, 64], sizes = [16, 32], strides = [1, 1]} : vector<16x96xf32> to vector<16x32xf32>
    %249 = vector.extract_strided_slice %231 {offsets = [0, 64], sizes = [16, 32], strides = [1, 1]} : vector<16x96xf32> to vector<16x32xf32>
    %250 = arith.mulf %239, %249 : vector<16x32xf32>
    %251 = arith.addf %248, %250 : vector<16x32xf32>
    %252 = math.tanh %251 : vector<16x32xf32>
    %cst_94 = arith.constant 1.000000e+00 : f32
    %253 = vector.broadcast %cst_94 : f32 to vector<16x32xf32>
    %254 = arith.subf %253, %247 : vector<16x32xf32>
    %255 = arith.mulf %254, %252 : vector<16x32xf32>
    %256 = arith.mulf %247, %223 : vector<16x32xf32>
    %257 = arith.addf %255, %256 : vector<16x32xf32>
    %c3_i32_95 = arith.constant 3 : i32
    %258 = arith.index_cast %c3_i32_95 : i32 to index
    %c0_96 = arith.constant 0 : index
    %c0_97 = arith.constant 0 : index
    %259 = vector.load %arg15[%258, %c0_96, %c0_97] : memref<4x16x96xf32, #tpu.memory_space<vmem>>, vector<1x16x96xf32>
    %260 = vector.shape_cast %259 : vector<1x16x96xf32> to vector<16x96xf32>
    %c0_98 = arith.constant 0 : index
    %c0_99 = arith.constant 0 : index
    %261 = vector.load %arg7[%c0_98, %c0_99] : memref<32x96xf32, #tpu.memory_space<vmem>>, vector<32x96xf32>
    %cst_100 = arith.constant dense<0.000000e+00> : vector<16x96xf32>
    %262 = tpu.matmul %257, %261, %cst_100 {dimension_numbers = #tpu.dot_dimension_numbers<[1], [0], [0], [1], [0, 0, 1, 1], [], []>} : vector<16x32xf32>, vector<32x96xf32>, vector<16x96xf32> -> vector<16x96xf32>
    %c0_101 = arith.constant 0 : index
    %c0_102 = arith.constant 0 : index
    %263 = vector.load %arg9[%c0_101, %c0_102] : memref<1x96xf32, #tpu.memory_space<vmem>>, vector<1x96xf32>
    %264 = vector.broadcast %263 : vector<1x96xf32> to vector<16x96xf32>
    %265 = arith.addf %262, %264 : vector<16x96xf32>
    %266 = vector.extract_strided_slice %260 {offsets = [0, 0], sizes = [16, 32], strides = [1, 1]} : vector<16x96xf32> to vector<16x32xf32>
    %267 = vector.extract_strided_slice %265 {offsets = [0, 0], sizes = [16, 32], strides = [1, 1]} : vector<16x96xf32> to vector<16x32xf32>
    %268 = arith.addf %266, %267 : vector<16x32xf32>
    %269 = arith.negf %268 : vector<16x32xf32>
    %270 = math.exp %269 : vector<16x32xf32>
    %cst_103 = arith.constant 1.000000e+00 : f32
    %271 = vector.broadcast %cst_103 : f32 to vector<16x32xf32>
    %272 = arith.addf %271, %270 : vector<16x32xf32>
    %273 = arith.divf %271, %272 : vector<16x32xf32>
    %274 = vector.extract_strided_slice %260 {offsets = [0, 32], sizes = [16, 32], strides = [1, 1]} : vector<16x96xf32> to vector<16x32xf32>
    %275 = vector.extract_strided_slice %265 {offsets = [0, 32], sizes = [16, 32], strides = [1, 1]} : vector<16x96xf32> to vector<16x32xf32>
    %276 = arith.addf %274, %275 : vector<16x32xf32>
    %277 = arith.negf %276 : vector<16x32xf32>
    %278 = math.exp %277 : vector<16x32xf32>
    %cst_104 = arith.constant 1.000000e+00 : f32
    %279 = vector.broadcast %cst_104 : f32 to vector<16x32xf32>
    %280 = arith.addf %279, %278 : vector<16x32xf32>
    %281 = arith.divf %279, %280 : vector<16x32xf32>
    %282 = vector.extract_strided_slice %260 {offsets = [0, 64], sizes = [16, 32], strides = [1, 1]} : vector<16x96xf32> to vector<16x32xf32>
    %283 = vector.extract_strided_slice %265 {offsets = [0, 64], sizes = [16, 32], strides = [1, 1]} : vector<16x96xf32> to vector<16x32xf32>
    %284 = arith.mulf %273, %283 : vector<16x32xf32>
    %285 = arith.addf %282, %284 : vector<16x32xf32>
    %286 = math.tanh %285 : vector<16x32xf32>
    %cst_105 = arith.constant 1.000000e+00 : f32
    %287 = vector.broadcast %cst_105 : f32 to vector<16x32xf32>
    %288 = arith.subf %287, %281 : vector<16x32xf32>
    %289 = arith.mulf %288, %286 : vector<16x32xf32>
    %290 = arith.mulf %281, %257 : vector<16x32xf32>
    %291 = arith.addf %289, %290 : vector<16x32xf32>
    %c4_i32_106 = arith.constant 4 : i32
    %c0_107 = arith.constant 0 : index
    %c0_108 = arith.constant 0 : index
    %292 = vector.load %arg10[%c0_107, %c0_108] : memref<16x32xf32, #tpu.memory_space<vmem>>, vector<16x32xf32>
    %293 = arith.addf %292, %145 : vector<16x32xf32>
    %294 = arith.addf %293, %291 : vector<16x32xf32>
    %c0_109 = arith.constant 0 : index
    %c0_110 = arith.constant 0 : index
    %295 = vector.load %arg11[%c0_109, %c0_110] : memref<1x32xf32, #tpu.memory_space<vmem>>, vector<1x32xf32>
    %c0_111 = arith.constant 0 : index
    %c0_112 = arith.constant 0 : index
    %296 = vector.load %arg12[%c0_111, %c0_112] : memref<1x32xf32, #tpu.memory_space<vmem>>, vector<1x32xf32>
    %cst_113 = arith.constant dense<0.000000e+00> : vector<16xf32>
    %297 = vector.multi_reduction <add>, %294, %cst_113 [1] : vector<16x32xf32> to vector<16xf32>
    %298 = vector.shape_cast %297 : vector<16xf32> to vector<16x1xf32>
    %cst_114 = arith.constant 3.200000e+01 : f32
    %299 = vector.broadcast %cst_114 : f32 to vector<16x1xf32>
    %300 = arith.divf %298, %299 : vector<16x1xf32>
    %301 = vector.broadcast %300 : vector<16x1xf32> to vector<16x32xf32>
    %302 = arith.subf %294, %301 : vector<16x32xf32>
    %303 = arith.mulf %302, %302 : vector<16x32xf32>
    %cst_115 = arith.constant dense<0.000000e+00> : vector<16xf32>
    %304 = vector.multi_reduction <add>, %303, %cst_115 [1] : vector<16x32xf32> to vector<16xf32>
    %305 = vector.shape_cast %304 : vector<16xf32> to vector<16x1xf32>
    %cst_116 = arith.constant 3.200000e+01 : f32
    %306 = vector.broadcast %cst_116 : f32 to vector<16x1xf32>
    %307 = arith.divf %305, %306 : vector<16x1xf32>
    %308 = vector.broadcast %300 : vector<16x1xf32> to vector<16x32xf32>
    %309 = arith.subf %294, %308 : vector<16x32xf32>
    %cst_117 = arith.constant 9.99999996E-13 : f32
    %310 = vector.broadcast %cst_117 : f32 to vector<16x1xf32>
    %311 = arith.addf %307, %310 : vector<16x1xf32>
    %312 = math.rsqrt %311 : vector<16x1xf32>
    %313 = vector.broadcast %312 : vector<16x1xf32> to vector<16x32xf32>
    %314 = arith.mulf %309, %313 : vector<16x32xf32>
    %315 = vector.broadcast %295 : vector<1x32xf32> to vector<16x32xf32>
    %316 = arith.mulf %314, %315 : vector<16x32xf32>
    %317 = vector.broadcast %296 : vector<1x32xf32> to vector<16x32xf32>
    %318 = arith.addf %316, %317 : vector<16x32xf32>
    %c0_118 = arith.constant 0 : index
    %c0_119 = arith.constant 0 : index
    %319 = vector.load %arg13[%c0_118, %c0_119] : memref<16x32xf32, #tpu.memory_space<vmem>>, vector<16x32xf32>
    tpu.vector_store %arg13[%c0_118, %c0_119], %318 {strides = array<i32>} : memref<16x32xf32, #tpu.memory_space<vmem>>, vector<16x32xf32>,
    return
  }
}

module attributes {stable_mosaic.version = 11 : i64} {
  func.func @_head_kernel(%arg0: memref<8x2x32xf32, #tpu.memory_space<vmem>>, %arg1: memref<8x2x1xf32, #tpu.memory_space<vmem>>, %arg2: memref<32x128xf32, #tpu.memory_space<vmem>>, %arg3: memref<1x128xf32, #tpu.memory_space<vmem>>, %arg4: memref<16x64xf32, #tpu.memory_space<vmem>>, %arg5: memref<1x64xf32, #tpu.memory_space<vmem>>, %arg6: memref<16x64xf32, #tpu.memory_space<vmem>>, %arg7: memref<1x64xf32, #tpu.memory_space<vmem>>, %arg8: memref<16x5xf32, #tpu.memory_space<vmem>>, %arg9: memref<16x5xf32, #tpu.memory_space<vmem>>, %arg10: memref<1x5xf32, #tpu.memory_space<vmem>>, %arg11: memref<8x2x5xf32, #tpu.memory_space<vmem>>, %arg12: memref<8x2x1xf32, #tpu.memory_space<vmem>>, %arg13: memref<2x5xf32, #tpu.memory_space<vmem>>, %arg14: memref<1x5xf32, #tpu.memory_space<vmem>>, %arg15: memref<1x5xf32, #tpu.memory_space<vmem>>, %arg16: memref<5x5xf32, #tpu.memory_space<vmem>>, %arg17: memref<2x1xf32, #tpu.memory_space<vmem>>, %arg18: memref<1x1xf32, #tpu.memory_space<vmem>>, %arg19: memref<8x2x128xf32, #tpu.memory_space<vmem>>, %arg20: memref<8x2x16xf32, #tpu.memory_space<vmem>>, %arg21: memref<8x2x16xf32, #tpu.memory_space<vmem>>, %arg22: memref<8x2x5xf32, #tpu.memory_space<vmem>>) attributes {dimension_semantics = [], scalar_prefetch = 0 : i64, scratch_operands = 4 : i64, tpu.core_type = #tpu.core_type<tc>} {
    %c0 = arith.constant 0 : index
    %c0_0 = arith.constant 0 : index
    %c0_1 = arith.constant 0 : index
    %0 = vector.load %arg0[%c0, %c0_0, %c0_1] : memref<8x2x32xf32, #tpu.memory_space<vmem>>, vector<8x2x32xf32>
    %1 = vector.shape_cast %0 : vector<8x2x32xf32> to vector<16x32xf32>
    %c0_2 = arith.constant 0 : index
    %c0_3 = arith.constant 0 : index
    %2 = vector.load %arg2[%c0_2, %c0_3] : memref<32x128xf32, #tpu.memory_space<vmem>>, vector<32x128xf32>
    %cst = arith.constant dense<0.000000e+00> : vector<16x128xf32>
    %3 = tpu.matmul %1, %2, %cst {dimension_numbers = #tpu.dot_dimension_numbers<[1], [0], [0], [1], [0, 0, 1, 1], [], []>} : vector<16x32xf32>, vector<32x128xf32>, vector<16x128xf32> -> vector<16x128xf32>
    %c0_4 = arith.constant 0 : index
    %c0_5 = arith.constant 0 : index
    %4 = vector.load %arg3[%c0_4, %c0_5] : memref<1x128xf32, #tpu.memory_space<vmem>>, vector<1x128xf32>
    %5 = vector.broadcast %4 : vector<1x128xf32> to vector<16x128xf32>
    %6 = arith.addf %3, %5 : vector<16x128xf32>
    %7 = vector.shape_cast %6 : vector<16x128xf32> to vector<8x2x128xf32>
    %c0_6 = arith.constant 0 : index
    %c0_7 = arith.constant 0 : index
    %c0_8 = arith.constant 0 : index
    %8 = vector.load %arg19[%c0_6, %c0_7, %c0_8] : memref<8x2x128xf32, #tpu.memory_space<vmem>>, vector<8x2x128xf32>
    tpu.vector_store %arg19[%c0_6, %c0_7, %c0_8], %7 {strides = array<i32>} : memref<8x2x128xf32, #tpu.memory_space<vmem>>, vector<8x2x128xf32>,
    %cst_9 = arith.constant 0.000000e+00 : f32
    %9 = vector.broadcast %cst_9 : f32 to vector<2x16xf32>
    %c0_i32 = arith.constant 0 : i32
    %c7_i32 = arith.constant 7 : i32
    %10 = arith.subi %c7_i32, %c0_i32 : i32
    %11 = arith.index_cast %c0_i32 : i32 to index
    %c0_10 = arith.constant 0 : index
    %c0_11 = arith.constant 0 : index
    %12 = vector.load %arg19[%11, %c0_10, %c0_11] : memref<8x2x128xf32, #tpu.memory_space<vmem>>, vector<1x2x128xf32>
    %13 = vector.shape_cast %12 : vector<1x2x128xf32> to vector<2x128xf32>
    %14 = vector.extract_strided_slice %13 {offsets = [0, 0], sizes = [2, 64], strides = [1, 1]} : vector<2x128xf32> to vector<2x64xf32>
    %c0_12 = arith.constant 0 : index
    %c0_13 = arith.constant 0 : index
    %15 = vector.load %arg4[%c0_12, %c0_13] : memref<16x64xf32, #tpu.memory_space<vmem>>, vector<16x64xf32>
    %c0_14 = arith.constant 0 : index
    %c0_15 = arith.constant 0 : index
    %16 = vector.load %arg5[%c0_14, %c0_15] : memref<1x64xf32, #tpu.memory_space<vmem>>, vector<1x64xf32>
    %cst_16 = arith.constant dense<0.000000e+00> : vector<2x64xf32>
    %17 = tpu.matmul %9, %15, %cst_16 {dimension_numbers = #tpu.dot_dimension_numbers<[1], [0], [0], [1], [0, 0, 1, 1], [], []>} : vector<2x16xf32>, vector<16x64xf32>, vector<2x64xf32> -> vector<2x64xf32>
    %18 = arith.addf %14, %17 : vector<2x64xf32>
    %19 = vector.broadcast %16 : vector<1x64xf32> to vector<2x64xf32>
    %20 = arith.addf %18, %19 : vector<2x64xf32>
    %21 = vector.extract_strided_slice %20 {offsets = [0, 0], sizes = [2, 16], strides = [1, 1]} : vector<2x64xf32> to vector<2x16xf32>
    %22 = arith.negf %21 : vector<2x16xf32>
    %23 = math.exp %22 : vector<2x16xf32>
    %cst_17 = arith.constant 1.000000e+00 : f32
    %24 = vector.broadcast %cst_17 : f32 to vector<2x16xf32>
    %25 = arith.addf %24, %23 : vector<2x16xf32>
    %26 = arith.divf %24, %25 : vector<2x16xf32>
    %27 = vector.extract_strided_slice %20 {offsets = [0, 16], sizes = [2, 16], strides = [1, 1]} : vector<2x64xf32> to vector<2x16xf32>
    %28 = arith.negf %27 : vector<2x16xf32>
    %29 = math.exp %28 : vector<2x16xf32>
    %cst_18 = arith.constant 1.000000e+00 : f32
    %30 = vector.broadcast %cst_18 : f32 to vector<2x16xf32>
    %31 = arith.addf %30, %29 : vector<2x16xf32>
    %32 = arith.divf %30, %31 : vector<2x16xf32>
    %33 = vector.extract_strided_slice %20 {offsets = [0, 32], sizes = [2, 16], strides = [1, 1]} : vector<2x64xf32> to vector<2x16xf32>
    %34 = math.tanh %33 : vector<2x16xf32>
    %35 = vector.extract_strided_slice %20 {offsets = [0, 48], sizes = [2, 16], strides = [1, 1]} : vector<2x64xf32> to vector<2x16xf32>
    %36 = arith.negf %35 : vector<2x16xf32>
    %37 = math.exp %36 : vector<2x16xf32>
    %cst_19 = arith.constant 1.000000e+00 : f32
    %38 = vector.broadcast %cst_19 : f32 to vector<2x16xf32>
    %39 = arith.addf %38, %37 : vector<2x16xf32>
    %40 = arith.divf %38, %39 : vector<2x16xf32>
    %41 = arith.mulf %32, %9 : vector<2x16xf32>
    %42 = arith.mulf %26, %34 : vector<2x16xf32>
    %43 = arith.addf %41, %42 : vector<2x16xf32>
    %44 = math.tanh %43 : vector<2x16xf32>
    %45 = arith.mulf %40, %44 : vector<2x16xf32>
    %46 = arith.index_cast %c0_i32 : i32 to index
    %c0_20 = arith.constant 0 : index
    %c0_21 = arith.constant 0 : index
    %47 = vector.load %arg20[%46, %c0_20, %c0_21] : memref<8x2x16xf32, #tpu.memory_space<vmem>>, vector<1x2x16xf32>
    %48 = vector.shape_cast %47 : vector<1x2x16xf32> to vector<2x16xf32>
    %49 = vector.shape_cast %45 : vector<2x16xf32> to vector<1x2x16xf32>
    tpu.vector_store %arg20[%46, %c0_20, %c0_21], %49 {strides = array<i32>} : memref<8x2x16xf32, #tpu.memory_space<vmem>>, vector<1x2x16xf32>,
    %50 = arith.index_cast %10 : i32 to index
    %c0_22 = arith.constant 0 : index
    %c0_23 = arith.constant 0 : index
    %51 = vector.load %arg19[%50, %c0_22, %c0_23] : memref<8x2x128xf32, #tpu.memory_space<vmem>>, vector<1x2x128xf32>
    %52 = vector.shape_cast %51 : vector<1x2x128xf32> to vector<2x128xf32>
    %53 = vector.extract_strided_slice %52 {offsets = [0, 64], sizes = [2, 64], strides = [1, 1]} : vector<2x128xf32> to vector<2x64xf32>
    %c0_24 = arith.constant 0 : index
    %c0_25 = arith.constant 0 : index
    %54 = vector.load %arg6[%c0_24, %c0_25] : memref<16x64xf32, #tpu.memory_space<vmem>>, vector<16x64xf32>
    %c0_26 = arith.constant 0 : index
    %c0_27 = arith.constant 0 : index
    %55 = vector.load %arg7[%c0_26, %c0_27] : memref<1x64xf32, #tpu.memory_space<vmem>>, vector<1x64xf32>
    %cst_28 = arith.constant dense<0.000000e+00> : vector<2x64xf32>
    %56 = tpu.matmul %9, %54, %cst_28 {dimension_numbers = #tpu.dot_dimension_numbers<[1], [0], [0], [1], [0, 0, 1, 1], [], []>} : vector<2x16xf32>, vector<16x64xf32>, vector<2x64xf32> -> vector<2x64xf32>
    %57 = arith.addf %53, %56 : vector<2x64xf32>
    %58 = vector.broadcast %55 : vector<1x64xf32> to vector<2x64xf32>
    %59 = arith.addf %57, %58 : vector<2x64xf32>
    %60 = vector.extract_strided_slice %59 {offsets = [0, 0], sizes = [2, 16], strides = [1, 1]} : vector<2x64xf32> to vector<2x16xf32>
    %61 = arith.negf %60 : vector<2x16xf32>
    %62 = math.exp %61 : vector<2x16xf32>
    %cst_29 = arith.constant 1.000000e+00 : f32
    %63 = vector.broadcast %cst_29 : f32 to vector<2x16xf32>
    %64 = arith.addf %63, %62 : vector<2x16xf32>
    %65 = arith.divf %63, %64 : vector<2x16xf32>
    %66 = vector.extract_strided_slice %59 {offsets = [0, 16], sizes = [2, 16], strides = [1, 1]} : vector<2x64xf32> to vector<2x16xf32>
    %67 = arith.negf %66 : vector<2x16xf32>
    %68 = math.exp %67 : vector<2x16xf32>
    %cst_30 = arith.constant 1.000000e+00 : f32
    %69 = vector.broadcast %cst_30 : f32 to vector<2x16xf32>
    %70 = arith.addf %69, %68 : vector<2x16xf32>
    %71 = arith.divf %69, %70 : vector<2x16xf32>
    %72 = vector.extract_strided_slice %59 {offsets = [0, 32], sizes = [2, 16], strides = [1, 1]} : vector<2x64xf32> to vector<2x16xf32>
    %73 = math.tanh %72 : vector<2x16xf32>
    %74 = vector.extract_strided_slice %59 {offsets = [0, 48], sizes = [2, 16], strides = [1, 1]} : vector<2x64xf32> to vector<2x16xf32>
    %75 = arith.negf %74 : vector<2x16xf32>
    %76 = math.exp %75 : vector<2x16xf32>
    %cst_31 = arith.constant 1.000000e+00 : f32
    %77 = vector.broadcast %cst_31 : f32 to vector<2x16xf32>
    %78 = arith.addf %77, %76 : vector<2x16xf32>
    %79 = arith.divf %77, %78 : vector<2x16xf32>
    %80 = arith.mulf %71, %9 : vector<2x16xf32>
    %81 = arith.mulf %65, %73 : vector<2x16xf32>
    %82 = arith.addf %80, %81 : vector<2x16xf32>
    %83 = math.tanh %82 : vector<2x16xf32>
    %84 = arith.mulf %79, %83 : vector<2x16xf32>
    %85 = arith.index_cast %10 : i32 to index
    %c0_32 = arith.constant 0 : index
    %c0_33 = arith.constant 0 : index
    %86 = vector.load %arg21[%85, %c0_32, %c0_33] : memref<8x2x16xf32, #tpu.memory_space<vmem>>, vector<1x2x16xf32>
    %87 = vector.shape_cast %86 : vector<1x2x16xf32> to vector<2x16xf32>
    %88 = vector.shape_cast %84 : vector<2x16xf32> to vector<1x2x16xf32>
    tpu.vector_store %arg21[%85, %c0_32, %c0_33], %88 {strides = array<i32>} : memref<8x2x16xf32, #tpu.memory_space<vmem>>, vector<1x2x16xf32>,
    %c1_i32 = arith.constant 1 : i32
    %c7_i32_34 = arith.constant 7 : i32
    %89 = arith.subi %c7_i32_34, %c1_i32 : i32
    %90 = arith.index_cast %c1_i32 : i32 to index
    %c0_35 = arith.constant 0 : index
    %c0_36 = arith.constant 0 : index
    %91 = vector.load %arg19[%90, %c0_35, %c0_36] : memref<8x2x128xf32, #tpu.memory_space<vmem>>, vector<1x2x128xf32>
    %92 = vector.shape_cast %91 : vector<1x2x128xf32> to vector<2x128xf32>
    %93 = vector.extract_strided_slice %92 {offsets = [0, 0], sizes = [2, 64], strides = [1, 1]} : vector<2x128xf32> to vector<2x64xf32>
    %c0_37 = arith.constant 0 : index
    %c0_38 = arith.constant 0 : index
    %94 = vector.load %arg4[%c0_37, %c0_38] : memref<16x64xf32, #tpu.memory_space<vmem>>, vector<16x64xf32>
    %c0_39 = arith.constant 0 : index
    %c0_40 = arith.constant 0 : index
    %95 = vector.load %arg5[%c0_39, %c0_40] : memref<1x64xf32, #tpu.memory_space<vmem>>, vector<1x64xf32>
    %cst_41 = arith.constant dense<0.000000e+00> : vector<2x64xf32>
    %96 = tpu.matmul %45, %94, %cst_41 {dimension_numbers = #tpu.dot_dimension_numbers<[1], [0], [0], [1], [0, 0, 1, 1], [], []>} : vector<2x16xf32>, vector<16x64xf32>, vector<2x64xf32> -> vector<2x64xf32>
    %97 = arith.addf %93, %96 : vector<2x64xf32>
    %98 = vector.broadcast %95 : vector<1x64xf32> to vector<2x64xf32>
    %99 = arith.addf %97, %98 : vector<2x64xf32>
    %100 = vector.extract_strided_slice %99 {offsets = [0, 0], sizes = [2, 16], strides = [1, 1]} : vector<2x64xf32> to vector<2x16xf32>
    %101 = arith.negf %100 : vector<2x16xf32>
    %102 = math.exp %101 : vector<2x16xf32>
    %cst_42 = arith.constant 1.000000e+00 : f32
    %103 = vector.broadcast %cst_42 : f32 to vector<2x16xf32>
    %104 = arith.addf %103, %102 : vector<2x16xf32>
    %105 = arith.divf %103, %104 : vector<2x16xf32>
    %106 = vector.extract_strided_slice %99 {offsets = [0, 16], sizes = [2, 16], strides = [1, 1]} : vector<2x64xf32> to vector<2x16xf32>
    %107 = arith.negf %106 : vector<2x16xf32>
    %108 = math.exp %107 : vector<2x16xf32>
    %cst_43 = arith.constant 1.000000e+00 : f32
    %109 = vector.broadcast %cst_43 : f32 to vector<2x16xf32>
    %110 = arith.addf %109, %108 : vector<2x16xf32>
    %111 = arith.divf %109, %110 : vector<2x16xf32>
    %112 = vector.extract_strided_slice %99 {offsets = [0, 32], sizes = [2, 16], strides = [1, 1]} : vector<2x64xf32> to vector<2x16xf32>
    %113 = math.tanh %112 : vector<2x16xf32>
    %114 = vector.extract_strided_slice %99 {offsets = [0, 48], sizes = [2, 16], strides = [1, 1]} : vector<2x64xf32> to vector<2x16xf32>
    %115 = arith.negf %114 : vector<2x16xf32>
    %116 = math.exp %115 : vector<2x16xf32>
    %cst_44 = arith.constant 1.000000e+00 : f32
    %117 = vector.broadcast %cst_44 : f32 to vector<2x16xf32>
    %118 = arith.addf %117, %116 : vector<2x16xf32>
    %119 = arith.divf %117, %118 : vector<2x16xf32>
    %120 = arith.mulf %111, %43 : vector<2x16xf32>
    %121 = arith.mulf %105, %113 : vector<2x16xf32>
    %122 = arith.addf %120, %121 : vector<2x16xf32>
    %123 = math.tanh %122 : vector<2x16xf32>
    %124 = arith.mulf %119, %123 : vector<2x16xf32>
    %125 = arith.index_cast %c1_i32 : i32 to index
    %c0_45 = arith.constant 0 : index
    %c0_46 = arith.constant 0 : index
    %126 = vector.load %arg20[%125, %c0_45, %c0_46] : memref<8x2x16xf32, #tpu.memory_space<vmem>>, vector<1x2x16xf32>
    %127 = vector.shape_cast %126 : vector<1x2x16xf32> to vector<2x16xf32>
    %128 = vector.shape_cast %124 : vector<2x16xf32> to vector<1x2x16xf32>
    tpu.vector_store %arg20[%125, %c0_45, %c0_46], %128 {strides = array<i32>} : memref<8x2x16xf32, #tpu.memory_space<vmem>>, vector<1x2x16xf32>,
    %129 = arith.index_cast %89 : i32 to index
    %c0_47 = arith.constant 0 : index
    %c0_48 = arith.constant 0 : index
    %130 = vector.load %arg19[%129, %c0_47, %c0_48] : memref<8x2x128xf32, #tpu.memory_space<vmem>>, vector<1x2x128xf32>
    %131 = vector.shape_cast %130 : vector<1x2x128xf32> to vector<2x128xf32>
    %132 = vector.extract_strided_slice %131 {offsets = [0, 64], sizes = [2, 64], strides = [1, 1]} : vector<2x128xf32> to vector<2x64xf32>
    %c0_49 = arith.constant 0 : index
    %c0_50 = arith.constant 0 : index
    %133 = vector.load %arg6[%c0_49, %c0_50] : memref<16x64xf32, #tpu.memory_space<vmem>>, vector<16x64xf32>
    %c0_51 = arith.constant 0 : index
    %c0_52 = arith.constant 0 : index
    %134 = vector.load %arg7[%c0_51, %c0_52] : memref<1x64xf32, #tpu.memory_space<vmem>>, vector<1x64xf32>
    %cst_53 = arith.constant dense<0.000000e+00> : vector<2x64xf32>
    %135 = tpu.matmul %84, %133, %cst_53 {dimension_numbers = #tpu.dot_dimension_numbers<[1], [0], [0], [1], [0, 0, 1, 1], [], []>} : vector<2x16xf32>, vector<16x64xf32>, vector<2x64xf32> -> vector<2x64xf32>
    %136 = arith.addf %132, %135 : vector<2x64xf32>
    %137 = vector.broadcast %134 : vector<1x64xf32> to vector<2x64xf32>
    %138 = arith.addf %136, %137 : vector<2x64xf32>
    %139 = vector.extract_strided_slice %138 {offsets = [0, 0], sizes = [2, 16], strides = [1, 1]} : vector<2x64xf32> to vector<2x16xf32>
    %140 = arith.negf %139 : vector<2x16xf32>
    %141 = math.exp %140 : vector<2x16xf32>
    %cst_54 = arith.constant 1.000000e+00 : f32
    %142 = vector.broadcast %cst_54 : f32 to vector<2x16xf32>
    %143 = arith.addf %142, %141 : vector<2x16xf32>
    %144 = arith.divf %142, %143 : vector<2x16xf32>
    %145 = vector.extract_strided_slice %138 {offsets = [0, 16], sizes = [2, 16], strides = [1, 1]} : vector<2x64xf32> to vector<2x16xf32>
    %146 = arith.negf %145 : vector<2x16xf32>
    %147 = math.exp %146 : vector<2x16xf32>
    %cst_55 = arith.constant 1.000000e+00 : f32
    %148 = vector.broadcast %cst_55 : f32 to vector<2x16xf32>
    %149 = arith.addf %148, %147 : vector<2x16xf32>
    %150 = arith.divf %148, %149 : vector<2x16xf32>
    %151 = vector.extract_strided_slice %138 {offsets = [0, 32], sizes = [2, 16], strides = [1, 1]} : vector<2x64xf32> to vector<2x16xf32>
    %152 = math.tanh %151 : vector<2x16xf32>
    %153 = vector.extract_strided_slice %138 {offsets = [0, 48], sizes = [2, 16], strides = [1, 1]} : vector<2x64xf32> to vector<2x16xf32>
    %154 = arith.negf %153 : vector<2x16xf32>
    %155 = math.exp %154 : vector<2x16xf32>
    %cst_56 = arith.constant 1.000000e+00 : f32
    %156 = vector.broadcast %cst_56 : f32 to vector<2x16xf32>
    %157 = arith.addf %156, %155 : vector<2x16xf32>
    %158 = arith.divf %156, %157 : vector<2x16xf32>
    %159 = arith.mulf %150, %82 : vector<2x16xf32>
    %160 = arith.mulf %144, %152 : vector<2x16xf32>
    %161 = arith.addf %159, %160 : vector<2x16xf32>
    %162 = math.tanh %161 : vector<2x16xf32>
    %163 = arith.mulf %158, %162 : vector<2x16xf32>
    %164 = arith.index_cast %89 : i32 to index
    %c0_57 = arith.constant 0 : index
    %c0_58 = arith.constant 0 : index
    %165 = vector.load %arg21[%164, %c0_57, %c0_58] : memref<8x2x16xf32, #tpu.memory_space<vmem>>, vector<1x2x16xf32>
    %166 = vector.shape_cast %165 : vector<1x2x16xf32> to vector<2x16xf32>
    %167 = vector.shape_cast %163 : vector<2x16xf32> to vector<1x2x16xf32>
    tpu.vector_store %arg21[%164, %c0_57, %c0_58], %167 {strides = array<i32>} : memref<8x2x16xf32, #tpu.memory_space<vmem>>, vector<1x2x16xf32>,
    %c2_i32 = arith.constant 2 : i32
    %c7_i32_59 = arith.constant 7 : i32
    %168 = arith.subi %c7_i32_59, %c2_i32 : i32
    %169 = arith.index_cast %c2_i32 : i32 to index
    %c0_60 = arith.constant 0 : index
    %c0_61 = arith.constant 0 : index
    %170 = vector.load %arg19[%169, %c0_60, %c0_61] : memref<8x2x128xf32, #tpu.memory_space<vmem>>, vector<1x2x128xf32>
    %171 = vector.shape_cast %170 : vector<1x2x128xf32> to vector<2x128xf32>
    %172 = vector.extract_strided_slice %171 {offsets = [0, 0], sizes = [2, 64], strides = [1, 1]} : vector<2x128xf32> to vector<2x64xf32>
    %c0_62 = arith.constant 0 : index
    %c0_63 = arith.constant 0 : index
    %173 = vector.load %arg4[%c0_62, %c0_63] : memref<16x64xf32, #tpu.memory_space<vmem>>, vector<16x64xf32>
    %c0_64 = arith.constant 0 : index
    %c0_65 = arith.constant 0 : index
    %174 = vector.load %arg5[%c0_64, %c0_65] : memref<1x64xf32, #tpu.memory_space<vmem>>, vector<1x64xf32>
    %cst_66 = arith.constant dense<0.000000e+00> : vector<2x64xf32>
    %175 = tpu.matmul %124, %173, %cst_66 {dimension_numbers = #tpu.dot_dimension_numbers<[1], [0], [0], [1], [0, 0, 1, 1], [], []>} : vector<2x16xf32>, vector<16x64xf32>, vector<2x64xf32> -> vector<2x64xf32>
    %176 = arith.addf %172, %175 : vector<2x64xf32>
    %177 = vector.broadcast %174 : vector<1x64xf32> to vector<2x64xf32>
    %178 = arith.addf %176, %177 : vector<2x64xf32>
    %179 = vector.extract_strided_slice %178 {offsets = [0, 0], sizes = [2, 16], strides = [1, 1]} : vector<2x64xf32> to vector<2x16xf32>
    %180 = arith.negf %179 : vector<2x16xf32>
    %181 = math.exp %180 : vector<2x16xf32>
    %cst_67 = arith.constant 1.000000e+00 : f32
    %182 = vector.broadcast %cst_67 : f32 to vector<2x16xf32>
    %183 = arith.addf %182, %181 : vector<2x16xf32>
    %184 = arith.divf %182, %183 : vector<2x16xf32>
    %185 = vector.extract_strided_slice %178 {offsets = [0, 16], sizes = [2, 16], strides = [1, 1]} : vector<2x64xf32> to vector<2x16xf32>
    %186 = arith.negf %185 : vector<2x16xf32>
    %187 = math.exp %186 : vector<2x16xf32>
    %cst_68 = arith.constant 1.000000e+00 : f32
    %188 = vector.broadcast %cst_68 : f32 to vector<2x16xf32>
    %189 = arith.addf %188, %187 : vector<2x16xf32>
    %190 = arith.divf %188, %189 : vector<2x16xf32>
    %191 = vector.extract_strided_slice %178 {offsets = [0, 32], sizes = [2, 16], strides = [1, 1]} : vector<2x64xf32> to vector<2x16xf32>
    %192 = math.tanh %191 : vector<2x16xf32>
    %193 = vector.extract_strided_slice %178 {offsets = [0, 48], sizes = [2, 16], strides = [1, 1]} : vector<2x64xf32> to vector<2x16xf32>
    %194 = arith.negf %193 : vector<2x16xf32>
    %195 = math.exp %194 : vector<2x16xf32>
    %cst_69 = arith.constant 1.000000e+00 : f32
    %196 = vector.broadcast %cst_69 : f32 to vector<2x16xf32>
    %197 = arith.addf %196, %195 : vector<2x16xf32>
    %198 = arith.divf %196, %197 : vector<2x16xf32>
    %199 = arith.mulf %190, %122 : vector<2x16xf32>
    %200 = arith.mulf %184, %192 : vector<2x16xf32>
    %201 = arith.addf %199, %200 : vector<2x16xf32>
    %202 = math.tanh %201 : vector<2x16xf32>
    %203 = arith.mulf %198, %202 : vector<2x16xf32>
    %204 = arith.index_cast %c2_i32 : i32 to index
    %c0_70 = arith.constant 0 : index
    %c0_71 = arith.constant 0 : index
    %205 = vector.load %arg20[%204, %c0_70, %c0_71] : memref<8x2x16xf32, #tpu.memory_space<vmem>>, vector<1x2x16xf32>
    %206 = vector.shape_cast %205 : vector<1x2x16xf32> to vector<2x16xf32>
    %207 = vector.shape_cast %203 : vector<2x16xf32> to vector<1x2x16xf32>
    tpu.vector_store %arg20[%204, %c0_70, %c0_71], %207 {strides = array<i32>} : memref<8x2x16xf32, #tpu.memory_space<vmem>>, vector<1x2x16xf32>,
    %208 = arith.index_cast %168 : i32 to index
    %c0_72 = arith.constant 0 : index
    %c0_73 = arith.constant 0 : index
    %209 = vector.load %arg19[%208, %c0_72, %c0_73] : memref<8x2x128xf32, #tpu.memory_space<vmem>>, vector<1x2x128xf32>
    %210 = vector.shape_cast %209 : vector<1x2x128xf32> to vector<2x128xf32>
    %211 = vector.extract_strided_slice %210 {offsets = [0, 64], sizes = [2, 64], strides = [1, 1]} : vector<2x128xf32> to vector<2x64xf32>
    %c0_74 = arith.constant 0 : index
    %c0_75 = arith.constant 0 : index
    %212 = vector.load %arg6[%c0_74, %c0_75] : memref<16x64xf32, #tpu.memory_space<vmem>>, vector<16x64xf32>
    %c0_76 = arith.constant 0 : index
    %c0_77 = arith.constant 0 : index
    %213 = vector.load %arg7[%c0_76, %c0_77] : memref<1x64xf32, #tpu.memory_space<vmem>>, vector<1x64xf32>
    %cst_78 = arith.constant dense<0.000000e+00> : vector<2x64xf32>
    %214 = tpu.matmul %163, %212, %cst_78 {dimension_numbers = #tpu.dot_dimension_numbers<[1], [0], [0], [1], [0, 0, 1, 1], [], []>} : vector<2x16xf32>, vector<16x64xf32>, vector<2x64xf32> -> vector<2x64xf32>
    %215 = arith.addf %211, %214 : vector<2x64xf32>
    %216 = vector.broadcast %213 : vector<1x64xf32> to vector<2x64xf32>
    %217 = arith.addf %215, %216 : vector<2x64xf32>
    %218 = vector.extract_strided_slice %217 {offsets = [0, 0], sizes = [2, 16], strides = [1, 1]} : vector<2x64xf32> to vector<2x16xf32>
    %219 = arith.negf %218 : vector<2x16xf32>
    %220 = math.exp %219 : vector<2x16xf32>
    %cst_79 = arith.constant 1.000000e+00 : f32
    %221 = vector.broadcast %cst_79 : f32 to vector<2x16xf32>
    %222 = arith.addf %221, %220 : vector<2x16xf32>
    %223 = arith.divf %221, %222 : vector<2x16xf32>
    %224 = vector.extract_strided_slice %217 {offsets = [0, 16], sizes = [2, 16], strides = [1, 1]} : vector<2x64xf32> to vector<2x16xf32>
    %225 = arith.negf %224 : vector<2x16xf32>
    %226 = math.exp %225 : vector<2x16xf32>
    %cst_80 = arith.constant 1.000000e+00 : f32
    %227 = vector.broadcast %cst_80 : f32 to vector<2x16xf32>
    %228 = arith.addf %227, %226 : vector<2x16xf32>
    %229 = arith.divf %227, %228 : vector<2x16xf32>
    %230 = vector.extract_strided_slice %217 {offsets = [0, 32], sizes = [2, 16], strides = [1, 1]} : vector<2x64xf32> to vector<2x16xf32>
    %231 = math.tanh %230 : vector<2x16xf32>
    %232 = vector.extract_strided_slice %217 {offsets = [0, 48], sizes = [2, 16], strides = [1, 1]} : vector<2x64xf32> to vector<2x16xf32>
    %233 = arith.negf %232 : vector<2x16xf32>
    %234 = math.exp %233 : vector<2x16xf32>
    %cst_81 = arith.constant 1.000000e+00 : f32
    %235 = vector.broadcast %cst_81 : f32 to vector<2x16xf32>
    %236 = arith.addf %235, %234 : vector<2x16xf32>
    %237 = arith.divf %235, %236 : vector<2x16xf32>
    %238 = arith.mulf %229, %161 : vector<2x16xf32>
    %239 = arith.mulf %223, %231 : vector<2x16xf32>
    %240 = arith.addf %238, %239 : vector<2x16xf32>
    %241 = math.tanh %240 : vector<2x16xf32>
    %242 = arith.mulf %237, %241 : vector<2x16xf32>
    %243 = arith.index_cast %168 : i32 to index
    %c0_82 = arith.constant 0 : index
    %c0_83 = arith.constant 0 : index
    %244 = vector.load %arg21[%243, %c0_82, %c0_83] : memref<8x2x16xf32, #tpu.memory_space<vmem>>, vector<1x2x16xf32>
    %245 = vector.shape_cast %244 : vector<1x2x16xf32> to vector<2x16xf32>
    %246 = vector.shape_cast %242 : vector<2x16xf32> to vector<1x2x16xf32>
    tpu.vector_store %arg21[%243, %c0_82, %c0_83], %246 {strides = array<i32>} : memref<8x2x16xf32, #tpu.memory_space<vmem>>, vector<1x2x16xf32>,
    %c3_i32 = arith.constant 3 : i32
    %c7_i32_84 = arith.constant 7 : i32
    %247 = arith.subi %c7_i32_84, %c3_i32 : i32
    %248 = arith.index_cast %c3_i32 : i32 to index
    %c0_85 = arith.constant 0 : index
    %c0_86 = arith.constant 0 : index
    %249 = vector.load %arg19[%248, %c0_85, %c0_86] : memref<8x2x128xf32, #tpu.memory_space<vmem>>, vector<1x2x128xf32>
    %250 = vector.shape_cast %249 : vector<1x2x128xf32> to vector<2x128xf32>
    %251 = vector.extract_strided_slice %250 {offsets = [0, 0], sizes = [2, 64], strides = [1, 1]} : vector<2x128xf32> to vector<2x64xf32>
    %c0_87 = arith.constant 0 : index
    %c0_88 = arith.constant 0 : index
    %252 = vector.load %arg4[%c0_87, %c0_88] : memref<16x64xf32, #tpu.memory_space<vmem>>, vector<16x64xf32>
    %c0_89 = arith.constant 0 : index
    %c0_90 = arith.constant 0 : index
    %253 = vector.load %arg5[%c0_89, %c0_90] : memref<1x64xf32, #tpu.memory_space<vmem>>, vector<1x64xf32>
    %cst_91 = arith.constant dense<0.000000e+00> : vector<2x64xf32>
    %254 = tpu.matmul %203, %252, %cst_91 {dimension_numbers = #tpu.dot_dimension_numbers<[1], [0], [0], [1], [0, 0, 1, 1], [], []>} : vector<2x16xf32>, vector<16x64xf32>, vector<2x64xf32> -> vector<2x64xf32>
    %255 = arith.addf %251, %254 : vector<2x64xf32>
    %256 = vector.broadcast %253 : vector<1x64xf32> to vector<2x64xf32>
    %257 = arith.addf %255, %256 : vector<2x64xf32>
    %258 = vector.extract_strided_slice %257 {offsets = [0, 0], sizes = [2, 16], strides = [1, 1]} : vector<2x64xf32> to vector<2x16xf32>
    %259 = arith.negf %258 : vector<2x16xf32>
    %260 = math.exp %259 : vector<2x16xf32>
    %cst_92 = arith.constant 1.000000e+00 : f32
    %261 = vector.broadcast %cst_92 : f32 to vector<2x16xf32>
    %262 = arith.addf %261, %260 : vector<2x16xf32>
    %263 = arith.divf %261, %262 : vector<2x16xf32>
    %264 = vector.extract_strided_slice %257 {offsets = [0, 16], sizes = [2, 16], strides = [1, 1]} : vector<2x64xf32> to vector<2x16xf32>
    %265 = arith.negf %264 : vector<2x16xf32>
    %266 = math.exp %265 : vector<2x16xf32>
    %cst_93 = arith.constant 1.000000e+00 : f32
    %267 = vector.broadcast %cst_93 : f32 to vector<2x16xf32>
    %268 = arith.addf %267, %266 : vector<2x16xf32>
    %269 = arith.divf %267, %268 : vector<2x16xf32>
    %270 = vector.extract_strided_slice %257 {offsets = [0, 32], sizes = [2, 16], strides = [1, 1]} : vector<2x64xf32> to vector<2x16xf32>
    %271 = math.tanh %270 : vector<2x16xf32>
    %272 = vector.extract_strided_slice %257 {offsets = [0, 48], sizes = [2, 16], strides = [1, 1]} : vector<2x64xf32> to vector<2x16xf32>
    %273 = arith.negf %272 : vector<2x16xf32>
    %274 = math.exp %273 : vector<2x16xf32>
    %cst_94 = arith.constant 1.000000e+00 : f32
    %275 = vector.broadcast %cst_94 : f32 to vector<2x16xf32>
    %276 = arith.addf %275, %274 : vector<2x16xf32>
    %277 = arith.divf %275, %276 : vector<2x16xf32>
    %278 = arith.mulf %269, %201 : vector<2x16xf32>
    %279 = arith.mulf %263, %271 : vector<2x16xf32>
    %280 = arith.addf %278, %279 : vector<2x16xf32>
    %281 = math.tanh %280 : vector<2x16xf32>
    %282 = arith.mulf %277, %281 : vector<2x16xf32>
    %283 = arith.index_cast %c3_i32 : i32 to index
    %c0_95 = arith.constant 0 : index
    %c0_96 = arith.constant 0 : index
    %284 = vector.load %arg20[%283, %c0_95, %c0_96] : memref<8x2x16xf32, #tpu.memory_space<vmem>>, vector<1x2x16xf32>
    %285 = vector.shape_cast %284 : vector<1x2x16xf32> to vector<2x16xf32>
    %286 = vector.shape_cast %282 : vector<2x16xf32> to vector<1x2x16xf32>
    tpu.vector_store %arg20[%283, %c0_95, %c0_96], %286 {strides = array<i32>} : memref<8x2x16xf32, #tpu.memory_space<vmem>>, vector<1x2x16xf32>,
    %287 = arith.index_cast %247 : i32 to index
    %c0_97 = arith.constant 0 : index
    %c0_98 = arith.constant 0 : index
    %288 = vector.load %arg19[%287, %c0_97, %c0_98] : memref<8x2x128xf32, #tpu.memory_space<vmem>>, vector<1x2x128xf32>
    %289 = vector.shape_cast %288 : vector<1x2x128xf32> to vector<2x128xf32>
    %290 = vector.extract_strided_slice %289 {offsets = [0, 64], sizes = [2, 64], strides = [1, 1]} : vector<2x128xf32> to vector<2x64xf32>
    %c0_99 = arith.constant 0 : index
    %c0_100 = arith.constant 0 : index
    %291 = vector.load %arg6[%c0_99, %c0_100] : memref<16x64xf32, #tpu.memory_space<vmem>>, vector<16x64xf32>
    %c0_101 = arith.constant 0 : index
    %c0_102 = arith.constant 0 : index
    %292 = vector.load %arg7[%c0_101, %c0_102] : memref<1x64xf32, #tpu.memory_space<vmem>>, vector<1x64xf32>
    %cst_103 = arith.constant dense<0.000000e+00> : vector<2x64xf32>
    %293 = tpu.matmul %242, %291, %cst_103 {dimension_numbers = #tpu.dot_dimension_numbers<[1], [0], [0], [1], [0, 0, 1, 1], [], []>} : vector<2x16xf32>, vector<16x64xf32>, vector<2x64xf32> -> vector<2x64xf32>
    %294 = arith.addf %290, %293 : vector<2x64xf32>
    %295 = vector.broadcast %292 : vector<1x64xf32> to vector<2x64xf32>
    %296 = arith.addf %294, %295 : vector<2x64xf32>
    %297 = vector.extract_strided_slice %296 {offsets = [0, 0], sizes = [2, 16], strides = [1, 1]} : vector<2x64xf32> to vector<2x16xf32>
    %298 = arith.negf %297 : vector<2x16xf32>
    %299 = math.exp %298 : vector<2x16xf32>
    %cst_104 = arith.constant 1.000000e+00 : f32
    %300 = vector.broadcast %cst_104 : f32 to vector<2x16xf32>
    %301 = arith.addf %300, %299 : vector<2x16xf32>
    %302 = arith.divf %300, %301 : vector<2x16xf32>
    %303 = vector.extract_strided_slice %296 {offsets = [0, 16], sizes = [2, 16], strides = [1, 1]} : vector<2x64xf32> to vector<2x16xf32>
    %304 = arith.negf %303 : vector<2x16xf32>
    %305 = math.exp %304 : vector<2x16xf32>
    %cst_105 = arith.constant 1.000000e+00 : f32
    %306 = vector.broadcast %cst_105 : f32 to vector<2x16xf32>
    %307 = arith.addf %306, %305 : vector<2x16xf32>
    %308 = arith.divf %306, %307 : vector<2x16xf32>
    %309 = vector.extract_strided_slice %296 {offsets = [0, 32], sizes = [2, 16], strides = [1, 1]} : vector<2x64xf32> to vector<2x16xf32>
    %310 = math.tanh %309 : vector<2x16xf32>
    %311 = vector.extract_strided_slice %296 {offsets = [0, 48], sizes = [2, 16], strides = [1, 1]} : vector<2x64xf32> to vector<2x16xf32>
    %312 = arith.negf %311 : vector<2x16xf32>
    %313 = math.exp %312 : vector<2x16xf32>
    %cst_106 = arith.constant 1.000000e+00 : f32
    %314 = vector.broadcast %cst_106 : f32 to vector<2x16xf32>
    %315 = arith.addf %314, %313 : vector<2x16xf32>
    %316 = arith.divf %314, %315 : vector<2x16xf32>
    %317 = arith.mulf %308, %240 : vector<2x16xf32>
    %318 = arith.mulf %302, %310 : vector<2x16xf32>
    %319 = arith.addf %317, %318 : vector<2x16xf32>
    %320 = math.tanh %319 : vector<2x16xf32>
    %321 = arith.mulf %316, %320 : vector<2x16xf32>
    %322 = arith.index_cast %247 : i32 to index
    %c0_107 = arith.constant 0 : index
    %c0_108 = arith.constant 0 : index
    %323 = vector.load %arg21[%322, %c0_107, %c0_108] : memref<8x2x16xf32, #tpu.memory_space<vmem>>, vector<1x2x16xf32>
    %324 = vector.shape_cast %323 : vector<1x2x16xf32> to vector<2x16xf32>
    %325 = vector.shape_cast %321 : vector<2x16xf32> to vector<1x2x16xf32>
    tpu.vector_store %arg21[%322, %c0_107, %c0_108], %325 {strides = array<i32>} : memref<8x2x16xf32, #tpu.memory_space<vmem>>, vector<1x2x16xf32>,
    %c4_i32 = arith.constant 4 : i32
    %c7_i32_109 = arith.constant 7 : i32
    %326 = arith.subi %c7_i32_109, %c4_i32 : i32
    %327 = arith.index_cast %c4_i32 : i32 to index
    %c0_110 = arith.constant 0 : index
    %c0_111 = arith.constant 0 : index
    %328 = vector.load %arg19[%327, %c0_110, %c0_111] : memref<8x2x128xf32, #tpu.memory_space<vmem>>, vector<1x2x128xf32>
    %329 = vector.shape_cast %328 : vector<1x2x128xf32> to vector<2x128xf32>
    %330 = vector.extract_strided_slice %329 {offsets = [0, 0], sizes = [2, 64], strides = [1, 1]} : vector<2x128xf32> to vector<2x64xf32>
    %c0_112 = arith.constant 0 : index
    %c0_113 = arith.constant 0 : index
    %331 = vector.load %arg4[%c0_112, %c0_113] : memref<16x64xf32, #tpu.memory_space<vmem>>, vector<16x64xf32>
    %c0_114 = arith.constant 0 : index
    %c0_115 = arith.constant 0 : index
    %332 = vector.load %arg5[%c0_114, %c0_115] : memref<1x64xf32, #tpu.memory_space<vmem>>, vector<1x64xf32>
    %cst_116 = arith.constant dense<0.000000e+00> : vector<2x64xf32>
    %333 = tpu.matmul %282, %331, %cst_116 {dimension_numbers = #tpu.dot_dimension_numbers<[1], [0], [0], [1], [0, 0, 1, 1], [], []>} : vector<2x16xf32>, vector<16x64xf32>, vector<2x64xf32> -> vector<2x64xf32>
    %334 = arith.addf %330, %333 : vector<2x64xf32>
    %335 = vector.broadcast %332 : vector<1x64xf32> to vector<2x64xf32>
    %336 = arith.addf %334, %335 : vector<2x64xf32>
    %337 = vector.extract_strided_slice %336 {offsets = [0, 0], sizes = [2, 16], strides = [1, 1]} : vector<2x64xf32> to vector<2x16xf32>
    %338 = arith.negf %337 : vector<2x16xf32>
    %339 = math.exp %338 : vector<2x16xf32>
    %cst_117 = arith.constant 1.000000e+00 : f32
    %340 = vector.broadcast %cst_117 : f32 to vector<2x16xf32>
    %341 = arith.addf %340, %339 : vector<2x16xf32>
    %342 = arith.divf %340, %341 : vector<2x16xf32>
    %343 = vector.extract_strided_slice %336 {offsets = [0, 16], sizes = [2, 16], strides = [1, 1]} : vector<2x64xf32> to vector<2x16xf32>
    %344 = arith.negf %343 : vector<2x16xf32>
    %345 = math.exp %344 : vector<2x16xf32>
    %cst_118 = arith.constant 1.000000e+00 : f32
    %346 = vector.broadcast %cst_118 : f32 to vector<2x16xf32>
    %347 = arith.addf %346, %345 : vector<2x16xf32>
    %348 = arith.divf %346, %347 : vector<2x16xf32>
    %349 = vector.extract_strided_slice %336 {offsets = [0, 32], sizes = [2, 16], strides = [1, 1]} : vector<2x64xf32> to vector<2x16xf32>
    %350 = math.tanh %349 : vector<2x16xf32>
    %351 = vector.extract_strided_slice %336 {offsets = [0, 48], sizes = [2, 16], strides = [1, 1]} : vector<2x64xf32> to vector<2x16xf32>
    %352 = arith.negf %351 : vector<2x16xf32>
    %353 = math.exp %352 : vector<2x16xf32>
    %cst_119 = arith.constant 1.000000e+00 : f32
    %354 = vector.broadcast %cst_119 : f32 to vector<2x16xf32>
    %355 = arith.addf %354, %353 : vector<2x16xf32>
    %356 = arith.divf %354, %355 : vector<2x16xf32>
    %357 = arith.mulf %348, %280 : vector<2x16xf32>
    %358 = arith.mulf %342, %350 : vector<2x16xf32>
    %359 = arith.addf %357, %358 : vector<2x16xf32>
    %360 = math.tanh %359 : vector<2x16xf32>
    %361 = arith.mulf %356, %360 : vector<2x16xf32>
    %362 = arith.index_cast %c4_i32 : i32 to index
    %c0_120 = arith.constant 0 : index
    %c0_121 = arith.constant 0 : index
    %363 = vector.load %arg20[%362, %c0_120, %c0_121] : memref<8x2x16xf32, #tpu.memory_space<vmem>>, vector<1x2x16xf32>
    %364 = vector.shape_cast %363 : vector<1x2x16xf32> to vector<2x16xf32>
    %365 = vector.shape_cast %361 : vector<2x16xf32> to vector<1x2x16xf32>
    tpu.vector_store %arg20[%362, %c0_120, %c0_121], %365 {strides = array<i32>} : memref<8x2x16xf32, #tpu.memory_space<vmem>>, vector<1x2x16xf32>,
    %366 = arith.index_cast %326 : i32 to index
    %c0_122 = arith.constant 0 : index
    %c0_123 = arith.constant 0 : index
    %367 = vector.load %arg19[%366, %c0_122, %c0_123] : memref<8x2x128xf32, #tpu.memory_space<vmem>>, vector<1x2x128xf32>
    %368 = vector.shape_cast %367 : vector<1x2x128xf32> to vector<2x128xf32>
    %369 = vector.extract_strided_slice %368 {offsets = [0, 64], sizes = [2, 64], strides = [1, 1]} : vector<2x128xf32> to vector<2x64xf32>
    %c0_124 = arith.constant 0 : index
    %c0_125 = arith.constant 0 : index
    %370 = vector.load %arg6[%c0_124, %c0_125] : memref<16x64xf32, #tpu.memory_space<vmem>>, vector<16x64xf32>
    %c0_126 = arith.constant 0 : index
    %c0_127 = arith.constant 0 : index
    %371 = vector.load %arg7[%c0_126, %c0_127] : memref<1x64xf32, #tpu.memory_space<vmem>>, vector<1x64xf32>
    %cst_128 = arith.constant dense<0.000000e+00> : vector<2x64xf32>
    %372 = tpu.matmul %321, %370, %cst_128 {dimension_numbers = #tpu.dot_dimension_numbers<[1], [0], [0], [1], [0, 0, 1, 1], [], []>} : vector<2x16xf32>, vector<16x64xf32>, vector<2x64xf32> -> vector<2x64xf32>
    %373 = arith.addf %369, %372 : vector<2x64xf32>
    %374 = vector.broadcast %371 : vector<1x64xf32> to vector<2x64xf32>
    %375 = arith.addf %373, %374 : vector<2x64xf32>
    %376 = vector.extract_strided_slice %375 {offsets = [0, 0], sizes = [2, 16], strides = [1, 1]} : vector<2x64xf32> to vector<2x16xf32>
    %377 = arith.negf %376 : vector<2x16xf32>
    %378 = math.exp %377 : vector<2x16xf32>
    %cst_129 = arith.constant 1.000000e+00 : f32
    %379 = vector.broadcast %cst_129 : f32 to vector<2x16xf32>
    %380 = arith.addf %379, %378 : vector<2x16xf32>
    %381 = arith.divf %379, %380 : vector<2x16xf32>
    %382 = vector.extract_strided_slice %375 {offsets = [0, 16], sizes = [2, 16], strides = [1, 1]} : vector<2x64xf32> to vector<2x16xf32>
    %383 = arith.negf %382 : vector<2x16xf32>
    %384 = math.exp %383 : vector<2x16xf32>
    %cst_130 = arith.constant 1.000000e+00 : f32
    %385 = vector.broadcast %cst_130 : f32 to vector<2x16xf32>
    %386 = arith.addf %385, %384 : vector<2x16xf32>
    %387 = arith.divf %385, %386 : vector<2x16xf32>
    %388 = vector.extract_strided_slice %375 {offsets = [0, 32], sizes = [2, 16], strides = [1, 1]} : vector<2x64xf32> to vector<2x16xf32>
    %389 = math.tanh %388 : vector<2x16xf32>
    %390 = vector.extract_strided_slice %375 {offsets = [0, 48], sizes = [2, 16], strides = [1, 1]} : vector<2x64xf32> to vector<2x16xf32>
    %391 = arith.negf %390 : vector<2x16xf32>
    %392 = math.exp %391 : vector<2x16xf32>
    %cst_131 = arith.constant 1.000000e+00 : f32
    %393 = vector.broadcast %cst_131 : f32 to vector<2x16xf32>
    %394 = arith.addf %393, %392 : vector<2x16xf32>
    %395 = arith.divf %393, %394 : vector<2x16xf32>
    %396 = arith.mulf %387, %319 : vector<2x16xf32>
    %397 = arith.mulf %381, %389 : vector<2x16xf32>
    %398 = arith.addf %396, %397 : vector<2x16xf32>
    %399 = math.tanh %398 : vector<2x16xf32>
    %400 = arith.mulf %395, %399 : vector<2x16xf32>
    %401 = arith.index_cast %326 : i32 to index
    %c0_132 = arith.constant 0 : index
    %c0_133 = arith.constant 0 : index
    %402 = vector.load %arg21[%401, %c0_132, %c0_133] : memref<8x2x16xf32, #tpu.memory_space<vmem>>, vector<1x2x16xf32>
    %403 = vector.shape_cast %402 : vector<1x2x16xf32> to vector<2x16xf32>
    %404 = vector.shape_cast %400 : vector<2x16xf32> to vector<1x2x16xf32>
    tpu.vector_store %arg21[%401, %c0_132, %c0_133], %404 {strides = array<i32>} : memref<8x2x16xf32, #tpu.memory_space<vmem>>, vector<1x2x16xf32>,
    %c5_i32 = arith.constant 5 : i32
    %c7_i32_134 = arith.constant 7 : i32
    %405 = arith.subi %c7_i32_134, %c5_i32 : i32
    %406 = arith.index_cast %c5_i32 : i32 to index
    %c0_135 = arith.constant 0 : index
    %c0_136 = arith.constant 0 : index
    %407 = vector.load %arg19[%406, %c0_135, %c0_136] : memref<8x2x128xf32, #tpu.memory_space<vmem>>, vector<1x2x128xf32>
    %408 = vector.shape_cast %407 : vector<1x2x128xf32> to vector<2x128xf32>
    %409 = vector.extract_strided_slice %408 {offsets = [0, 0], sizes = [2, 64], strides = [1, 1]} : vector<2x128xf32> to vector<2x64xf32>
    %c0_137 = arith.constant 0 : index
    %c0_138 = arith.constant 0 : index
    %410 = vector.load %arg4[%c0_137, %c0_138] : memref<16x64xf32, #tpu.memory_space<vmem>>, vector<16x64xf32>
    %c0_139 = arith.constant 0 : index
    %c0_140 = arith.constant 0 : index
    %411 = vector.load %arg5[%c0_139, %c0_140] : memref<1x64xf32, #tpu.memory_space<vmem>>, vector<1x64xf32>
    %cst_141 = arith.constant dense<0.000000e+00> : vector<2x64xf32>
    %412 = tpu.matmul %361, %410, %cst_141 {dimension_numbers = #tpu.dot_dimension_numbers<[1], [0], [0], [1], [0, 0, 1, 1], [], []>} : vector<2x16xf32>, vector<16x64xf32>, vector<2x64xf32> -> vector<2x64xf32>
    %413 = arith.addf %409, %412 : vector<2x64xf32>
    %414 = vector.broadcast %411 : vector<1x64xf32> to vector<2x64xf32>
    %415 = arith.addf %413, %414 : vector<2x64xf32>
    %416 = vector.extract_strided_slice %415 {offsets = [0, 0], sizes = [2, 16], strides = [1, 1]} : vector<2x64xf32> to vector<2x16xf32>
    %417 = arith.negf %416 : vector<2x16xf32>
    %418 = math.exp %417 : vector<2x16xf32>
    %cst_142 = arith.constant 1.000000e+00 : f32
    %419 = vector.broadcast %cst_142 : f32 to vector<2x16xf32>
    %420 = arith.addf %419, %418 : vector<2x16xf32>
    %421 = arith.divf %419, %420 : vector<2x16xf32>
    %422 = vector.extract_strided_slice %415 {offsets = [0, 16], sizes = [2, 16], strides = [1, 1]} : vector<2x64xf32> to vector<2x16xf32>
    %423 = arith.negf %422 : vector<2x16xf32>
    %424 = math.exp %423 : vector<2x16xf32>
    %cst_143 = arith.constant 1.000000e+00 : f32
    %425 = vector.broadcast %cst_143 : f32 to vector<2x16xf32>
    %426 = arith.addf %425, %424 : vector<2x16xf32>
    %427 = arith.divf %425, %426 : vector<2x16xf32>
    %428 = vector.extract_strided_slice %415 {offsets = [0, 32], sizes = [2, 16], strides = [1, 1]} : vector<2x64xf32> to vector<2x16xf32>
    %429 = math.tanh %428 : vector<2x16xf32>
    %430 = vector.extract_strided_slice %415 {offsets = [0, 48], sizes = [2, 16], strides = [1, 1]} : vector<2x64xf32> to vector<2x16xf32>
    %431 = arith.negf %430 : vector<2x16xf32>
    %432 = math.exp %431 : vector<2x16xf32>
    %cst_144 = arith.constant 1.000000e+00 : f32
    %433 = vector.broadcast %cst_144 : f32 to vector<2x16xf32>
    %434 = arith.addf %433, %432 : vector<2x16xf32>
    %435 = arith.divf %433, %434 : vector<2x16xf32>
    %436 = arith.mulf %427, %359 : vector<2x16xf32>
    %437 = arith.mulf %421, %429 : vector<2x16xf32>
    %438 = arith.addf %436, %437 : vector<2x16xf32>
    %439 = math.tanh %438 : vector<2x16xf32>
    %440 = arith.mulf %435, %439 : vector<2x16xf32>
    %441 = arith.index_cast %c5_i32 : i32 to index
    %c0_145 = arith.constant 0 : index
    %c0_146 = arith.constant 0 : index
    %442 = vector.load %arg20[%441, %c0_145, %c0_146] : memref<8x2x16xf32, #tpu.memory_space<vmem>>, vector<1x2x16xf32>
    %443 = vector.shape_cast %442 : vector<1x2x16xf32> to vector<2x16xf32>
    %444 = vector.shape_cast %440 : vector<2x16xf32> to vector<1x2x16xf32>
    tpu.vector_store %arg20[%441, %c0_145, %c0_146], %444 {strides = array<i32>} : memref<8x2x16xf32, #tpu.memory_space<vmem>>, vector<1x2x16xf32>,
    %445 = arith.index_cast %405 : i32 to index
    %c0_147 = arith.constant 0 : index
    %c0_148 = arith.constant 0 : index
    %446 = vector.load %arg19[%445, %c0_147, %c0_148] : memref<8x2x128xf32, #tpu.memory_space<vmem>>, vector<1x2x128xf32>
    %447 = vector.shape_cast %446 : vector<1x2x128xf32> to vector<2x128xf32>
    %448 = vector.extract_strided_slice %447 {offsets = [0, 64], sizes = [2, 64], strides = [1, 1]} : vector<2x128xf32> to vector<2x64xf32>
    %c0_149 = arith.constant 0 : index
    %c0_150 = arith.constant 0 : index
    %449 = vector.load %arg6[%c0_149, %c0_150] : memref<16x64xf32, #tpu.memory_space<vmem>>, vector<16x64xf32>
    %c0_151 = arith.constant 0 : index
    %c0_152 = arith.constant 0 : index
    %450 = vector.load %arg7[%c0_151, %c0_152] : memref<1x64xf32, #tpu.memory_space<vmem>>, vector<1x64xf32>
    %cst_153 = arith.constant dense<0.000000e+00> : vector<2x64xf32>
    %451 = tpu.matmul %400, %449, %cst_153 {dimension_numbers = #tpu.dot_dimension_numbers<[1], [0], [0], [1], [0, 0, 1, 1], [], []>} : vector<2x16xf32>, vector<16x64xf32>, vector<2x64xf32> -> vector<2x64xf32>
    %452 = arith.addf %448, %451 : vector<2x64xf32>
    %453 = vector.broadcast %450 : vector<1x64xf32> to vector<2x64xf32>
    %454 = arith.addf %452, %453 : vector<2x64xf32>
    %455 = vector.extract_strided_slice %454 {offsets = [0, 0], sizes = [2, 16], strides = [1, 1]} : vector<2x64xf32> to vector<2x16xf32>
    %456 = arith.negf %455 : vector<2x16xf32>
    %457 = math.exp %456 : vector<2x16xf32>
    %cst_154 = arith.constant 1.000000e+00 : f32
    %458 = vector.broadcast %cst_154 : f32 to vector<2x16xf32>
    %459 = arith.addf %458, %457 : vector<2x16xf32>
    %460 = arith.divf %458, %459 : vector<2x16xf32>
    %461 = vector.extract_strided_slice %454 {offsets = [0, 16], sizes = [2, 16], strides = [1, 1]} : vector<2x64xf32> to vector<2x16xf32>
    %462 = arith.negf %461 : vector<2x16xf32>
    %463 = math.exp %462 : vector<2x16xf32>
    %cst_155 = arith.constant 1.000000e+00 : f32
    %464 = vector.broadcast %cst_155 : f32 to vector<2x16xf32>
    %465 = arith.addf %464, %463 : vector<2x16xf32>
    %466 = arith.divf %464, %465 : vector<2x16xf32>
    %467 = vector.extract_strided_slice %454 {offsets = [0, 32], sizes = [2, 16], strides = [1, 1]} : vector<2x64xf32> to vector<2x16xf32>
    %468 = math.tanh %467 : vector<2x16xf32>
    %469 = vector.extract_strided_slice %454 {offsets = [0, 48], sizes = [2, 16], strides = [1, 1]} : vector<2x64xf32> to vector<2x16xf32>
    %470 = arith.negf %469 : vector<2x16xf32>
    %471 = math.exp %470 : vector<2x16xf32>
    %cst_156 = arith.constant 1.000000e+00 : f32
    %472 = vector.broadcast %cst_156 : f32 to vector<2x16xf32>
    %473 = arith.addf %472, %471 : vector<2x16xf32>
    %474 = arith.divf %472, %473 : vector<2x16xf32>
    %475 = arith.mulf %466, %398 : vector<2x16xf32>
    %476 = arith.mulf %460, %468 : vector<2x16xf32>
    %477 = arith.addf %475, %476 : vector<2x16xf32>
    %478 = math.tanh %477 : vector<2x16xf32>
    %479 = arith.mulf %474, %478 : vector<2x16xf32>
    %480 = arith.index_cast %405 : i32 to index
    %c0_157 = arith.constant 0 : index
    %c0_158 = arith.constant 0 : index
    %481 = vector.load %arg21[%480, %c0_157, %c0_158] : memref<8x2x16xf32, #tpu.memory_space<vmem>>, vector<1x2x16xf32>
    %482 = vector.shape_cast %481 : vector<1x2x16xf32> to vector<2x16xf32>
    %483 = vector.shape_cast %479 : vector<2x16xf32> to vector<1x2x16xf32>
    tpu.vector_store %arg21[%480, %c0_157, %c0_158], %483 {strides = array<i32>} : memref<8x2x16xf32, #tpu.memory_space<vmem>>, vector<1x2x16xf32>,
    %c6_i32 = arith.constant 6 : i32
    %c7_i32_159 = arith.constant 7 : i32
    %484 = arith.subi %c7_i32_159, %c6_i32 : i32
    %485 = arith.index_cast %c6_i32 : i32 to index
    %c0_160 = arith.constant 0 : index
    %c0_161 = arith.constant 0 : index
    %486 = vector.load %arg19[%485, %c0_160, %c0_161] : memref<8x2x128xf32, #tpu.memory_space<vmem>>, vector<1x2x128xf32>
    %487 = vector.shape_cast %486 : vector<1x2x128xf32> to vector<2x128xf32>
    %488 = vector.extract_strided_slice %487 {offsets = [0, 0], sizes = [2, 64], strides = [1, 1]} : vector<2x128xf32> to vector<2x64xf32>
    %c0_162 = arith.constant 0 : index
    %c0_163 = arith.constant 0 : index
    %489 = vector.load %arg4[%c0_162, %c0_163] : memref<16x64xf32, #tpu.memory_space<vmem>>, vector<16x64xf32>
    %c0_164 = arith.constant 0 : index
    %c0_165 = arith.constant 0 : index
    %490 = vector.load %arg5[%c0_164, %c0_165] : memref<1x64xf32, #tpu.memory_space<vmem>>, vector<1x64xf32>
    %cst_166 = arith.constant dense<0.000000e+00> : vector<2x64xf32>
    %491 = tpu.matmul %440, %489, %cst_166 {dimension_numbers = #tpu.dot_dimension_numbers<[1], [0], [0], [1], [0, 0, 1, 1], [], []>} : vector<2x16xf32>, vector<16x64xf32>, vector<2x64xf32> -> vector<2x64xf32>
    %492 = arith.addf %488, %491 : vector<2x64xf32>
    %493 = vector.broadcast %490 : vector<1x64xf32> to vector<2x64xf32>
    %494 = arith.addf %492, %493 : vector<2x64xf32>
    %495 = vector.extract_strided_slice %494 {offsets = [0, 0], sizes = [2, 16], strides = [1, 1]} : vector<2x64xf32> to vector<2x16xf32>
    %496 = arith.negf %495 : vector<2x16xf32>
    %497 = math.exp %496 : vector<2x16xf32>
    %cst_167 = arith.constant 1.000000e+00 : f32
    %498 = vector.broadcast %cst_167 : f32 to vector<2x16xf32>
    %499 = arith.addf %498, %497 : vector<2x16xf32>
    %500 = arith.divf %498, %499 : vector<2x16xf32>
    %501 = vector.extract_strided_slice %494 {offsets = [0, 16], sizes = [2, 16], strides = [1, 1]} : vector<2x64xf32> to vector<2x16xf32>
    %502 = arith.negf %501 : vector<2x16xf32>
    %503 = math.exp %502 : vector<2x16xf32>
    %cst_168 = arith.constant 1.000000e+00 : f32
    %504 = vector.broadcast %cst_168 : f32 to vector<2x16xf32>
    %505 = arith.addf %504, %503 : vector<2x16xf32>
    %506 = arith.divf %504, %505 : vector<2x16xf32>
    %507 = vector.extract_strided_slice %494 {offsets = [0, 32], sizes = [2, 16], strides = [1, 1]} : vector<2x64xf32> to vector<2x16xf32>
    %508 = math.tanh %507 : vector<2x16xf32>
    %509 = vector.extract_strided_slice %494 {offsets = [0, 48], sizes = [2, 16], strides = [1, 1]} : vector<2x64xf32> to vector<2x16xf32>
    %510 = arith.negf %509 : vector<2x16xf32>
    %511 = math.exp %510 : vector<2x16xf32>
    %cst_169 = arith.constant 1.000000e+00 : f32
    %512 = vector.broadcast %cst_169 : f32 to vector<2x16xf32>
    %513 = arith.addf %512, %511 : vector<2x16xf32>
    %514 = arith.divf %512, %513 : vector<2x16xf32>
    %515 = arith.mulf %506, %438 : vector<2x16xf32>
    %516 = arith.mulf %500, %508 : vector<2x16xf32>
    %517 = arith.addf %515, %516 : vector<2x16xf32>
    %518 = math.tanh %517 : vector<2x16xf32>
    %519 = arith.mulf %514, %518 : vector<2x16xf32>
    %520 = arith.index_cast %c6_i32 : i32 to index
    %c0_170 = arith.constant 0 : index
    %c0_171 = arith.constant 0 : index
    %521 = vector.load %arg20[%520, %c0_170, %c0_171] : memref<8x2x16xf32, #tpu.memory_space<vmem>>, vector<1x2x16xf32>
    %522 = vector.shape_cast %521 : vector<1x2x16xf32> to vector<2x16xf32>
    %523 = vector.shape_cast %519 : vector<2x16xf32> to vector<1x2x16xf32>
    tpu.vector_store %arg20[%520, %c0_170, %c0_171], %523 {strides = array<i32>} : memref<8x2x16xf32, #tpu.memory_space<vmem>>, vector<1x2x16xf32>,
    %524 = arith.index_cast %484 : i32 to index
    %c0_172 = arith.constant 0 : index
    %c0_173 = arith.constant 0 : index
    %525 = vector.load %arg19[%524, %c0_172, %c0_173] : memref<8x2x128xf32, #tpu.memory_space<vmem>>, vector<1x2x128xf32>
    %526 = vector.shape_cast %525 : vector<1x2x128xf32> to vector<2x128xf32>
    %527 = vector.extract_strided_slice %526 {offsets = [0, 64], sizes = [2, 64], strides = [1, 1]} : vector<2x128xf32> to vector<2x64xf32>
    %c0_174 = arith.constant 0 : index
    %c0_175 = arith.constant 0 : index
    %528 = vector.load %arg6[%c0_174, %c0_175] : memref<16x64xf32, #tpu.memory_space<vmem>>, vector<16x64xf32>
    %c0_176 = arith.constant 0 : index
    %c0_177 = arith.constant 0 : index
    %529 = vector.load %arg7[%c0_176, %c0_177] : memref<1x64xf32, #tpu.memory_space<vmem>>, vector<1x64xf32>
    %cst_178 = arith.constant dense<0.000000e+00> : vector<2x64xf32>
    %530 = tpu.matmul %479, %528, %cst_178 {dimension_numbers = #tpu.dot_dimension_numbers<[1], [0], [0], [1], [0, 0, 1, 1], [], []>} : vector<2x16xf32>, vector<16x64xf32>, vector<2x64xf32> -> vector<2x64xf32>
    %531 = arith.addf %527, %530 : vector<2x64xf32>
    %532 = vector.broadcast %529 : vector<1x64xf32> to vector<2x64xf32>
    %533 = arith.addf %531, %532 : vector<2x64xf32>
    %534 = vector.extract_strided_slice %533 {offsets = [0, 0], sizes = [2, 16], strides = [1, 1]} : vector<2x64xf32> to vector<2x16xf32>
    %535 = arith.negf %534 : vector<2x16xf32>
    %536 = math.exp %535 : vector<2x16xf32>
    %cst_179 = arith.constant 1.000000e+00 : f32
    %537 = vector.broadcast %cst_179 : f32 to vector<2x16xf32>
    %538 = arith.addf %537, %536 : vector<2x16xf32>
    %539 = arith.divf %537, %538 : vector<2x16xf32>
    %540 = vector.extract_strided_slice %533 {offsets = [0, 16], sizes = [2, 16], strides = [1, 1]} : vector<2x64xf32> to vector<2x16xf32>
    %541 = arith.negf %540 : vector<2x16xf32>
    %542 = math.exp %541 : vector<2x16xf32>
    %cst_180 = arith.constant 1.000000e+00 : f32
    %543 = vector.broadcast %cst_180 : f32 to vector<2x16xf32>
    %544 = arith.addf %543, %542 : vector<2x16xf32>
    %545 = arith.divf %543, %544 : vector<2x16xf32>
    %546 = vector.extract_strided_slice %533 {offsets = [0, 32], sizes = [2, 16], strides = [1, 1]} : vector<2x64xf32> to vector<2x16xf32>
    %547 = math.tanh %546 : vector<2x16xf32>
    %548 = vector.extract_strided_slice %533 {offsets = [0, 48], sizes = [2, 16], strides = [1, 1]} : vector<2x64xf32> to vector<2x16xf32>
    %549 = arith.negf %548 : vector<2x16xf32>
    %550 = math.exp %549 : vector<2x16xf32>
    %cst_181 = arith.constant 1.000000e+00 : f32
    %551 = vector.broadcast %cst_181 : f32 to vector<2x16xf32>
    %552 = arith.addf %551, %550 : vector<2x16xf32>
    %553 = arith.divf %551, %552 : vector<2x16xf32>
    %554 = arith.mulf %545, %477 : vector<2x16xf32>
    %555 = arith.mulf %539, %547 : vector<2x16xf32>
    %556 = arith.addf %554, %555 : vector<2x16xf32>
    %557 = math.tanh %556 : vector<2x16xf32>
    %558 = arith.mulf %553, %557 : vector<2x16xf32>
    %559 = arith.index_cast %484 : i32 to index
    %c0_182 = arith.constant 0 : index
    %c0_183 = arith.constant 0 : index
    %560 = vector.load %arg21[%559, %c0_182, %c0_183] : memref<8x2x16xf32, #tpu.memory_space<vmem>>, vector<1x2x16xf32>
    %561 = vector.shape_cast %560 : vector<1x2x16xf32> to vector<2x16xf32>
    %562 = vector.shape_cast %558 : vector<2x16xf32> to vector<1x2x16xf32>
    tpu.vector_store %arg21[%559, %c0_182, %c0_183], %562 {strides = array<i32>} : memref<8x2x16xf32, #tpu.memory_space<vmem>>, vector<1x2x16xf32>,
    %c7_i32_184 = arith.constant 7 : i32
    %c7_i32_185 = arith.constant 7 : i32
    %563 = arith.subi %c7_i32_185, %c7_i32_184 : i32
    %564 = arith.index_cast %c7_i32_184 : i32 to index
    %c0_186 = arith.constant 0 : index
    %c0_187 = arith.constant 0 : index
    %565 = vector.load %arg19[%564, %c0_186, %c0_187] : memref<8x2x128xf32, #tpu.memory_space<vmem>>, vector<1x2x128xf32>
    %566 = vector.shape_cast %565 : vector<1x2x128xf32> to vector<2x128xf32>
    %567 = vector.extract_strided_slice %566 {offsets = [0, 0], sizes = [2, 64], strides = [1, 1]} : vector<2x128xf32> to vector<2x64xf32>
    %c0_188 = arith.constant 0 : index
    %c0_189 = arith.constant 0 : index
    %568 = vector.load %arg4[%c0_188, %c0_189] : memref<16x64xf32, #tpu.memory_space<vmem>>, vector<16x64xf32>
    %c0_190 = arith.constant 0 : index
    %c0_191 = arith.constant 0 : index
    %569 = vector.load %arg5[%c0_190, %c0_191] : memref<1x64xf32, #tpu.memory_space<vmem>>, vector<1x64xf32>
    %cst_192 = arith.constant dense<0.000000e+00> : vector<2x64xf32>
    %570 = tpu.matmul %519, %568, %cst_192 {dimension_numbers = #tpu.dot_dimension_numbers<[1], [0], [0], [1], [0, 0, 1, 1], [], []>} : vector<2x16xf32>, vector<16x64xf32>, vector<2x64xf32> -> vector<2x64xf32>
    %571 = arith.addf %567, %570 : vector<2x64xf32>
    %572 = vector.broadcast %569 : vector<1x64xf32> to vector<2x64xf32>
    %573 = arith.addf %571, %572 : vector<2x64xf32>
    %574 = vector.extract_strided_slice %573 {offsets = [0, 0], sizes = [2, 16], strides = [1, 1]} : vector<2x64xf32> to vector<2x16xf32>
    %575 = arith.negf %574 : vector<2x16xf32>
    %576 = math.exp %575 : vector<2x16xf32>
    %cst_193 = arith.constant 1.000000e+00 : f32
    %577 = vector.broadcast %cst_193 : f32 to vector<2x16xf32>
    %578 = arith.addf %577, %576 : vector<2x16xf32>
    %579 = arith.divf %577, %578 : vector<2x16xf32>
    %580 = vector.extract_strided_slice %573 {offsets = [0, 16], sizes = [2, 16], strides = [1, 1]} : vector<2x64xf32> to vector<2x16xf32>
    %581 = arith.negf %580 : vector<2x16xf32>
    %582 = math.exp %581 : vector<2x16xf32>
    %cst_194 = arith.constant 1.000000e+00 : f32
    %583 = vector.broadcast %cst_194 : f32 to vector<2x16xf32>
    %584 = arith.addf %583, %582 : vector<2x16xf32>
    %585 = arith.divf %583, %584 : vector<2x16xf32>
    %586 = vector.extract_strided_slice %573 {offsets = [0, 32], sizes = [2, 16], strides = [1, 1]} : vector<2x64xf32> to vector<2x16xf32>
    %587 = math.tanh %586 : vector<2x16xf32>
    %588 = vector.extract_strided_slice %573 {offsets = [0, 48], sizes = [2, 16], strides = [1, 1]} : vector<2x64xf32> to vector<2x16xf32>
    %589 = arith.negf %588 : vector<2x16xf32>
    %590 = math.exp %589 : vector<2x16xf32>
    %cst_195 = arith.constant 1.000000e+00 : f32
    %591 = vector.broadcast %cst_195 : f32 to vector<2x16xf32>
    %592 = arith.addf %591, %590 : vector<2x16xf32>
    %593 = arith.divf %591, %592 : vector<2x16xf32>
    %594 = arith.mulf %585, %517 : vector<2x16xf32>
    %595 = arith.mulf %579, %587 : vector<2x16xf32>
    %596 = arith.addf %594, %595 : vector<2x16xf32>
    %597 = math.tanh %596 : vector<2x16xf32>
    %598 = arith.mulf %593, %597 : vector<2x16xf32>
    %599 = arith.index_cast %c7_i32_184 : i32 to index
    %c0_196 = arith.constant 0 : index
    %c0_197 = arith.constant 0 : index
    %600 = vector.load %arg20[%599, %c0_196, %c0_197] : memref<8x2x16xf32, #tpu.memory_space<vmem>>, vector<1x2x16xf32>
    %601 = vector.shape_cast %600 : vector<1x2x16xf32> to vector<2x16xf32>
    %602 = vector.shape_cast %598 : vector<2x16xf32> to vector<1x2x16xf32>
    tpu.vector_store %arg20[%599, %c0_196, %c0_197], %602 {strides = array<i32>} : memref<8x2x16xf32, #tpu.memory_space<vmem>>, vector<1x2x16xf32>,
    %603 = arith.index_cast %563 : i32 to index
    %c0_198 = arith.constant 0 : index
    %c0_199 = arith.constant 0 : index
    %604 = vector.load %arg19[%603, %c0_198, %c0_199] : memref<8x2x128xf32, #tpu.memory_space<vmem>>, vector<1x2x128xf32>
    %605 = vector.shape_cast %604 : vector<1x2x128xf32> to vector<2x128xf32>
    %606 = vector.extract_strided_slice %605 {offsets = [0, 64], sizes = [2, 64], strides = [1, 1]} : vector<2x128xf32> to vector<2x64xf32>
    %c0_200 = arith.constant 0 : index
    %c0_201 = arith.constant 0 : index
    %607 = vector.load %arg6[%c0_200, %c0_201] : memref<16x64xf32, #tpu.memory_space<vmem>>, vector<16x64xf32>
    %c0_202 = arith.constant 0 : index
    %c0_203 = arith.constant 0 : index
    %608 = vector.load %arg7[%c0_202, %c0_203] : memref<1x64xf32, #tpu.memory_space<vmem>>, vector<1x64xf32>
    %cst_204 = arith.constant dense<0.000000e+00> : vector<2x64xf32>
    %609 = tpu.matmul %558, %607, %cst_204 {dimension_numbers = #tpu.dot_dimension_numbers<[1], [0], [0], [1], [0, 0, 1, 1], [], []>} : vector<2x16xf32>, vector<16x64xf32>, vector<2x64xf32> -> vector<2x64xf32>
    %610 = arith.addf %606, %609 : vector<2x64xf32>
    %611 = vector.broadcast %608 : vector<1x64xf32> to vector<2x64xf32>
    %612 = arith.addf %610, %611 : vector<2x64xf32>
    %613 = vector.extract_strided_slice %612 {offsets = [0, 0], sizes = [2, 16], strides = [1, 1]} : vector<2x64xf32> to vector<2x16xf32>
    %614 = arith.negf %613 : vector<2x16xf32>
    %615 = math.exp %614 : vector<2x16xf32>
    %cst_205 = arith.constant 1.000000e+00 : f32
    %616 = vector.broadcast %cst_205 : f32 to vector<2x16xf32>
    %617 = arith.addf %616, %615 : vector<2x16xf32>
    %618 = arith.divf %616, %617 : vector<2x16xf32>
    %619 = vector.extract_strided_slice %612 {offsets = [0, 16], sizes = [2, 16], strides = [1, 1]} : vector<2x64xf32> to vector<2x16xf32>
    %620 = arith.negf %619 : vector<2x16xf32>
    %621 = math.exp %620 : vector<2x16xf32>
    %cst_206 = arith.constant 1.000000e+00 : f32
    %622 = vector.broadcast %cst_206 : f32 to vector<2x16xf32>
    %623 = arith.addf %622, %621 : vector<2x16xf32>
    %624 = arith.divf %622, %623 : vector<2x16xf32>
    %625 = vector.extract_strided_slice %612 {offsets = [0, 32], sizes = [2, 16], strides = [1, 1]} : vector<2x64xf32> to vector<2x16xf32>
    %626 = math.tanh %625 : vector<2x16xf32>
    %627 = vector.extract_strided_slice %612 {offsets = [0, 48], sizes = [2, 16], strides = [1, 1]} : vector<2x64xf32> to vector<2x16xf32>
    %628 = arith.negf %627 : vector<2x16xf32>
    %629 = math.exp %628 : vector<2x16xf32>
    %cst_207 = arith.constant 1.000000e+00 : f32
    %630 = vector.broadcast %cst_207 : f32 to vector<2x16xf32>
    %631 = arith.addf %630, %629 : vector<2x16xf32>
    %632 = arith.divf %630, %631 : vector<2x16xf32>
    %633 = arith.mulf %624, %556 : vector<2x16xf32>
    %634 = arith.mulf %618, %626 : vector<2x16xf32>
    %635 = arith.addf %633, %634 : vector<2x16xf32>
    %636 = math.tanh %635 : vector<2x16xf32>
    %637 = arith.mulf %632, %636 : vector<2x16xf32>
    %638 = arith.index_cast %563 : i32 to index
    %c0_208 = arith.constant 0 : index
    %c0_209 = arith.constant 0 : index
    %639 = vector.load %arg21[%638, %c0_208, %c0_209] : memref<8x2x16xf32, #tpu.memory_space<vmem>>, vector<1x2x16xf32>
    %640 = vector.shape_cast %639 : vector<1x2x16xf32> to vector<2x16xf32>
    %641 = vector.shape_cast %637 : vector<2x16xf32> to vector<1x2x16xf32>
    tpu.vector_store %arg21[%638, %c0_208, %c0_209], %641 {strides = array<i32>} : memref<8x2x16xf32, #tpu.memory_space<vmem>>, vector<1x2x16xf32>,
    %c8_i32 = arith.constant 8 : i32
    %c0_210 = arith.constant 0 : index
    %c0_211 = arith.constant 0 : index
    %c0_212 = arith.constant 0 : index
    %642 = vector.load %arg1[%c0_210, %c0_211, %c0_212] : memref<8x2x1xf32, #tpu.memory_space<vmem>>, vector<8x2x1xf32>
    %c0_213 = arith.constant 0 : index
    %c0_214 = arith.constant 0 : index
    %c0_215 = arith.constant 0 : index
    %643 = vector.load %arg20[%c0_213, %c0_214, %c0_215] : memref<8x2x16xf32, #tpu.memory_space<vmem>>, vector<8x2x16xf32>
    %644 = vector.broadcast %642 : vector<8x2x1xf32> to vector<8x2x16xf32>
    %645 = arith.mulf %643, %644 : vector<8x2x16xf32>
    %646 = vector.shape_cast %645 : vector<8x2x16xf32> to vector<16x16xf32>
    %c0_216 = arith.constant 0 : index
    %c0_217 = arith.constant 0 : index
    %c0_218 = arith.constant 0 : index
    %647 = vector.load %arg21[%c0_216, %c0_217, %c0_218] : memref<8x2x16xf32, #tpu.memory_space<vmem>>, vector<8x2x16xf32>
    %648 = vector.broadcast %642 : vector<8x2x1xf32> to vector<8x2x16xf32>
    %649 = arith.mulf %647, %648 : vector<8x2x16xf32>
    %650 = vector.shape_cast %649 : vector<8x2x16xf32> to vector<16x16xf32>
    %c0_219 = arith.constant 0 : index
    %c0_220 = arith.constant 0 : index
    %651 = vector.load %arg8[%c0_219, %c0_220] : memref<16x5xf32, #tpu.memory_space<vmem>>, vector<16x5xf32>
    %cst_221 = arith.constant dense<0.000000e+00> : vector<16x5xf32>
    %652 = tpu.matmul %646, %651, %cst_221 {dimension_numbers = #tpu.dot_dimension_numbers<[1], [0], [0], [1], [0, 0, 1, 1], [], []>} : vector<16x16xf32>, vector<16x5xf32>, vector<16x5xf32> -> vector<16x5xf32>
    %c0_222 = arith.constant 0 : index
    %c0_223 = arith.constant 0 : index
    %653 = vector.load %arg9[%c0_222, %c0_223] : memref<16x5xf32, #tpu.memory_space<vmem>>, vector<16x5xf32>
    %cst_224 = arith.constant dense<0.000000e+00> : vector<16x5xf32>
    %654 = tpu.matmul %650, %653, %cst_224 {dimension_numbers = #tpu.dot_dimension_numbers<[1], [0], [0], [1], [0, 0, 1, 1], [], []>} : vector<16x16xf32>, vector<16x5xf32>, vector<16x5xf32> -> vector<16x5xf32>
    %655 = arith.addf %652, %654 : vector<16x5xf32>
    %c0_225 = arith.constant 0 : index
    %c0_226 = arith.constant 0 : index
    %656 = vector.load %arg10[%c0_225, %c0_226] : memref<1x5xf32, #tpu.memory_space<vmem>>, vector<1x5xf32>
    %657 = vector.broadcast %656 : vector<1x5xf32> to vector<16x5xf32>
    %658 = arith.addf %655, %657 : vector<16x5xf32>
    %659 = vector.shape_cast %658 : vector<16x5xf32> to vector<8x2x5xf32>
    %c0_227 = arith.constant 0 : index
    %c0_228 = arith.constant 0 : index
    %c0_229 = arith.constant 0 : index
    %660 = vector.load %arg22[%c0_227, %c0_228, %c0_229] : memref<8x2x5xf32, #tpu.memory_space<vmem>>, vector<8x2x5xf32>
    tpu.vector_store %arg22[%c0_227, %c0_228, %c0_229], %659 {strides = array<i32>} : memref<8x2x5xf32, #tpu.memory_space<vmem>>, vector<8x2x5xf32>,
    %c0_230 = arith.constant 0 : index
    %c0_231 = arith.constant 0 : index
    %661 = vector.load %arg16[%c0_230, %c0_231] : memref<5x5xf32, #tpu.memory_space<vmem>>, vector<5x5xf32>
    %c0_232 = arith.constant 0 : index
    %c0_233 = arith.constant 0 : index
    %c0_234 = arith.constant 0 : index
    %662 = vector.load %arg22[%c0_232, %c0_233, %c0_234] : memref<8x2x5xf32, #tpu.memory_space<vmem>>, vector<1x2x5xf32>
    %663 = vector.shape_cast %662 : vector<1x2x5xf32> to vector<2x5xf32>
    %c0_235 = arith.constant 0 : index
    %c0_236 = arith.constant 0 : index
    %c0_237 = arith.constant 0 : index
    %664 = vector.load %arg11[%c0_235, %c0_236, %c0_237] : memref<8x2x5xf32, #tpu.memory_space<vmem>>, vector<1x2x5xf32>
    %665 = vector.shape_cast %664 : vector<1x2x5xf32> to vector<2x5xf32>
    %c0_238 = arith.constant 0 : index
    %c0_239 = arith.constant 0 : index
    %666 = vector.load %arg14[%c0_238, %c0_239] : memref<1x5xf32, #tpu.memory_space<vmem>>, vector<1x5xf32>
    %667 = vector.broadcast %666 : vector<1x5xf32> to vector<2x5xf32>
    %668 = arith.addf %667, %663 : vector<2x5xf32>
    %c0_240 = arith.constant 0 : index
    %c0_241 = arith.constant 0 : index
    %669 = vector.load %arg14[%c0_240, %c0_241] : memref<1x5xf32, #tpu.memory_space<vmem>>, vector<1x5xf32>
    %670 = vector.broadcast %669 : vector<1x5xf32> to vector<2x5xf32>
    %671 = arith.addf %670, %663 : vector<2x5xf32>
    %672 = arith.mulf %671, %665 : vector<2x5xf32>
    %cst_242 = arith.constant dense<0.000000e+00> : vector<2xf32>
    %673 = vector.multi_reduction <add>, %672, %cst_242 [1] : vector<2x5xf32> to vector<2xf32>
    %674 = vector.shape_cast %673 : vector<2xf32> to vector<2x1xf32>
    %c1_i32_243 = arith.constant 1 : i32
    %675 = arith.index_cast %c1_i32_243 : i32 to index
    %c0_244 = arith.constant 0 : index
    %c0_245 = arith.constant 0 : index
    %676 = vector.load %arg22[%675, %c0_244, %c0_245] : memref<8x2x5xf32, #tpu.memory_space<vmem>>, vector<1x2x5xf32>
    %677 = vector.shape_cast %676 : vector<1x2x5xf32> to vector<2x5xf32>
    %678 = arith.index_cast %c1_i32_243 : i32 to index
    %c0_246 = arith.constant 0 : index
    %c0_247 = arith.constant 0 : index
    %679 = vector.load %arg11[%678, %c0_246, %c0_247] : memref<8x2x5xf32, #tpu.memory_space<vmem>>, vector<1x2x5xf32>
    %680 = vector.shape_cast %679 : vector<1x2x5xf32> to vector<2x5xf32>
    %c1_i32_248 = arith.constant 1 : i32
    %681 = arith.subi %c1_i32_243, %c1_i32_248 : i32
    %682 = arith.index_cast %681 : i32 to index
    %c0_249 = arith.constant 0 : index
    %c0_250 = arith.constant 0 : index
    %683 = vector.load %arg11[%682, %c0_249, %c0_250] : memref<8x2x5xf32, #tpu.memory_space<vmem>>, vector<1x2x5xf32>
    %684 = vector.shape_cast %683 : vector<1x2x5xf32> to vector<2x5xf32>
    %685 = arith.index_cast %c1_i32_243 : i32 to index
    %c0_251 = arith.constant 0 : index
    %c0_252 = arith.constant 0 : index
    %686 = vector.load %arg12[%685, %c0_251, %c0_252] : memref<8x2x1xf32, #tpu.memory_space<vmem>>, vector<1x2x1xf32>
    %687 = vector.shape_cast %686 : vector<1x2x1xf32> to vector<2x1xf32>
    %688 = vector.shape_cast %668 : vector<2x5xf32> to vector<2x5x1xf32>
    %689 = vector.shape_cast %661 : vector<5x5xf32> to vector<1x5x5xf32>
    %690 = vector.broadcast %688 : vector<2x5x1xf32> to vector<2x5x5xf32>
    %691 = vector.broadcast %689 : vector<1x5x5xf32> to vector<2x5x5xf32>
    %692 = arith.addf %690, %691 : vector<2x5x5xf32>
    %693 = vector.shape_cast %677 : vector<2x5xf32> to vector<2x1x5xf32>
    %694 = vector.broadcast %693 : vector<2x1x5xf32> to vector<2x5x5xf32>
    %695 = arith.addf %692, %694 : vector<2x5x5xf32>
    %cst_253 = arith.constant dense<0xFF800000> : vector<2x5xf32>
    %696 = vector.multi_reduction <maximumf>, %695, %cst_253 [1] : vector<2x5x5xf32> to vector<2x5xf32>
    %697 = vector.shape_cast %696 : vector<2x5xf32> to vector<2x1x5xf32>
    %698 = vector.broadcast %697 : vector<2x1x5xf32> to vector<2x5x5xf32>
    %699 = arith.subf %695, %698 : vector<2x5x5xf32>
    %700 = math.exp %699 : vector<2x5x5xf32>
    %cst_254 = arith.constant dense<0.000000e+00> : vector<2x5xf32>
    %701 = vector.multi_reduction <add>, %700, %cst_254 [1] : vector<2x5x5xf32> to vector<2x5xf32>
    %702 = math.log %701 : vector<2x5xf32>
    %703 = vector.shape_cast %697 : vector<2x1x5xf32> to vector<2x5xf32>
    %704 = arith.addf %702, %703 : vector<2x5xf32>
    %cst_255 = arith.constant 5.000000e-01 : f32
    %705 = vector.broadcast %cst_255 : f32 to vector<2x1xf32>
    %706 = arith.cmpf ogt, %687, %705 : vector<2x1xf32>
    %707 = vector.shape_cast %706 : vector<2x1xi1> to vector<2x1xi1>
    %708 = vector.broadcast %707 : vector<2x1xi1> to vector<2x5xi1>
    %709 = arith.select %708, %704, %668 : vector<2x5xi1>, vector<2x5xf32>
    %710 = vector.shape_cast %684 : vector<2x5xf32> to vector<2x5x1xf32>
    %711 = vector.shape_cast %661 : vector<5x5xf32> to vector<1x5x5xf32>
    %712 = vector.broadcast %710 : vector<2x5x1xf32> to vector<2x5x5xf32>
    %713 = vector.broadcast %711 : vector<1x5x5xf32> to vector<2x5x5xf32>
    %714 = arith.mulf %712, %713 : vector<2x5x5xf32>
    %715 = vector.shape_cast %680 : vector<2x5xf32> to vector<2x1x5xf32>
    %716 = vector.broadcast %715 : vector<2x1x5xf32> to vector<2x5x5xf32>
    %717 = arith.mulf %714, %716 : vector<2x5x5xf32>
    %cst_256 = arith.constant dense<0.000000e+00> : vector<2x5xf32>
    %718 = vector.multi_reduction <add>, %717, %cst_256 [2] : vector<2x5x5xf32> to vector<2x5xf32>
    %cst_257 = arith.constant dense<0.000000e+00> : vector<2xf32>
    %719 = vector.multi_reduction <add>, %718, %cst_257 [1] : vector<2x5xf32> to vector<2xf32>
    %720 = vector.shape_cast %719 : vector<2xf32> to vector<2x1xf32>
    %721 = arith.mulf %677, %680 : vector<2x5xf32>
    %cst_258 = arith.constant dense<0.000000e+00> : vector<2xf32>
    %722 = vector.multi_reduction <add>, %721, %cst_258 [1] : vector<2x5xf32> to vector<2xf32>
    %723 = vector.shape_cast %722 : vector<2xf32> to vector<2x1xf32>
    %724 = arith.addf %720, %723 : vector<2x1xf32>
    %725 = arith.mulf %724, %687 : vector<2x1xf32>
    %726 = arith.addf %674, %725 : vector<2x1xf32>
    %c2_i32_259 = arith.constant 2 : i32
    %727 = arith.index_cast %c2_i32_259 : i32 to index
    %c0_260 = arith.constant 0 : index
    %c0_261 = arith.constant 0 : index
    %728 = vector.load %arg22[%727, %c0_260, %c0_261] : memref<8x2x5xf32, #tpu.memory_space<vmem>>, vector<1x2x5xf32>
    %729 = vector.shape_cast %728 : vector<1x2x5xf32> to vector<2x5xf32>
    %730 = arith.index_cast %c2_i32_259 : i32 to index
    %c0_262 = arith.constant 0 : index
    %c0_263 = arith.constant 0 : index
    %731 = vector.load %arg11[%730, %c0_262, %c0_263] : memref<8x2x5xf32, #tpu.memory_space<vmem>>, vector<1x2x5xf32>
    %732 = vector.shape_cast %731 : vector<1x2x5xf32> to vector<2x5xf32>
    %c1_i32_264 = arith.constant 1 : i32
    %733 = arith.subi %c2_i32_259, %c1_i32_264 : i32
    %734 = arith.index_cast %733 : i32 to index
    %c0_265 = arith.constant 0 : index
    %c0_266 = arith.constant 0 : index
    %735 = vector.load %arg11[%734, %c0_265, %c0_266] : memref<8x2x5xf32, #tpu.memory_space<vmem>>, vector<1x2x5xf32>
    %736 = vector.shape_cast %735 : vector<1x2x5xf32> to vector<2x5xf32>
    %737 = arith.index_cast %c2_i32_259 : i32 to index
    %c0_267 = arith.constant 0 : index
    %c0_268 = arith.constant 0 : index
    %738 = vector.load %arg12[%737, %c0_267, %c0_268] : memref<8x2x1xf32, #tpu.memory_space<vmem>>, vector<1x2x1xf32>
    %739 = vector.shape_cast %738 : vector<1x2x1xf32> to vector<2x1xf32>
    %740 = vector.shape_cast %709 : vector<2x5xf32> to vector<2x5x1xf32>
    %741 = vector.shape_cast %661 : vector<5x5xf32> to vector<1x5x5xf32>
    %742 = vector.broadcast %740 : vector<2x5x1xf32> to vector<2x5x5xf32>
    %743 = vector.broadcast %741 : vector<1x5x5xf32> to vector<2x5x5xf32>
    %744 = arith.addf %742, %743 : vector<2x5x5xf32>
    %745 = vector.shape_cast %729 : vector<2x5xf32> to vector<2x1x5xf32>
    %746 = vector.broadcast %745 : vector<2x1x5xf32> to vector<2x5x5xf32>
    %747 = arith.addf %744, %746 : vector<2x5x5xf32>
    %cst_269 = arith.constant dense<0xFF800000> : vector<2x5xf32>
    %748 = vector.multi_reduction <maximumf>, %747, %cst_269 [1] : vector<2x5x5xf32> to vector<2x5xf32>
    %749 = vector.shape_cast %748 : vector<2x5xf32> to vector<2x1x5xf32>
    %750 = vector.broadcast %749 : vector<2x1x5xf32> to vector<2x5x5xf32>
    %751 = arith.subf %747, %750 : vector<2x5x5xf32>
    %752 = math.exp %751 : vector<2x5x5xf32>
    %cst_270 = arith.constant dense<0.000000e+00> : vector<2x5xf32>
    %753 = vector.multi_reduction <add>, %752, %cst_270 [1] : vector<2x5x5xf32> to vector<2x5xf32>
    %754 = math.log %753 : vector<2x5xf32>
    %755 = vector.shape_cast %749 : vector<2x1x5xf32> to vector<2x5xf32>
    %756 = arith.addf %754, %755 : vector<2x5xf32>
    %cst_271 = arith.constant 5.000000e-01 : f32
    %757 = vector.broadcast %cst_271 : f32 to vector<2x1xf32>
    %758 = arith.cmpf ogt, %739, %757 : vector<2x1xf32>
    %759 = vector.shape_cast %758 : vector<2x1xi1> to vector<2x1xi1>
    %760 = vector.broadcast %759 : vector<2x1xi1> to vector<2x5xi1>
    %761 = arith.select %760, %756, %709 : vector<2x5xi1>, vector<2x5xf32>
    %762 = vector.shape_cast %736 : vector<2x5xf32> to vector<2x5x1xf32>
    %763 = vector.shape_cast %661 : vector<5x5xf32> to vector<1x5x5xf32>
    %764 = vector.broadcast %762 : vector<2x5x1xf32> to vector<2x5x5xf32>
    %765 = vector.broadcast %763 : vector<1x5x5xf32> to vector<2x5x5xf32>
    %766 = arith.mulf %764, %765 : vector<2x5x5xf32>
    %767 = vector.shape_cast %732 : vector<2x5xf32> to vector<2x1x5xf32>
    %768 = vector.broadcast %767 : vector<2x1x5xf32> to vector<2x5x5xf32>
    %769 = arith.mulf %766, %768 : vector<2x5x5xf32>
    %cst_272 = arith.constant dense<0.000000e+00> : vector<2x5xf32>
    %770 = vector.multi_reduction <add>, %769, %cst_272 [2] : vector<2x5x5xf32> to vector<2x5xf32>
    %cst_273 = arith.constant dense<0.000000e+00> : vector<2xf32>
    %771 = vector.multi_reduction <add>, %770, %cst_273 [1] : vector<2x5xf32> to vector<2xf32>
    %772 = vector.shape_cast %771 : vector<2xf32> to vector<2x1xf32>
    %773 = arith.mulf %729, %732 : vector<2x5xf32>
    %cst_274 = arith.constant dense<0.000000e+00> : vector<2xf32>
    %774 = vector.multi_reduction <add>, %773, %cst_274 [1] : vector<2x5xf32> to vector<2xf32>
    %775 = vector.shape_cast %774 : vector<2xf32> to vector<2x1xf32>
    %776 = arith.addf %772, %775 : vector<2x1xf32>
    %777 = arith.mulf %776, %739 : vector<2x1xf32>
    %778 = arith.addf %726, %777 : vector<2x1xf32>
    %c3_i32_275 = arith.constant 3 : i32
    %779 = arith.index_cast %c3_i32_275 : i32 to index
    %c0_276 = arith.constant 0 : index
    %c0_277 = arith.constant 0 : index
    %780 = vector.load %arg22[%779, %c0_276, %c0_277] : memref<8x2x5xf32, #tpu.memory_space<vmem>>, vector<1x2x5xf32>
    %781 = vector.shape_cast %780 : vector<1x2x5xf32> to vector<2x5xf32>
    %782 = arith.index_cast %c3_i32_275 : i32 to index
    %c0_278 = arith.constant 0 : index
    %c0_279 = arith.constant 0 : index
    %783 = vector.load %arg11[%782, %c0_278, %c0_279] : memref<8x2x5xf32, #tpu.memory_space<vmem>>, vector<1x2x5xf32>
    %784 = vector.shape_cast %783 : vector<1x2x5xf32> to vector<2x5xf32>
    %c1_i32_280 = arith.constant 1 : i32
    %785 = arith.subi %c3_i32_275, %c1_i32_280 : i32
    %786 = arith.index_cast %785 : i32 to index
    %c0_281 = arith.constant 0 : index
    %c0_282 = arith.constant 0 : index
    %787 = vector.load %arg11[%786, %c0_281, %c0_282] : memref<8x2x5xf32, #tpu.memory_space<vmem>>, vector<1x2x5xf32>
    %788 = vector.shape_cast %787 : vector<1x2x5xf32> to vector<2x5xf32>
    %789 = arith.index_cast %c3_i32_275 : i32 to index
    %c0_283 = arith.constant 0 : index
    %c0_284 = arith.constant 0 : index
    %790 = vector.load %arg12[%789, %c0_283, %c0_284] : memref<8x2x1xf32, #tpu.memory_space<vmem>>, vector<1x2x1xf32>
    %791 = vector.shape_cast %790 : vector<1x2x1xf32> to vector<2x1xf32>
    %792 = vector.shape_cast %761 : vector<2x5xf32> to vector<2x5x1xf32>
    %793 = vector.shape_cast %661 : vector<5x5xf32> to vector<1x5x5xf32>
    %794 = vector.broadcast %792 : vector<2x5x1xf32> to vector<2x5x5xf32>
    %795 = vector.broadcast %793 : vector<1x5x5xf32> to vector<2x5x5xf32>
    %796 = arith.addf %794, %795 : vector<2x5x5xf32>
    %797 = vector.shape_cast %781 : vector<2x5xf32> to vector<2x1x5xf32>
    %798 = vector.broadcast %797 : vector<2x1x5xf32> to vector<2x5x5xf32>
    %799 = arith.addf %796, %798 : vector<2x5x5xf32>
    %cst_285 = arith.constant dense<0xFF800000> : vector<2x5xf32>
    %800 = vector.multi_reduction <maximumf>, %799, %cst_285 [1] : vector<2x5x5xf32> to vector<2x5xf32>
    %801 = vector.shape_cast %800 : vector<2x5xf32> to vector<2x1x5xf32>
    %802 = vector.broadcast %801 : vector<2x1x5xf32> to vector<2x5x5xf32>
    %803 = arith.subf %799, %802 : vector<2x5x5xf32>
    %804 = math.exp %803 : vector<2x5x5xf32>
    %cst_286 = arith.constant dense<0.000000e+00> : vector<2x5xf32>
    %805 = vector.multi_reduction <add>, %804, %cst_286 [1] : vector<2x5x5xf32> to vector<2x5xf32>
    %806 = math.log %805 : vector<2x5xf32>
    %807 = vector.shape_cast %801 : vector<2x1x5xf32> to vector<2x5xf32>
    %808 = arith.addf %806, %807 : vector<2x5xf32>
    %cst_287 = arith.constant 5.000000e-01 : f32
    %809 = vector.broadcast %cst_287 : f32 to vector<2x1xf32>
    %810 = arith.cmpf ogt, %791, %809 : vector<2x1xf32>
    %811 = vector.shape_cast %810 : vector<2x1xi1> to vector<2x1xi1>
    %812 = vector.broadcast %811 : vector<2x1xi1> to vector<2x5xi1>
    %813 = arith.select %812, %808, %761 : vector<2x5xi1>, vector<2x5xf32>
    %814 = vector.shape_cast %788 : vector<2x5xf32> to vector<2x5x1xf32>
    %815 = vector.shape_cast %661 : vector<5x5xf32> to vector<1x5x5xf32>
    %816 = vector.broadcast %814 : vector<2x5x1xf32> to vector<2x5x5xf32>
    %817 = vector.broadcast %815 : vector<1x5x5xf32> to vector<2x5x5xf32>
    %818 = arith.mulf %816, %817 : vector<2x5x5xf32>
    %819 = vector.shape_cast %784 : vector<2x5xf32> to vector<2x1x5xf32>
    %820 = vector.broadcast %819 : vector<2x1x5xf32> to vector<2x5x5xf32>
    %821 = arith.mulf %818, %820 : vector<2x5x5xf32>
    %cst_288 = arith.constant dense<0.000000e+00> : vector<2x5xf32>
    %822 = vector.multi_reduction <add>, %821, %cst_288 [2] : vector<2x5x5xf32> to vector<2x5xf32>
    %cst_289 = arith.constant dense<0.000000e+00> : vector<2xf32>
    %823 = vector.multi_reduction <add>, %822, %cst_289 [1] : vector<2x5xf32> to vector<2xf32>
    %824 = vector.shape_cast %823 : vector<2xf32> to vector<2x1xf32>
    %825 = arith.mulf %781, %784 : vector<2x5xf32>
    %cst_290 = arith.constant dense<0.000000e+00> : vector<2xf32>
    %826 = vector.multi_reduction <add>, %825, %cst_290 [1] : vector<2x5xf32> to vector<2xf32>
    %827 = vector.shape_cast %826 : vector<2xf32> to vector<2x1xf32>
    %828 = arith.addf %824, %827 : vector<2x1xf32>
    %829 = arith.mulf %828, %791 : vector<2x1xf32>
    %830 = arith.addf %778, %829 : vector<2x1xf32>
    %c4_i32_291 = arith.constant 4 : i32
    %831 = arith.index_cast %c4_i32_291 : i32 to index
    %c0_292 = arith.constant 0 : index
    %c0_293 = arith.constant 0 : index
    %832 = vector.load %arg22[%831, %c0_292, %c0_293] : memref<8x2x5xf32, #tpu.memory_space<vmem>>, vector<1x2x5xf32>
    %833 = vector.shape_cast %832 : vector<1x2x5xf32> to vector<2x5xf32>
    %834 = arith.index_cast %c4_i32_291 : i32 to index
    %c0_294 = arith.constant 0 : index
    %c0_295 = arith.constant 0 : index
    %835 = vector.load %arg11[%834, %c0_294, %c0_295] : memref<8x2x5xf32, #tpu.memory_space<vmem>>, vector<1x2x5xf32>
    %836 = vector.shape_cast %835 : vector<1x2x5xf32> to vector<2x5xf32>
    %c1_i32_296 = arith.constant 1 : i32
    %837 = arith.subi %c4_i32_291, %c1_i32_296 : i32
    %838 = arith.index_cast %837 : i32 to index
    %c0_297 = arith.constant 0 : index
    %c0_298 = arith.constant 0 : index
    %839 = vector.load %arg11[%838, %c0_297, %c0_298] : memref<8x2x5xf32, #tpu.memory_space<vmem>>, vector<1x2x5xf32>
    %840 = vector.shape_cast %839 : vector<1x2x5xf32> to vector<2x5xf32>
    %841 = arith.index_cast %c4_i32_291 : i32 to index
    %c0_299 = arith.constant 0 : index
    %c0_300 = arith.constant 0 : index
    %842 = vector.load %arg12[%841, %c0_299, %c0_300] : memref<8x2x1xf32, #tpu.memory_space<vmem>>, vector<1x2x1xf32>
    %843 = vector.shape_cast %842 : vector<1x2x1xf32> to vector<2x1xf32>
    %844 = vector.shape_cast %813 : vector<2x5xf32> to vector<2x5x1xf32>
    %845 = vector.shape_cast %661 : vector<5x5xf32> to vector<1x5x5xf32>
    %846 = vector.broadcast %844 : vector<2x5x1xf32> to vector<2x5x5xf32>
    %847 = vector.broadcast %845 : vector<1x5x5xf32> to vector<2x5x5xf32>
    %848 = arith.addf %846, %847 : vector<2x5x5xf32>
    %849 = vector.shape_cast %833 : vector<2x5xf32> to vector<2x1x5xf32>
    %850 = vector.broadcast %849 : vector<2x1x5xf32> to vector<2x5x5xf32>
    %851 = arith.addf %848, %850 : vector<2x5x5xf32>
    %cst_301 = arith.constant dense<0xFF800000> : vector<2x5xf32>
    %852 = vector.multi_reduction <maximumf>, %851, %cst_301 [1] : vector<2x5x5xf32> to vector<2x5xf32>
    %853 = vector.shape_cast %852 : vector<2x5xf32> to vector<2x1x5xf32>
    %854 = vector.broadcast %853 : vector<2x1x5xf32> to vector<2x5x5xf32>
    %855 = arith.subf %851, %854 : vector<2x5x5xf32>
    %856 = math.exp %855 : vector<2x5x5xf32>
    %cst_302 = arith.constant dense<0.000000e+00> : vector<2x5xf32>
    %857 = vector.multi_reduction <add>, %856, %cst_302 [1] : vector<2x5x5xf32> to vector<2x5xf32>
    %858 = math.log %857 : vector<2x5xf32>
    %859 = vector.shape_cast %853 : vector<2x1x5xf32> to vector<2x5xf32>
    %860 = arith.addf %858, %859 : vector<2x5xf32>
    %cst_303 = arith.constant 5.000000e-01 : f32
    %861 = vector.broadcast %cst_303 : f32 to vector<2x1xf32>
    %862 = arith.cmpf ogt, %843, %861 : vector<2x1xf32>
    %863 = vector.shape_cast %862 : vector<2x1xi1> to vector<2x1xi1>
    %864 = vector.broadcast %863 : vector<2x1xi1> to vector<2x5xi1>
    %865 = arith.select %864, %860, %813 : vector<2x5xi1>, vector<2x5xf32>
    %866 = vector.shape_cast %840 : vector<2x5xf32> to vector<2x5x1xf32>
    %867 = vector.shape_cast %661 : vector<5x5xf32> to vector<1x5x5xf32>
    %868 = vector.broadcast %866 : vector<2x5x1xf32> to vector<2x5x5xf32>
    %869 = vector.broadcast %867 : vector<1x5x5xf32> to vector<2x5x5xf32>
    %870 = arith.mulf %868, %869 : vector<2x5x5xf32>
    %871 = vector.shape_cast %836 : vector<2x5xf32> to vector<2x1x5xf32>
    %872 = vector.broadcast %871 : vector<2x1x5xf32> to vector<2x5x5xf32>
    %873 = arith.mulf %870, %872 : vector<2x5x5xf32>
    %cst_304 = arith.constant dense<0.000000e+00> : vector<2x5xf32>
    %874 = vector.multi_reduction <add>, %873, %cst_304 [2] : vector<2x5x5xf32> to vector<2x5xf32>
    %cst_305 = arith.constant dense<0.000000e+00> : vector<2xf32>
    %875 = vector.multi_reduction <add>, %874, %cst_305 [1] : vector<2x5xf32> to vector<2xf32>
    %876 = vector.shape_cast %875 : vector<2xf32> to vector<2x1xf32>
    %877 = arith.mulf %833, %836 : vector<2x5xf32>
    %cst_306 = arith.constant dense<0.000000e+00> : vector<2xf32>
    %878 = vector.multi_reduction <add>, %877, %cst_306 [1] : vector<2x5xf32> to vector<2xf32>
    %879 = vector.shape_cast %878 : vector<2xf32> to vector<2x1xf32>
    %880 = arith.addf %876, %879 : vector<2x1xf32>
    %881 = arith.mulf %880, %843 : vector<2x1xf32>
    %882 = arith.addf %830, %881 : vector<2x1xf32>
    %c5_i32_307 = arith.constant 5 : i32
    %883 = arith.index_cast %c5_i32_307 : i32 to index
    %c0_308 = arith.constant 0 : index
    %c0_309 = arith.constant 0 : index
    %884 = vector.load %arg22[%883, %c0_308, %c0_309] : memref<8x2x5xf32, #tpu.memory_space<vmem>>, vector<1x2x5xf32>
    %885 = vector.shape_cast %884 : vector<1x2x5xf32> to vector<2x5xf32>
    %886 = arith.index_cast %c5_i32_307 : i32 to index
    %c0_310 = arith.constant 0 : index
    %c0_311 = arith.constant 0 : index
    %887 = vector.load %arg11[%886, %c0_310, %c0_311] : memref<8x2x5xf32, #tpu.memory_space<vmem>>, vector<1x2x5xf32>
    %888 = vector.shape_cast %887 : vector<1x2x5xf32> to vector<2x5xf32>
    %c1_i32_312 = arith.constant 1 : i32
    %889 = arith.subi %c5_i32_307, %c1_i32_312 : i32
    %890 = arith.index_cast %889 : i32 to index
    %c0_313 = arith.constant 0 : index
    %c0_314 = arith.constant 0 : index
    %891 = vector.load %arg11[%890, %c0_313, %c0_314] : memref<8x2x5xf32, #tpu.memory_space<vmem>>, vector<1x2x5xf32>
    %892 = vector.shape_cast %891 : vector<1x2x5xf32> to vector<2x5xf32>
    %893 = arith.index_cast %c5_i32_307 : i32 to index
    %c0_315 = arith.constant 0 : index
    %c0_316 = arith.constant 0 : index
    %894 = vector.load %arg12[%893, %c0_315, %c0_316] : memref<8x2x1xf32, #tpu.memory_space<vmem>>, vector<1x2x1xf32>
    %895 = vector.shape_cast %894 : vector<1x2x1xf32> to vector<2x1xf32>
    %896 = vector.shape_cast %865 : vector<2x5xf32> to vector<2x5x1xf32>
    %897 = vector.shape_cast %661 : vector<5x5xf32> to vector<1x5x5xf32>
    %898 = vector.broadcast %896 : vector<2x5x1xf32> to vector<2x5x5xf32>
    %899 = vector.broadcast %897 : vector<1x5x5xf32> to vector<2x5x5xf32>
    %900 = arith.addf %898, %899 : vector<2x5x5xf32>
    %901 = vector.shape_cast %885 : vector<2x5xf32> to vector<2x1x5xf32>
    %902 = vector.broadcast %901 : vector<2x1x5xf32> to vector<2x5x5xf32>
    %903 = arith.addf %900, %902 : vector<2x5x5xf32>
    %cst_317 = arith.constant dense<0xFF800000> : vector<2x5xf32>
    %904 = vector.multi_reduction <maximumf>, %903, %cst_317 [1] : vector<2x5x5xf32> to vector<2x5xf32>
    %905 = vector.shape_cast %904 : vector<2x5xf32> to vector<2x1x5xf32>
    %906 = vector.broadcast %905 : vector<2x1x5xf32> to vector<2x5x5xf32>
    %907 = arith.subf %903, %906 : vector<2x5x5xf32>
    %908 = math.exp %907 : vector<2x5x5xf32>
    %cst_318 = arith.constant dense<0.000000e+00> : vector<2x5xf32>
    %909 = vector.multi_reduction <add>, %908, %cst_318 [1] : vector<2x5x5xf32> to vector<2x5xf32>
    %910 = math.log %909 : vector<2x5xf32>
    %911 = vector.shape_cast %905 : vector<2x1x5xf32> to vector<2x5xf32>
    %912 = arith.addf %910, %911 : vector<2x5xf32>
    %cst_319 = arith.constant 5.000000e-01 : f32
    %913 = vector.broadcast %cst_319 : f32 to vector<2x1xf32>
    %914 = arith.cmpf ogt, %895, %913 : vector<2x1xf32>
    %915 = vector.shape_cast %914 : vector<2x1xi1> to vector<2x1xi1>
    %916 = vector.broadcast %915 : vector<2x1xi1> to vector<2x5xi1>
    %917 = arith.select %916, %912, %865 : vector<2x5xi1>, vector<2x5xf32>
    %918 = vector.shape_cast %892 : vector<2x5xf32> to vector<2x5x1xf32>
    %919 = vector.shape_cast %661 : vector<5x5xf32> to vector<1x5x5xf32>
    %920 = vector.broadcast %918 : vector<2x5x1xf32> to vector<2x5x5xf32>
    %921 = vector.broadcast %919 : vector<1x5x5xf32> to vector<2x5x5xf32>
    %922 = arith.mulf %920, %921 : vector<2x5x5xf32>
    %923 = vector.shape_cast %888 : vector<2x5xf32> to vector<2x1x5xf32>
    %924 = vector.broadcast %923 : vector<2x1x5xf32> to vector<2x5x5xf32>
    %925 = arith.mulf %922, %924 : vector<2x5x5xf32>
    %cst_320 = arith.constant dense<0.000000e+00> : vector<2x5xf32>
    %926 = vector.multi_reduction <add>, %925, %cst_320 [2] : vector<2x5x5xf32> to vector<2x5xf32>
    %cst_321 = arith.constant dense<0.000000e+00> : vector<2xf32>
    %927 = vector.multi_reduction <add>, %926, %cst_321 [1] : vector<2x5xf32> to vector<2xf32>
    %928 = vector.shape_cast %927 : vector<2xf32> to vector<2x1xf32>
    %929 = arith.mulf %885, %888 : vector<2x5xf32>
    %cst_322 = arith.constant dense<0.000000e+00> : vector<2xf32>
    %930 = vector.multi_reduction <add>, %929, %cst_322 [1] : vector<2x5xf32> to vector<2xf32>
    %931 = vector.shape_cast %930 : vector<2xf32> to vector<2x1xf32>
    %932 = arith.addf %928, %931 : vector<2x1xf32>
    %933 = arith.mulf %932, %895 : vector<2x1xf32>
    %934 = arith.addf %882, %933 : vector<2x1xf32>
    %c6_i32_323 = arith.constant 6 : i32
    %935 = arith.index_cast %c6_i32_323 : i32 to index
    %c0_324 = arith.constant 0 : index
    %c0_325 = arith.constant 0 : index
    %936 = vector.load %arg22[%935, %c0_324, %c0_325] : memref<8x2x5xf32, #tpu.memory_space<vmem>>, vector<1x2x5xf32>
    %937 = vector.shape_cast %936 : vector<1x2x5xf32> to vector<2x5xf32>
    %938 = arith.index_cast %c6_i32_323 : i32 to index
    %c0_326 = arith.constant 0 : index
    %c0_327 = arith.constant 0 : index
    %939 = vector.load %arg11[%938, %c0_326, %c0_327] : memref<8x2x5xf32, #tpu.memory_space<vmem>>, vector<1x2x5xf32>
    %940 = vector.shape_cast %939 : vector<1x2x5xf32> to vector<2x5xf32>
    %c1_i32_328 = arith.constant 1 : i32
    %941 = arith.subi %c6_i32_323, %c1_i32_328 : i32
    %942 = arith.index_cast %941 : i32 to index
    %c0_329 = arith.constant 0 : index
    %c0_330 = arith.constant 0 : index
    %943 = vector.load %arg11[%942, %c0_329, %c0_330] : memref<8x2x5xf32, #tpu.memory_space<vmem>>, vector<1x2x5xf32>
    %944 = vector.shape_cast %943 : vector<1x2x5xf32> to vector<2x5xf32>
    %945 = arith.index_cast %c6_i32_323 : i32 to index
    %c0_331 = arith.constant 0 : index
    %c0_332 = arith.constant 0 : index
    %946 = vector.load %arg12[%945, %c0_331, %c0_332] : memref<8x2x1xf32, #tpu.memory_space<vmem>>, vector<1x2x1xf32>
    %947 = vector.shape_cast %946 : vector<1x2x1xf32> to vector<2x1xf32>
    %948 = vector.shape_cast %917 : vector<2x5xf32> to vector<2x5x1xf32>
    %949 = vector.shape_cast %661 : vector<5x5xf32> to vector<1x5x5xf32>
    %950 = vector.broadcast %948 : vector<2x5x1xf32> to vector<2x5x5xf32>
    %951 = vector.broadcast %949 : vector<1x5x5xf32> to vector<2x5x5xf32>
    %952 = arith.addf %950, %951 : vector<2x5x5xf32>
    %953 = vector.shape_cast %937 : vector<2x5xf32> to vector<2x1x5xf32>
    %954 = vector.broadcast %953 : vector<2x1x5xf32> to vector<2x5x5xf32>
    %955 = arith.addf %952, %954 : vector<2x5x5xf32>
    %cst_333 = arith.constant dense<0xFF800000> : vector<2x5xf32>
    %956 = vector.multi_reduction <maximumf>, %955, %cst_333 [1] : vector<2x5x5xf32> to vector<2x5xf32>
    %957 = vector.shape_cast %956 : vector<2x5xf32> to vector<2x1x5xf32>
    %958 = vector.broadcast %957 : vector<2x1x5xf32> to vector<2x5x5xf32>
    %959 = arith.subf %955, %958 : vector<2x5x5xf32>
    %960 = math.exp %959 : vector<2x5x5xf32>
    %cst_334 = arith.constant dense<0.000000e+00> : vector<2x5xf32>
    %961 = vector.multi_reduction <add>, %960, %cst_334 [1] : vector<2x5x5xf32> to vector<2x5xf32>
    %962 = math.log %961 : vector<2x5xf32>
    %963 = vector.shape_cast %957 : vector<2x1x5xf32> to vector<2x5xf32>
    %964 = arith.addf %962, %963 : vector<2x5xf32>
    %cst_335 = arith.constant 5.000000e-01 : f32
    %965 = vector.broadcast %cst_335 : f32 to vector<2x1xf32>
    %966 = arith.cmpf ogt, %947, %965 : vector<2x1xf32>
    %967 = vector.shape_cast %966 : vector<2x1xi1> to vector<2x1xi1>
    %968 = vector.broadcast %967 : vector<2x1xi1> to vector<2x5xi1>
    %969 = arith.select %968, %964, %917 : vector<2x5xi1>, vector<2x5xf32>
    %970 = vector.shape_cast %944 : vector<2x5xf32> to vector<2x5x1xf32>
    %971 = vector.shape_cast %661 : vector<5x5xf32> to vector<1x5x5xf32>
    %972 = vector.broadcast %970 : vector<2x5x1xf32> to vector<2x5x5xf32>
    %973 = vector.broadcast %971 : vector<1x5x5xf32> to vector<2x5x5xf32>
    %974 = arith.mulf %972, %973 : vector<2x5x5xf32>
    %975 = vector.shape_cast %940 : vector<2x5xf32> to vector<2x1x5xf32>
    %976 = vector.broadcast %975 : vector<2x1x5xf32> to vector<2x5x5xf32>
    %977 = arith.mulf %974, %976 : vector<2x5x5xf32>
    %cst_336 = arith.constant dense<0.000000e+00> : vector<2x5xf32>
    %978 = vector.multi_reduction <add>, %977, %cst_336 [2] : vector<2x5x5xf32> to vector<2x5xf32>
    %cst_337 = arith.constant dense<0.000000e+00> : vector<2xf32>
    %979 = vector.multi_reduction <add>, %978, %cst_337 [1] : vector<2x5xf32> to vector<2xf32>
    %980 = vector.shape_cast %979 : vector<2xf32> to vector<2x1xf32>
    %981 = arith.mulf %937, %940 : vector<2x5xf32>
    %cst_338 = arith.constant dense<0.000000e+00> : vector<2xf32>
    %982 = vector.multi_reduction <add>, %981, %cst_338 [1] : vector<2x5xf32> to vector<2xf32>
    %983 = vector.shape_cast %982 : vector<2xf32> to vector<2x1xf32>
    %984 = arith.addf %980, %983 : vector<2x1xf32>
    %985 = arith.mulf %984, %947 : vector<2x1xf32>
    %986 = arith.addf %934, %985 : vector<2x1xf32>
    %c7_i32_339 = arith.constant 7 : i32
    %987 = arith.index_cast %c7_i32_339 : i32 to index
    %c0_340 = arith.constant 0 : index
    %c0_341 = arith.constant 0 : index
    %988 = vector.load %arg22[%987, %c0_340, %c0_341] : memref<8x2x5xf32, #tpu.memory_space<vmem>>, vector<1x2x5xf32>
    %989 = vector.shape_cast %988 : vector<1x2x5xf32> to vector<2x5xf32>
    %990 = arith.index_cast %c7_i32_339 : i32 to index
    %c0_342 = arith.constant 0 : index
    %c0_343 = arith.constant 0 : index
    %991 = vector.load %arg11[%990, %c0_342, %c0_343] : memref<8x2x5xf32, #tpu.memory_space<vmem>>, vector<1x2x5xf32>
    %992 = vector.shape_cast %991 : vector<1x2x5xf32> to vector<2x5xf32>
    %c1_i32_344 = arith.constant 1 : i32
    %993 = arith.subi %c7_i32_339, %c1_i32_344 : i32
    %994 = arith.index_cast %993 : i32 to index
    %c0_345 = arith.constant 0 : index
    %c0_346 = arith.constant 0 : index
    %995 = vector.load %arg11[%994, %c0_345, %c0_346] : memref<8x2x5xf32, #tpu.memory_space<vmem>>, vector<1x2x5xf32>
    %996 = vector.shape_cast %995 : vector<1x2x5xf32> to vector<2x5xf32>
    %997 = arith.index_cast %c7_i32_339 : i32 to index
    %c0_347 = arith.constant 0 : index
    %c0_348 = arith.constant 0 : index
    %998 = vector.load %arg12[%997, %c0_347, %c0_348] : memref<8x2x1xf32, #tpu.memory_space<vmem>>, vector<1x2x1xf32>
    %999 = vector.shape_cast %998 : vector<1x2x1xf32> to vector<2x1xf32>
    %1000 = vector.shape_cast %969 : vector<2x5xf32> to vector<2x5x1xf32>
    %1001 = vector.shape_cast %661 : vector<5x5xf32> to vector<1x5x5xf32>
    %1002 = vector.broadcast %1000 : vector<2x5x1xf32> to vector<2x5x5xf32>
    %1003 = vector.broadcast %1001 : vector<1x5x5xf32> to vector<2x5x5xf32>
    %1004 = arith.addf %1002, %1003 : vector<2x5x5xf32>
    %1005 = vector.shape_cast %989 : vector<2x5xf32> to vector<2x1x5xf32>
    %1006 = vector.broadcast %1005 : vector<2x1x5xf32> to vector<2x5x5xf32>
    %1007 = arith.addf %1004, %1006 : vector<2x5x5xf32>
    %cst_349 = arith.constant dense<0xFF800000> : vector<2x5xf32>
    %1008 = vector.multi_reduction <maximumf>, %1007, %cst_349 [1] : vector<2x5x5xf32> to vector<2x5xf32>
    %1009 = vector.shape_cast %1008 : vector<2x5xf32> to vector<2x1x5xf32>
    %1010 = vector.broadcast %1009 : vector<2x1x5xf32> to vector<2x5x5xf32>
    %1011 = arith.subf %1007, %1010 : vector<2x5x5xf32>
    %1012 = math.exp %1011 : vector<2x5x5xf32>
    %cst_350 = arith.constant dense<0.000000e+00> : vector<2x5xf32>
    %1013 = vector.multi_reduction <add>, %1012, %cst_350 [1] : vector<2x5x5xf32> to vector<2x5xf32>
    %1014 = math.log %1013 : vector<2x5xf32>
    %1015 = vector.shape_cast %1009 : vector<2x1x5xf32> to vector<2x5xf32>
    %1016 = arith.addf %1014, %1015 : vector<2x5xf32>
    %cst_351 = arith.constant 5.000000e-01 : f32
    %1017 = vector.broadcast %cst_351 : f32 to vector<2x1xf32>
    %1018 = arith.cmpf ogt, %999, %1017 : vector<2x1xf32>
    %1019 = vector.shape_cast %1018 : vector<2x1xi1> to vector<2x1xi1>
    %1020 = vector.broadcast %1019 : vector<2x1xi1> to vector<2x5xi1>
    %1021 = arith.select %1020, %1016, %969 : vector<2x5xi1>, vector<2x5xf32>
    %1022 = vector.shape_cast %996 : vector<2x5xf32> to vector<2x5x1xf32>
    %1023 = vector.shape_cast %661 : vector<5x5xf32> to vector<1x5x5xf32>
    %1024 = vector.broadcast %1022 : vector<2x5x1xf32> to vector<2x5x5xf32>
    %1025 = vector.broadcast %1023 : vector<1x5x5xf32> to vector<2x5x5xf32>
    %1026 = arith.mulf %1024, %1025 : vector<2x5x5xf32>
    %1027 = vector.shape_cast %992 : vector<2x5xf32> to vector<2x1x5xf32>
    %1028 = vector.broadcast %1027 : vector<2x1x5xf32> to vector<2x5x5xf32>
    %1029 = arith.mulf %1026, %1028 : vector<2x5x5xf32>
    %cst_352 = arith.constant dense<0.000000e+00> : vector<2x5xf32>
    %1030 = vector.multi_reduction <add>, %1029, %cst_352 [2] : vector<2x5x5xf32> to vector<2x5xf32>
    %cst_353 = arith.constant dense<0.000000e+00> : vector<2xf32>
    %1031 = vector.multi_reduction <add>, %1030, %cst_353 [1] : vector<2x5xf32> to vector<2xf32>
    %1032 = vector.shape_cast %1031 : vector<2xf32> to vector<2x1xf32>
    %1033 = arith.mulf %989, %992 : vector<2x5xf32>
    %cst_354 = arith.constant dense<0.000000e+00> : vector<2xf32>
    %1034 = vector.multi_reduction <add>, %1033, %cst_354 [1] : vector<2x5xf32> to vector<2xf32>
    %1035 = vector.shape_cast %1034 : vector<2xf32> to vector<2x1xf32>
    %1036 = arith.addf %1032, %1035 : vector<2x1xf32>
    %1037 = arith.mulf %1036, %999 : vector<2x1xf32>
    %1038 = arith.addf %986, %1037 : vector<2x1xf32>
    %c7_i32_355 = arith.constant 7 : i32
    %c0_356 = arith.constant 0 : index
    %c0_357 = arith.constant 0 : index
    %1039 = vector.load %arg15[%c0_356, %c0_357] : memref<1x5xf32, #tpu.memory_space<vmem>>, vector<1x5xf32>
    %c0_358 = arith.constant 0 : index
    %c0_359 = arith.constant 0 : index
    %1040 = vector.load %arg13[%c0_358, %c0_359] : memref<2x5xf32, #tpu.memory_space<vmem>>, vector<2x5xf32>
    %1041 = vector.broadcast %1039 : vector<1x5xf32> to vector<2x5xf32>
    %1042 = arith.mulf %1041, %1040 : vector<2x5xf32>
    %cst_360 = arith.constant dense<0.000000e+00> : vector<2xf32>
    %1043 = vector.multi_reduction <add>, %1042, %cst_360 [1] : vector<2x5xf32> to vector<2xf32>
    %1044 = vector.shape_cast %1043 : vector<2xf32> to vector<2x1xf32>
    %1045 = arith.addf %1038, %1044 : vector<2x1xf32>
    %c0_361 = arith.constant 0 : index
    %c0_362 = arith.constant 0 : index
    %1046 = vector.load %arg15[%c0_361, %c0_362] : memref<1x5xf32, #tpu.memory_space<vmem>>, vector<1x5xf32>
    %1047 = vector.broadcast %1046 : vector<1x5xf32> to vector<2x5xf32>
    %1048 = arith.addf %1021, %1047 : vector<2x5xf32>
    %cst_363 = arith.constant dense<0xFF800000> : vector<2xf32>
    %1049 = vector.multi_reduction <maximumf>, %1048, %cst_363 [1] : vector<2x5xf32> to vector<2xf32>
    %1050 = vector.shape_cast %1049 : vector<2xf32> to vector<2x1xf32>
    %1051 = vector.broadcast %1050 : vector<2x1xf32> to vector<2x5xf32>
    %1052 = arith.subf %1048, %1051 : vector<2x5xf32>
    %1053 = math.exp %1052 : vector<2x5xf32>
    %cst_364 = arith.constant dense<0.000000e+00> : vector<2xf32>
    %1054 = vector.multi_reduction <add>, %1053, %cst_364 [1] : vector<2x5xf32> to vector<2xf32>
    %1055 = vector.shape_cast %1054 : vector<2xf32> to vector<2x1xf32>
    %1056 = math.log %1055 : vector<2x1xf32>
    %1057 = arith.addf %1056, %1050 : vector<2x1xf32>
    %1058 = arith.subf %1057, %1045 : vector<2x1xf32>
    %c0_365 = arith.constant 0 : index
    %c0_366 = arith.constant 0 : index
    %1059 = vector.load %arg17[%c0_365, %c0_366] : memref<2x1xf32, #tpu.memory_space<vmem>>, vector<2x1xf32>
    %1060 = arith.mulf %1058, %1059 : vector<2x1xf32>
    %cst_367 = arith.constant 0.000000e+00 : f32
    %1061 = vector.broadcast %cst_367 : f32 to vector<2x1xf32>
    %1062 = arith.subf %1061, %1060 : vector<2x1xf32>
    %1063 = math.exp %1062 : vector<2x1xf32>
    %cst_368 = arith.constant 1.000000e+00 : f32
    %1064 = vector.broadcast %cst_368 : f32 to vector<2x1xf32>
    %1065 = arith.subf %1064, %1063 : vector<2x1xf32>
    %1066 = arith.mulf %1065, %1065 : vector<2x1xf32>
    %1067 = arith.mulf %1060, %1066 : vector<2x1xf32>
    %1068 = vector.shape_cast %1067 : vector<2x1xf32> to vector<1x2x1xf32>
    %cst_369 = arith.constant dense<0.000000e+00> : vector<1xf32>
    %1069 = vector.multi_reduction <add>, %1068, %cst_369 [1, 2] : vector<1x2x1xf32> to vector<1xf32>
    %1070 = vector.shape_cast %1069 : vector<1xf32> to vector<1x1x1xf32>
    %1071 = vector.extract %1070[0, 0, 0] : f32 from vector<1x1x1xf32>
    %1072 = vector.broadcast %1071 : f32 to vector<1x1xf32>
    %c0_370 = arith.constant 0 : index
    %c0_371 = arith.constant 0 : index
    %1073 = vector.load %arg18[%c0_370, %c0_371] : memref<1x1xf32, #tpu.memory_space<vmem>>, vector<1x1xf32>
    tpu.vector_store %arg18[%c0_370, %c0_371], %1072 {strides = array<i32>} : memref<1x1xf32, #tpu.memory_space<vmem>>, vector<1x1xf32>,
    return
  }
}

</mosaic_0001>

<bundles_post_ra>
// kernel: fwd.5
= control target key start
LH: loop header
LB: loop body
LE: loop exit
PB: predicated region body
PF: predicated region fallthrough
CT: control target
= control target key end

     0   :  { %vm57_vm0 = vcmask 261120   ;;  %s703_s25 = smov 64   ;;  %s705_s26 = smov 80   ;;  %vm92_vm1 = vcmask 130048   ;;  %vm154_vm2 = vcmask 64512   ;;  %vm542_vm10 = vcmask 523264   ;;  %s966_s2 = inlined_call_operand.vmem [shape: f32[32,96], index: 2, kind: input, shape index: {}]   ;;  %s967_s3 = inlined_call_operand.vmem [shape: f32[1,96], index: 3, kind: input, shape index: {}]   ;;  %s968_s0 = inlined_call_operand.vmem [shape: f32[16,32], index: 0, kind: input, shape index: {}]   ;;  %s969_s1 = inlined_call_operand.vmem [shape: f32[2,1,8], index: 1, kind: input, shape index: {}]   ;;  %s970_s5 = inlined_call_operand.vmem [shape: f32[1,32], index: 5, kind: input, shape index: {}]   ;;  %s971_s4 = inlined_call_operand.vmem [shape: f32[32,32], index: 4, kind: input, shape index: {}]   ;;  %s972_s6 = inlined_call_operand.vmem [shape: f32[1,32], index: 6, kind: input, shape index: {}]   ;;  %s973_s7 = inlined_call_operand.vmem [shape: f32[1,32], index: 7, kind: input, shape index: {}]   ;;  %s974_s9 = inlined_call_operand.vmem [shape: f32[1,64], index: 9, kind: input, shape index: {}]   ;;  %s975_s8 = inlined_call_operand.vmem [shape: f32[32,64], index: 8, kind: input, shape index: {}]   ;;  %s976_s11 = inlined_call_operand.vmem [shape: f32[1,32], index: 11, kind: input, shape index: {}]   ;;  %s977_s10 = inlined_call_operand.vmem [shape: f32[64,32], index: 10, kind: input, shape index: {}]   ;;  %s978_s12 = inlined_call_operand.vmem [shape: f32[1,32], index: 12, kind: input, shape index: {}]   ;;  %s979_s13 = inlined_call_operand.vmem [shape: f32[1,32], index: 13, kind: input, shape index: {}]   ;;  %s980_s14 = inlined_call_operand.vmem [shape: f32[16,32], index: 14, kind: output, shape index: {}]  }
   0x1   :  { %v52_v0 = vld [vmem:[%s966_s2 + $0x18] sm:$0xff]  ;;  %v51_v1 = vld [vmem:[%s966_s2 + $0x10] sm:$0xff]  ;;  %v50_v2 = vld [vmem:[%s966_s2 + $0x8] sm:$0xff]  ;;  %s706_s27 = smov 112   ;;  %s707_s16 = smov 48  }
   0x2   :  { %76 = vmatpush.msra.mxu0 %v52_v0  ;;  %v49_v3 = vld [vmem:[%s966_s2] sm:$0xff]  ;;  %s704_s2 = smov 96   ;;  %v822_v11 = vld [vmem:[%s968_s0 + $0x8] sm:$0xff] }
   0x3   :  { %v800_v4 = vld [vmem:[%s968_s0] sm:$0xff] }
   0x4   :  { %77 = vmatpush.msra.mxu0 %v51_v1  ;;  %v663_v5 = vld [vmem:[%s967_s3] ss:$0 sm:$0xff]  ;;  %v665_v36 = vld [vmem:[%s969_s1 + $0x1] ss:$0 sm:$0xff] }
   0x5   :  { %v664_v12 = vld [vmem:[%s969_s1] ss:$0 sm:$0xff]  ;;  %s708_s1 = smov 16  }
   0x6   :  { %78 = vmatpush.msra.mxu0 %v50_v2 }
   0x8   :  { %79 = vmatpush.msra.mxu0 %v49_v3 }
   0x9   :  { %636 = vmatmul.msk.f32.vlgmr.msra.gmra.mxu0 %vm57_vm0, %v800_v4 }
  0x11   :  { %637 = vmatmul.msk.f32.gmra.mxu0 %vm57_vm0, %v822_v11 }
  0x86   :  { %v81_v6 = vpop.f32.mrf.mxu0 }
  0x87   :  { %v807_v7 = vadd.f32 %v663_v5, %v81_v6 }
  0x89   :  { %177 = vrot.lane.b32.xlu2 %v807_v7, %s703_s25  ;;  %90 = vrot.lane.b32.xlu0 %v807_v7, %s704_s2 }
  0x8e   :  { %v84_v17 = vpop.f32.mrf.mxu0 }
  0x8f   :  { %v830_v18 = vadd.f32 %v663_v5, %v84_v17 }
  0x91   :  { %231 = vrot.lane.b32.xlu2 %v807_v7, %s705_s26 }
  0x99   :  { %229 = vrot.lane.b32.xlu2 %v807_v7, %s706_s27 }
  0xa1   :  { %259 = vrot.lane.b32.xlu2 %v830_v18, %s705_s26 }
  0xa9   :  { %257 = vrot.lane.b32.xlu2 %v830_v18, %s706_s27 }
  0xe3   :  { %v178_v8 = vpop.permute.xlu2 %177 }
  0xeb   :  { %v232_v10 = vpop.permute.xlu2 %231 }
  0xf3   :  { %v230_v27 = vpop.permute.xlu2 %229 }
  0xfb   :  { %v91_v9 = vpop.permute.xlu0 %90  ;;  %v260_v29 = vpop.permute.xlu2 %259 }
  0xfc   :  { %638 = vmatpush.xpose.msk.msra.mxu1 %vm92_vm1, %v91_v9 }
  0xff   :  { %639 = vmatmul.msk.f32.vlgmr.msra.gmra.mxu1 %vm92_vm1, %v807_v7 }
 0x100   :  { %198 = vmatpush.msrb.mxu1 %v178_v8 }
 0x102   :  { %644 = vmatpush.xpose.msk.msra.mxu1 %vm92_vm1, %v232_v10 }
 0x103   :  { %v258_v30 = vpop.permute.xlu2 %257 }
 0x17c   :  { %v114_v13 = vpop.f32.mrf.mxu1 }
 0x17d   :  { %v144_v14 = vmul.f32 0.25, %v114_v13  ;;  %v376_v13 = vld [vmem:[%s971_s4 + $0x18] sm:$0xff] }
 0x17f   :  { %v152_v15 = vadd.f32 %v664_v12, %v144_v14  ;;  %v375_v14 = vld [vmem:[%s971_s4 + $0x10] sm:$0xff] }
 0x181   :  { %v155_v16 = vsel %vm154_vm2, %v152_v15, -inf }
 0x182   :  { %156 = vmax.xlane.f32.xlu0 %v155_v16  ;;  %v373_v16 = vld [vmem:[%s971_s4] sm:$0xff] }
 0x1f5   :  { %v157_v19 = vpop.xlane.xlu0 %156 }
 0x1f6   :  { %v161_v20 = vsub.f32 %v152_v15, %v157_v19  ;;  %v374_v15 = vld [vmem:[%s971_s4 + $0x8] sm:$0xff] }
 0x1f8   :  { %v163_v21 = vmul.f32 1.442695, %v161_v20 }
 0x1fa   :  { %673 = vpow2.f32 %v163_v21  ;;  %v666_v21 = vld [vmem:[%s970_s5] ss:$0 sm:$0xff] }
 0x200   :  { %v674_v22 = vpop.eup %673 }
 0x201   :  { %v167_v23 = vsel %vm154_vm2, %v674_v22, 0.0 }
 0x202   :  { %168 = vadd.xlane.f32.xlu1 %v167_v23 }
 0x21b   :  { %118 = vrot.lane.b32.xlu1 %v830_v18, %s704_s2 }
 0x275   :  { %v169_v24 = vpop.xlane.xlu1 %168 }
 0x276   :  { %675 = vrcp.f32 %v169_v24 }
 0x27c   :  { %v676_v25 = vpop.eup %675 }
 0x27d   :  { %v175_v26 = vmul.f32 %v676_v25, %v674_v22 }
 0x27f   :  { %642 = vmatmul.msk.f32.vlgmr.msrb.gmra.mxu1 %vm154_vm2, %v175_v26 }
 0x287   :  { %645 = vmatmul.msk.f32.vlgmr.msra.gmra.mxu1 %vm92_vm1, %v230_v27 }
 0x28d   :  { %v119_v28 = vpop.permute.xlu1 %118 }
 0x28e   :  { %640 = vmatpush.xpose.msk.msra.mxu2 %vm92_vm1, %v119_v28 }
 0x291   :  { %641 = vmatmul.msk.f32.vlgmr.msra.gmra.mxu2 %vm92_vm1, %v830_v18 }
 0x292   :  { %646 = vmatpush.xpose.msk.msrb.mxu2 %vm92_vm1, %v260_v29 }
 0x296   :  { %399 = vmatpush.msra.mxu2 %v376_v13 }
 0x298   :  { %400 = vmatpush.msra.mxu2 %v375_v14 }
 0x299   :  { %647 = vmatmul.msk.f32.vlgmr.msrb.gmra.mxu2 %vm92_vm1, %v258_v30  ;;  %v709_v30 = vmov 32.0  }
 0x29a   :  { %401 = vmatpush.msra.mxu2 %v374_v15  ;;  %v537_v15 = vld [vmem:[%s977_s10 + $0x38] sm:$0xff] }
 0x29c   :  { %402 = vmatpush.msra.mxu2 %v373_v16  ;;  %v536_v16 = vld [vmem:[%s977_s10 + $0x30] sm:$0xff] }
 0x2fc   :  { %v844_v31 = vpop.f32.mrf.mxu1 }
 0x304   :  { %v254_v32 = vpop.f32.mrf.mxu1 }
 0x305   :  { %v285_v33 = vmul.f32 0.25, %v254_v32 }
 0x307   :  { %v287_v34 = vadd.f32 %v664_v12, %v285_v33 }
 0x309   :  { %v289_v35 = vsel %vm154_vm2, %v287_v34, -inf }
 0x30a   :  { %290 = vmax.xlane.f32.xlu2 %v289_v35 }
 0x314   :  { %v141_v37 = vpop.f32.mrf.mxu2 }
 0x315   :  { %v145_v38 = vmul.f32 0.25, %v141_v37 }
 0x317   :  { %v153_v39 = vadd.f32 %v665_v36, %v145_v38 }
 0x319   :  { %v158_v40 = vsel %vm154_vm2, %v153_v39, -inf }
 0x31a   :  { %159 = vmax.xlane.f32.xlu1 %v158_v40 }
 0x31c   :  { %v282_v41 = vpop.f32.mrf.mxu2 }
 0x31d   :  { %v286_v42 = vmul.f32 0.25, %v282_v41 }
 0x31f   :  { %v288_v43 = vadd.f32 %v665_v36, %v286_v42 }
 0x321   :  { %v292_v44 = vsel %vm154_vm2, %v288_v43, -inf }
 0x322   :  { %293 = vmax.xlane.f32.xlu0 %v292_v44 }
 0x333   :  { %311 = vrot.lane.b32.xlu1 %v807_v7, %s707_s16 }
 0x37d   :  { %v291_v45 = vpop.xlane.xlu2 %290 }
 0x37e   :  { %v295_v48 = vsub.f32 %v287_v34, %v291_v45  ;;  %v478_v45 = vld [vmem:[%s975_s8 + $0x18] sm:$0xff] }
 0x37f   :  { %501 = vmatpush.msrb.mxu0 %v478_v45  ;;  %v670_v45 = vld [vmem:[%s976_s11] ss:$0 sm:$0xff] }
 0x380   :  { %v297_v50 = vmul.f32 1.442695, %v295_v48  ;;  %v475_v48 = vld [vmem:[%s975_s8] sm:$0xff] }
 0x38d   :  { %v160_v46 = vpop.xlane.xlu1 %159 }
 0x38e   :  { %v162_v47 = vsub.f32 %v153_v39, %v160_v46  ;;  %v477_v46 = vld [vmem:[%s975_s8 + $0x10] sm:$0xff] }
 0x38f   :  { %502 = vmatpush.msrb.mxu0 %v477_v46 }
 0x390   :  { %v165_v49 = vmul.f32 1.442695, %v162_v47  ;;  %v476_v47 = vld [vmem:[%s975_s8 + $0x8] sm:$0xff] }
 0x391   :  { %503 = vmatpush.msrb.mxu0 %v476_v47 }
 0x392   :  { %677 = vpow2.f32 %v165_v49 }
 0x393   :  { %679 = vpow2.f32 %v297_v50  ;;  %504 = vmatpush.msrb.mxu0 %v475_v48 }
 0x395   :  { %v294_v51 = vpop.xlane.xlu0 %293 }
 0x396   :  { %v296_v52 = vsub.f32 %v288_v43, %v294_v51 }
 0x398   :  { %v678_v53 = vpop.eup %677  ;;  %v299_v54 = vmul.f32 1.442695, %v296_v52 }
 0x399   :  { %v170_v55 = vsel %vm154_vm2, %v678_v53, 0.0  ;;  %v680_v56 = vpop.eup %679 }
 0x39a   :  { %681 = vpow2.f32 %v299_v54  ;;  %171 = vadd.xlane.f32.xlu0 %v170_v55  ;;  %v301_v59 = vsel %vm154_vm2, %v680_v56, 0.0 }
 0x3a0   :  { %v682_v57 = vpop.eup %681 }
 0x3a1   :  { %v304_v58 = vsel %vm154_vm2, %v682_v57, 0.0 }
 0x3a2   :  { %305 = vadd.xlane.f32.xlu2 %v304_v58  ;;  %302 = vadd.xlane.f32.xlu0 %v301_v59 }
 0x3a5   :  { %v312_v6 = vpop.permute.xlu1 %311 }
 0x3b6   :  { %203 = vrot.lane.b32.xlu0 %v830_v18, %s703_s25 }
 0x3ba   :  { %337 = vrot.lane.b32.xlu2 %v830_v18, %s707_s16 }
 0x40d   :  { %v172_v61 = vpop.xlane.xlu0 %171 }
 0x415   :  { %v306_v60 = vpop.xlane.xlu2 %305  ;;  %v303_v1 = vpop.xlane.xlu0 %302 }
 0x416   :  { %683 = vrcp.f32 %v306_v60 }
 0x417   :  { %685 = vrcp.f32 %v172_v61 }
 0x418   :  { %687 = vrcp.f32 %v303_v1 }
 0x419   :  { %689 = vrcp.f32 %v709_v30 }
 0x41c   :  { %v684_v62 = vpop.eup %683 }
 0x41d   :  { %v310_v63 = vmul.f32 %v684_v62, %v682_v57  ;;  %v338_v0 = vpop.permute.xlu2 %337  ;;  %v686_v2 = vpop.eup %685 }
 0x41e   :  { %358 = vmatpush.msrb.mxu1 %v338_v0  ;;  %v176_v5 = vmul.f32 %v686_v2, %v678_v53  ;;  %v688_v7 = vpop.eup %687 }
 0x41f   :  { %649 = vmatmul.msk.f32.vlgmr.msrb.gmra.mxu1 %vm154_vm2, %v310_v63  ;;  %v309_v8 = vmul.f32 %v688_v7, %v680_v56  ;;  %v667_v63 = vld [vmem:[%s972_s6] ss:$0 sm:$0xff] }
 0x428   :  { %v204_v3 = vpop.permute.xlu0 %203 }
 0x429   :  { %224 = vmatpush.msra.mxu3 %v204_v3  ;;  %v668_v3 = vld [vmem:[%s973_s7] ss:$0 sm:$0xff] }
 0x42a   :  { %643 = vmatmul.msk.f32.vlgmr.msra.gmra.mxu3 %vm154_vm2, %v176_v5 }
 0x42b   :  { %332 = vmatpush.msrb.mxu3 %v312_v6 }
 0x42d   :  { %557 = vmatpush.msra.mxu3 %v537_v15 }
 0x42f   :  { %558 = vmatpush.msra.mxu3 %v536_v16  ;;  %v671_v16 = vld [vmem:[%s978_s12] ss:$0 sm:$0xff] }
 0x432   :  { %648 = vmatmul.msk.f32.vlgmr.msrb.gmra.mxu3 %vm154_vm2, %v309_v8 }
 0x49c   :  { %v360_v9 = vpop.f32.mrf.mxu1 }
 0x49d   :  { %367 = vrot.lane.b32.xlu1 %v360_v9, %s708_s1 }
 0x4ad   :  { %v226_v10 = vpop.f32.mrf.mxu3 }
 0x4b5   :  { %v334_v12 = vpop.f32.mrf.mxu3 }
 0x4b6   :  { %365 = vrot.lane.b32.xlu0 %v334_v12, %s708_s1 }
 0x50f   :  { %v368_v19 = vpop.permute.xlu1 %367 }
 0x510   :  { %v372_v20 = vsel %vm92_vm1, %v226_v10, %v368_v19  ;;  %v533_v19 = vld [vmem:[%s977_s10 + $0x18] sm:$0xff] }
 0x528   :  { %v366_v17 = vpop.permute.xlu0 %365 }
 0x529   :  { %v371_v18 = vsel %vm92_vm1, %v844_v31, %v366_v17  ;;  %v690_v31 = vpop.eup %689  ;;  %v535_v17 = vld [vmem:[%s977_s10 + $0x28] sm:$0xff] }
 0x52a   :  { %650 = vmatmul.msk.f32.vlgmr.msra.gmra.mxu2 %vm57_vm0, %v371_v18  ;;  %v421_v32 = vmul.f32 32.0, %v690_v31  ;;  %vm425_vm3 = vweird.f32 %v690_v31  ;;  %v534_v18 = vld [vmem:[%s977_s10 + $0x20] sm:$0xff]  ;;  %559 = vmatpush.msra.mxu3 %v535_v17 }
 0x52c   :  { %v422_v33 = vsub.f32 1.0, %v421_v32  ;;  %560 = vmatpush.msra.mxu3 %v534_v18 }
 0x52e   :  { %v423_v34 = vmul.f32 %v690_v31, %v422_v33  ;;  %561 = vmatpush.msra.mxu3 %v533_v19 }
 0x530   :  { %v424_v35 = vadd.f32 %v690_v31, %v423_v34 }
 0x532   :  { %651 = vmatmul.msk.f32.gmra.mxu2 %vm57_vm0, %v372_v20  ;;  %v886_v36 = vsel %vm425_vm3, %v690_v31, %v424_v35  ;;  %v532_v20 = vld [vmem:[%s977_s10 + $0x10] sm:$0xff] }
 0x533   :  { %562 = vmatpush.msra.mxu3 %v532_v20 }
 0x5ad   :  { %v404_v22 = vpop.f32.mrf.mxu2 }
 0x5ae   :  { %v405_v23 = vadd.f32 %v666_v21, %v404_v22  ;;  %v530_v22 = vld [vmem:[%s977_s10] sm:$0xff] }
 0x5b0   :  { %v410_v24 = vadd.f32 %v405_v23, %v800_v4  ;;  %v669_v23 = vld [vmem:[%s974_s9] ss:$0 sm:$0xff] }
 0x5b2   :  { %v414_v25 = vsel %vm57_vm0, %v410_v24, 0.0 }
 0x5b3   :  { %415 = vadd.xlane.f32.xlu0 %v414_v25 }
 0x5b5   :  { %v407_v26 = vpop.f32.mrf.mxu2 }
 0x5b6   :  { %v408_v27 = vadd.f32 %v666_v21, %v407_v26  ;;  %v531_v21 = vld [vmem:[%s977_s10 + $0x8] sm:$0xff] }
 0x5b7   :  { %563 = vmatpush.msra.mxu3 %v531_v21 }
 0x5b8   :  { %v411_v28 = vadd.f32 %v408_v27, %v822_v11 }
 0x5b9   :  { %564 = vmatpush.msra.mxu3 %v530_v22 }
 0x5ba   :  { %v417_v29 = vsel %vm57_vm0, %v411_v28, 0.0 }
 0x5bb   :  { %418 = vadd.xlane.f32.xlu1 %v417_v29 }
 0x626   :  { %v416_v4 = vpop.xlane.xlu0 %415 }
 0x627   :  { %v427_v37 = vmul.f32 %v886_v36, %v416_v4 }
 0x629   :  { %v429_v38 = vsub.f32 %v410_v24, %v427_v37 }
 0x62b   :  { %v431_v39 = vmul.f32 %v429_v38, %v429_v38 }
 0x62d   :  { %v433_v11 = vsel %vm57_vm0, %v431_v39, 0.0 }
 0x62e   :  { %434 = vadd.xlane.f32.xlu2 %v433_v11  ;;  %v419_v40 = vpop.xlane.xlu1 %418 }
 0x62f   :  { %v428_v41 = vmul.f32 %v886_v36, %v419_v40 }
 0x631   :  { %v430_v42 = vsub.f32 %v411_v28, %v428_v41 }
 0x633   :  { %v432_v43 = vmul.f32 %v430_v42, %v430_v42 }
 0x635   :  { %v436_v44 = vsel %vm57_vm0, %v432_v43, 0.0 }
 0x636   :  { %437 = vadd.xlane.f32.xlu0 %v436_v44 }
 0x6a1   :  { %v435_v49 = vpop.xlane.xlu2 %434 }
 0x6a2   :  { %v439_v50 = vmul.f32 %v435_v49, %v886_v36 }
 0x6a4   :  { %v441_v51 = vadd.f32 1e-12, %v439_v50 }
 0x6a6   :  { %691 = vrsqrt.f32 %v441_v51  ;;  %vm449_vm5 = vweird.f32 %v441_v51 }
 0x6a9   :  { %v438_v52 = vpop.xlane.xlu0 %437 }
 0x6aa   :  { %v440_v53 = vmul.f32 %v438_v52, %v886_v36 }
 0x6ac   :  { %v692_v54 = vpop.eup %691  ;;  %v442_v55 = vadd.f32 1e-12, %v440_v53 }
 0x6ad   :  { %v444_v56 = vmul.f32 %v692_v54, %v441_v51  ;;  %vm450_vm4 = vweird.f32 %v692_v54 }
 0x6ae   :  { %693 = vrsqrt.f32 %v442_v55  ;;  %vm451_vm6 = vmor %vm449_vm5, %vm450_vm4  ;;  %vm459_vm8 = vweird.f32 %v442_v55 }
 0x6af   :  { %v445_v57 = vmul.f32 %v692_v54, %v444_v56 }
 0x6b1   :  { %v446_v58 = vmul.f32 0.5, %v445_v57 }
 0x6b3   :  { %v447_v59 = vsub.f32 1.5, %v446_v58 }
 0x6b4   :  { %v694_v60 = vpop.eup %693 }
 0x6b5   :  { %v448_v61 = vmul.f32 %v692_v54, %v447_v59  ;;  %v454_v62 = vmul.f32 %v694_v60, %v442_v55  ;;  %vm460_vm7 = vweird.f32 %v694_v60 }
 0x6b6   :  { %vm461_vm9 = vmor %vm459_vm8, %vm460_vm7 }
 0x6b7   :  { %v452_v0 = vsel %vm451_vm6, %v692_v54, %v448_v61  ;;  %v455_v1 = vmul.f32 %v694_v60, %v454_v62 }
 0x6b8   :  { %v463_v2 = vmul.f32 %v452_v0, %v429_v38 }
 0x6b9   :  { %v456_v5 = vmul.f32 0.5, %v455_v1 }
 0x6ba   :  { %v468_v6 = vmul.f32 %v667_v63, %v463_v2 }
 0x6bb   :  { %v457_v7 = vsub.f32 1.5, %v456_v5 }
 0x6bc   :  { %v473_v8 = vadd.f32 %v668_v3, %v468_v6 }
 0x6bd   :  { %v458_v9 = vmul.f32 %v694_v60, %v457_v7 }
 0x6be   :  { %652 = vmatmul.msk.f32.vlgmr.msrb.gmra.mxu0 %vm57_vm0, %v473_v8 }
 0x6bf   :  { %v462_v10 = vsel %vm461_vm9, %v694_v60, %v458_v9 }
 0x6c0   :  { %v464_v12 = vmul.f32 %v462_v10, %v430_v42 }
 0x6c2   :  { %v469_v13 = vmul.f32 %v667_v63, %v464_v12 }
 0x6c4   :  { %v474_v14 = vadd.f32 %v668_v3, %v469_v13 }
 0x6c6   :  { %653 = vmatmul.msk.f32.gmra.mxu0 %vm57_vm0, %v474_v14 }
 0x73b   :  { %v506_v24 = vpop.f32.mrf.mxu0 }
 0x73c   :  { %v507_v25 = vadd.f32 %v669_v23, %v506_v24 }
 0x73e   :  { %v514_v26 = vmul.f32 0.044715, %v507_v25  ;;  %v512_v39 = vmul.f32 0.5, %v507_v25 }
 0x740   :  { %v516_v27 = vmul.f32 %v514_v26, %v507_v25 }
 0x742   :  { %v518_v28 = vmul.f32 %v516_v27, %v507_v25 }
 0x743   :  { %v509_v29 = vpop.f32.mrf.mxu0 }
 0x744   :  { %v520_v30 = vadd.f32 %v518_v28, %v507_v25  ;;  %v510_v31 = vadd.f32 %v669_v23, %v509_v29 }
 0x746   :  { %v522_v32 = vmul.f32 0.7978846, %v520_v30  ;;  %v515_v33 = vmul.f32 0.044715, %v510_v31  ;;  %v513_v42 = vmul.f32 0.5, %v510_v31 }
 0x748   :  { %695 = vtanh.f32 %v522_v32  ;;  %v517_v34 = vmul.f32 %v515_v33, %v510_v31 }
 0x74a   :  { %v519_v35 = vmul.f32 %v517_v34, %v510_v31 }
 0x74c   :  { %v521_v4 = vadd.f32 %v519_v35, %v510_v31 }
 0x74e   :  { %v696_v37 = vpop.eup %695  ;;  %v523_v38 = vmul.f32 0.7978846, %v521_v4 }
 0x74f   :  { %v526_v11 = vadd.f32 1.0, %v696_v37 }
 0x750   :  { %697 = vtanh.f32 %v523_v38 }
 0x751   :  { %v528_v40 = vmul.f32 %v526_v11, %v512_v39 }
 0x753   :  { %654 = vmatmul.msk.f32.vlgmr.msra.gmra.mxu3 %vm542_vm10, %v528_v40 }
 0x756   :  { %v698_v41 = vpop.eup %697 }
 0x757   :  { %v527_v43 = vadd.f32 1.0, %v698_v41 }
 0x759   :  { %v529_v44 = vmul.f32 %v527_v43, %v513_v42 }
 0x75b   :  { %655 = vmatmul.msk.f32.gmra.mxu3 %vm542_vm10, %v529_v44 }
 0x7d6   :  { %v566_v46 = vpop.f32.mrf.mxu3 }
 0x7d7   :  { %v567_v47 = vadd.f32 %v670_v45, %v566_v46 }
 0x7d9   :  { %v572_v48 = vadd.f32 %v567_v47, %v473_v8 }
 0x7db   :  { %v576_v49 = vsel %vm57_vm0, %v572_v48, 0.0 }
 0x7dc   :  { %577 = vadd.xlane.f32.xlu1 %v576_v49 }
 0x7de   :  { %v569_v50 = vpop.f32.mrf.mxu3 }
 0x7df   :  { %v570_v51 = vadd.f32 %v670_v45, %v569_v50 }
 0x7e1   :  { %v573_v52 = vadd.f32 %v570_v51, %v474_v14 }
 0x7e3   :  { %v579_v53 = vsel %vm57_vm0, %v573_v52, 0.0 }
 0x7e4   :  { %580 = vadd.xlane.f32.xlu0 %v579_v53 }
 0x84f   :  { %v578_v54 = vpop.xlane.xlu1 %577 }
 0x850   :  { %v582_v55 = vmul.f32 %v578_v54, %v886_v36 }
 0x852   :  { %v584_v56 = vsub.f32 %v572_v48, %v582_v55 }
 0x854   :  { %v586_v57 = vmul.f32 %v584_v56, %v584_v56 }
 0x856   :  { %v588_v58 = vsel %vm57_vm0, %v586_v57, 0.0 }
 0x857   :  { %v581_v59 = vpop.xlane.xlu0 %580  ;;  %589 = vadd.xlane.f32.xlu2 %v588_v58 }
 0x858   :  { %v583_v60 = vmul.f32 %v581_v59, %v886_v36 }
 0x85a   :  { %v585_v61 = vsub.f32 %v573_v52, %v583_v60 }
 0x85c   :  { %v587_v62 = vmul.f32 %v585_v61, %v585_v61 }
 0x85e   :  { %v591_v63 = vsel %vm57_vm0, %v587_v62, 0.0 }
 0x85f   :  { %592 = vadd.xlane.f32.xlu1 %v591_v63 }
 0x8ca   :  { %v590_v0 = vpop.xlane.xlu2 %589 }
 0x8cb   :  { %v594_v1 = vmul.f32 %v590_v0, %v886_v36 }
 0x8cd   :  { %v596_v2 = vadd.f32 1e-12, %v594_v1 }
 0x8cf   :  { %699 = vrsqrt.f32 %v596_v2  ;;  %vm604_vm12 = vweird.f32 %v596_v2 }
 0x8d2   :  { %v593_v3 = vpop.xlane.xlu1 %592 }
 0x8d3   :  { %v595_v5 = vmul.f32 %v593_v3, %v886_v36  ;;  %v672_v36 = vld [vmem:[%s979_s13] ss:$0 sm:$0xff] }
 0x8d5   :  { %v700_v6 = vpop.eup %699  ;;  %v597_v7 = vadd.f32 1e-12, %v595_v5 }
 0x8d6   :  { %v599_v8 = vmul.f32 %v700_v6, %v596_v2  ;;  %vm605_vm11 = vweird.f32 %v700_v6 }
 0x8d7   :  { %701 = vrsqrt.f32 %v597_v7  ;;  %vm606_vm13 = vmor %vm604_vm12, %vm605_vm11  ;;  %vm614_vm15 = vweird.f32 %v597_v7 }
 0x8d8   :  { %v600_v9 = vmul.f32 %v700_v6, %v599_v8 }
 0x8da   :  { %v601_v10 = vmul.f32 0.5, %v600_v9 }
 0x8dc   :  { %v602_v12 = vsub.f32 1.5, %v601_v10 }
 0x8dd   :  { %v702_v13 = vpop.eup %701 }
 0x8de   :  { %v603_v14 = vmul.f32 %v700_v6, %v602_v12  ;;  %v609_v15 = vmul.f32 %v702_v13, %v597_v7  ;;  %vm615_vm14 = vweird.f32 %v702_v13 }
 0x8df   :  { %vm616_vm1 = vmor %vm614_vm15, %vm615_vm14 }
 0x8e0   :  { %v607_v17 = vsel %vm606_vm13, %v700_v6, %v603_v14  ;;  %v610_v18 = vmul.f32 %v702_v13, %v609_v15 }
 0x8e1   :  { %v618_v19 = vmul.f32 %v607_v17, %v584_v56 }
 0x8e2   :  { %v611_v20 = vmul.f32 0.5, %v610_v18 }
 0x8e3   :  { %v623_v21 = vmul.f32 %v671_v16, %v618_v19 }
 0x8e4   :  { %v612_v22 = vsub.f32 1.5, %v611_v20 }
 0x8e5   :  { %v628_v23 = vadd.f32 %v672_v36, %v623_v21 }
 0x8e6   :  { %v613_v24 = vmul.f32 %v702_v13, %v612_v22 }
 0x8e7   :  { %630 = vst.msk [vmem:[%s980_s14] sm:$0xff] %vm57_vm0, %v628_v23 }
 0x8e8   :  { %v617_v25 = vsel %vm616_vm1, %v702_v13, %v613_v24 }
 0x8e9   :  { %v619_v26 = vmul.f32 %v617_v25, %v585_v61 }
 0x8eb   :  { %v624_v27 = vmul.f32 %v671_v16, %v619_v26 }
 0x8ed   :  { %v629_v28 = vadd.f32 %v672_v36, %v624_v27 }
 0x8ef   :  { %631 = vst.msk [vmem:[%s980_s14 + $0x8] sm:$0xff] %vm57_vm0, %v629_v28 }

// kernel: fwd.4
= control target key start
LH: loop header
LB: loop body
LE: loop exit
PB: predicated region body
PF: predicated region fallthrough
CT: control target
= control target key end

     0   :  { %vm60_vm0 = vcmask 261120   ;;  %v1381_v9 = vmov 0.0   ;;  %vm126_vm1 = vcmask 785408   ;;  %s1382_s30 = smov 64   ;;  %s1866_s1 = inlined_call_operand.vmem [shape: f32[32,96], index: 1, kind: input, shape index: {}]   ;;  %s1867_s2 = inlined_call_operand.vmem [shape: f32[32,96], index: 2, kind: input, shape index: {}]   ;;  %s1868_s0 = inlined_call_operand.vmem [shape: f32[4,16,32], index: 0, kind: input, shape index: {}]   ;;  %s1869_s3 = inlined_call_operand.vmem [shape: f32[1,96], index: 3, kind: input, shape index: {}]   ;;  %s1870_s4 = inlined_call_operand.vmem [shape: f32[1,96], index: 4, kind: input, shape index: {}]   ;;  %s1871_s7 = inlined_call_operand.vmem [shape: f32[32,96], index: 7, kind: input, shape index: {}]   ;;  %s1872_s6 = inlined_call_operand.vmem [shape: f32[32,96], index: 6, kind: input, shape index: {}]   ;;  %s1873_s5 = inlined_call_operand.vmem [shape: f32[4,16,32], index: 5, kind: input, shape index: {}]   ;;  %s1874_s8 = inlined_call_operand.vmem [shape: f32[1,96], index: 8, kind: input, shape index: {}]   ;;  %s1875_s9 = inlined_call_operand.vmem [shape: f32[1,96], index: 9, kind: input, shape index: {}]   ;;  %s1876_s10 = inlined_call_operand.vmem [shape: f32[16,32], index: 10, kind: input, shape index: {}]   ;;  %s1877_s11 = inlined_call_operand.vmem [shape: f32[1,32], index: 11, kind: input, shape index: {}]   ;;  %s1878_s12 = inlined_call_operand.vmem [shape: f32[1,32], index: 12, kind: input, shape index: {}]   ;;  %s1879_s13 = inlined_call_operand.vmem [shape: f32[16,32], index: 13, kind: output, shape index: {}]  }
   0x1   :  { %v55_v0 = vld [vmem:[%s1866_s1 + $0x18] sm:$0xff]  ;;  %v54_v2 = vld [vmem:[%s1866_s1 + $0x10] sm:$0xff]  ;;  %v53_v4 = vld [vmem:[%s1866_s1 + $0x8] sm:$0xff] }
   0x2   :  { %v140_v1 = vld [vmem:[%s1867_s2 + $0x18] sm:$0xff]  ;;  %97 = vmatpush.msra.mxu0 %v55_v0  ;;  %v139_v3 = vld [vmem:[%s1867_s2 + $0x10] sm:$0xff]  ;;  %v138_v5 = vld [vmem:[%s1867_s2 + $0x8] sm:$0xff] }
   0x3   :  { %160 = vmatpush.msra.mxu1 %v140_v1  ;;  %274 = vmatpush.msra.mxu3 %v140_v1  ;;  %v52_v6 = vld [vmem:[%s1866_s1] sm:$0xff]  ;;  %v45_v10 = vld [vmem:[%s1868_s0 + $0x8] sm:$0xff]  ;;  %v46_v61 = vld [vmem:[%s1868_s0 + $0x10] sm:$0xff] }
   0x4   :  { %98 = vmatpush.msra.mxu0 %v54_v2  ;;  %v137_v7 = vld [vmem:[%s1867_s2] sm:$0xff] }
   0x5   :  { %161 = vmatpush.msra.mxu1 %v139_v3  ;;  %275 = vmatpush.msra.mxu3 %v139_v3  ;;  %v44_v8 = vld [vmem:[%s1868_s0] sm:$0xff] }
   0x6   :  { %99 = vmatpush.msra.mxu0 %v53_v4  ;;  %v1492_v11 = vld [vmem:[%s1869_s3] ss:$0 sm:$0xff]  ;;  %s1383_s3 = smov 96  }
   0x7   :  { %162 = vmatpush.msra.mxu1 %v138_v5  ;;  %276 = vmatpush.msra.mxu3 %v138_v5  ;;  %v1497_v12 = vld [vmem:[%s1870_s4] ss:$0 sm:$0xff] }
   0x8   :  { %100 = vmatpush.msra.mxu0 %v52_v6 }
   0x9   :  { %163 = vmatpush.msra.mxu1 %v137_v7  ;;  %1224 = vmatmul.msk.f32.vlgmr.msra.gmra.mxu0 %vm60_vm0, %v44_v8  ;;  %v47_v8 = vld [vmem:[%s1868_s0 + $0x18] sm:$0xff] }
   0xa   :  { %164 = vmatmul.f32.vlgmr.msra.gmra.mxu1 %v1381_v9  ;;  %277 = vmatpush.msra.mxu3 %v137_v7 }
   0xb   :  { %502 = vmatpush.msrb.mxu1 %v140_v1 }
   0xc   :  { %388 = vmatpush.msrb.mxu3 %v140_v1 }
   0xd   :  { %503 = vmatpush.msrb.mxu1 %v139_v3 }
   0xe   :  { %389 = vmatpush.msrb.mxu3 %v139_v3 }
   0xf   :  { %504 = vmatpush.msrb.mxu1 %v138_v5 }
  0x10   :  { %390 = vmatpush.msrb.mxu3 %v138_v5 }
  0x11   :  { %505 = vmatpush.msrb.mxu1 %v137_v7  ;;  %1225 = vmatmul.msk.f32.gmra.mxu0 %vm60_vm0, %v45_v10 }
  0x12   :  { %167 = vmatmul.f32.gmra.mxu1 %v1381_v9  ;;  %391 = vmatpush.msrb.mxu3 %v137_v7 }
  0x19   :  { %1226 = vmatmul.msk.f32.gmra.mxu0 %vm60_vm0, %v46_v61 }
  0x21   :  { %1227 = vmatmul.msk.f32.gmra.mxu0 %vm60_vm0, %v47_v8 }
  0x86   :  { %v102_v13 = vpop.f32.mrf.mxu0 }
  0x87   :  { %v165_v14 = vpop.f32.mrf.mxu1  ;;  %v103_v15 = vadd.f32 %v1492_v11, %v102_v13 }
  0x88   :  { %v166_v16 = vadd.f32 %v1497_v12, %v165_v14 }
  0x89   :  { %127 = vst.msk [vmem:[#allocation2] sm:$0xff] %vm126_vm1, %v103_v15 }
  0x8a   :  { %213 = vrot.lane.b32.xlu0 %v166_v16, %s1382_s30 }
  0x8e   :  { %v105_v17 = vpop.f32.mrf.mxu0 }
  0x8f   :  { %v168_v18 = vpop.f32.mrf.mxu1  ;;  %v106_v19 = vadd.f32 %v1492_v11, %v105_v17 }
  0x90   :  { %v169_v20 = vadd.f32 %v1497_v12, %v168_v18  ;;  %v135_v21 = vld [vmem:[#allocation2] sm:$0xff] }
  0x91   :  { %128 = vst.msk [vmem:[#allocation2 + $0x8] sm:$0xff] %vm126_vm1, %v106_v19  ;;  %v171_v22 = vadd.f32 %v166_v16, %v135_v21 }
  0x92   :  { %215 = vrot.lane.b32.xlu0 %v169_v20, %s1382_s30 }
  0x93   :  { %v1232_v23 = vmul.f32 -1.442695, %v171_v22 }
  0x95   :  { %1278 = vpow2.f32 %v1232_v23 }
  0x96   :  { %v108_v10 = vpop.f32.mrf.mxu0 }
  0x97   :  { %v109_v13 = vadd.f32 %v1492_v11, %v108_v10 }
  0x98   :  { %v136_v24 = vld [vmem:[#allocation2 + $0x8] sm:$0xff] }
  0x99   :  { %v172_v25 = vadd.f32 %v169_v20, %v136_v24  ;;  %129 = vst.msk [vmem:[#allocation2 + $0x10] sm:$0xff] %vm126_vm1, %v109_v13 }
  0x9b   :  { %v1233_v26 = vmul.f32 -1.442695, %v172_v25  ;;  %v1279_v27 = vpop.eup %1278 }
  0x9c   :  { %v179_v28 = vadd.f32 1.0, %v1279_v27 }
  0x9d   :  { %1280 = vpow2.f32 %v1233_v26 }
  0x9e   :  { %1282 = vrcp.f32 %v179_v28  ;;  %v192_v39 = vand.u32 2147483648, %v179_v28  ;;  %vm186_vm3 = vweird.f32 %v179_v28  ;;  %v190_v40 = vand.u32 2147483647, %v179_v28  ;;  %v111_v16 = vpop.f32.mrf.mxu0 }
  0x9f   :  { %v112_v17 = vadd.f32 %v1492_v11, %v111_v16  ;;  %v49_v16 = vld [vmem:[%s1868_s0 + $0x28] sm:$0xff] }
  0xa0   :  { %v193_v43 = vor.u32 1.1754944e-38, %v192_v39  ;;  %vm191_vm5 = vcmp.eq.f32.partialorder %v190_v40, 8.507059e+37  ;;  %v250_v22 = vld [vmem:[#allocation2 + $0x10] sm:$0xff] }
  0xa1   :  { %130 = vst.msk [vmem:[#allocation2 + $0x18] sm:$0xff] %vm126_vm1, %v112_v17  ;;  %v600_v17 = vld [vmem:[%s1872_s6 + $0x8] sm:$0xff] }
  0xa3   :  { %v1281_v29 = vpop.eup %1280 }
  0xa4   :  { %v180_v30 = vadd.f32 1.0, %v1281_v29  ;;  %v1283_v31 = vpop.eup %1282 }
  0xa5   :  { %v182_v32 = vmul.f32 %v1283_v31, %v179_v28  ;;  %vm187_vm2 = vweird.f32 %v1283_v31 }
  0xa6   :  { %1284 = vrcp.f32 %v180_v30  ;;  %vm188_vm4 = vmor %vm186_vm3, %vm187_vm2  ;;  %v207_v48 = vand.u32 2147483648, %v180_v30  ;;  %vm201_vm7 = vweird.f32 %v180_v30  ;;  %v205_v49 = vand.u32 2147483647, %v180_v30 }
  0xa7   :  { %v183_v33 = vsub.f32 1.0, %v182_v32 }
  0xa8   :  { %v208_v51 = vor.u32 1.1754944e-38, %v207_v48  ;;  %vm206_vm9 = vcmp.eq.f32.partialorder %v205_v49, 8.507059e+37  ;;  %v251_v28 = vld [vmem:[#allocation2 + $0x18] sm:$0xff] }
  0xa9   :  { %v184_v35 = vmul.f32 %v1283_v31, %v183_v33 }
  0xab   :  { %v185_v37 = vadd.f32 %v1283_v31, %v184_v35 }
  0xac   :  { %v1285_v34 = vpop.eup %1284 }
  0xad   :  { %v197_v36 = vmul.f32 %v1285_v34, %v180_v30  ;;  %v189_v41 = vsel %vm188_vm4, %v1283_v31, %v185_v37  ;;  %vm202_vm6 = vweird.f32 %v1285_v34 }
  0xae   :  { %v194_v45 = vsel %vm191_vm5, %v193_v43, %v189_v41  ;;  %vm203_vm8 = vmor %vm201_vm7, %vm202_vm6 }
  0xaf   :  { %v198_v38 = vsub.f32 1.0, %v197_v36  ;;  %v233_v62 = vsub.f32 1.0, %v194_v45  ;;  %v245_v0 = vmul.f32 0.0, %v194_v45 }
  0xb1   :  { %v199_v42 = vmul.f32 %v1285_v34, %v198_v38 }
  0xb3   :  { %v200_v47 = vadd.f32 %v1285_v34, %v199_v42 }
  0xb5   :  { %v204_v50 = vsel %vm203_vm8, %v1285_v34, %v200_v47 }
  0xb6   :  { %v209_v53 = vsel %vm206_vm9, %v208_v51, %v204_v50 }
  0xb7   :  { %v234_v3 = vsub.f32 1.0, %v209_v53  ;;  %v246_v5 = vmul.f32 0.0, %v209_v53 }
  0xfc   :  { %v214_v44 = vpop.permute.xlu0 %213 }
  0xfd   :  { %v219_v46 = vmul.f32 %v214_v44, %v194_v45 }
  0xff   :  { %223 = vrot.lane.b32.xlu1 %v219_v46, %s1382_s30 }
 0x104   :  { %v216_v52 = vpop.permute.xlu0 %215 }
 0x105   :  { %v220_v54 = vmul.f32 %v216_v52, %v209_v53 }
 0x107   :  { %225 = vrot.lane.b32.xlu1 %v220_v54, %s1382_s30 }
 0x171   :  { %v224_v55 = vpop.permute.xlu1 %223 }
 0x172   :  { %v229_v56 = vadd.f32 %v224_v55, %v135_v21 }
 0x174   :  { %1286 = vtanh.f32 %v229_v56 }
 0x179   :  { %v226_v57 = vpop.permute.xlu1 %225 }
 0x17a   :  { %v1287_v58 = vpop.eup %1286  ;;  %v230_v59 = vadd.f32 %v226_v57, %v136_v24 }
 0x17b   :  { %237 = vrot.lane.b32.xlu2 %v1287_v58, %s1383_s3 }
 0x17c   :  { %1288 = vtanh.f32 %v230_v59 }
 0x182   :  { %v1289_v60 = vpop.eup %1288 }
 0x183   :  { %239 = vrot.lane.b32.xlu2 %v1289_v60, %s1383_s3 }
 0x1d5   :  { %v238_v63 = vpop.permute.xlu2 %237 }
 0x1d6   :  { %v243_v1 = vmul.f32 %v238_v63, %v233_v62  ;;  %v48_v62 = vld [vmem:[%s1868_s0 + $0x20] sm:$0xff] }
 0x1d7   :  { %1228 = vmatmul.msk.f32.gmra.mxu0 %vm60_vm0, %v48_v62 }
 0x1d8   :  { %v1515_v2 = vadd.f32 %v245_v0, %v243_v1 }
 0x1da   :  { %254 = vrot.lane.b32.xlu0 %v1515_v2, %s1383_s3 }
 0x1dd   :  { %v240_v4 = vpop.permute.xlu2 %239 }
 0x1de   :  { %v244_v6 = vmul.f32 %v240_v4, %v234_v3 }
 0x1df   :  { %1229 = vmatmul.msk.f32.gmra.mxu0 %vm60_vm0, %v49_v16 }
 0x1e0   :  { %v1519_v7 = vadd.f32 %v246_v5, %v244_v6 }
 0x1e2   :  { %256 = vrot.lane.b32.xlu1 %v1519_v7, %s1383_s3 }
 0x24c   :  { %v255_v14 = vpop.permute.xlu0 %254 }
 0x24d   :  { %1234 = vmatmul.msk.f32.vlgmr.msra.gmra.mxu3 %vm60_vm0, %v255_v14  ;;  %v602_v14 = vld [vmem:[%s1872_s6 + $0x18] sm:$0xff] }
 0x24e   :  { %643 = vmatpush.msra.mxu2 %v602_v14 }
 0x254   :  { %v257_v15 = vpop.permute.xlu1 %256 }
 0x255   :  { %1235 = vmatmul.msk.f32.gmra.mxu3 %vm60_vm0, %v257_v15  ;;  %v601_v15 = vld [vmem:[%s1872_s6 + $0x10] sm:$0xff] }
 0x256   :  { %644 = vmatpush.msra.mxu2 %v601_v15 }
 0x258   :  { %645 = vmatpush.msra.mxu2 %v600_v17 }
 0x2d0   :  { %v279_v18 = vpop.f32.mrf.mxu3 }
 0x2d1   :  { %v280_v19 = vadd.f32 %v1497_v12, %v279_v18  ;;  %v599_v18 = vld [vmem:[%s1872_s6] sm:$0xff] }
 0x2d2   :  { %646 = vmatpush.msra.mxu2 %v599_v18 }
 0x2d3   :  { %327 = vrot.lane.b32.xlu2 %v280_v19, %s1382_s30  ;;  %v285_v23 = vadd.f32 %v280_v19, %v250_v22 }
 0x2d5   :  { %v1236_v24 = vmul.f32 -1.442695, %v285_v23  ;;  %v592_v23 = vld [vmem:[%s1873_s5 + $0x8] sm:$0xff] }
 0x2d7   :  { %1290 = vpow2.f32 %v1236_v24  ;;  %v114_v24 = vpop.f32.mrf.mxu0 }
 0x2d8   :  { %v282_v20 = vpop.f32.mrf.mxu3 }
 0x2d9   :  { %v283_v21 = vadd.f32 %v1497_v12, %v282_v20  ;;  %v591_v20 = vld [vmem:[%s1873_s5] sm:$0xff] }
 0x2da   :  { %1246 = vmatmul.msk.f32.vlgmr.msra.gmra.mxu2 %vm60_vm0, %v591_v20 }
 0x2db   :  { %329 = vrot.lane.b32.xlu0 %v283_v21, %s1382_s30  ;;  %v286_v30 = vadd.f32 %v283_v21, %v251_v28  ;;  %v1593_v21 = vld [vmem:[%s1871_s7 + $0x8] sm:$0xff] }
 0x2dd   :  { %v1291_v25 = vpop.eup %1290  ;;  %v1237_v32 = vmul.f32 -1.442695, %v286_v30 }
 0x2de   :  { %v293_v26 = vadd.f32 1.0, %v1291_v25  ;;  %v115_v25 = vadd.f32 %v1492_v11, %v114_v24 }
 0x2e0   :  { %1292 = vrcp.f32 %v293_v26  ;;  %v306_v35 = vand.u32 2147483648, %v293_v26  ;;  %vm300_vm11 = vweird.f32 %v293_v26  ;;  %v304_v36 = vand.u32 2147483647, %v293_v26  ;;  %131 = vst.msk [vmem:[#allocation2 + $0x20] sm:$0xff] %vm126_vm1, %v115_v25 }
 0x2e1   :  { %1294 = vpow2.f32 %v1237_v32 }
 0x2e2   :  { %v307_v39 = vor.u32 1.1754944e-38, %v306_v35  ;;  %vm305_vm13 = vcmp.eq.f32.partialorder %v304_v36, 8.507059e+37  ;;  %1247 = vmatmul.msk.f32.gmra.mxu2 %vm60_vm0, %v592_v23 }
 0x2e6   :  { %v1293_v27 = vpop.eup %1292 }
 0x2e7   :  { %v296_v29 = vmul.f32 %v1293_v27, %v293_v26  ;;  %vm301_vm10 = vweird.f32 %v1293_v27  ;;  %v1295_v37 = vpop.eup %1294 }
 0x2e8   :  { %vm302_vm12 = vmor %vm300_vm11, %vm301_vm10  ;;  %v294_v40 = vadd.f32 1.0, %v1295_v37  ;;  %v1635_v37 = vld [vmem:[%s1875_s9] ss:$0 sm:$0xff] }
 0x2e9   :  { %v297_v31 = vsub.f32 1.0, %v296_v29  ;;  %v1622_v29 = vld [vmem:[%s1874_s8] ss:$0 sm:$0xff] }
 0x2ea   :  { %1296 = vrcp.f32 %v294_v40  ;;  %v321_v49 = vand.u32 2147483648, %v294_v40  ;;  %vm315_vm15 = vweird.f32 %v294_v40  ;;  %v319_v50 = vand.u32 2147483647, %v294_v40 }
 0x2eb   :  { %v298_v33 = vmul.f32 %v1293_v27, %v297_v31 }
 0x2ec   :  { %v322_v52 = vor.u32 1.1754944e-38, %v321_v49  ;;  %vm320_vm3 = vcmp.eq.f32.partialorder %v319_v50, 8.507059e+37 }
 0x2ed   :  { %v299_v34 = vadd.f32 %v1293_v27, %v298_v33 }
 0x2ef   :  { %v303_v38 = vsel %vm302_vm12, %v1293_v27, %v299_v34  ;;  %v117_v27 = vpop.f32.mrf.mxu0 }
 0x2f0   :  { %v308_v41 = vsel %vm305_vm13, %v307_v39, %v303_v38  ;;  %v1297_v44 = vpop.eup %1296 }
 0x2f1   :  { %v311_v45 = vmul.f32 %v1297_v44, %v294_v40  ;;  %vm316_vm14 = vweird.f32 %v1297_v44  ;;  %v347_v63 = vsub.f32 1.0, %v308_v41  ;;  %v359_v1 = vmul.f32 %v308_v41, %v1515_v2  ;;  %v1558_v2 = vld [vmem:[%s1871_s7 + $0x18] sm:$0xff] }
 0x2f2   :  { %vm317_vm2 = vmor %vm315_vm15, %vm316_vm14  ;;  %702 = vmatpush.msra.mxu3 %v1558_v2  ;;  %816 = vmatpush.msra.mxu1 %v1558_v2 }
 0x2f3   :  { %v312_v46 = vsub.f32 1.0, %v311_v45 }
 0x2f5   :  { %v313_v47 = vmul.f32 %v1297_v44, %v312_v46 }
 0x2f7   :  { %v314_v48 = vadd.f32 %v1297_v44, %v313_v47 }
 0x2f9   :  { %v318_v51 = vsel %vm317_vm2, %v1297_v44, %v314_v48 }
 0x2fa   :  { %v323_v54 = vsel %vm320_vm3, %v322_v52, %v318_v51 }
 0x2fb   :  { %v348_v5 = vsub.f32 1.0, %v323_v54  ;;  %v360_v8 = vmul.f32 %v323_v54, %v1519_v7  ;;  %v1570_v7 = vld [vmem:[%s1871_s7 + $0x10] sm:$0xff] }
 0x2fc   :  { %703 = vmatpush.msra.mxu3 %v1570_v7  ;;  %817 = vmatpush.msra.mxu1 %v1570_v7 }
 0x2fe   :  { %704 = vmatpush.msra.mxu3 %v1593_v21  ;;  %818 = vmatpush.msra.mxu1 %v1593_v21 }
 0x32d   :  { %v328_v42 = vpop.permute.xlu2 %327 }
 0x32e   :  { %v333_v43 = vmul.f32 %v328_v42, %v308_v41  ;;  %v1641_v42 = vld [vmem:[#allocation2 + $0x20] sm:$0xff] }
 0x330   :  { %337 = vrot.lane.b32.xlu1 %v333_v43, %s1382_s30 }
 0x34d   :  { %v330_v53 = vpop.permute.xlu0 %329 }
 0x34e   :  { %v334_v55 = vmul.f32 %v330_v53, %v323_v54 }
 0x350   :  { %339 = vrot.lane.b32.xlu2 %v334_v55, %s1382_s30 }
 0x35d   :  { %v648_v31 = vpop.f32.mrf.mxu2 }
 0x35e   :  { %v649_v33 = vadd.f32 %v1622_v29, %v648_v31 }
 0x360   :  { %672 = vst.msk [vmem:[#allocation3] sm:$0xff] %vm126_vm1, %v649_v33 }
 0x367   :  { %v1647_v55 = vld [vmem:[#allocation3] sm:$0xff] }
 0x3a2   :  { %v338_v56 = vpop.permute.xlu1 %337 }
 0x3a3   :  { %v343_v57 = vadd.f32 %v338_v56, %v250_v22  ;;  %v1598_v22 = vld [vmem:[%s1871_s7] sm:$0xff] }
 0x3a4   :  { %705 = vmatpush.msra.mxu3 %v1598_v22  ;;  %819 = vmatpush.msra.mxu1 %v1598_v22 }
 0x3a5   :  { %1298 = vtanh.f32 %v343_v57 }
 0x3aa   :  { %v340_v58 = vpop.permute.xlu2 %339 }
 0x3ab   :  { %v1299_v59 = vpop.eup %1298  ;;  %v344_v60 = vadd.f32 %v340_v58, %v251_v28  ;;  %v118_v28 = vadd.f32 %v1492_v11, %v117_v27 }
 0x3ac   :  { %351 = vrot.lane.b32.xlu0 %v1299_v59, %s1383_s3 }
 0x3ad   :  { %1300 = vtanh.f32 %v344_v60  ;;  %132 = vst.msk [vmem:[#allocation2 + $0x28] sm:$0xff] %vm126_vm1, %v118_v28 }
 0x3b3   :  { %v1301_v61 = vpop.eup %1300 }
 0x3b4   :  { %353 = vrot.lane.b32.xlu1 %v1301_v61, %s1383_s3  ;;  %v1644_v44 = vld [vmem:[#allocation2 + $0x28] sm:$0xff] }
 0x41e   :  { %v352_v0 = vpop.permute.xlu0 %351 }
 0x41f   :  { %v357_v3 = vmul.f32 %v352_v0, %v347_v63 }
 0x421   :  { %v1546_v4 = vadd.f32 %v359_v1, %v357_v3 }
 0x423   :  { %368 = vrot.lane.b32.xlu2 %v1546_v4, %s1383_s3 }
 0x426   :  { %v354_v6 = vpop.permute.xlu1 %353 }
 0x427   :  { %v358_v10 = vmul.f32 %v354_v6, %v348_v5 }
 0x429   :  { %v1551_v13 = vadd.f32 %v360_v8, %v358_v10 }
 0x42b   :  { %370 = vrot.lane.b32.xlu0 %v1551_v13, %s1383_s3 }
 0x47d   :  { %v369_v19 = vpop.permute.xlu2 %368 }
 0x47e   :  { %1238 = vmatmul.msk.f32.vlgmr.msrb.gmra.mxu3 %vm60_vm0, %v369_v19 }
 0x47f   :  { %930 = vmatpush.msrb.mxu3 %v1558_v2 }
 0x481   :  { %931 = vmatpush.msrb.mxu3 %v1570_v7 }
 0x483   :  { %932 = vmatpush.msrb.mxu3 %v1593_v21 }
 0x485   :  { %933 = vmatpush.msrb.mxu3 %v1598_v22 }
 0x49d   :  { %v371_v26 = vpop.permute.xlu0 %370 }
 0x49e   :  { %1239 = vmatmul.msk.f32.gmra.mxu3 %vm60_vm0, %v371_v26 }
 0x4a6   :  { %706 = vmatmul.f32.vlgmr.msra.gmra.mxu3 %v1381_v9 }
 0x4ae   :  { %709 = vmatmul.f32.gmra.mxu3 %v1381_v9  ;;  %v651_v9 = vpop.f32.mrf.mxu2 }
 0x4af   :  { %v652_v34 = vadd.f32 %v1622_v29, %v651_v9 }
 0x4b1   :  { %673 = vst.msk [vmem:[#allocation3 + $0x8] sm:$0xff] %vm126_vm1, %v652_v34 }
 0x4b8   :  { %v1650_v0 = vld [vmem:[#allocation3 + $0x8] sm:$0xff] }
 0x501   :  { %v393_v30 = vpop.f32.mrf.mxu3 }
 0x502   :  { %v394_v32 = vadd.f32 %v1497_v12, %v393_v30 }
 0x504   :  { %441 = vrot.lane.b32.xlu1 %v394_v32, %s1382_s30 }
 0x521   :  { %v396_v35 = vpop.f32.mrf.mxu3 }
 0x522   :  { %v397_v36 = vadd.f32 %v1497_v12, %v396_v35  ;;  %v399_v12 = vadd.f32 %v394_v32, %v1641_v42 }
 0x524   :  { %443 = vrot.lane.b32.xlu2 %v397_v36, %s1382_s30  ;;  %v1240_v43 = vmul.f32 -1.442695, %v399_v12  ;;  %v400_v45 = vadd.f32 %v397_v36, %v1644_v44 }
 0x526   :  { %1302 = vpow2.f32 %v1240_v43  ;;  %v1241_v46 = vmul.f32 -1.442695, %v400_v45 }
 0x528   :  { %1304 = vpow2.f32 %v1241_v46 }
 0x529   :  { %v707_v38 = vpop.f32.mrf.mxu3 }
 0x52a   :  { %v708_v39 = vadd.f32 %v1635_v37, %v707_v38 }
 0x52c   :  { %755 = vrot.lane.b32.xlu0 %v708_v39, %s1382_s30  ;;  %v1303_v47 = vpop.eup %1302  ;;  %v713_v58 = vadd.f32 %v708_v39, %v1647_v55 }
 0x52d   :  { %v407_v48 = vadd.f32 1.0, %v1303_v47 }
 0x52e   :  { %v1305_v49 = vpop.eup %1304  ;;  %v1254_v62 = vmul.f32 -1.442695, %v713_v58 }
 0x52f   :  { %1306 = vrcp.f32 %v407_v48  ;;  %v408_v50 = vadd.f32 1.0, %v1305_v49  ;;  %v420_v61 = vand.u32 2147483648, %v407_v48  ;;  %vm414_vm5 = vweird.f32 %v407_v48 }
 0x530   :  { %v418_v63 = vand.u32 2147483647, %v407_v48 }
 0x531   :  { %v710_v40 = vpop.f32.mrf.mxu3  ;;  %1308 = vrcp.f32 %v408_v50  ;;  %v421_v5 = vor.u32 1.1754944e-38, %v420_v61  ;;  %v435_v16 = vand.u32 2147483648, %v408_v50  ;;  %vm429_vm9 = vweird.f32 %v408_v50 }
 0x532   :  { %v711_v41 = vadd.f32 %v1635_v37, %v710_v40  ;;  %1310 = vpow2.f32 %v1254_v62  ;;  %vm419_vm7 = vcmp.eq.f32.partialorder %v418_v63, 8.507059e+37  ;;  %v433_v18 = vand.u32 2147483647, %v408_v50 }
 0x533   :  { %v436_v23 = vor.u32 1.1754944e-38, %v435_v16 }
 0x534   :  { %757 = vrot.lane.b32.xlu1 %v711_v41, %s1382_s30  ;;  %v714_v6 = vadd.f32 %v711_v41, %v1650_v0  ;;  %vm434_vm11 = vcmp.eq.f32.partialorder %v433_v18, 8.507059e+37 }
 0x535   :  { %v1307_v51 = vpop.eup %1306 }
 0x536   :  { %v410_v52 = vmul.f32 %v1307_v51, %v407_v48  ;;  %vm415_vm4 = vweird.f32 %v1307_v51  ;;  %v1255_v17 = vmul.f32 -1.442695, %v714_v6 }
 0x537   :  { %v1309_v54 = vpop.eup %1308  ;;  %vm416_vm6 = vmor %vm414_vm5, %vm415_vm4 }
 0x538   :  { %v411_v53 = vsub.f32 1.0, %v410_v52  ;;  %v425_v57 = vmul.f32 %v1309_v54, %v408_v50  ;;  %vm430_vm8 = vweird.f32 %v1309_v54  ;;  %v1311_v19 = vpop.eup %1310  ;;  %1312 = vpow2.f32 %v1255_v17 }
 0x539   :  { %vm431_vm10 = vmor %vm429_vm9, %vm430_vm8  ;;  %v721_v24 = vadd.f32 1.0, %v1311_v19 }
 0x53a   :  { %v412_v56 = vmul.f32 %v1307_v51, %v411_v53  ;;  %v426_v60 = vsub.f32 1.0, %v425_v57 }
 0x53b   :  { %1314 = vrcp.f32 %v721_v24  ;;  %v734_v39 = vand.u32 2147483648, %v721_v24  ;;  %vm728_vm13 = vweird.f32 %v721_v24  ;;  %v732_v40 = vand.u32 2147483647, %v721_v24 }
 0x53c   :  { %v413_v59 = vadd.f32 %v1307_v51, %v412_v56  ;;  %v427_v3 = vmul.f32 %v1309_v54, %v426_v60 }
 0x53d   :  { %v735_v43 = vor.u32 1.1754944e-38, %v734_v39  ;;  %vm733_vm15 = vcmp.eq.f32.partialorder %v732_v40, 8.507059e+37 }
 0x53e   :  { %v417_v1 = vsel %vm416_vm6, %v1307_v51, %v413_v59  ;;  %v428_v15 = vadd.f32 %v1309_v54, %v427_v3  ;;  %v1313_v28 = vpop.eup %1312 }
 0x53f   :  { %v1653_v10 = vsel %vm419_vm7, %v421_v5, %v417_v1  ;;  %v722_v30 = vadd.f32 1.0, %v1313_v28 }
 0x540   :  { %v432_v20 = vsel %vm431_vm10, %v1309_v54, %v428_v15 }
 0x541   :  { %v1657_v26 = vsel %vm434_vm11, %v436_v23, %v432_v20  ;;  %v1315_v31 = vpop.eup %1314  ;;  %1316 = vrcp.f32 %v722_v30  ;;  %v749_v49 = vand.u32 2147483648, %v722_v30  ;;  %vm743_vm3 = vweird.f32 %v722_v30 }
 0x542   :  { %v724_v32 = vmul.f32 %v1315_v31, %v721_v24  ;;  %vm729_vm12 = vweird.f32 %v1315_v31  ;;  %v747_v50 = vand.u32 2147483647, %v722_v30  ;;  %v474_v18 = vmul.f32 %v1657_v26, %v1551_v13 }
 0x543   :  { %vm730_vm14 = vmor %vm728_vm13, %vm729_vm12  ;;  %v750_v52 = vor.u32 1.1754944e-38, %v749_v49 }
 0x544   :  { %v725_v33 = vsub.f32 1.0, %v724_v32  ;;  %vm748_vm5 = vcmp.eq.f32.partialorder %v747_v50, 8.507059e+37  ;;  %v593_v32 = vld [vmem:[%s1873_s5 + $0x10] sm:$0xff] }
 0x545   :  { %1248 = vmatmul.msk.f32.gmra.mxu2 %vm60_vm0, %v593_v32 }
 0x546   :  { %v726_v34 = vmul.f32 %v1315_v31, %v725_v33  ;;  %v594_v33 = vld [vmem:[%s1873_s5 + $0x18] sm:$0xff] }
 0x547   :  { %v1317_v9 = vpop.eup %1316 }
 0x548   :  { %v739_v35 = vmul.f32 %v1317_v9, %v722_v30  ;;  %v727_v36 = vadd.f32 %v1315_v31, %v726_v34  ;;  %vm744_vm2 = vweird.f32 %v1317_v9 }
 0x549   :  { %vm745_vm4 = vmor %vm743_vm3, %vm744_vm2 }
 0x54a   :  { %v740_v38 = vsub.f32 1.0, %v739_v35  ;;  %v731_v41 = vsel %vm730_vm14, %v1315_v31, %v727_v36 }
 0x54b   :  { %v736_v46 = vsel %vm733_vm15, %v735_v43, %v731_v41 }
 0x54c   :  { %v741_v12 = vmul.f32 %v1317_v9, %v740_v38  ;;  %v787_v23 = vmul.f32 0.0, %v736_v46 }
 0x54d   :  { %1249 = vmatmul.msk.f32.gmra.mxu2 %vm60_vm0, %v594_v33 }
 0x54e   :  { %v742_v48 = vadd.f32 %v1317_v9, %v741_v12 }
 0x550   :  { %v746_v51 = vsel %vm745_vm4, %v1317_v9, %v742_v48 }
 0x551   :  { %v751_v53 = vsel %vm748_vm5, %v750_v52, %v746_v51 }
 0x552   :  { %v788_v30 = vmul.f32 0.0, %v751_v53 }
 0x576   :  { %v442_v8 = vpop.permute.xlu1 %441 }
 0x577   :  { %v447_v14 = vmul.f32 %v442_v8, %v1653_v10 }
 0x579   :  { %451 = vrot.lane.b32.xlu2 %v447_v14, %s1382_s30  ;;  %v473_v14 = vmul.f32 %v1653_v10, %v1546_v4 }
 0x57e   :  { %v444_v25 = vpop.permute.xlu2 %443 }
 0x57f   :  { %v448_v27 = vmul.f32 %v444_v25, %v1657_v26 }
 0x581   :  { %453 = vrot.lane.b32.xlu0 %v448_v27, %s1382_s30  ;;  %v776_v27 = vsub.f32 1.0, %v751_v53 }
 0x59e   :  { %v756_v45 = vpop.permute.xlu0 %755 }
 0x59f   :  { %v761_v47 = vmul.f32 %v756_v45, %v736_v46 }
 0x5a1   :  { %765 = vrot.lane.b32.xlu1 %v761_v47, %s1382_s30 }
 0x5a6   :  { %v758_v54 = vpop.permute.xlu1 %757 }
 0x5a7   :  { %v762_v56 = vmul.f32 %v758_v54, %v751_v53 }
 0x5a9   :  { %767 = vrot.lane.b32.xlu2 %v762_v56, %s1382_s30 }
 0x5d3   :  { %v452_v57 = vpop.permute.xlu2 %451 }
 0x5d4   :  { %v457_v58 = vadd.f32 %v452_v57, %v1641_v42 }
 0x5d6   :  { %1318 = vtanh.f32 %v457_v58 }
 0x5dc   :  { %v1319_v59 = vpop.eup %1318 }
 0x5dd   :  { %465 = vrot.lane.b32.xlu0 %v1319_v59, %s1383_s3 }
 0x5f3   :  { %v454_v60 = vpop.permute.xlu0 %453 }
 0x5f4   :  { %v458_v61 = vadd.f32 %v454_v60, %v1644_v44  ;;  %v461_v44 = vsub.f32 1.0, %v1653_v10  ;;  %v775_v10 = vsub.f32 1.0, %v736_v46 }
 0x5f6   :  { %1320 = vtanh.f32 %v458_v61 }
 0x5fc   :  { %v1321_v62 = vpop.eup %1320 }
 0x5fd   :  { %467 = vrot.lane.b32.xlu1 %v1321_v62, %s1383_s3 }
 0x603   :  { %v768_v63 = vpop.permute.xlu2 %767 }
 0x604   :  { %v772_v1 = vadd.f32 %v768_v63, %v1650_v0  ;;  %v462_v0 = vsub.f32 1.0, %v1657_v26  ;;  %v51_v26 = vld [vmem:[%s1868_s0 + $0x38] sm:$0xff] }
 0x606   :  { %1322 = vtanh.f32 %v772_v1 }
 0x60c   :  { %v1323_v3 = vpop.eup %1322 }
 0x60d   :  { %781 = vrot.lane.b32.xlu0 %v1323_v3, %s1383_s3 }
 0x613   :  { %v766_v5 = vpop.permute.xlu1 %765 }
 0x614   :  { %v771_v42 = vadd.f32 %v766_v5, %v1647_v55  ;;  %v50_v55 = vld [vmem:[%s1868_s0 + $0x30] sm:$0xff] }
 0x615   :  { %1230 = vmatmul.msk.f32.gmra.mxu0 %vm60_vm0, %v50_v55 }
 0x616   :  { %1324 = vtanh.f32 %v771_v42 }
 0x61c   :  { %v1325_v6 = vpop.eup %1324 }
 0x61d   :  { %779 = vrot.lane.b32.xlu2 %v1325_v6, %s1383_s3  ;;  %1231 = vmatmul.msk.f32.gmra.mxu0 %vm60_vm0, %v51_v26 }
 0x64f   :  { %v466_v8 = vpop.permute.xlu0 %465 }
 0x650   :  { %v471_v15 = vmul.f32 %v466_v8, %v461_v44 }
 0x652   :  { %v1674_v16 = vadd.f32 %v473_v14, %v471_v15 }
 0x654   :  { %482 = vrot.lane.b32.xlu1 %v1674_v16, %s1383_s3 }
 0x66f   :  { %v468_v17 = vpop.permute.xlu1 %467 }
 0x670   :  { %v472_v19 = vmul.f32 %v468_v17, %v462_v0 }
 0x672   :  { %v1685_v4 = vadd.f32 %v474_v18, %v472_v19 }
 0x674   :  { %484 = vrot.lane.b32.xlu2 %v1685_v4, %s1383_s3 }
 0x677   :  { %v780_v20 = vpop.permute.xlu2 %779 }
 0x678   :  { %v785_v24 = vmul.f32 %v780_v20, %v775_v10 }
 0x67a   :  { %v1689_v25 = vadd.f32 %v787_v23, %v785_v24 }
 0x67c   :  { %796 = vrot.lane.b32.xlu0 %v1689_v25, %s1383_s3 }
 0x67f   :  { %v782_v28 = vpop.permute.xlu0 %781 }
 0x680   :  { %v786_v31 = vmul.f32 %v782_v28, %v776_v27 }
 0x682   :  { %v1693_v13 = vadd.f32 %v788_v30, %v786_v31 }
 0x684   :  { %798 = vrot.lane.b32.xlu1 %v1693_v13, %s1383_s3 }
 0x692   :  { %v120_v35 = vpop.f32.mrf.mxu0 }
 0x693   :  { %v121_v36 = vadd.f32 %v1492_v11, %v120_v35 }
 0x695   :  { %133 = vst.msk [vmem:[#allocation2 + $0x30] sm:$0xff] %vm126_vm1, %v121_v36 }
 0x6c6   :  { %v483_v9 = vpop.permute.xlu1 %482 }
 0x6c7   :  { %1242 = vmatmul.msk.f32.vlgmr.msrb.gmra.mxu1 %vm60_vm0, %v483_v9  ;;  %v595_v9 = vld [vmem:[%s1873_s5 + $0x20] sm:$0xff] }
 0x6c8   :  { %1044 = vmatpush.msrb.mxu1 %v1558_v2  ;;  %v123_v2 = vpop.f32.mrf.mxu0  ;;  %1250 = vmatmul.msk.f32.gmra.mxu2 %vm60_vm0, %v595_v9 }
 0x6ca   :  { %1045 = vmatpush.msrb.mxu1 %v1570_v7  ;;  %v124_v7 = vadd.f32 %v1492_v11, %v123_v2 }
 0x6cc   :  { %1046 = vmatpush.msrb.mxu1 %v1593_v21  ;;  %134 = vst.msk [vmem:[#allocation2 + $0x38] sm:$0xff] %vm126_vm1, %v124_v7  ;;  %v654_v21 = vpop.f32.mrf.mxu2 }
 0x6ce   :  { %v485_v34 = vpop.permute.xlu2 %484  ;;  %1047 = vmatpush.msrb.mxu1 %v1598_v22  ;;  %v655_v22 = vadd.f32 %v1622_v29, %v654_v21 }
 0x6cf   :  { %1243 = vmatmul.msk.f32.gmra.mxu1 %vm60_vm0, %v485_v34 }
 0x6d0   :  { %674 = vst.msk [vmem:[#allocation3 + $0x10] sm:$0xff] %vm126_vm1, %v655_v22 }
 0x6d4   :  { %v657_v40 = vpop.f32.mrf.mxu2 }
 0x6d5   :  { %v658_v41 = vadd.f32 %v1622_v29, %v657_v40 }
 0x6d7   :  { %675 = vst.msk [vmem:[#allocation3 + $0x18] sm:$0xff] %vm126_vm1, %v658_v41  ;;  %v792_v48 = vld [vmem:[#allocation3 + $0x10] sm:$0xff] }
 0x6de   :  { %v793_v54 = vld [vmem:[#allocation3 + $0x18] sm:$0xff] }
 0x6ee   :  { %v797_v38 = vpop.permute.xlu0 %796 }
 0x6ef   :  { %1256 = vmatmul.msk.f32.vlgmr.msra.gmra.mxu1 %vm60_vm0, %v797_v38 }
 0x6f6   :  { %v799_v39 = vpop.permute.xlu1 %798 }
 0x6f7   :  { %1257 = vmatmul.msk.f32.gmra.mxu1 %vm60_vm0, %v799_v39 }
 0x744   :  { %v1725_v12 = vpop.f32.mrf.mxu1 }
 0x74c   :  { %v1727_v43 = vpop.f32.mrf.mxu1 }
 0x76c   :  { %v821_v45 = vpop.f32.mrf.mxu1 }
 0x76d   :  { %v822_v46 = vadd.f32 %v1635_v37, %v821_v45  ;;  %v660_v45 = vpop.f32.mrf.mxu2 }
 0x76f   :  { %869 = vrot.lane.b32.xlu2 %v822_v46, %s1382_s30  ;;  %v827_v49 = vadd.f32 %v822_v46, %v792_v48  ;;  %v661_v46 = vadd.f32 %v1622_v29, %v660_v45 }
 0x771   :  { %v1258_v50 = vmul.f32 -1.442695, %v827_v49  ;;  %676 = vst.msk [vmem:[#allocation3 + $0x20] sm:$0xff] %vm126_vm1, %v661_v46 }
 0x773   :  { %1326 = vpow2.f32 %v1258_v50 }
 0x774   :  { %v824_v11 = vpop.f32.mrf.mxu1 }
 0x775   :  { %v825_v47 = vadd.f32 %v1635_v37, %v824_v11 }
 0x777   :  { %871 = vrot.lane.b32.xlu0 %v825_v47, %s1382_s30  ;;  %v828_v57 = vadd.f32 %v825_v47, %v793_v54 }
 0x779   :  { %v1327_v51 = vpop.eup %1326  ;;  %v1259_v59 = vmul.f32 -1.442695, %v828_v57 }
 0x77a   :  { %v835_v52 = vadd.f32 1.0, %v1327_v51 }
 0x77c   :  { %1328 = vrcp.f32 %v835_v52  ;;  %v848_v62 = vand.u32 2147483648, %v835_v52  ;;  %vm842_vm7 = vweird.f32 %v835_v52  ;;  %v846_v63 = vand.u32 2147483647, %v835_v52 }
 0x77d   :  { %1330 = vpow2.f32 %v1259_v59 }
 0x77e   :  { %v849_v5 = vor.u32 1.1754944e-38, %v848_v62  ;;  %vm847_vm9 = vcmp.eq.f32.partialorder %v846_v63, 8.507059e+37 }
 0x782   :  { %v1329_v53 = vpop.eup %1328 }
 0x783   :  { %v838_v56 = vmul.f32 %v1329_v53, %v835_v52  ;;  %vm843_vm6 = vweird.f32 %v1329_v53  ;;  %v1331_v1 = vpop.eup %1330  ;;  %v906_v52 = vld [vmem:[#allocation3 + $0x20] sm:$0xff] }
 0x784   :  { %vm844_vm8 = vmor %vm842_vm7, %vm843_vm6  ;;  %v836_v42 = vadd.f32 1.0, %v1331_v1 }
 0x785   :  { %v839_v58 = vsub.f32 1.0, %v838_v56 }
 0x786   :  { %1332 = vrcp.f32 %v836_v42  ;;  %v863_v18 = vand.u32 2147483648, %v836_v42  ;;  %vm857_vm11 = vweird.f32 %v836_v42  ;;  %v861_v19 = vand.u32 2147483647, %v836_v42 }
 0x787   :  { %v840_v60 = vmul.f32 %v1329_v53, %v839_v58 }
 0x788   :  { %v864_v20 = vor.u32 1.1754944e-38, %v863_v18  ;;  %vm862_vm13 = vcmp.eq.f32.partialorder %v861_v19, 8.507059e+37 }
 0x789   :  { %v841_v61 = vadd.f32 %v1329_v53, %v840_v60 }
 0x78b   :  { %v845_v3 = vsel %vm844_vm8, %v1329_v53, %v841_v61 }
 0x78c   :  { %v850_v44 = vsel %vm847_vm9, %v849_v5, %v845_v3  ;;  %v1333_v14 = vpop.eup %1332 }
 0x78d   :  { %v853_v15 = vmul.f32 %v1333_v14, %v836_v42  ;;  %vm858_vm10 = vweird.f32 %v1333_v14  ;;  %v889_v34 = vsub.f32 1.0, %v850_v44  ;;  %v901_v36 = vmul.f32 %v850_v44, %v1689_v25  ;;  %v596_v25 = vld [vmem:[%s1873_s5 + $0x28] sm:$0xff] }
 0x78e   :  { %vm859_vm12 = vmor %vm857_vm11, %vm858_vm10  ;;  %1251 = vmatmul.msk.f32.gmra.mxu2 %vm60_vm0, %v596_v25 }
 0x78f   :  { %v854_v55 = vsub.f32 1.0, %v853_v15 }
 0x791   :  { %v855_v0 = vmul.f32 %v1333_v14, %v854_v55 }
 0x793   :  { %v856_v17 = vadd.f32 %v1333_v14, %v855_v0 }
 0x795   :  { %v860_v10 = vsel %vm859_vm12, %v1333_v14, %v856_v17 }
 0x796   :  { %v865_v24 = vsel %vm862_vm13, %v864_v20, %v860_v10 }
 0x797   :  { %v890_v2 = vsub.f32 1.0, %v865_v24  ;;  %v902_v21 = vmul.f32 %v865_v24, %v1693_v13 }
 0x7c9   :  { %v870_v6 = vpop.permute.xlu2 %869 }
 0x7ca   :  { %v875_v8 = vmul.f32 %v870_v6, %v850_v44 }
 0x7cc   :  { %879 = vrot.lane.b32.xlu1 %v875_v8, %s1382_s30 }
 0x7e9   :  { %v872_v23 = vpop.permute.xlu0 %871 }
 0x7ea   :  { %v876_v27 = vmul.f32 %v872_v23, %v865_v24 }
 0x7ec   :  { %881 = vrot.lane.b32.xlu2 %v876_v27, %s1382_s30 }
 0x811   :  { %v663_v11 = vpop.f32.mrf.mxu2 }
 0x812   :  { %v664_v47 = vadd.f32 %v1622_v29, %v663_v11 }
 0x814   :  { %677 = vst.msk [vmem:[#allocation3 + $0x28] sm:$0xff] %vm126_vm1, %v664_v47 }
 0x81b   :  { %v907_v56 = vld [vmem:[#allocation3 + $0x28] sm:$0xff] }
 0x83e   :  { %v880_v28 = vpop.permute.xlu1 %879 }
 0x83f   :  { %v885_v30 = vadd.f32 %v880_v28, %v792_v48 }
 0x841   :  { %1334 = vtanh.f32 %v885_v30 }
 0x846   :  { %v882_v31 = vpop.permute.xlu2 %881 }
 0x847   :  { %v1335_v26 = vpop.eup %1334  ;;  %v886_v32 = vadd.f32 %v882_v31, %v793_v54 }
 0x848   :  { %893 = vrot.lane.b32.xlu0 %v1335_v26, %s1383_s3 }
 0x849   :  { %1336 = vtanh.f32 %v886_v32 }
 0x84f   :  { %v1337_v33 = vpop.eup %1336 }
 0x850   :  { %895 = vrot.lane.b32.xlu1 %v1337_v33, %s1383_s3 }
 0x8ba   :  { %v894_v35 = vpop.permute.xlu0 %893 }
 0x8bb   :  { %v899_v38 = vmul.f32 %v894_v35, %v889_v34 }
 0x8bd   :  { %v1742_v39 = vadd.f32 %v901_v36, %v899_v38  ;;  %v1380_v38 = vld [vmem:[%s1870_s4] ss:$0 sm:$0xff] }
 0x8be   :  { %v511_v47 = vadd.f32 %v1380_v38, %v1727_v43 }
 0x8bf   :  { %910 = vrot.lane.b32.xlu2 %v1742_v39, %s1383_s3 }
 0x8c2   :  { %v896_v7 = vpop.permute.xlu1 %895 }
 0x8c3   :  { %v900_v22 = vmul.f32 %v896_v7, %v890_v2  ;;  %v508_v2 = vadd.f32 %v1380_v38, %v1725_v12  ;;  %v1774_v7 = vld [vmem:[#allocation2 + $0x30] sm:$0xff] }
 0x8c5   :  { %v1747_v40 = vadd.f32 %v902_v21, %v900_v22  ;;  %v513_v21 = vadd.f32 %v508_v2, %v1774_v7 }
 0x8c7   :  { %912 = vrot.lane.b32.xlu0 %v1747_v40, %s1383_s3  ;;  %v1244_v22 = vmul.f32 -1.442695, %v513_v21 }
 0x919   :  { %v911_v41 = vpop.permute.xlu2 %910 }
 0x91a   :  { %1260 = vmatmul.msk.f32.vlgmr.msrb.gmra.mxu3 %vm60_vm0, %v911_v41 }
 0x939   :  { %v913_v13 = vpop.permute.xlu0 %912 }
 0x93a   :  { %1261 = vmatmul.msk.f32.gmra.mxu3 %vm60_vm0, %v913_v13 }
 0x99d   :  { %v935_v48 = vpop.f32.mrf.mxu3 }
 0x99e   :  { %v936_v49 = vadd.f32 %v1635_v37, %v935_v48  ;;  %v597_v48 = vld [vmem:[%s1873_s5 + $0x30] sm:$0xff] }
 0x99f   :  { %1252 = vmatmul.msk.f32.gmra.mxu2 %vm60_vm0, %v597_v48 }
 0x9a0   :  { %983 = vrot.lane.b32.xlu1 %v936_v49, %s1382_s30  ;;  %v941_v53 = vadd.f32 %v936_v49, %v906_v52 }
 0x9a2   :  { %v1262_v54 = vmul.f32 -1.442695, %v941_v53 }
 0x9a4   :  { %1338 = vpow2.f32 %v1262_v54 }
 0x9aa   :  { %v1339_v59 = vpop.eup %1338 }
 0x9ab   :  { %v949_v60 = vadd.f32 1.0, %v1339_v59 }
 0x9ad   :  { %v962_v14 = vand.u32 2147483648, %v949_v60  ;;  %vm956_vm15 = vweird.f32 %v949_v60  ;;  %v960_v15 = vand.u32 2147483647, %v949_v60 }
 0x9af   :  { %v963_v17 = vor.u32 1.1754944e-38, %v962_v14  ;;  %vm961_vm3 = vcmp.eq.f32.partialorder %v960_v15, 8.507059e+37  ;;  %v1807_v14 = vld [vmem:[#allocation2 + $0x38] sm:$0xff] }
 0x9b0   :  { %v514_v15 = vadd.f32 %v511_v47, %v1807_v14 }
 0x9bd   :  { %v938_v50 = vpop.f32.mrf.mxu3 }
 0x9be   :  { %v939_v51 = vadd.f32 %v1635_v37, %v938_v50 }
 0x9c0   :  { %985 = vrot.lane.b32.xlu2 %v939_v51, %s1382_s30  ;;  %v942_v57 = vadd.f32 %v939_v51, %v907_v56 }
 0x9c2   :  { %v1263_v58 = vmul.f32 -1.442695, %v942_v57 }
 0x9c4   :  { %1340 = vpow2.f32 %v1263_v58 }
 0x9c5   :  { %1342 = vrcp.f32 %v949_v60 }
 0x9ca   :  { %v1341_v61 = vpop.eup %1340 }
 0x9cb   :  { %v950_v62 = vadd.f32 1.0, %v1341_v61  ;;  %v1343_v63 = vpop.eup %1342 }
 0x9cc   :  { %v952_v1 = vmul.f32 %v1343_v63, %v949_v60  ;;  %vm957_vm14 = vweird.f32 %v1343_v63 }
 0x9cd   :  { %1344 = vrcp.f32 %v950_v62  ;;  %vm958_vm2 = vmor %vm956_vm15, %vm957_vm14  ;;  %v977_v23 = vand.u32 2147483648, %v950_v62  ;;  %vm971_vm5 = vweird.f32 %v950_v62  ;;  %v975_v24 = vand.u32 2147483647, %v950_v62 }
 0x9ce   :  { %v953_v3 = vsub.f32 1.0, %v952_v1 }
 0x9cf   :  { %v978_v28 = vor.u32 1.1754944e-38, %v977_v23  ;;  %vm976_vm7 = vcmp.eq.f32.partialorder %v975_v24, 8.507059e+37 }
 0x9d0   :  { %v954_v42 = vmul.f32 %v1343_v63, %v953_v3 }
 0x9d2   :  { %v955_v44 = vadd.f32 %v1343_v63, %v954_v42 }
 0x9d3   :  { %v1345_v5 = vpop.eup %1344 }
 0x9d4   :  { %v967_v6 = vmul.f32 %v1345_v5, %v950_v62  ;;  %v959_v55 = vsel %vm958_vm2, %v1343_v63, %v955_v44  ;;  %vm972_vm4 = vweird.f32 %v1345_v5 }
 0x9d5   :  { %v964_v18 = vsel %vm961_vm3, %v963_v17, %v959_v55  ;;  %vm973_vm6 = vmor %vm971_vm5, %vm972_vm4  ;;  %v1245_v55 = vmul.f32 -1.442695, %v514_v15 }
 0x9d6   :  { %v968_v8 = vsub.f32 1.0, %v967_v6  ;;  %v1003_v25 = vsub.f32 1.0, %v964_v18  ;;  %v1015_v45 = vmul.f32 %v964_v18, %v1742_v39  ;;  %v598_v39 = vld [vmem:[%s1873_s5 + $0x38] sm:$0xff] }
 0x9d7   :  { %1253 = vmatmul.msk.f32.gmra.mxu2 %vm60_vm0, %v598_v39 }
 0x9d8   :  { %v969_v0 = vmul.f32 %v1345_v5, %v968_v8 }
 0x9da   :  { %v970_v20 = vadd.f32 %v1345_v5, %v969_v0 }
 0x9dc   :  { %v974_v27 = vsel %vm973_vm6, %v1345_v5, %v970_v20 }
 0x9dd   :  { %v979_v31 = vsel %vm976_vm7, %v978_v28, %v974_v27 }
 0x9de   :  { %v1004_v43 = vsub.f32 1.0, %v979_v31  ;;  %v1016_v54 = vmul.f32 %v979_v31, %v1747_v40 }
 0xa12   :  { %v984_v19 = vpop.permute.xlu1 %983 }
 0xa13   :  { %v989_v10 = vmul.f32 %v984_v19, %v964_v18 }
 0xa15   :  { %993 = vrot.lane.b32.xlu0 %v989_v10, %s1382_s30 }
 0xa1a   :  { %v986_v30 = vpop.permute.xlu2 %985 }
 0xa1b   :  { %v990_v26 = vmul.f32 %v986_v30, %v979_v31 }
 0xa1d   :  { %995 = vrot.lane.b32.xlu1 %v990_v26, %s1382_s30 }
 0xa22   :  { %v666_v42 = vpop.f32.mrf.mxu2 }
 0xa23   :  { %v667_v6 = vadd.f32 %v1622_v29, %v666_v42 }
 0xa25   :  { %678 = vst.msk [vmem:[#allocation3 + $0x30] sm:$0xff] %vm126_vm1, %v667_v6 }
 0xa5a   :  { %v669_v44 = vpop.f32.mrf.mxu2 }
 0xa5b   :  { %v670_v8 = vadd.f32 %v1622_v29, %v669_v44 }
 0xa5d   :  { %679 = vst.msk [vmem:[#allocation3 + $0x38] sm:$0xff] %vm126_vm1, %v670_v8 }
 0xa87   :  { %v994_v32 = vpop.permute.xlu0 %993 }
 0xa88   :  { %v999_v33 = vadd.f32 %v994_v32, %v906_v52 }
 0xa8a   :  { %1346 = vtanh.f32 %v999_v33 }
 0xa8f   :  { %v996_v9 = vpop.permute.xlu1 %995 }
 0xa90   :  { %v1347_v34 = vpop.eup %1346  ;;  %v1000_v35 = vadd.f32 %v996_v9, %v907_v56 }
 0xa91   :  { %1007 = vrot.lane.b32.xlu2 %v1347_v34, %s1383_s3 }
 0xa92   :  { %1348 = vtanh.f32 %v1000_v35 }
 0xa93   :  { %1350 = vpow2.f32 %v1244_v22 }
 0xa98   :  { %v1349_v36 = vpop.eup %1348 }
 0xa99   :  { %1009 = vrot.lane.b32.xlu0 %v1349_v36, %s1383_s3  ;;  %v1351_v11 = vpop.eup %1350 }
 0xa9a   :  { %v521_v12 = vadd.f32 1.0, %v1351_v11 }
 0xa9c   :  { %1352 = vrcp.f32 %v521_v12  ;;  %v534_v58 = vand.u32 2147483648, %v521_v12  ;;  %vm528_vm9 = vweird.f32 %v521_v12  ;;  %v532_v60 = vand.u32 2147483647, %v521_v12 }
 0xa9d   :  { %1354 = vpow2.f32 %v1245_v55 }
 0xa9e   :  { %v535_v62 = vor.u32 1.1754944e-38, %v534_v58  ;;  %vm533_vm11 = vcmp.eq.f32.partialorder %v532_v60, 8.507059e+37 }
 0xaa1   :  { %555 = vrot.lane.b32.xlu0 %v508_v2, %s1382_s30  ;;  %v1020_v2 = vld [vmem:[#allocation3 + $0x30] sm:$0xff] }
 0xaa2   :  { %v1353_v49 = vpop.eup %1352 }
 0xaa3   :  { %v524_v50 = vmul.f32 %v1353_v49, %v521_v12  ;;  %vm529_vm8 = vweird.f32 %v1353_v49  ;;  %v1355_v0 = vpop.eup %1354 }
 0xaa4   :  { %vm530_vm10 = vmor %vm528_vm9, %vm529_vm8  ;;  %v522_v17 = vadd.f32 1.0, %v1355_v0 }
 0xaa5   :  { %v525_v51 = vsub.f32 1.0, %v524_v50 }
 0xaa6   :  { %1356 = vrcp.f32 %v522_v17  ;;  %v549_v28 = vand.u32 2147483648, %v522_v17  ;;  %vm543_vm1 = vweird.f32 %v522_v17  ;;  %v547_v30 = vand.u32 2147483647, %v522_v17 }
 0xaa7   :  { %v526_v52 = vmul.f32 %v1353_v49, %v525_v51 }
 0xaa8   :  { %v550_v32 = vor.u32 1.1754944e-38, %v549_v28  ;;  %vm548_vm14 = vcmp.eq.f32.partialorder %v547_v30, 8.507059e+37 }
 0xaa9   :  { %v527_v57 = vadd.f32 %v1353_v49, %v526_v52 }
 0xaab   :  { %v531_v61 = vsel %vm530_vm10, %v1353_v49, %v527_v57 }
 0xaac   :  { %v1797_v63 = vsel %vm533_vm11, %v535_v62, %v531_v61  ;;  %v1357_v18 = vpop.eup %1356 }
 0xaad   :  { %v539_v19 = vmul.f32 %v1357_v18, %v522_v17  ;;  %vm544_vm12 = vweird.f32 %v1357_v18  ;;  %v587_v6 = vmul.f32 %v1797_v63, %v1674_v16 }
 0xaae   :  { %vm545_vm13 = vmor %vm543_vm1, %vm544_vm12 }
 0xaaf   :  { %v540_v10 = vsub.f32 1.0, %v539_v19 }
 0xab1   :  { %v541_v23 = vmul.f32 %v1357_v18, %v540_v10 }
 0xab3   :  { %v542_v27 = vadd.f32 %v1357_v18, %v541_v23 }
 0xab5   :  { %v546_v31 = vsel %vm545_vm13, %v1357_v18, %v542_v27 }
 0xab6   :  { %v1812_v33 = vsel %vm548_vm14, %v550_v32, %v546_v31 }
 0xaeb   :  { %v1008_v41 = vpop.permute.xlu2 %1007 }
 0xaec   :  { %v1013_v46 = vmul.f32 %v1008_v41, %v1003_v25 }
 0xaee   :  { %v1778_v13 = vadd.f32 %v1015_v45, %v1013_v46  ;;  %v1820_v45 = vld [vmem:[#allocation3 + $0x38] sm:$0xff] }
 0xaf0   :  { %1024 = vrot.lane.b32.xlu1 %v1778_v13, %s1383_s3 }
 0xaf8   :  { %557 = vrot.lane.b32.xlu1 %v511_v47, %s1382_s30 }
 0xb0b   :  { %v1010_v53 = vpop.permute.xlu0 %1009 }
 0xb0c   :  { %v1014_v56 = vmul.f32 %v1010_v53, %v1004_v43 }
 0xb0e   :  { %v1793_v59 = vadd.f32 %v1016_v54, %v1014_v56 }
 0xb10   :  { %1026 = vrot.lane.b32.xlu2 %v1793_v59, %s1383_s3 }
 0xb13   :  { %v556_v1 = vpop.permute.xlu0 %555 }
 0xb14   :  { %v561_v40 = vmul.f32 %v556_v1, %v1797_v63 }
 0xb16   :  { %565 = vrot.lane.b32.xlu1 %v561_v40, %s1382_s30 }
 0xb62   :  { %v1025_v3 = vpop.permute.xlu1 %1024 }
 0xb63   :  { %1264 = vmatmul.msk.f32.vlgmr.msrb.gmra.mxu1 %vm60_vm0, %v1025_v3  ;;  %v575_v3 = vsub.f32 1.0, %v1797_v63  ;;  %v576_v63 = vsub.f32 1.0, %v1812_v33 }
 0xb6a   :  { %v1027_v5 = vpop.permute.xlu2 %1026  ;;  %v558_v20 = vpop.permute.xlu1 %557 }
 0xb6b   :  { %1265 = vmatmul.msk.f32.gmra.mxu1 %vm60_vm0, %v1027_v5  ;;  %v562_v35 = vmul.f32 %v558_v20, %v1812_v33 }
 0xb88   :  { %v566_v26 = vpop.permute.xlu1 %565 }
 0xb89   :  { %v571_v9 = vadd.f32 %v566_v26, %v1774_v7 }
 0xb8b   :  { %1358 = vtanh.f32 %v571_v9 }
 0xb91   :  { %v1359_v38 = vpop.eup %1358 }
 0xbe0   :  { %v1049_v24 = vpop.f32.mrf.mxu1 }
 0xbe1   :  { %v1050_v29 = vadd.f32 %v1635_v37, %v1049_v24  ;;  %v588_v24 = vmul.f32 %v1812_v33, %v1685_v4 }
 0xbe3   :  { %1097 = vrot.lane.b32.xlu2 %v1050_v29, %s1382_s30  ;;  %v1055_v21 = vadd.f32 %v1050_v29, %v1020_v2 }
 0xbe5   :  { %v1266_v22 = vmul.f32 -1.442695, %v1055_v21  ;;  %v1133_v21 = vld [vmem:[%s1876_s10] sm:$0xff] }
 0xbe7   :  { %1360 = vpow2.f32 %v1266_v22 }
 0xbe8   :  { %v1052_v34 = vpop.f32.mrf.mxu1 }
 0xbe9   :  { %v1053_v36 = vadd.f32 %v1635_v37, %v1052_v34 }
 0xbeb   :  { %1099 = vrot.lane.b32.xlu0 %v1053_v36, %s1382_s30  ;;  %567 = vrot.lane.b32.xlu2 %v562_v35, %s1382_s30  ;;  %v1056_v37 = vadd.f32 %v1053_v36, %v1820_v45 }
 0xbed   :  { %v1361_v25 = vpop.eup %1360  ;;  %v1267_v12 = vmul.f32 -1.442695, %v1056_v37 }
 0xbee   :  { %v1063_v41 = vadd.f32 1.0, %v1361_v25 }
 0xbf0   :  { %1362 = vrcp.f32 %v1063_v41  ;;  %v1076_v39 = vand.u32 2147483648, %v1063_v41  ;;  %vm1070_vm2 = vweird.f32 %v1063_v41  ;;  %v1074_v49 = vand.u32 2147483647, %v1063_v41 }
 0xbf1   :  { %1364 = vpow2.f32 %v1267_v12 }
 0xbf2   :  { %v1077_v52 = vor.u32 1.1754944e-38, %v1076_v39  ;;  %vm1075_vm4 = vcmp.eq.f32.partialorder %v1074_v49, 8.507059e+37 }
 0xbf3   :  { %579 = vrot.lane.b32.xlu2 %v1359_v38, %s1383_s3 }
 0xbf6   :  { %v1363_v7 = vpop.eup %1362 }
 0xbf7   :  { %v1066_v46 = vmul.f32 %v1363_v7, %v1063_v41  ;;  %vm1071_vm15 = vweird.f32 %v1363_v7  ;;  %v1365_v50 = vpop.eup %1364 }
 0xbf8   :  { %vm1072_vm3 = vmor %vm1070_vm2, %vm1071_vm15  ;;  %v1064_v43 = vadd.f32 1.0, %v1365_v50 }
 0xbf9   :  { %v1067_v11 = vsub.f32 1.0, %v1066_v46 }
 0xbfa   :  { %1366 = vrcp.f32 %v1064_v43  ;;  %vm1085_vm6 = vweird.f32 %v1064_v43  ;;  %v1089_v15 = vand.u32 2147483647, %v1064_v43 }
 0xbfb   :  { %v1068_v47 = vmul.f32 %v1363_v7, %v1067_v11 }
 0xbfc   :  { %vm1090_vm8 = vcmp.eq.f32.partialorder %v1089_v15, 8.507059e+37 }
 0xbfd   :  { %v1069_v48 = vadd.f32 %v1363_v7, %v1068_v47  ;;  %v1384_v47 = vmov 32.0  }
 0xbff   :  { %v1073_v51 = vsel %vm1072_vm3, %v1363_v7, %v1069_v48 }
 0xc00   :  { %v1078_v54 = vsel %vm1075_vm4, %v1077_v52, %v1073_v51  ;;  %v1367_v60 = vpop.eup %1366 }
 0xc01   :  { %v1081_v61 = vmul.f32 %v1367_v60, %v1064_v43  ;;  %vm1086_vm5 = vweird.f32 %v1367_v60  ;;  %v1117_v26 = vsub.f32 1.0, %v1078_v54  ;;  %v1129_v9 = vmul.f32 %v1078_v54, %v1778_v13 }
 0xc02   :  { %vm1087_vm7 = vmor %vm1085_vm6, %vm1086_vm5 }
 0xc03   :  { %v1082_v40 = vsub.f32 1.0, %v1081_v61 }
 0xc05   :  { %v1083_v42 = vmul.f32 %v1367_v60, %v1082_v40 }
 0xc07   :  { %v1084_v8 = vadd.f32 %v1367_v60, %v1083_v42 }
 0xc09   :  { %v1088_v55 = vsel %vm1087_vm7, %v1367_v60, %v1084_v8 }
 0xc3d   :  { %v1098_v53 = vpop.permute.xlu2 %1097 }
 0xc3e   :  { %v1103_v56 = vmul.f32 %v1098_v53, %v1078_v54 }
 0xc40   :  { %1107 = vrot.lane.b32.xlu0 %v1103_v56, %s1382_s30 }
 0xc45   :  { %v568_v57 = vpop.permute.xlu2 %567 }
 0xc46   :  { %v572_v58 = vadd.f32 %v568_v57, %v1807_v14  ;;  %v1091_v14 = vand.u32 2147483648, %v1064_v43 }
 0xc48   :  { %1368 = vtanh.f32 %v572_v58  ;;  %v1092_v0 = vor.u32 1.1754944e-38, %v1091_v14 }
 0xc4a   :  { %v1093_v18 = vsel %vm1090_vm8, %v1092_v0, %v1088_v55  ;;  %v1276_v55 = vld [vmem:[%s1877_s11] ss:$0 sm:$0xff] }
 0xc4b   :  { %v1118_v4 = vsub.f32 1.0, %v1093_v18  ;;  %v1130_v36 = vmul.f32 %v1093_v18, %v1793_v59 }
 0xc4d   :  { %v580_v1 = vpop.permute.xlu2 %579 }
 0xc4e   :  { %v1369_v62 = vpop.eup %1368  ;;  %v585_v5 = vmul.f32 %v580_v1, %v575_v3 }
 0xc4f   :  { %581 = vrot.lane.b32.xlu0 %v1369_v62, %s1383_s3 }
 0xc50   :  { %v589_v44 = vadd.f32 %v587_v6, %v585_v5 }
 0xc57   :  { %1137 = vrot.lane.b32.xlu0 %v589_v44, %s1383_s3 }
 0xc5d   :  { %v1100_v17 = vpop.permute.xlu0 %1099 }
 0xc5e   :  { %v1104_v19 = vmul.f32 %v1100_v17, %v1093_v18  ;;  %v1277_v17 = vld [vmem:[%s1878_s12] ss:$0 sm:$0xff] }
 0xc60   :  { %1109 = vrot.lane.b32.xlu1 %v1104_v19, %s1382_s30 }
 0xcb2   :  { %v1108_v10 = vpop.permute.xlu0 %1107 }
 0xcb3   :  { %v1113_v20 = vadd.f32 %v1108_v10, %v1020_v2 }
 0xcb5   :  { %1370 = vtanh.f32 %v1113_v20 }
 0xcbb   :  { %v1371_v16 = vpop.eup %1370 }
 0xcbc   :  { %1121 = vrot.lane.b32.xlu1 %v1371_v16, %s1383_s3 }
 0xcc1   :  { %v582_v23 = vpop.permute.xlu0 %581 }
 0xcc2   :  { %v586_v27 = vmul.f32 %v582_v23, %v576_v63 }
 0xcc4   :  { %v590_v29 = vadd.f32 %v588_v24, %v586_v27 }
 0xcc6   :  { %1139 = vrot.lane.b32.xlu1 %v590_v29, %s1383_s3 }
 0xcc9   :  { %v1138_v22 = vpop.permute.xlu0 %1137 }
 0xcca   :  { %v1143_v25 = vadd.f32 %v1138_v22, %v1133_v21 }
 0xcd2   :  { %v1110_v28 = vpop.permute.xlu1 %1109 }
 0xcd3   :  { %v1114_v30 = vadd.f32 %v1110_v28, %v1820_v45  ;;  %v1134_v45 = vld [vmem:[%s1876_s10 + $0x8] sm:$0xff] }
 0xcd5   :  { %1372 = vtanh.f32 %v1114_v30 }
 0xcd6   :  { %1374 = vrcp.f32 %v1384_v47 }
 0xcdb   :  { %v1373_v31 = vpop.eup %1372 }
 0xcdc   :  { %1123 = vrot.lane.b32.xlu2 %v1373_v31, %s1383_s3  ;;  %v1375_v48 = vpop.eup %1374 }
 0xcdd   :  { %v1164_v39 = vmul.f32 32.0, %v1375_v48  ;;  %vm1168_vm9 = vweird.f32 %v1375_v48 }
 0xcdf   :  { %v1165_v49 = vsub.f32 1.0, %v1164_v39 }
 0xce1   :  { %v1166_v50 = vmul.f32 %v1375_v48, %v1165_v49 }
 0xce3   :  { %v1167_v51 = vadd.f32 %v1375_v48, %v1166_v50 }
 0xce5   :  { %v1169_v52 = vsel %vm1168_vm9, %v1375_v48, %v1167_v51 }
 0xd2e   :  { %v1122_v32 = vpop.permute.xlu1 %1121 }
 0xd2f   :  { %v1127_v34 = vmul.f32 %v1122_v32, %v1117_v26 }
 0xd31   :  { %v1131_v35 = vadd.f32 %v1129_v9, %v1127_v34 }
 0xd33   :  { %1147 = vrot.lane.b32.xlu2 %v1131_v35, %s1383_s3 }
 0xd36   :  { %v1124_v33 = vpop.permute.xlu2 %1123 }
 0xd37   :  { %v1128_v38 = vmul.f32 %v1124_v33, %v1118_v4 }
 0xd38   :  { %v1140_v59 = vpop.permute.xlu1 %1139 }
 0xd39   :  { %v1132_v2 = vadd.f32 %v1130_v36, %v1128_v38  ;;  %v1144_v46 = vadd.f32 %v1140_v59, %v1134_v45 }
 0xd3b   :  { %1149 = vrot.lane.b32.xlu0 %v1132_v2, %s1383_s3 }
 0xd8d   :  { %v1148_v41 = vpop.permute.xlu2 %1147 }
 0xd8e   :  { %v1153_v13 = vadd.f32 %v1148_v41, %v1143_v25 }
 0xd90   :  { %v1157_v7 = vsel %vm60_vm0, %v1153_v13, 0.0 }
 0xd91   :  { %1158 = vadd.xlane.f32.xlu1 %v1157_v7 }
 0xdad   :  { %v1150_v37 = vpop.permute.xlu0 %1149 }
 0xdae   :  { %v1154_v11 = vadd.f32 %v1150_v37, %v1144_v46 }
 0xdb0   :  { %v1160_v12 = vsel %vm60_vm0, %v1154_v11, 0.0 }
 0xdb1   :  { %1161 = vadd.xlane.f32.xlu2 %v1160_v12 }
 0xe04   :  { %v1159_v43 = vpop.xlane.xlu1 %1158 }
 0xe05   :  { %v1170_v53 = vmul.f32 %v1169_v52, %v1159_v43 }
 0xe07   :  { %v1172_v54 = vsub.f32 %v1153_v13, %v1170_v53 }
 0xe09   :  { %v1174_v56 = vmul.f32 %v1172_v54, %v1172_v54 }
 0xe0b   :  { %v1176_v57 = vsel %vm60_vm0, %v1174_v56, 0.0 }
 0xe0c   :  { %1177 = vadd.xlane.f32.xlu0 %v1176_v57 }
 0xe24   :  { %v1162_v58 = vpop.xlane.xlu2 %1161 }
 0xe25   :  { %v1171_v60 = vmul.f32 %v1169_v52, %v1162_v58 }
 0xe27   :  { %v1173_v61 = vsub.f32 %v1154_v11, %v1171_v60 }
 0xe29   :  { %v1175_v62 = vmul.f32 %v1173_v61, %v1173_v61 }
 0xe2b   :  { %v1179_v1 = vsel %vm60_vm0, %v1175_v62, 0.0 }
 0xe2c   :  { %1180 = vadd.xlane.f32.xlu2 %v1179_v1 }
 0xe7f   :  { %v1178_v40 = vpop.xlane.xlu0 %1177 }
 0xe80   :  { %v1182_v3 = vmul.f32 %v1178_v40, %v1169_v52 }
 0xe82   :  { %v1184_v5 = vadd.f32 1e-12, %v1182_v3 }
 0xe84   :  { %1376 = vrsqrt.f32 %v1184_v5  ;;  %vm1192_vm11 = vweird.f32 %v1184_v5 }
 0xe8a   :  { %v1377_v42 = vpop.eup %1376 }
 0xe8b   :  { %v1187_v6 = vmul.f32 %v1377_v42, %v1184_v5  ;;  %vm1193_vm10 = vweird.f32 %v1377_v42 }
 0xe8c   :  { %vm1194_vm12 = vmor %vm1192_vm11, %vm1193_vm10 }
 0xe8d   :  { %v1188_v44 = vmul.f32 %v1377_v42, %v1187_v6 }
 0xe8f   :  { %v1189_v8 = vmul.f32 0.5, %v1188_v44 }
 0xe91   :  { %v1190_v14 = vsub.f32 1.5, %v1189_v8 }
 0xe93   :  { %v1191_v15 = vmul.f32 %v1377_v42, %v1190_v14 }
 0xe95   :  { %v1195_v0 = vsel %vm1194_vm12, %v1377_v42, %v1191_v15 }
 0xe96   :  { %v1206_v18 = vmul.f32 %v1195_v0, %v1172_v54 }
 0xe98   :  { %v1211_v19 = vmul.f32 %v1276_v55, %v1206_v18 }
 0xe9a   :  { %v1216_v10 = vadd.f32 %v1277_v17, %v1211_v19 }
 0xe9c   :  { %1218 = vst.msk [vmem:[%s1879_s13] sm:$0xff] %vm60_vm0, %v1216_v10 }
 0xe9f   :  { %v1181_v20 = vpop.xlane.xlu2 %1180 }
 0xea0   :  { %v1183_v16 = vmul.f32 %v1181_v20, %v1169_v52 }
 0xea2   :  { %v1185_v63 = vadd.f32 1e-12, %v1183_v16 }
 0xea4   :  { %1378 = vrsqrt.f32 %v1185_v63  ;;  %vm1202_vm13 = vweird.f32 %v1185_v63 }
 0xeaa   :  { %v1379_v23 = vpop.eup %1378 }
 0xeab   :  { %v1197_v24 = vmul.f32 %v1379_v23, %v1185_v63  ;;  %vm1203_vm1 = vweird.f32 %v1379_v23 }
 0xeac   :  { %vm1204_vm14 = vmor %vm1202_vm13, %vm1203_vm1 }
 0xead   :  { %v1198_v27 = vmul.f32 %v1379_v23, %v1197_v24 }
 0xeaf   :  { %v1199_v29 = vmul.f32 0.5, %v1198_v27 }
 0xeb1   :  { %v1200_v28 = vsub.f32 1.5, %v1199_v29 }
 0xeb3   :  { %v1201_v30 = vmul.f32 %v1379_v23, %v1200_v28 }
 0xeb5   :  { %v1205_v31 = vsel %vm1204_vm14, %v1379_v23, %v1201_v30 }
 0xeb6   :  { %v1207_v26 = vmul.f32 %v1205_v31, %v1173_v61 }
 0xeb8   :  { %v1212_v32 = vmul.f32 %v1276_v55, %v1207_v26 }
 0xeba   :  { %v1217_v9 = vadd.f32 %v1277_v17, %v1212_v32 }
 0xebc   :  { %1219 = vst.msk [vmem:[%s1879_s13 + $0x8] sm:$0xff] %vm60_vm0, %v1217_v9 }

// kernel: fwd.7
= control target key start
LH: loop header
LB: loop body
LE: loop exit
PB: predicated region body
PF: predicated region fallthrough
CT: control target
= control target key end

     0   :  { %s3747_s0 = inlined_call_operand.vmem [shape: f32[8,2,32], index: 0, kind: input, shape index: {}]   ;;  %s3748_s1 = inlined_call_operand.vmem [shape: f32[8,2,1], index: 1, kind: input, shape index: {}]   ;;  %s3749_s2 = inlined_call_operand.vmem [shape: f32[32,128], index: 2, kind: input, shape index: {}]   ;;  %s3750_s3 = inlined_call_operand.vmem [shape: f32[1,128], index: 3, kind: input, shape index: {}]   ;;  %s3751_s4 = inlined_call_operand.vmem [shape: f32[16,64], index: 4, kind: input, shape index: {}]   ;;  %s3752_s5 = inlined_call_operand.vmem [shape: f32[1,64], index: 5, kind: input, shape index: {}]   ;;  %s3753_s6 = inlined_call_operand.vmem [shape: f32[16,64], index: 6, kind: input, shape index: {}]   ;;  %s3754_s7 = inlined_call_operand.vmem [shape: f32[1,64], index: 7, kind: input, shape index: {}]   ;;  %s3755_s8 = inlined_call_operand.vmem [shape: f32[16,5], index: 8, kind: input, shape index: {}]   ;;  %s3756_s9 = inlined_call_operand.vmem [shape: f32[16,5], index: 9, kind: input, shape index: {}]   ;;  %s3757_s10 = inlined_call_operand.vmem [shape: f32[1,5], index: 10, kind: input, shape index: {}]   ;;  %s3758_s11 = inlined_call_operand.vmem [shape: f32[8,2,5], index: 11, kind: input, shape index: {}]   ;;  %s3759_s12 = inlined_call_operand.vmem [shape: f32[8,2,1], index: 12, kind: input, shape index: {}]   ;;  %s3760_s13 = inlined_call_operand.vmem [shape: f32[2,5], index: 13, kind: input, shape index: {}]   ;;  %s3761_s14 = inlined_call_operand.vmem [shape: f32[1,5], index: 14, kind: input, shape index: {}]   ;;  %s3762_s15 = inlined_call_operand.vmem [shape: f32[1,5], index: 15, kind: input, shape index: {}]   ;;  %s3763_s16 = inlined_call_operand.vmem [shape: f32[5,5], index: 16, kind: input, shape index: {}]   ;;  %s3764_s17 = inlined_call_operand.vmem [shape: f32[2,1], index: 17, kind: input, shape index: {}]   ;;  %s3765_s18 = inlined_call_operand.hbm [shape: f32[1,1], index: 18, kind: output, shape index: {}]  }
   0x1   :  { %3769 = sst [smem:[#allocation9_spill]] %s3747_s0 }
   0x2   :  { %3770 = sst [smem:[#allocation10_spill]] %s3748_s1 }
   0x3   :  { %3771 = sst [smem:[#allocation11_spill]] %s3749_s2 }
   0x4   :  { %v3000_v0 = vld [vmem:[%s3753_s6 + $0x8] sm:$0xff]  ;;  %v3005_v1 = vld [vmem:[%s3753_s6] sm:$0xff]  ;;  %s3772_s1 = sld [smem:[#allocation11_spill]]  ;;  %v2894_v11 = vmov 0.0   ;;  %vm101_vm0 = vcmask 261120  }
   0x5   :  { %246 = vmatpush.msra.mxu2 %v3000_v0  ;;  %s3773_s25 = sld [smem:[#allocation9_spill]]  ;;  %v3033_v9 = vld [vmem:[%s3751_s4 + $0x8] sm:$0xff]  ;;  %v3038_v10 = vld [vmem:[%s3751_s4] sm:$0xff] }
   0x6   :  { %173 = vmatpush.msra.mxu1 %v3033_v9  ;;  %327 = vmatpush.msra.mxu3 %v3033_v9 }
   0x7   :  { %247 = vmatpush.msra.mxu2 %v3005_v1 }
   0x8   :  { %248 = vmatmul.f32.vlgmr.msra.gmra.mxu2 %v2894_v11  ;;  %174 = vmatpush.msra.mxu1 %v3038_v10 }
   0x9   :  { %483 = vmatpush.msrb.mxu2 %v3033_v9  ;;  %175 = vmatmul.f32.vlgmr.msra.gmra.mxu1 %v2894_v11 }
   0xa   :  { %v71_v2 = vld [vmem:[%s3772_s1 + $0x18] sm:$0xff]  ;;  %v70_v3 = vld [vmem:[%s3772_s1 + $0x10] sm:$0xff]  ;;  %v69_v4 = vld [vmem:[%s3772_s1 + $0x8] sm:$0xff]  ;;  %402 = vmatpush.msrb.mxu1 %v3000_v0  ;;  %328 = vmatpush.msra.mxu3 %v3038_v10 }
   0xb   :  { %118 = vmatpush.msra.mxu0 %v71_v2  ;;  %v60_v5 = vld [vmem:[%s3773_s25] sm:$0x3]  ;;  %v61_v6 = vld [vmem:[%s3773_s25 + $0x2] sm:$0x3]  ;;  %v62_v7 = vld [vmem:[%s3773_s25 + $0x4] sm:$0x3]  ;;  %484 = vmatpush.msrb.mxu2 %v3038_v10 }
   0xc   :  { %v63_v8 = vld [vmem:[%s3773_s25 + $0x6] sm:$0x3]  ;;  %84 = vst [vmem:[#allocation1] ss:$4 sm:$0xff] %v60_v5  ;;  %v64_v13 = vld [vmem:[%s3773_s25 + $0x8] sm:$0x3]  ;;  %558 = vmatpush.msrb.mxu3 %v3000_v0  ;;  %403 = vmatpush.msrb.mxu1 %v3005_v1 }
   0xd   :  { %119 = vmatpush.msra.mxu0 %v70_v3  ;;  %v68_v12 = vld [vmem:[%s3772_s1] sm:$0xff]  ;;  %86 = vst [vmem:[#allocation1 + $0x1] ss:$4 sm:$0xff] %v61_v6  ;;  %v65_v14 = vld [vmem:[%s3773_s25 + $0xa] sm:$0x3]  ;;  %714 = vmatpush.msra.mxu2 %v3000_v0 }
   0xe   :  { %88 = vst [vmem:[#allocation1 + $0x2] ss:$4 sm:$0xff] %v62_v7  ;;  %v66_v15 = vld [vmem:[%s3773_s25 + $0xc] sm:$0x3]  ;;  %v67_v16 = vld [vmem:[%s3773_s25 + $0xe] sm:$0x3]  ;;  %559 = vmatpush.msrb.mxu3 %v3005_v1  ;;  %639 = vmatpush.msra.mxu1 %v3033_v9 }
   0xf   :  { %120 = vmatpush.msra.mxu0 %v69_v4  ;;  %90 = vst [vmem:[#allocation1 + $0x3] ss:$4 sm:$0xff] %v63_v8  ;;  %715 = vmatpush.msra.mxu2 %v3005_v1 }
  0x10   :  { %92 = vst [vmem:[#allocation1 + $0x20] ss:$4 sm:$0xff] %v64_v13  ;;  %640 = vmatpush.msra.mxu1 %v3038_v10 }
  0x11   :  { %121 = vmatpush.msra.mxu0 %v68_v12  ;;  %94 = vst [vmem:[#allocation1 + $0x21] ss:$4 sm:$0xff] %v65_v14 }
  0x12   :  { %96 = vst [vmem:[#allocation1 + $0x22] ss:$4 sm:$0xff] %v66_v15 }
  0x13   :  { %98 = vst [vmem:[#allocation1 + $0x23] ss:$4 sm:$0xff] %v67_v16 }
  0x16   :  { %v99_v17 = vld.sshfl [vmem:[#allocation1] sm:$0xff pattern:$0x73625140] }
  0x17   :  { %2573 = vmatmul.msk.f32.vlgmr.msra.gmra.mxu0 %vm101_vm0, %v99_v17 }
  0x18   :  { %23 = vsyncpa [#allocation7], 0  ;;  %s2895_s25 = smov 64   ;;  %v2650_v20 = vld [vmem:[%s3750_s3] ss:$0 sm:$0xff]  ;;  %s2896_s3 = smov 96  }
  0x19   :  { %v2649_v22 = vld [vmem:[%s3754_s7] ss:$0 sm:$0xff]  ;;  %s2897_s2 = smov 16   ;;  %s2898_s23 = smov 32   ;;  %vm225_vm5 = vcmask 123904   ;;  %vm155_vm6 = vcmask 130048  }
  0x1a   :  { %v100_v18 = vld.sshfl [vmem:[#allocation1 + $0x20] sm:$0xff pattern:$0x73625140]  ;;  %s2899_s29 = smov 80   ;;  %s3774_s26 = sld [smem:[#allocation10_spill]] }
  0x1b   :  { %v2651_v60 = vld [vmem:[%s3752_s5] ss:$0 sm:$0xff]  ;;  %s2564_s19 = sshll.u32 %s3765_s18, 4  ;;  %s2901_s20 = smov [#allocation6]   ;;  %s2565_s19 = int_to_ptr.hbm [resolvable:$true] %s2564_s19 }
  0x1c   :  { %v2652_v4 = vld [vmem:[%s3754_s7] ss:$0 sm:$0xff] }
  0x1f   :  { %2574 = vmatmul.msk.f32.gmra.mxu0 %vm101_vm0, %v100_v18 }
  0x86   :  { %v176_v58 = vpop.f32.mrf.mxu1 }
  0x8b   :  { %v249_v19 = vpop.f32.mrf.mxu2 }
  0x8c   :  { %253 = vrot.lane.b32.xlu0 %v249_v19, %s2895_s25 }
  0x94   :  { %v123_v21 = vpop.f32.mrf.mxu0  ;;  %259 = vrot.lane.b32.xlu0 %v2649_v22, %s2895_s25 }
  0x95   :  { %v124_v23 = vadd.f32 %v2650_v20, %v123_v21 }
  0x97   :  { %v131_v24 = vrot.slane %v124_v23, 2  ;;  %v132_v25 = vrot.slane %v124_v23, 4  ;;  %v133_v26 = vrot.slane %v124_v23, 6  ;;  %143 = vst [vmem:[#allocation2] sm:$0x3] %v124_v23 }
  0x99   :  { %144 = vst [vmem:[#allocation2 + $0x2] sm:$0x3] %v131_v24 }
  0x9a   :  { %145 = vst [vmem:[#allocation2 + $0x4] sm:$0x3] %v132_v25 }
  0x9b   :  { %146 = vst [vmem:[#allocation2 + $0x6] sm:$0x3] %v133_v26 }
  0x9c   :  { %v126_v27 = vpop.f32.mrf.mxu0 }
  0x9d   :  { %v127_v28 = vadd.f32 %v2650_v20, %v126_v27 }
  0x9e   :  { %v151_v57 = vld [vmem:[#allocation2] sm:$0x3] }
  0x9f   :  { %v134_v29 = vrot.slane %v127_v28, 2  ;;  %v135_v30 = vrot.slane %v127_v28, 4  ;;  %v136_v31 = vrot.slane %v127_v28, 6  ;;  %147 = vst [vmem:[#allocation2 + $0x8] sm:$0x3] %v127_v28  ;;  %v179_v59 = vadd.f32 %v176_v58, %v151_v57 }
  0xa0   :  { %v307_v58 = vld [vmem:[#allocation2 + $0x2] sm:$0x3] }
  0xa1   :  { %148 = vst [vmem:[#allocation2 + $0xa] sm:$0x3] %v134_v29  ;;  %v183_v63 = vadd.f32 %v2651_v60, %v179_v59 }
  0xa2   :  { %149 = vst [vmem:[#allocation2 + $0xc] sm:$0x3] %v135_v30 }
  0xa3   :  { %150 = vst [vmem:[#allocation2 + $0xe] sm:$0x3] %v136_v31  ;;  %v2575_v3 = vmul.f32 -1.442695, %v183_v63 }
  0xa9   :  { %v382_v25 = vld [vmem:[#allocation2 + $0xc] sm:$0x3] }
  0xaa   :  { %v228_v33 = vld [vmem:[#allocation2 + $0xe] sm:$0x3] }
  0xfe   :  { %v254_v32 = vpop.permute.xlu0 %253 }
  0xff   :  { %v256_v34 = vadd.f32 %v254_v32, %v228_v33 }
 0x106   :  { %v260_v35 = vpop.permute.xlu0 %259 }
 0x107   :  { %v262_v36 = vadd.f32 %v260_v35, %v256_v34 }
 0x109   :  { %2669 = vtanh.f32 %v262_v36  ;;  %v2576_v38 = vmul.f32 -1.442695, %v262_v36 }
 0x10b   :  { %2671 = vpow2.f32 %v2576_v38 }
 0x10f   :  { %v2670_v37 = vpop.eup %2669 }
 0x110   :  { %285 = vrot.lane.b32.xlu1 %v2670_v37, %s2896_s3 }
 0x111   :  { %v2672_v39 = vpop.eup %2671 }
 0x112   :  { %v266_v40 = vadd.f32 1.0, %v2672_v39 }
 0x114   :  { %2673 = vrcp.f32 %v266_v40  ;;  %v278_v46 = vand.u32 2147483648, %v266_v40  ;;  %vm272_vm2 = vweird.f32 %v266_v40  ;;  %v276_v47 = vand.u32 2147483647, %v266_v40 }
 0x116   :  { %v279_v49 = vor.u32 1.1754944e-38, %v278_v46  ;;  %vm277_vm4 = vcmp.eq.f32.partialorder %v276_v47, 8.507059e+37 }
 0x11a   :  { %v2674_v41 = vpop.eup %2673 }
 0x11b   :  { %v268_v42 = vmul.f32 %v2674_v41, %v266_v40  ;;  %vm273_vm1 = vweird.f32 %v2674_v41 }
 0x11c   :  { %vm274_vm3 = vmor %vm272_vm2, %vm273_vm1 }
 0x11d   :  { %v269_v43 = vsub.f32 1.0, %v268_v42 }
 0x11f   :  { %v270_v44 = vmul.f32 %v2674_v41, %v269_v43 }
 0x121   :  { %v271_v45 = vadd.f32 %v2674_v41, %v270_v44 }
 0x123   :  { %v275_v48 = vsel %vm274_vm3, %v2674_v41, %v271_v45 }
 0x124   :  { %v280_v51 = vsel %vm277_vm4, %v279_v49, %v275_v48 }
 0x125   :  { %v283_v53 = vmul.f32 0.0, %v280_v51 }
 0x182   :  { %v286_v50 = vpop.permute.xlu1 %285 }
 0x183   :  { %v288_v52 = vmul.f32 %v286_v50, %v280_v51 }
 0x185   :  { %290 = vrot.lane.b32.xlu1 %v288_v52, %s2897_s2 }
 0x18d   :  { %415 = vrot.lane.b32.xlu1 %v2652_v4, %s2895_s25 }
 0x1f7   :  { %v291_v54 = vpop.permute.xlu1 %290 }
 0x1f8   :  { %v3081_v55 = vadd.f32 %v291_v54, %v283_v53 }
 0x1fa   :  { %2675 = vtanh.f32 %v3081_v55 }
 0x1fb   :  { %2677 = vtanh.f32 %v183_v63 }
 0x1fc   :  { %2679 = vpow2.f32 %v2575_v3 }
 0x1ff   :  { %v416_v23 = vpop.permute.xlu1 %415 }
 0x200   :  { %v2676_v56 = vpop.eup %2675 }
 0x201   :  { %296 = vrot.lane.b32.xlu2 %v2676_v56, %s2898_s23  ;;  %v2678_v2 = vpop.eup %2677 }
 0x202   :  { %v2680_v5 = vpop.eup %2679 }
 0x203   :  { %v187_v6 = vadd.f32 1.0, %v2680_v5 }
 0x205   :  { %2681 = vrcp.f32 %v187_v6  ;;  %vm193_vm7 = vweird.f32 %v187_v6  ;;  %v199_v14 = vand.u32 2147483648, %v187_v6  ;;  %v197_v16 = vand.u32 2147483647, %v187_v6 }
 0x207   :  { %v200_v17 = vor.u32 1.1754944e-38, %v199_v14  ;;  %vm198_vm10 = vcmp.eq.f32.partialorder %v197_v16, 8.507059e+37 }
 0x20b   :  { %v2682_v7 = vpop.eup %2681 }
 0x20c   :  { %v189_v8 = vmul.f32 %v2682_v7, %v187_v6  ;;  %vm194_vm8 = vweird.f32 %v2682_v7 }
 0x20d   :  { %vm195_vm9 = vmor %vm193_vm7, %vm194_vm8 }
 0x20e   :  { %v190_v11 = vsub.f32 1.0, %v189_v8 }
 0x210   :  { %v191_v12 = vmul.f32 %v2682_v7, %v190_v11 }
 0x212   :  { %v192_v15 = vadd.f32 %v2682_v7, %v191_v12 }
 0x214   :  { %v196_v18 = vsel %vm195_vm9, %v2682_v7, %v192_v15 }
 0x215   :  { %v201_v20 = vsel %vm198_vm10, %v200_v17, %v196_v18 }
 0x216   :  { %v204_v29 = vmul.f32 0.0, %v201_v20 }
 0x25b   :  { %v297_v61 = vpop.permute.xlu2 %296 }
 0x25c   :  { %v299_v62 = vmul.f32 %v297_v61, %v280_v51 }
 0x25e   :  { %301 = vrot.lane.b32.xlu2 %v299_v62, %s2897_s2 }
 0x266   :  { %206 = vrot.lane.b32.xlu2 %v2678_v2, %s2896_s3 }
 0x2b8   :  { %v302_v13 = vpop.permute.xlu2 %301 }
 0x2b9   :  { %305 = vst.msk [vmem:[#allocation4 + $0xe] sm:$0x3] %vm225_vm5, %v302_v13  ;;  %2579 = vmatmul.msk.f32.vlgmr.msrb.gmra.mxu1 %vm155_vm6, %v302_v13 }
 0x2ba   :  { %868 = vmatpush.msrb.mxu1 %v3000_v0 }
 0x2bc   :  { %869 = vmatpush.msrb.mxu1 %v3005_v1 }
 0x2c0   :  { %v207_v19 = vpop.permute.xlu2 %206 }
 0x2c1   :  { %v209_v21 = vmul.f32 %v207_v19, %v201_v20 }
 0x2c3   :  { %211 = vrot.lane.b32.xlu1 %v209_v21, %s2897_s2 }
 0x335   :  { %v212_v28 = vpop.permute.xlu1 %211 }
 0x336   :  { %v405_v22 = vpop.f32.mrf.mxu1  ;;  %v3100_v30 = vadd.f32 %v212_v28, %v204_v29 }
 0x337   :  { %409 = vrot.lane.b32.xlu0 %v405_v22, %s2895_s25 }
 0x3a9   :  { %v410_v24 = vpop.permute.xlu0 %409 }
 0x3aa   :  { %v412_v26 = vadd.f32 %v410_v24, %v382_v25 }
 0x3ac   :  { %v418_v27 = vadd.f32 %v416_v23, %v412_v26 }
 0x3ae   :  { %2683 = vtanh.f32 %v418_v27  ;;  %v2580_v33 = vmul.f32 -1.442695, %v418_v27 }
 0x3af   :  { %2685 = vtanh.f32 %v3100_v30 }
 0x3b0   :  { %2687 = vpow2.f32 %v2580_v33 }
 0x3b4   :  { %v2684_v31 = vpop.eup %2683 }
 0x3b5   :  { %441 = vrot.lane.b32.xlu0 %v2684_v31, %s2896_s3  ;;  %v2686_v32 = vpop.eup %2685 }
 0x3b6   :  { %v2688_v34 = vpop.eup %2687 }
 0x3b7   :  { %v422_v35 = vadd.f32 1.0, %v2688_v34 }
 0x3b9   :  { %2689 = vrcp.f32 %v422_v35  ;;  %v434_v41 = vand.u32 2147483648, %v422_v35  ;;  %vm428_vm12 = vweird.f32 %v422_v35  ;;  %v432_v42 = vand.u32 2147483647, %v422_v35 }
 0x3bb   :  { %v435_v44 = vor.u32 1.1754944e-38, %v434_v41  ;;  %vm433_vm14 = vcmp.eq.f32.partialorder %v432_v42, 8.507059e+37 }
 0x3bd   :  { %217 = vrot.lane.b32.xlu0 %v2686_v32, %s2898_s23 }
 0x3bf   :  { %v2690_v36 = vpop.eup %2689 }
 0x3c0   :  { %v424_v37 = vmul.f32 %v2690_v36, %v422_v35  ;;  %vm429_vm11 = vweird.f32 %v2690_v36 }
 0x3c1   :  { %vm430_vm13 = vmor %vm428_vm12, %vm429_vm11 }
 0x3c2   :  { %v425_v38 = vsub.f32 1.0, %v424_v37 }
 0x3c4   :  { %v426_v39 = vmul.f32 %v2690_v36, %v425_v38 }
 0x3c6   :  { %v427_v40 = vadd.f32 %v2690_v36, %v426_v39 }
 0x3c8   :  { %v431_v43 = vsel %vm430_vm13, %v2690_v36, %v427_v40 }
 0x3c9   :  { %v436_v46 = vsel %vm433_vm14, %v435_v44, %v431_v43 }
 0x3ca   :  { %v439_v50 = vmul.f32 %v436_v46, %v3081_v55  ;;  %v2653_v55 = vld [vmem:[%s3752_s5] ss:$0 sm:$0xff] }
 0x427   :  { %v442_v45 = vpop.permute.xlu0 %441 }
 0x428   :  { %v444_v47 = vmul.f32 %v442_v45, %v436_v46 }
 0x42a   :  { %446 = vrot.lane.b32.xlu2 %v444_v47, %s2897_s2 }
 0x42f   :  { %v218_v48 = vpop.permute.xlu0 %217 }
 0x430   :  { %v220_v49 = vmul.f32 %v218_v48, %v201_v20  ;;  %v538_v20 = vld [vmem:[#allocation2 + $0xa] sm:$0x3] }
 0x432   :  { %222 = vrot.lane.b32.xlu2 %v220_v49, %s2899_s29 }
 0x484   :  { %v447_v51 = vpop.permute.xlu2 %446 }
 0x485   :  { %v3108_v52 = vadd.f32 %v447_v51, %v439_v50 }
 0x487   :  { %2691 = vtanh.f32 %v3108_v52 }
 0x48c   :  { %v223_v53 = vpop.permute.xlu2 %222 }
 0x48d   :  { %v2692_v54 = vpop.eup %2691  ;;  %226 = vst.msk [vmem:[#allocation3] sm:$0x3] %vm225_vm5, %v223_v53  ;;  %2577 = vmatmul.msk.f32.vlgmr.msra.gmra.mxu3 %vm155_vm6, %v223_v53 }
 0x48e   :  { %452 = vrot.lane.b32.xlu1 %v2692_v54, %s2898_s23  ;;  %794 = vmatpush.msra.mxu3 %v3033_v9  ;;  %v2654_v9 = vld [vmem:[%s3754_s7] ss:$0 sm:$0xff]  ;;  %v463_v54 = vld [vmem:[#allocation2 + $0x4] sm:$0x3] }
 0x48f   :  { %571 = vrot.lane.b32.xlu2 %v2654_v9, %s2895_s25 }
 0x490   :  { %795 = vmatpush.msra.mxu3 %v3038_v10 }
 0x4e9   :  { %v572_v19 = vpop.permute.xlu2 %571 }
 0x500   :  { %v453_v56 = vpop.permute.xlu1 %452 }
 0x501   :  { %v455_v57 = vmul.f32 %v453_v56, %v436_v46 }
 0x503   :  { %457 = vrot.lane.b32.xlu0 %v455_v57, %s2897_s2 }
 0x510   :  { %v330_v59 = vpop.f32.mrf.mxu3 }
 0x511   :  { %v333_v60 = vadd.f32 %v330_v59, %v307_v58 }
 0x513   :  { %v337_v61 = vadd.f32 %v2653_v55, %v333_v60 }
 0x515   :  { %2693 = vtanh.f32 %v337_v61  ;;  %v2578_v10 = vmul.f32 -1.442695, %v337_v61 }
 0x517   :  { %2695 = vpow2.f32 %v2578_v10 }
 0x51b   :  { %v2694_v62 = vpop.eup %2693 }
 0x51c   :  { %360 = vrot.lane.b32.xlu0 %v2694_v62, %s2896_s3 }
 0x51d   :  { %v2696_v63 = vpop.eup %2695 }
 0x51e   :  { %v341_v2 = vadd.f32 1.0, %v2696_v63 }
 0x520   :  { %2697 = vrcp.f32 %v341_v2  ;;  %v353_v11 = vand.u32 2147483648, %v341_v2  ;;  %vm347_vm0 = vweird.f32 %v341_v2  ;;  %v351_v12 = vand.u32 2147483647, %v341_v2 }
 0x522   :  { %v354_v14 = vor.u32 1.1754944e-38, %v353_v11  ;;  %vm352_vm2 = vcmp.eq.f32.partialorder %v351_v12, 8.507059e+37 }
 0x526   :  { %v2698_v4 = vpop.eup %2697 }
 0x527   :  { %v343_v5 = vmul.f32 %v2698_v4, %v341_v2  ;;  %vm348_vm15 = vweird.f32 %v2698_v4 }
 0x528   :  { %vm349_vm1 = vmor %vm347_vm0, %vm348_vm15 }
 0x529   :  { %v344_v6 = vsub.f32 1.0, %v343_v5 }
 0x52b   :  { %v345_v7 = vmul.f32 %v2698_v4, %v344_v6 }
 0x52d   :  { %v346_v8 = vadd.f32 %v2698_v4, %v345_v7 }
 0x52f   :  { %v350_v13 = vsel %vm349_vm1, %v2698_v4, %v346_v8 }
 0x530   :  { %v355_v16 = vsel %vm352_vm2, %v354_v14, %v350_v13  ;;  %v694_v14 = vld [vmem:[#allocation2 + $0x8] sm:$0x3] }
 0x531   :  { %v358_v25 = vmul.f32 %v355_v16, %v3100_v30 }
 0x575   :  { %v458_v3 = vpop.permute.xlu0 %457 }
 0x576   :  { %461 = vst.msk [vmem:[#allocation4 + $0xc] sm:$0x3] %vm225_vm5, %v458_v3  ;;  %2583 = vmatmul.msk.f32.vlgmr.msrb.gmra.mxu3 %vm155_vm6, %v458_v3 }
 0x58e   :  { %v361_v15 = vpop.permute.xlu0 %360 }
 0x58f   :  { %v363_v17 = vmul.f32 %v361_v15, %v355_v16 }
 0x591   :  { %365 = vrot.lane.b32.xlu2 %v363_v17, %s2897_s2 }
 0x5eb   :  { %v366_v24 = vpop.permute.xlu2 %365 }
 0x5ec   :  { %v3130_v26 = vadd.f32 %v366_v24, %v358_v25 }
 0x5f9   :  { %v561_v18 = vpop.f32.mrf.mxu3 }
 0x5fa   :  { %565 = vrot.lane.b32.xlu1 %v561_v18, %s2895_s25 }
 0x66c   :  { %v566_v21 = vpop.permute.xlu1 %565 }
 0x66d   :  { %v568_v22 = vadd.f32 %v566_v21, %v538_v20 }
 0x66f   :  { %v574_v23 = vadd.f32 %v572_v19, %v568_v22 }
 0x671   :  { %2699 = vtanh.f32 %v574_v23  ;;  %v2584_v29 = vmul.f32 -1.442695, %v574_v23 }
 0x672   :  { %2701 = vtanh.f32 %v3130_v26 }
 0x673   :  { %2703 = vpow2.f32 %v2584_v29 }
 0x677   :  { %v2700_v27 = vpop.eup %2699 }
 0x678   :  { %597 = vrot.lane.b32.xlu1 %v2700_v27, %s2896_s3  ;;  %v2702_v28 = vpop.eup %2701 }
 0x679   :  { %v2704_v31 = vpop.eup %2703 }
 0x67a   :  { %v578_v32 = vadd.f32 1.0, %v2704_v31 }
 0x67c   :  { %2705 = vrcp.f32 %v578_v32  ;;  %v590_v37 = vand.u32 2147483648, %v578_v32  ;;  %vm584_vm4 = vweird.f32 %v578_v32  ;;  %v588_v38 = vand.u32 2147483647, %v578_v32 }
 0x67e   :  { %v591_v40 = vor.u32 1.1754944e-38, %v590_v37  ;;  %vm589_vm8 = vcmp.eq.f32.partialorder %v588_v38, 8.507059e+37 }
 0x680   :  { %371 = vrot.lane.b32.xlu1 %v2702_v28, %s2898_s23 }
 0x682   :  { %v2706_v33 = vpop.eup %2705 }
 0x683   :  { %v580_v34 = vmul.f32 %v2706_v33, %v578_v32  ;;  %vm585_vm3 = vweird.f32 %v2706_v33 }
 0x684   :  { %vm586_vm7 = vmor %vm584_vm4, %vm585_vm3 }
 0x685   :  { %v581_v35 = vsub.f32 1.0, %v580_v34 }
 0x687   :  { %v582_v36 = vmul.f32 %v2706_v33, %v581_v35 }
 0x689   :  { %v583_v30 = vadd.f32 %v2706_v33, %v582_v36 }
 0x68b   :  { %v587_v39 = vsel %vm586_vm7, %v2706_v33, %v583_v30 }
 0x68c   :  { %v592_v42 = vsel %vm589_vm8, %v591_v40, %v587_v39 }
 0x68d   :  { %v595_v46 = vmul.f32 %v592_v42, %v3108_v52  ;;  %v2655_v52 = vld [vmem:[%s3752_s5] ss:$0 sm:$0xff] }
 0x6ea   :  { %v598_v41 = vpop.permute.xlu1 %597 }
 0x6eb   :  { %v600_v43 = vmul.f32 %v598_v41, %v592_v42 }
 0x6ed   :  { %602 = vrot.lane.b32.xlu0 %v600_v43, %s2897_s2 }
 0x6f2   :  { %v372_v44 = vpop.permute.xlu1 %371 }
 0x6f3   :  { %v374_v45 = vmul.f32 %v372_v44, %v355_v16 }
 0x6f5   :  { %376 = vrot.lane.b32.xlu0 %v374_v45, %s2899_s29 }
 0x75f   :  { %v603_v47 = vpop.permute.xlu0 %602 }
 0x760   :  { %v3138_v48 = vadd.f32 %v603_v47, %v595_v46 }
 0x762   :  { %2707 = vtanh.f32 %v3138_v48 }
 0x767   :  { %v377_v49 = vpop.permute.xlu0 %376 }
 0x768   :  { %v2708_v50 = vpop.eup %2707  ;;  %380 = vst.msk [vmem:[#allocation3 + $0x2] sm:$0x3] %vm225_vm5, %v377_v49  ;;  %2581 = vmatmul.msk.f32.vlgmr.msrb.gmra.mxu2 %vm155_vm6, %v377_v49 }
 0x769   :  { %608 = vrot.lane.b32.xlu2 %v2708_v50, %s2898_s23  ;;  %1022 = vmatpush.msrb.mxu2 %v3000_v0  ;;  %v2656_v0 = vld [vmem:[%s3754_s7] ss:$0 sm:$0xff] }
 0x76a   :  { %727 = vrot.lane.b32.xlu0 %v2656_v0, %s2895_s25 }
 0x76b   :  { %1023 = vmatpush.msrb.mxu2 %v3005_v1 }
 0x7c3   :  { %v609_v51 = vpop.permute.xlu2 %608 }
 0x7c4   :  { %v611_v53 = vmul.f32 %v609_v51, %v592_v42  ;;  %v848_v51 = vld [vmem:[#allocation2 + $0x6] sm:$0x3] }
 0x7c6   :  { %613 = vrot.lane.b32.xlu1 %v611_v53, %s2897_s2 }
 0x7dc   :  { %v728_v13 = vpop.permute.xlu0 %727 }
 0x7eb   :  { %v486_v56 = vpop.f32.mrf.mxu2 }
 0x7ec   :  { %v489_v57 = vadd.f32 %v486_v56, %v463_v54 }
 0x7ee   :  { %v493_v55 = vadd.f32 %v2655_v52, %v489_v57 }
 0x7f0   :  { %2709 = vtanh.f32 %v493_v55  ;;  %v2582_v59 = vmul.f32 -1.442695, %v493_v55 }
 0x7f2   :  { %2711 = vpow2.f32 %v2582_v59 }
 0x7f6   :  { %v2710_v58 = vpop.eup %2709 }
 0x7f7   :  { %516 = vrot.lane.b32.xlu1 %v2710_v58, %s2896_s3 }
 0x7f8   :  { %v2712_v60 = vpop.eup %2711 }
 0x7f9   :  { %v497_v61 = vadd.f32 1.0, %v2712_v60 }
 0x7fb   :  { %2713 = vrcp.f32 %v497_v61  ;;  %v509_v3 = vand.u32 2147483648, %v497_v61  ;;  %vm503_vm10 = vweird.f32 %v497_v61  ;;  %v507_v4 = vand.u32 2147483647, %v497_v61 }
 0x7fd   :  { %v510_v6 = vor.u32 1.1754944e-38, %v509_v3  ;;  %vm508_vm12 = vcmp.eq.f32.partialorder %v507_v4, 8.507059e+37  ;;  %v2657_v3 = vld [vmem:[%s3752_s5] ss:$0 sm:$0xff] }
 0x801   :  { %v2714_v62 = vpop.eup %2713 }
 0x802   :  { %v499_v9 = vmul.f32 %v2714_v62, %v497_v61  ;;  %vm504_vm9 = vweird.f32 %v2714_v62 }
 0x803   :  { %vm505_vm11 = vmor %vm503_vm10, %vm504_vm9 }
 0x804   :  { %v500_v10 = vsub.f32 1.0, %v499_v9 }
 0x806   :  { %v501_v63 = vmul.f32 %v2714_v62, %v500_v10  ;;  %v619_v10 = vld [vmem:[#allocation2 + $0x6] sm:$0x3] }
 0x808   :  { %v502_v2 = vadd.f32 %v2714_v62, %v501_v63 }
 0x80a   :  { %v506_v5 = vsel %vm505_vm11, %v2714_v62, %v502_v2 }
 0x80b   :  { %v511_v7 = vsel %vm508_vm12, %v510_v6, %v506_v5 }
 0x80c   :  { %v514_v19 = vmul.f32 %v511_v7, %v3130_v26 }
 0x838   :  { %v614_v1 = vpop.permute.xlu1 %613 }
 0x839   :  { %617 = vst.msk [vmem:[#allocation4 + $0xa] sm:$0x3] %vm225_vm5, %v614_v1  ;;  %2587 = vmatmul.msk.f32.vlgmr.msra.gmra.mxu2 %vm155_vm6, %v614_v1 }
 0x869   :  { %v517_v8 = vpop.permute.xlu1 %516 }
 0x86a   :  { %v519_v11 = vmul.f32 %v517_v8, %v511_v7 }
 0x86c   :  { %521 = vrot.lane.b32.xlu0 %v519_v11, %s2897_s2 }
 0x8bc   :  { %v717_v12 = vpop.f32.mrf.mxu2 }
 0x8bd   :  { %721 = vrot.lane.b32.xlu2 %v717_v12, %s2895_s25 }
 0x8de   :  { %v522_v18 = vpop.permute.xlu0 %521 }
 0x8df   :  { %v3160_v20 = vadd.f32 %v522_v18, %v514_v19 }
 0x917   :  { %v722_v15 = vpop.permute.xlu2 %721 }
 0x918   :  { %v724_v16 = vadd.f32 %v722_v15, %v694_v14 }
 0x91a   :  { %v730_v17 = vadd.f32 %v728_v13, %v724_v16 }
 0x91c   :  { %2715 = vtanh.f32 %v730_v17  ;;  %v2588_v23 = vmul.f32 -1.442695, %v730_v17 }
 0x91d   :  { %2717 = vtanh.f32 %v3160_v20 }
 0x91e   :  { %2719 = vpow2.f32 %v2588_v23 }
 0x922   :  { %v2716_v21 = vpop.eup %2715 }
 0x923   :  { %753 = vrot.lane.b32.xlu2 %v2716_v21, %s2896_s3  ;;  %v2718_v22 = vpop.eup %2717 }
 0x924   :  { %v2720_v24 = vpop.eup %2719 }
 0x925   :  { %v734_v25 = vadd.f32 1.0, %v2720_v24 }
 0x927   :  { %2721 = vrcp.f32 %v734_v25  ;;  %v746_v32 = vand.u32 2147483648, %v734_v25  ;;  %vm740_vm14 = vweird.f32 %v734_v25  ;;  %v744_v33 = vand.u32 2147483647, %v734_v25 }
 0x929   :  { %v747_v35 = vor.u32 1.1754944e-38, %v746_v32  ;;  %vm745_vm0 = vcmp.eq.f32.partialorder %v744_v33, 8.507059e+37 }
 0x92b   :  { %527 = vrot.lane.b32.xlu2 %v2718_v22, %s2898_s23 }
 0x92d   :  { %v2722_v27 = vpop.eup %2721 }
 0x92e   :  { %v736_v28 = vmul.f32 %v2722_v27, %v734_v25  ;;  %vm741_vm13 = vweird.f32 %v2722_v27 }
 0x92f   :  { %vm742_vm15 = vmor %vm740_vm14, %vm741_vm13 }
 0x930   :  { %v737_v29 = vsub.f32 1.0, %v736_v28 }
 0x932   :  { %v738_v31 = vmul.f32 %v2722_v27, %v737_v29 }
 0x934   :  { %v739_v26 = vadd.f32 %v2722_v27, %v738_v31 }
 0x936   :  { %v743_v34 = vsel %vm742_vm15, %v2722_v27, %v739_v26 }
 0x937   :  { %v748_v30 = vsel %vm745_vm0, %v747_v35, %v743_v34 }
 0x938   :  { %v751_v40 = vmul.f32 %v748_v30, %v3138_v48  ;;  %v2658_v48 = vld [vmem:[%s3754_s7] ss:$0 sm:$0xff] }
 0x97d   :  { %v754_v36 = vpop.permute.xlu2 %753 }
 0x97e   :  { %v756_v37 = vmul.f32 %v754_v36, %v748_v30 }
 0x980   :  { %758 = vrot.lane.b32.xlu1 %v756_v37, %s2897_s2 }
 0x985   :  { %v528_v38 = vpop.permute.xlu2 %527 }
 0x986   :  { %v530_v39 = vmul.f32 %v528_v38, %v511_v7 }
 0x988   :  { %532 = vrot.lane.b32.xlu1 %v530_v39, %s2899_s29 }
 0x990   :  { %881 = vrot.lane.b32.xlu1 %v2658_v48, %s2895_s25 }
 0x9f2   :  { %v759_v41 = vpop.permute.xlu1 %758 }
 0x9f3   :  { %v761_v42 = vadd.f32 %v759_v41, %v751_v40 }
 0x9f5   :  { %2723 = vtanh.f32 %v761_v42 }
 0x9fa   :  { %v533_v43 = vpop.permute.xlu1 %532 }
 0x9fb   :  { %v2724_v44 = vpop.eup %2723  ;;  %536 = vst.msk [vmem:[#allocation3 + $0x4] sm:$0x3] %vm225_vm5, %v533_v43  ;;  %2585 = vmatmul.msk.f32.vlgmr.msra.gmra.mxu1 %vm155_vm6, %v533_v43 }
 0x9fc   :  { %764 = vrot.lane.b32.xlu0 %v2724_v44, %s2898_s23  ;;  %v1002_v44 = vld [vmem:[#allocation2 + $0x4] sm:$0x3] }
 0xa02   :  { %v882_v52 = vpop.permute.xlu1 %881 }
 0xa6e   :  { %v765_v45 = vpop.permute.xlu0 %764 }
 0xa6f   :  { %v767_v46 = vmul.f32 %v765_v45, %v748_v30 }
 0xa71   :  { %769 = vrot.lane.b32.xlu2 %v767_v46, %s2897_s2 }
 0xa78   :  { %v642_v49 = vpop.f32.mrf.mxu1 }
 0xa79   :  { %v645_v2 = vadd.f32 %v642_v49, %v619_v10 }
 0xa7b   :  { %v649_v6 = vadd.f32 %v2657_v3, %v645_v2 }
 0xa7d   :  { %v2586_v13 = vmul.f32 -1.442695, %v649_v6 }
 0xacb   :  { %v770_v47 = vpop.permute.xlu2 %769 }
 0xacc   :  { %773 = vst.msk [vmem:[#allocation4 + $0x8] sm:$0x3] %vm225_vm5, %v770_v47  ;;  %2591 = vmatmul.msk.f32.vlgmr.msrb.gmra.mxu1 %vm155_vm6, %v770_v47 }
 0xb49   :  { %v871_v50 = vpop.f32.mrf.mxu1 }
 0xb4a   :  { %875 = vrot.lane.b32.xlu0 %v871_v50, %s2895_s25  ;;  %v2660_v50 = vld [vmem:[%s3752_s5] ss:$0 sm:$0xff] }
 0xbbc   :  { %v876_v53 = vpop.permute.xlu0 %875 }
 0xbbd   :  { %v878_v54 = vadd.f32 %v876_v53, %v848_v51  ;;  %v774_v51 = vld [vmem:[#allocation2 + $0x8] sm:$0x3] }
 0xbbf   :  { %v884_v56 = vadd.f32 %v882_v52, %v878_v54 }
 0xbc1   :  { %2725 = vtanh.f32 %v884_v56  ;;  %v2592_v55 = vmul.f32 -1.442695, %v884_v56 }
 0xbc3   :  { %2727 = vpow2.f32 %v2592_v55 }
 0xbc7   :  { %v2726_v57 = vpop.eup %2725 }
 0xbc8   :  { %907 = vrot.lane.b32.xlu2 %v2726_v57, %s2896_s3 }
 0xbc9   :  { %v2728_v58 = vpop.eup %2727 }
 0xbca   :  { %v888_v0 = vadd.f32 1.0, %v2728_v58 }
 0xbcc   :  { %2729 = vrcp.f32 %v888_v0  ;;  %v900_v9 = vand.u32 2147483648, %v888_v0  ;;  %vm894_vm2 = vweird.f32 %v888_v0  ;;  %v898_v63 = vand.u32 2147483647, %v888_v0 }
 0xbcd   :  { %2731 = vtanh.f32 %v649_v6 }
 0xbce   :  { %v901_v5 = vor.u32 1.1754944e-38, %v900_v9  ;;  %vm899_vm4 = vcmp.eq.f32.partialorder %v898_v63, 8.507059e+37  ;;  %2733 = vpow2.f32 %v2586_v13 }
 0xbd2   :  { %v2730_v1 = vpop.eup %2729 }
 0xbd3   :  { %v890_v59 = vmul.f32 %v2730_v1, %v888_v0  ;;  %vm895_vm1 = vweird.f32 %v2730_v1  ;;  %v2732_v12 = vpop.eup %2731 }
 0xbd4   :  { %vm896_vm3 = vmor %vm894_vm2, %vm895_vm1  ;;  %v2734_v14 = vpop.eup %2733 }
 0xbd5   :  { %v891_v60 = vsub.f32 1.0, %v890_v59  ;;  %v653_v15 = vadd.f32 1.0, %v2734_v14 }
 0xbd7   :  { %v892_v61 = vmul.f32 %v2730_v1, %v891_v60  ;;  %2735 = vrcp.f32 %v653_v15  ;;  %v665_v27 = vand.u32 2147483648, %v653_v15  ;;  %vm659_vm8 = vweird.f32 %v653_v15 }
 0xbd8   :  { %v663_v28 = vand.u32 2147483647, %v653_v15 }
 0xbd9   :  { %v893_v62 = vadd.f32 %v2730_v1, %v892_v61  ;;  %v666_v31 = vor.u32 1.1754944e-38, %v665_v27 }
 0xbda   :  { %vm664_vm10 = vcmp.eq.f32.partialorder %v663_v28, 8.507059e+37  ;;  %v1158_v28 = vld [vmem:[%s3753_s6 + $0x8] sm:$0xff] }
 0xbdb   :  { %v897_v4 = vsel %vm896_vm3, %v2730_v1, %v893_v62  ;;  %1176 = vmatpush.msrb.mxu0 %v1158_v28  ;;  %1330 = vmatpush.msra.mxu2 %v1158_v28 }
 0xbdc   :  { %v902_v8 = vsel %vm899_vm4, %v901_v5, %v897_v4 }
 0xbdd   :  { %v2736_v16 = vpop.eup %2735  ;;  %v905_v18 = vmul.f32 %v902_v8, %v761_v42 }
 0xbde   :  { %v655_v17 = vmul.f32 %v2736_v16, %v653_v15  ;;  %vm660_vm7 = vweird.f32 %v2736_v16 }
 0xbdf   :  { %vm661_vm9 = vmor %vm659_vm8, %vm660_vm7 }
 0xbe0   :  { %v656_v21 = vsub.f32 1.0, %v655_v17 }
 0xbe2   :  { %v657_v23 = vmul.f32 %v2736_v16, %v656_v21 }
 0xbe4   :  { %v658_v24 = vadd.f32 %v2736_v16, %v657_v23 }
 0xbe6   :  { %v662_v29 = vsel %vm661_vm9, %v2736_v16, %v658_v24 }
 0xbe7   :  { %v667_v32 = vsel %vm664_vm10, %v666_v31, %v662_v29  ;;  %v1157_v29 = vld [vmem:[%s3753_s6] sm:$0xff] }
 0xbe8   :  { %v670_v36 = vmul.f32 %v667_v32, %v3160_v20  ;;  %v2659_v20 = vld [vmem:[%s3754_s7] ss:$0 sm:$0xff]  ;;  %1177 = vmatpush.msrb.mxu0 %v1157_v29  ;;  %1331 = vmatpush.msra.mxu2 %v1157_v29 }
 0xc22   :  { %v908_v7 = vpop.permute.xlu2 %907 }
 0xc23   :  { %v910_v11 = vmul.f32 %v908_v7, %v902_v8 }
 0xc25   :  { %912 = vrot.lane.b32.xlu0 %v910_v11, %s2897_s2 }
 0xc2d   :  { %672 = vrot.lane.b32.xlu0 %v2732_v12, %s2896_s3 }
 0xc97   :  { %v913_v19 = vpop.permute.xlu0 %912 }
 0xc98   :  { %v3185_v22 = vadd.f32 %v913_v19, %v905_v18 }
 0xc9a   :  { %2737 = vtanh.f32 %v3185_v22 }
 0xc9f   :  { %v673_v26 = vpop.permute.xlu0 %672 }
 0xca0   :  { %v2738_v25 = vpop.eup %2737  ;;  %v675_v33 = vmul.f32 %v673_v26, %v667_v32 }
 0xca1   :  { %918 = vrot.lane.b32.xlu1 %v2738_v25, %s2898_s23 }
 0xca9   :  { %677 = vrot.lane.b32.xlu1 %v675_v33, %s2897_s2 }
 0xd13   :  { %v919_v34 = vpop.permute.xlu1 %918 }
 0xd14   :  { %v921_v35 = vmul.f32 %v919_v34, %v902_v8 }
 0xd16   :  { %923 = vrot.lane.b32.xlu2 %v921_v35, %s2897_s2 }
 0xd1b   :  { %v678_v30 = vpop.permute.xlu1 %677 }
 0xd1c   :  { %v3192_v37 = vadd.f32 %v678_v30, %v670_v36  ;;  %v2661_v36 = vld [vmem:[%s3754_s7] ss:$0 sm:$0xff] }
 0xd1e   :  { %2739 = vtanh.f32 %v3192_v37 }
 0xd24   :  { %v2740_v38 = vpop.eup %2739 }
 0xd25   :  { %683 = vrot.lane.b32.xlu2 %v2740_v38, %s2898_s23 }
 0xd2d   :  { %1035 = vrot.lane.b32.xlu2 %v2659_v20, %s2895_s25 }
 0xd70   :  { %v924_v39 = vpop.permute.xlu2 %923 }
 0xd71   :  { %927 = vst.msk [vmem:[#allocation4 + $0x6] sm:$0x3] %vm225_vm5, %v924_v39  ;;  %2595 = vmatmul.msk.f32.vlgmr.msrb.gmra.mxu2 %vm155_vm6, %v924_v39  ;;  %v930_v39 = vld [vmem:[%s3751_s4 + $0x8] sm:$0xff] }
 0xd72   :  { %948 = vmatpush.msra.mxu1 %v930_v39  ;;  %1102 = vmatpush.msrb.mxu3 %v930_v39 }
 0xd7f   :  { %v684_v40 = vpop.permute.xlu2 %683 }
 0xd80   :  { %v686_v41 = vmul.f32 %v684_v40, %v667_v32  ;;  %v929_v40 = vld [vmem:[%s3751_s4] sm:$0xff] }
 0xd81   :  { %949 = vmatpush.msra.mxu1 %v929_v40  ;;  %1103 = vmatpush.msrb.mxu3 %v929_v40 }
 0xd82   :  { %688 = vrot.lane.b32.xlu0 %v686_v41, %s2899_s29 }
 0xd83   :  { %1256 = vmatpush.msrb.mxu1 %v930_v39 }
 0xd85   :  { %1257 = vmatpush.msrb.mxu1 %v929_v40 }
 0xd87   :  { %v1036_v46 = vpop.permute.xlu2 %1035 }
 0xdf4   :  { %v1025_v42 = vpop.f32.mrf.mxu2  ;;  %v689_v43 = vpop.permute.xlu0 %688 }
 0xdf5   :  { %692 = vst.msk [vmem:[#allocation3 + $0x6] sm:$0x3] %vm225_vm5, %v689_v43  ;;  %1029 = vrot.lane.b32.xlu1 %v1025_v42, %s2895_s25  ;;  %2589 = vmatmul.msk.f32.vlgmr.msra.gmra.mxu3 %vm155_vm6, %v689_v43  ;;  %v1156_v42 = vld [vmem:[#allocation2 + $0x2] sm:$0x3] }
 0xe67   :  { %v1030_v45 = vpop.permute.xlu1 %1029 }
 0xe68   :  { %v1032_v47 = vadd.f32 %v1030_v45, %v1002_v44 }
 0xe6a   :  { %v1038_v48 = vadd.f32 %v1036_v46, %v1032_v47 }
 0xe6c   :  { %2741 = vtanh.f32 %v1038_v48  ;;  %v2596_v57 = vmul.f32 -1.442695, %v1038_v48  ;;  %v2662_v48 = vld [vmem:[%s3752_s5] ss:$0 sm:$0xff] }
 0xe72   :  { %v2742_v49 = vpop.eup %2741 }
 0xe73   :  { %1061 = vrot.lane.b32.xlu0 %v2742_v49, %s2896_s3  ;;  %v928_v49 = vld [vmem:[#allocation2 + $0xa] sm:$0x3] }
 0xe78   :  { %v797_v53 = vpop.f32.mrf.mxu3 }
 0xe79   :  { %v800_v52 = vadd.f32 %v797_v53, %v774_v51 }
 0xe7b   :  { %v804_v54 = vadd.f32 %v2660_v50, %v800_v52 }
 0xe7d   :  { %2743 = vtanh.f32 %v804_v54  ;;  %v2590_v5 = vmul.f32 -1.442695, %v804_v54 }
 0xe7e   :  { %2745 = vpow2.f32 %v2596_v57 }
 0xe83   :  { %v2744_v56 = vpop.eup %2743 }
 0xe84   :  { %827 = vrot.lane.b32.xlu0 %v2744_v56, %s2896_s3  ;;  %v2746_v55 = vpop.eup %2745 }
 0xe85   :  { %v1042_v58 = vadd.f32 1.0, %v2746_v55 }
 0xe87   :  { %2747 = vrcp.f32 %v1042_v58  ;;  %v1054_v62 = vand.u32 2147483648, %v1042_v58  ;;  %vm1048_vm12 = vweird.f32 %v1042_v58  ;;  %v1052_v9 = vand.u32 2147483647, %v1042_v58 }
 0xe88   :  { %2749 = vpow2.f32 %v2590_v5 }
 0xe89   :  { %v1055_v63 = vor.u32 1.1754944e-38, %v1054_v62  ;;  %vm1053_vm14 = vcmp.eq.f32.partialorder %v1052_v9, 8.507059e+37 }
 0xe8d   :  { %v2748_v0 = vpop.eup %2747 }
 0xe8e   :  { %v1044_v1 = vmul.f32 %v2748_v0, %v1042_v58  ;;  %vm1049_vm11 = vweird.f32 %v2748_v0  ;;  %v2750_v6 = vpop.eup %2749 }
 0xe8f   :  { %vm1050_vm13 = vmor %vm1048_vm12, %vm1049_vm11  ;;  %v808_v7 = vadd.f32 1.0, %v2750_v6 }
 0xe90   :  { %v1045_v59 = vsub.f32 1.0, %v1044_v1 }
 0xe91   :  { %2751 = vrcp.f32 %v808_v7  ;;  %v820_v19 = vand.u32 2147483648, %v808_v7  ;;  %vm814_vm0 = vweird.f32 %v808_v7  ;;  %v818_v21 = vand.u32 2147483647, %v808_v7 }
 0xe92   :  { %v1046_v60 = vmul.f32 %v2748_v0, %v1045_v59 }
 0xe93   :  { %v821_v24 = vor.u32 1.1754944e-38, %v820_v19  ;;  %vm819_vm2 = vcmp.eq.f32.partialorder %v818_v21, 8.507059e+37 }
 0xe94   :  { %v1047_v61 = vadd.f32 %v2748_v0, %v1046_v60 }
 0xe96   :  { %v1051_v10 = vsel %vm1050_vm13, %v2748_v0, %v1047_v61 }
 0xe97   :  { %v1056_v3 = vsel %vm1053_vm14, %v1055_v63, %v1051_v10  ;;  %v2752_v8 = vpop.eup %2751 }
 0xe98   :  { %v810_v11 = vmul.f32 %v2752_v8, %v808_v7  ;;  %v1059_v12 = vmul.f32 %v1056_v3, %v3185_v22  ;;  %vm815_vm15 = vweird.f32 %v2752_v8 }
 0xe99   :  { %vm816_vm1 = vmor %vm814_vm0, %vm815_vm15 }
 0xe9a   :  { %v811_v13 = vsub.f32 1.0, %v810_v11 }
 0xe9c   :  { %v812_v16 = vmul.f32 %v2752_v8, %v811_v13 }
 0xe9e   :  { %v813_v17 = vadd.f32 %v2752_v8, %v812_v16 }
 0xea0   :  { %v817_v23 = vsel %vm816_vm1, %v2752_v8, %v813_v17 }
 0xea1   :  { %v822_v22 = vsel %vm819_vm2, %v821_v24, %v817_v23 }
 0xea2   :  { %v825_v32 = vmul.f32 %v822_v22, %v3192_v37 }
 0xee5   :  { %v1062_v2 = vpop.permute.xlu0 %1061 }
 0xee6   :  { %v1064_v4 = vmul.f32 %v1062_v2, %v1056_v3 }
 0xee8   :  { %1066 = vrot.lane.b32.xlu1 %v1064_v4, %s2897_s2 }
 0xef6   :  { %v828_v25 = vpop.permute.xlu0 %827 }
 0xef7   :  { %v830_v27 = vmul.f32 %v828_v25, %v822_v22 }
 0xf5a   :  { %v1067_v14 = vpop.permute.xlu1 %1066 }
 0xf5b   :  { %v3213_v15 = vadd.f32 %v1067_v14, %v1059_v12 }
 0xf5d   :  { %2753 = vtanh.f32 %v3213_v15 }
 0xf63   :  { %v2754_v18 = vpop.eup %2753 }
 0xf64   :  { %1072 = vrot.lane.b32.xlu2 %v2754_v18, %s2898_s23 }
 0xf6c   :  { %832 = vrot.lane.b32.xlu2 %v830_v27, %s2897_s2 }
 0xfbe   :  { %v1073_v31 = vpop.permute.xlu2 %1072 }
 0xfbf   :  { %v1075_v26 = vmul.f32 %v1073_v31, %v1056_v3 }
 0xfc1   :  { %1077 = vrot.lane.b32.xlu1 %v1075_v26, %s2897_s2 }
 0xfc6   :  { %v833_v33 = vpop.permute.xlu2 %832 }
 0xfc7   :  { %v3226_v34 = vadd.f32 %v833_v33, %v825_v32 }
 0xfc9   :  { %2755 = vtanh.f32 %v3226_v34 }
 0xfcf   :  { %v2756_v35 = vpop.eup %2755 }
 0xfd0   :  { %838 = vrot.lane.b32.xlu0 %v2756_v35, %s2898_s23 }
 0xfd8   :  { %1189 = vrot.lane.b32.xlu0 %v2661_v36, %s2895_s25  ;;  %v2663_v36 = vld [vmem:[%s3754_s7] ss:$0 sm:$0xff] }
0x1033   :  { %v1078_v30 = vpop.permute.xlu1 %1077 }
0x1034   :  { %1081 = vst.msk [vmem:[#allocation4 + $0x4] sm:$0x3] %vm225_vm5, %v1078_v30  ;;  %2599 = vmatmul.msk.f32.vlgmr.msrb.gmra.mxu0 %vm155_vm6, %v1078_v30 }
0x1042   :  { %v839_v37 = vpop.permute.xlu0 %838 }
0x1043   :  { %v841_v38 = vmul.f32 %v839_v37, %v822_v22  ;;  %v2664_v37 = vld [vmem:[%s3752_s5] ss:$0 sm:$0xff] }
0x1045   :  { %843 = vrot.lane.b32.xlu1 %v841_v38, %s2899_s29  ;;  %v1082_v38 = vld [vmem:[#allocation2 + $0xc] sm:$0x3] }
0x104a   :  { %v1190_v44 = vpop.permute.xlu0 %1189 }
0x10b1   :  { %v1179_v41 = vpop.f32.mrf.mxu0 }
0x10b2   :  { %1183 = vrot.lane.b32.xlu2 %v1179_v41, %s2895_s25 }
0x10b7   :  { %v844_v20 = vpop.permute.xlu1 %843 }
0x10b8   :  { %847 = vst.msk [vmem:[#allocation3 + $0x8] sm:$0x3] %vm225_vm5, %v844_v20  ;;  %2593 = vmatmul.msk.f32.vlgmr.msra.gmra.mxu1 %vm155_vm6, %v844_v20 }
0x110c   :  { %v1184_v43 = vpop.permute.xlu2 %1183 }
0x110d   :  { %v1186_v45 = vadd.f32 %v1184_v43, %v1156_v42 }
0x110f   :  { %v1192_v46 = vadd.f32 %v1190_v44, %v1186_v45  ;;  %v1310_v45 = vld [vmem:[#allocation2] sm:$0x3] }
0x1111   :  { %2757 = vtanh.f32 %v1192_v46  ;;  %v2600_v54 = vmul.f32 -1.442695, %v1192_v46 }
0x1117   :  { %v2758_v47 = vpop.eup %2757 }
0x1118   :  { %1215 = vrot.lane.b32.xlu1 %v2758_v47, %s2896_s3 }
0x1135   :  { %v951_v50 = vpop.f32.mrf.mxu1 }
0x1136   :  { %v954_v51 = vadd.f32 %v951_v50, %v928_v49 }
0x1138   :  { %v958_v53 = vadd.f32 %v2662_v48, %v954_v51 }
0x113a   :  { %2759 = vtanh.f32 %v958_v53  ;;  %v2594_v62 = vmul.f32 -1.442695, %v958_v53 }
0x113b   :  { %2761 = vpow2.f32 %v2600_v54 }
0x1140   :  { %v2760_v52 = vpop.eup %2759 }
0x1141   :  { %981 = vrot.lane.b32.xlu0 %v2760_v52, %s2896_s3  ;;  %v2762_v56 = vpop.eup %2761 }
0x1142   :  { %v1196_v57 = vadd.f32 1.0, %v2762_v56 }
0x1144   :  { %2763 = vrcp.f32 %v1196_v57  ;;  %v1208_v60 = vand.u32 2147483648, %v1196_v57  ;;  %vm1202_vm4 = vweird.f32 %v1196_v57  ;;  %v1206_v61 = vand.u32 2147483647, %v1196_v57 }
0x1145   :  { %2765 = vpow2.f32 %v2594_v62 }
0x1146   :  { %v1209_v10 = vor.u32 1.1754944e-38, %v1208_v60  ;;  %vm1207_vm8 = vcmp.eq.f32.partialorder %v1206_v61, 8.507059e+37 }
0x114a   :  { %v2764_v55 = vpop.eup %2763 }
0x114b   :  { %v1198_v58 = vmul.f32 %v2764_v55, %v1196_v57  ;;  %vm1203_vm3 = vweird.f32 %v2764_v55  ;;  %v2766_v4 = vpop.eup %2765 }
0x114c   :  { %vm1204_vm7 = vmor %vm1202_vm4, %vm1203_vm3  ;;  %v962_v5 = vadd.f32 1.0, %v2766_v4 }
0x114d   :  { %v1199_v0 = vsub.f32 1.0, %v1198_v58 }
0x114e   :  { %2767 = vrcp.f32 %v962_v5  ;;  %v974_v13 = vand.u32 2147483648, %v962_v5  ;;  %vm968_vm10 = vweird.f32 %v962_v5  ;;  %v972_v14 = vand.u32 2147483647, %v962_v5 }
0x114f   :  { %v1200_v1 = vmul.f32 %v2764_v55, %v1199_v0 }
0x1150   :  { %v975_v17 = vor.u32 1.1754944e-38, %v974_v13  ;;  %vm973_vm12 = vcmp.eq.f32.partialorder %v972_v14, 8.507059e+37 }
0x1151   :  { %v1201_v59 = vadd.f32 %v2764_v55, %v1200_v1 }
0x1153   :  { %v1205_v9 = vsel %vm1204_vm7, %v2764_v55, %v1201_v59  ;;  %vm1597_vm7 = vcmask 33792  }
0x1154   :  { %v1210_v2 = vsel %vm1207_vm8, %v1209_v10, %v1205_v9  ;;  %v2768_v6 = vpop.eup %2767 }
0x1155   :  { %v964_v7 = vmul.f32 %v2768_v6, %v962_v5  ;;  %vm969_vm9 = vweird.f32 %v2768_v6  ;;  %v1213_v23 = vmul.f32 %v1210_v2, %v3213_v15 }
0x1156   :  { %vm970_vm11 = vmor %vm968_vm10, %vm969_vm9 }
0x1157   :  { %v965_v8 = vsub.f32 1.0, %v964_v7 }
0x1159   :  { %v966_v11 = vmul.f32 %v2768_v6, %v965_v8 }
0x115b   :  { %v967_v12 = vadd.f32 %v2768_v6, %v966_v11  ;;  %v2900_v11 = vmov 0  }
0x115c   :  { %2634 = vset.pattern.permute.xlu1 %v2900_v11  ;;  %2633 = vset.pattern.permute.xlu0 %v2900_v11 }
0x115d   :  { %v971_v16 = vsel %vm970_vm11, %v2768_v6, %v967_v12  ;;  %2635 = vset.pattern.permute.xlu2 %v2900_v11 }
0x115e   :  { %v976_v18 = vsel %vm973_vm12, %v975_v17, %v971_v16  ;;  %vm1648_vm12 = vcmask 36864  }
0x115f   :  { %v979_v27 = vmul.f32 %v976_v18, %v3226_v34 }
0x118a   :  { %v1216_v63 = vpop.permute.xlu1 %1215 }
0x118b   :  { %v1218_v3 = vmul.f32 %v1216_v63, %v1210_v2 }
0x118d   :  { %1220 = vrot.lane.b32.xlu2 %v1218_v3, %s2897_s2 }
0x11b3   :  { %v982_v19 = vpop.permute.xlu0 %981 }
0x11b4   :  { %v984_v21 = vmul.f32 %v982_v19, %v976_v18 }
0x11b6   :  { %986 = vrot.lane.b32.xlu2 %v984_v21, %s2897_s2  ;;  %v1390_v21 = vld [vmem:[%s3774_s26 + $0x2] sm:$0x3] }
0x11e7   :  { %v1221_v24 = vpop.permute.xlu2 %1220 }
0x11e8   :  { %v3254_v25 = vadd.f32 %v1221_v24, %v1213_v23  ;;  %v1392_v23 = vld [vmem:[%s3774_s26 + $0x6] sm:$0x3] }
0x11ea   :  { %2769 = vtanh.f32 %v3254_v25 }
0x11f0   :  { %v2770_v22 = vpop.eup %2769 }
0x11f1   :  { %1226 = vrot.lane.b32.xlu1 %v2770_v22, %s2898_s23 }
0x1210   :  { %v987_v28 = vpop.permute.xlu2 %986 }
0x1211   :  { %v3259_v29 = vadd.f32 %v987_v28, %v979_v27 }
0x1213   :  { %2771 = vtanh.f32 %v3259_v29 }
0x1219   :  { %v2772_v31 = vpop.eup %2771 }
0x121a   :  { %992 = vrot.lane.b32.xlu1 %v2772_v31, %s2898_s23 }
0x1222   :  { %1343 = vrot.lane.b32.xlu1 %v2663_v36, %s2895_s25 }
0x1263   :  { %v1227_v26 = vpop.permute.xlu1 %1226 }
0x1264   :  { %v1229_v15 = vmul.f32 %v1227_v26, %v1210_v2 }
0x1266   :  { %1231 = vrot.lane.b32.xlu0 %v1229_v15, %s2897_s2 }
0x128c   :  { %v993_v32 = vpop.permute.xlu1 %992 }
0x128d   :  { %v995_v33 = vmul.f32 %v993_v32, %v976_v18 }
0x128f   :  { %997 = vrot.lane.b32.xlu2 %v995_v33, %s2899_s29  ;;  %v1456_v33 = vld [vmem:[#allocation4 + $0x6] sm:$0x3] }
0x1294   :  { %v1344_v47 = vpop.permute.xlu1 %1343 }
0x12d8   :  { %v1232_v35 = vpop.permute.xlu0 %1231 }
0x12d9   :  { %1235 = vst.msk [vmem:[#allocation4 + $0x2] sm:$0x3] %vm225_vm5, %v1232_v35  ;;  %2603 = vmatmul.msk.f32.vlgmr.msra.gmra.mxu2 %vm155_vm6, %v1232_v35 }
0x12e0   :  { %v1454_v26 = vld [vmem:[#allocation4 + $0x2] sm:$0x3] }
0x12e9   :  { %v998_v34 = vpop.permute.xlu2 %997 }
0x12ea   :  { %1001 = vst.msk [vmem:[#allocation3 + $0xa] sm:$0x3] %vm225_vm5, %v998_v34  ;;  %2597 = vmatmul.msk.f32.vlgmr.msrb.gmra.mxu3 %vm155_vm6, %v998_v34 }
0x135c   :  { %v1333_v30 = vpop.f32.mrf.mxu2 }
0x135d   :  { %1337 = vrot.lane.b32.xlu0 %v1333_v30, %s2895_s25  ;;  %v1391_v30 = vld [vmem:[%s3774_s26 + $0x4] sm:$0x3] }
0x136d   :  { %v1105_v39 = vpop.f32.mrf.mxu3 }
0x136e   :  { %v1108_v40 = vadd.f32 %v1105_v39, %v1082_v38  ;;  %v1472_v38 = vld [vmem:[%s3756_s9 + $0x8] sm:$0xff]  ;;  %v1471_v39 = vld [vmem:[%s3756_s9] sm:$0xff] }
0x136f   :  { %1516 = vmatpush.msra.mxu3 %v1472_v38 }
0x1370   :  { %v1112_v41 = vadd.f32 %v2664_v37, %v1108_v40  ;;  %v1470_v40 = vld [vmem:[%s3755_s8 + $0x8] sm:$0xff] }
0x1371   :  { %1517 = vmatpush.msra.mxu3 %v1471_v39  ;;  %1568 = vmatpush.msra.mxu0 %v1470_v40 }
0x1372   :  { %2773 = vtanh.f32 %v1112_v41  ;;  %v2598_v42 = vmul.f32 -1.442695, %v1112_v41  ;;  %v1469_v41 = vld [vmem:[%s3755_s8] sm:$0xff] }
0x1373   :  { %1569 = vmatpush.msra.mxu0 %v1469_v41 }
0x1374   :  { %2775 = vpow2.f32 %v2598_v42 }
0x1378   :  { %v2774_v20 = vpop.eup %2773 }
0x1379   :  { %1135 = vrot.lane.b32.xlu0 %v2774_v20, %s2896_s3 }
0x137a   :  { %v2776_v43 = vpop.eup %2775 }
0x137b   :  { %v1116_v44 = vadd.f32 1.0, %v2776_v43  ;;  %v1455_v43 = vld [vmem:[#allocation4 + $0x4] sm:$0x3] }
0x137d   :  { %2777 = vrcp.f32 %v1116_v44  ;;  %v1128_v57 = vand.u32 2147483648, %v1116_v44  ;;  %vm1122_vm14 = vweird.f32 %v1116_v44  ;;  %v1126_v55 = vand.u32 2147483647, %v1116_v44 }
0x137f   :  { %v1129_v0 = vor.u32 1.1754944e-38, %v1128_v57  ;;  %vm1127_vm0 = vcmp.eq.f32.partialorder %v1126_v55, 8.507059e+37 }
0x1383   :  { %v2778_v50 = vpop.eup %2777 }
0x1384   :  { %v1118_v51 = vmul.f32 %v2778_v50, %v1116_v44  ;;  %vm1123_vm13 = vweird.f32 %v2778_v50 }
0x1385   :  { %vm1124_vm15 = vmor %vm1122_vm14, %vm1123_vm13  ;;  %vm1697_vm14 = vcmask 1041409  }
0x1386   :  { %v1119_v52 = vsub.f32 1.0, %v1118_v51 }
0x1388   :  { %v1120_v54 = vmul.f32 %v2778_v50, %v1119_v52  ;;  %v1399_v52 = vld [vmem:[#allocation3 + $0x4] sm:$0x3] }
0x138a   :  { %v1121_v56 = vadd.f32 %v2778_v50, %v1120_v54 }
0x138c   :  { %v1125_v58 = vsel %vm1124_vm15, %v2778_v50, %v1121_v56  ;;  %v1398_v50 = vld [vmem:[#allocation3 + $0x2] sm:$0x3]  ;;  %v1400_v56 = vld [vmem:[#allocation3 + $0x6] sm:$0x3] }
0x138d   :  { %v1130_v59 = vsel %vm1127_vm0, %v1129_v0, %v1125_v58  ;;  %v1625_v0 = vlaneseq }
0x138e   :  { %v1133_v16 = vmul.f32 %v1130_v59, %v3259_v29  ;;  %v1389_v29 = vld [vmem:[%s3774_s26] sm:$0x3] }
0x13cf   :  { %v1338_v46 = vpop.permute.xlu0 %1337 }
0x13d0   :  { %v1340_v48 = vadd.f32 %v1338_v46, %v1310_v45 }
0x13d2   :  { %v1346_v49 = vadd.f32 %v1344_v47, %v1340_v48 }
0x13d4   :  { %2779 = vtanh.f32 %v1346_v49  ;;  %v2604_v61 = vmul.f32 -1.442695, %v1346_v49  ;;  %v1397_v49 = vld [vmem:[#allocation3] sm:$0x3] }
0x13d6   :  { %2781 = vpow2.f32 %v2604_v61 }
0x13da   :  { %v2780_v53 = vpop.eup %2779 }
0x13db   :  { %1369 = vrot.lane.b32.xlu2 %v2780_v53, %s2896_s3 }
0x13dc   :  { %v2782_v62 = vpop.eup %2781 }
0x13dd   :  { %v1350_v9 = vadd.f32 1.0, %v2782_v62 }
0x13df   :  { %2783 = vrcp.f32 %v1350_v9  ;;  %v1362_v5 = vand.u32 2147483648, %v1350_v9  ;;  %vm1356_vm2 = vweird.f32 %v1350_v9  ;;  %v1360_v6 = vand.u32 2147483647, %v1350_v9 }
0x13e1   :  { %v1363_v8 = vor.u32 1.1754944e-38, %v1362_v5  ;;  %vm1361_vm4 = vcmp.eq.f32.partialorder %v1360_v6, 8.507059e+37 }
0x13e5   :  { %v2784_v10 = vpop.eup %2783 }
0x13e6   :  { %v1352_v63 = vmul.f32 %v2784_v10, %v1350_v9  ;;  %vm1357_vm1 = vweird.f32 %v2784_v10 }
0x13e7   :  { %vm1358_vm3 = vmor %vm1356_vm2, %vm1357_vm1 }
0x13e8   :  { %v1353_v2 = vsub.f32 1.0, %v1352_v63  ;;  %v3335_v63 = vld [vmem:[%s3757_s10] ss:$0 sm:$0xff] }
0x13ea   :  { %v1354_v3 = vmul.f32 %v2784_v10, %v1353_v2 }
0x13eb   :  { %v1136_v1 = vpop.permute.xlu0 %1135 }
0x13ec   :  { %v1138_v60 = vmul.f32 %v1136_v1, %v1130_v59  ;;  %v1355_v4 = vadd.f32 %v2784_v10, %v1354_v3  ;;  %v3323_v1 = vshrl.u32 %v1625_v0, 7 }
0x13ee   :  { %1140 = vrot.lane.b32.xlu2 %v1138_v60, %s2897_s2  ;;  %v1359_v7 = vsel %vm1358_vm3, %v2784_v10, %v1355_v4  ;;  %v1236_v60 = vld [vmem:[#allocation2 + $0xe] sm:$0x3] }
0x13ef   :  { %v1364_v13 = vsel %vm1361_vm4, %v1363_v8, %v1359_v7 }
0x13f0   :  { %v1367_v24 = vmul.f32 %v1364_v13, %v3254_v25 }
0x1435   :  { %v1370_v12 = vpop.permute.xlu2 %1369 }
0x1436   :  { %v1372_v14 = vmul.f32 %v1370_v12, %v1364_v13  ;;  %v2667_v12 = vld [vmem:[%s3761_s14] ss:$0 sm:$0xff] }
0x1438   :  { %1374 = vrot.lane.b32.xlu1 %v1372_v14, %s2897_s2 }
0x1448   :  { %v1141_v17 = vpop.permute.xlu2 %1140 }
0x1449   :  { %v3285_v18 = vadd.f32 %v1141_v17, %v1133_v16 }
0x144b   :  { %2785 = vtanh.f32 %v3285_v18 }
0x1451   :  { %v2786_v19 = vpop.eup %2785 }
0x1452   :  { %1146 = vrot.lane.b32.xlu1 %v2786_v19, %s2898_s23  ;;  %v2610_v19 = vld [vmem:[%s3759_s12 + $0x2] sm:$0x3] }
0x1453   :  { %vm1689_vm8 = vcmp.gt.f32.partialorder %v2610_v19, 0.5 }
0x145a   :  { %1412 = vperm.xlu1 %2634, %v1390_v21   ;;  %v1690_v21 = vsel %vm1689_vm8, 1, %v2900_v11 }
0x1462   :  { %1422 = vperm.xlu1 %2634, %v1392_v23  }
0x146a   :  { %2636 = vset.pattern.permute.xlu1 %v3323_v1 }
0x14aa   :  { %v1375_v22 = vpop.permute.xlu1 %1374 }
0x14ab   :  { %v1377_v27 = vadd.f32 %v1375_v22, %v1367_v24 }
0x14ad   :  { %2787 = vtanh.f32 %v1377_v27 }
0x14b3   :  { %v2788_v28 = vpop.eup %2787 }
0x14b4   :  { %1380 = vrot.lane.b32.xlu0 %v2788_v28, %s2898_s23 }
0x14bc   :  { %1407 = vperm.xlu0 %2633, %v1389_v29  }
0x14c4   :  { %v1147_v31 = vpop.permute.xlu1 %1146  ;;  %2639 = vset.pattern.permute.xlu0 %v3323_v1 }
0x14c5   :  { %v1149_v37 = vmul.f32 %v1147_v31, %v1130_v59  ;;  %v2665_v59 = vld [vmem:[%s3752_s5] ss:$0 sm:$0xff] }
0x14cc   :  { %v1413_v15 = vpop.permute.xlu1 %1412 }
0x14cd   :  { %v1462_v32 = vmul.f32 %v1454_v26, %v1413_v15  ;;  %v1446_v53 = vmul.f32 %v1413_v15, %v1398_v50 }
0x14cf   :  { %1483 = vst [vmem:[#allocation1 + $0x1] ss:$4 sm:$0xff] %v1462_v32  ;;  %v3359_v32 = vld [vmem:[%s3763_s16] sm:$0x1f] }
0x14d4   :  { %v1423_v35 = vpop.permute.xlu1 %1422 }
0x14d5   :  { %v1464_v34 = vmul.f32 %v1456_v33, %v1423_v35  ;;  %v1448_v55 = vmul.f32 %v1423_v35, %v1400_v56 }
0x14d7   :  { %1487 = vst [vmem:[#allocation1 + $0x3] ss:$4 sm:$0xff] %v1464_v34 }
0x1526   :  { %v1381_v25 = vpop.permute.xlu0 %1380 }
0x1527   :  { %v1383_v36 = vmul.f32 %v1381_v25, %v1364_v13 }
0x1529   :  { %1385 = vrot.lane.b32.xlu2 %v1383_v36, %s2897_s2 }
0x152e   :  { %v1408_v42 = vpop.permute.xlu0 %1407 }
0x152f   :  { %v1445_v51 = vmul.f32 %v1408_v42, %v1397_v49 }
0x1531   :  { %1417 = vperm.xlu2 %2635, %v1391_v30  }
0x1539   :  { %1151 = vrot.lane.b32.xlu2 %v1149_v37, %s2899_s29 }
0x153a   :  { %2637 = vset.pattern.permute.xlu2 %v3323_v1 }
0x1583   :  { %v1386_v20 = vpop.permute.xlu2 %1385 }
0x1584   :  { %1388 = vst.msk [vmem:[#allocation4] sm:$0x3] %vm225_vm5, %v1386_v20 }
0x158b   :  { %v1418_v44 = vpop.permute.xlu2 %1417  ;;  %v1453_v45 = vld [vmem:[#allocation4] sm:$0x3] }
0x158c   :  { %v1463_v46 = vmul.f32 %v1455_v43, %v1418_v44  ;;  %v1461_v47 = vmul.f32 %v1453_v45, %v1408_v42  ;;  %v1447_v57 = vmul.f32 %v1418_v44, %v1399_v52 }
0x158e   :  { %1485 = vst [vmem:[#allocation1 + $0x2] ss:$4 sm:$0xff] %v1463_v46 }
0x158f   :  { %1481 = vst [vmem:[#allocation1] ss:$4 sm:$0xff] %v1461_v47 }
0x1593   :  { %v1152_v48 = vpop.permute.xlu2 %1151 }
0x1594   :  { %1155 = vst.msk [vmem:[#allocation3 + $0xc] sm:$0x3] %vm225_vm5, %v1152_v48  ;;  %2601 = vmatmul.msk.f32.vlgmr.msrb.gmra.mxu1 %vm155_vm6, %v1152_v48 }
0x1596   :  { %v1496_v54 = vld.sshfl [vmem:[#allocation1] sm:$0xff pattern:$0x73625140] }
0x1597   :  { %2605 = vmatmul.msk.f32.vlgmr.msra.gmra.mxu3 %vm155_vm6, %v1496_v54  ;;  %1533 = vst [vmem:[#allocation1] ss:$4 sm:$0xff] %v1445_v51 }
0x1598   :  { %1535 = vst [vmem:[#allocation1 + $0x1] ss:$4 sm:$0xff] %v1446_v53 }
0x1599   :  { %1537 = vst [vmem:[#allocation1 + $0x2] ss:$4 sm:$0xff] %v1447_v57 }
0x159a   :  { %1539 = vst [vmem:[#allocation1 + $0x3] ss:$4 sm:$0xff] %v1448_v55 }
0x15a1   :  { %v1548_v58 = vld.sshfl [vmem:[#allocation1] sm:$0xff pattern:$0x73625140] }
0x15a2   :  { %2607 = vmatmul.msk.f32.vlgmr.msra.gmra.mxu0 %vm155_vm6, %v1548_v58 }
0x1611   :  { %v1259_v61 = vpop.f32.mrf.mxu1 }
0x1612   :  { %v1262_v62 = vadd.f32 %v1259_v61, %v1236_v60 }
0x1614   :  { %v1266_v9 = vadd.f32 %v2665_v59, %v1262_v62 }
0x1616   :  { %2789 = vtanh.f32 %v1266_v9  ;;  %v2602_v23 = vmul.f32 -1.442695, %v1266_v9 }
0x1618   :  { %2791 = vpow2.f32 %v2602_v23 }
0x161a   :  { %v1519_v2 = vpop.f32.mrf.mxu3 }
0x161c   :  { %v2790_v10 = vpop.eup %2789 }
0x161d   :  { %1289 = vrot.lane.b32.xlu0 %v2790_v10, %s2896_s3 }
0x161e   :  { %v2792_v24 = vpop.eup %2791 }
0x161f   :  { %v1571_v3 = vpop.f32.mrf.mxu0  ;;  %v1270_v22 = vadd.f32 1.0, %v2792_v24 }
0x1620   :  { %v1572_v4 = vadd.f32 %v1571_v3, %v1519_v2 }
0x1621   :  { %2793 = vrcp.f32 %v1270_v22  ;;  %v1282_v35 = vand.u32 2147483648, %v1270_v22  ;;  %vm1276_vm10 = vweird.f32 %v1270_v22  ;;  %v1280_v25 = vand.u32 2147483647, %v1270_v22 }
0x1622   :  { %v1581_v5 = vadd.f32 %v3335_v63, %v1572_v4 }
0x1623   :  { %v1283_v39 = vor.u32 1.1754944e-38, %v1282_v35  ;;  %vm1281_vm13 = vcmp.eq.f32.partialorder %v1280_v25, 8.507059e+37 }
0x1624   :  { %v1585_v6 = vrot.slane %v1581_v5, 2  ;;  %v1586_v7 = vrot.slane %v1581_v5, 4  ;;  %v1587_v8 = vrot.slane %v1581_v5, 6  ;;  %1598 = vst.msk [vmem:[#allocation5] sm:$0x3] %vm1597_vm7, %v1581_v5 }
0x1626   :  { %1599 = vst.msk [vmem:[#allocation5 + $0x2] sm:$0x3] %vm1597_vm7, %v1585_v6 }
0x1627   :  { %1600 = vst.msk [vmem:[#allocation5 + $0x4] sm:$0x3] %vm1597_vm7, %v1586_v7  ;;  %v2794_v27 = vpop.eup %2793 }
0x1628   :  { %1601 = vst.msk [vmem:[#allocation5 + $0x6] sm:$0x3] %vm1597_vm7, %v1587_v8  ;;  %v1272_v28 = vmul.f32 %v2794_v27, %v1270_v22  ;;  %vm1277_vm9 = vweird.f32 %v2794_v27 }
0x1629   :  { %vm1278_vm11 = vmor %vm1276_vm10, %vm1277_vm9 }
0x162a   :  { %v1273_v29 = vsub.f32 1.0, %v1272_v28 }
0x162b   :  { %v1607_v13 = vld [vmem:[#allocation5] sm:$0x3] }
0x162c   :  { %v3345_v14 = vadd.f32 %v2667_v12, %v1607_v13  ;;  %v1274_v26 = vmul.f32 %v2794_v27, %v1273_v29 }
0x162d   :  { %v1619_v31 = vld [vmem:[#allocation5 + $0x2] sm:$0x3] }
0x162e   :  { %v1631_v16 = vperm.slane %v3345_v14, 1  ;;  %v1624_v17 = vperm.slane %v3345_v14, 0  ;;  %v1641_v15 = vrot.slane %v1619_v31, 1  ;;  %v1275_v33 = vadd.f32 %v2794_v27, %v1274_v26 }
0x162f   :  { %v1642_v52 = vperm.slane %v1619_v31, 0 }
0x1630   :  { %1636 = vperm.xlu2 %2637, %v1631_v16   ;;  %1629 = vperm.xlu1 %2636, %v1624_v17   ;;  %v1643_v30 = vperm.slane %v1641_v15, 0  ;;  %v1279_v37 = vsel %vm1278_vm11, %v2794_v27, %v1275_v33 }
0x1631   :  { %v3363_v41 = vsel %vm1281_vm13, %v1283_v39, %v1279_v37  ;;  %v1396_v37 = vld [vmem:[%s3774_s26 + $0xe] sm:$0x3] }
0x1638   :  { %2638 = vset.pattern.permute.xlu1 %v2900_v11  ;;  %2642 = vset.pattern.permute.xlu2 %v2900_v11 }
0x1639   :  { %1692 = vperm.xlu1 %2638, %v1690_v21  }
0x1641   :  { %2640 = vset.pattern.permute.xlu1 %v3323_v1 }
0x168a   :  { %v1637_v34 = vpop.permute.xlu2 %1636 }
0x168b   :  { %v1639_v36 = vadd.f32 %v1637_v34, %v3359_v32 }
0x168d   :  { %v1647_v38 = vadd.f32 %v1643_v30, %v1639_v36  ;;  %v1393_v36 = vld [vmem:[%s3774_s26 + $0x8] sm:$0x3]  ;;  %v1395_v30 = vld [vmem:[%s3774_s26 + $0xc] sm:$0x3] }
0x168f   :  { %v1656_v40 = vsel %vm1648_vm12, %v1647_v38, -inf  ;;  %v1290_v20 = vpop.permute.xlu0 %1289 }
0x1690   :  { %v1657_v42 = vrot.slane %v1656_v40, 4  ;;  %v1292_v43 = vmul.f32 %v1290_v20, %v3363_v41 }
0x1692   :  { %v1658_v44 = vmax.f32 %v1656_v40, %v1657_v42  ;;  %1294 = vrot.lane.b32.xlu0 %v1292_v43, %s2897_s2  ;;  %v1750_v42 = vld [vmem:[#allocation5 + $0x4] sm:$0x3] }
0x1693   :  { %v1772_v43 = vrot.slane %v1750_v42, 1 }
0x1694   :  { %v1659_v45 = vrot.slane %v1658_v44, 2 }
0x1696   :  { %v1660_v46 = vmax.f32 %v1658_v44, %v1659_v45 }
0x1698   :  { %v1661_v47 = vrot.slane %v1660_v46, 1 }
0x169a   :  { %v1662_v48 = vmax.f32 %v1660_v46, %v1661_v47  ;;  %v1774_v46 = vperm.slane %v1772_v43, 0 }
0x169c   :  { %v1664_v49 = vsub.f32 %v1647_v38, %v1662_v48  ;;  %v1287_v38 = vmul.f32 %v3363_v41, %v3285_v18 }
0x169e   :  { %v1667_v50 = vmul.f32 1.442695, %v1664_v49 }
0x16a0   :  { %2795 = vpow2.f32 %v1667_v50 }
0x16a2   :  { %v1630_v51 = vpop.permute.xlu1 %1629 }
0x16a3   :  { %v1638_v53 = vadd.f32 %v1630_v51, %v3359_v32 }
0x16a5   :  { %v1646_v54 = vadd.f32 %v1642_v52, %v1638_v53 }
0x16a6   :  { %v2796_v55 = vpop.eup %2795 }
0x16a7   :  { %v1649_v56 = vsel %vm1648_vm12, %v1646_v54, -inf  ;;  %v1676_v60 = vsel %vm1648_vm12, %v2796_v55, 0.0  ;;  %v1457_v55 = vld [vmem:[#allocation4 + $0x8] sm:$0x3] }
0x16a8   :  { %v1650_v57 = vrot.slane %v1649_v56, 4  ;;  %v1677_v62 = vrot.slane %v1676_v60, 4 }
0x16aa   :  { %v1651_v58 = vmax.f32 %v1649_v56, %v1650_v57  ;;  %v1678_v2 = vadd.f32 %v1677_v62, %v1676_v60 }
0x16ab   :  { %v1693_v29 = vpop.permute.xlu1 %1692 }
0x16ac   :  { %v1652_v59 = vrot.slane %v1651_v58, 2  ;;  %v1679_v5 = vrot.slane %v1678_v2, 2  ;;  %vm1694_vm15 = vcmp.eq.s32.totalorder %v1693_v29, 1 }
0x16ae   :  { %v1653_v61 = vmax.f32 %v1651_v58, %v1652_v59  ;;  %v1680_v6 = vadd.f32 %v1679_v5, %v1678_v2 }
0x16b0   :  { %v1654_v9 = vrot.slane %v1653_v61, 1  ;;  %v1681_v12 = vrot.slane %v1680_v6, 1 }
0x16b2   :  { %v1655_v10 = vmax.f32 %v1653_v61, %v1654_v9  ;;  %v1682_v17 = vadd.f32 %v1681_v12, %v1680_v6  ;;  %v1459_v9 = vld [vmem:[#allocation4 + $0xc] sm:$0x3] }
0x16b4   :  { %v1663_v3 = vsub.f32 %v1646_v54, %v1655_v10 }
0x16b6   :  { %v1665_v4 = vmul.f32 1.442695, %v1663_v3 }
0x16b8   :  { %2797 = vpow2.f32 %v1665_v4 }
0x16b9   :  { %2799 = vlog2.f32 %v1682_v17 }
0x16be   :  { %v2798_v7 = vpop.eup %2797 }
0x16bf   :  { %v1669_v8 = vsel %vm1648_vm12, %v2798_v7, 0.0  ;;  %v2800_v22 = vpop.eup %2799 }
0x16c0   :  { %v1670_v13 = vrot.slane %v1669_v8, 4  ;;  %v1686_v27 = vmul.f32 0.6931472, %v2800_v22 }
0x16c2   :  { %v1671_v16 = vadd.f32 %v1670_v13, %v1669_v8  ;;  %v1688_v26 = vadd.f32 %v1686_v27, %v1662_v48  ;;  %v1773_v48 = vperm.slane %v1750_v42, 0  ;;  %v1460_v8 = vld [vmem:[#allocation4 + $0xe] sm:$0x3] }
0x16c4   :  { %v1672_v19 = vrot.slane %v1671_v16, 2 }
0x16c6   :  { %v1673_v21 = vadd.f32 %v1672_v19, %v1671_v16 }
0x16c8   :  { %v1674_v23 = vrot.slane %v1673_v21, 1 }
0x16ca   :  { %v1675_v24 = vadd.f32 %v1674_v23, %v1673_v21 }
0x16cc   :  { %2801 = vlog2.f32 %v1675_v24 }
0x16d2   :  { %v2802_v28 = vpop.eup %2801 }
0x16d3   :  { %v1684_v31 = vmul.f32 0.6931472, %v2802_v28 }
0x16d5   :  { %v1687_v15 = vadd.f32 %v1684_v31, %v1655_v10 }
0x16d7   :  { %v1698_v33 = vsel %vm1697_vm14, %v1688_v26, %v1687_v15 }
0x16d8   :  { %v3373_v35 = vsel %vm1694_vm15, %v1698_v33, %v3345_v14 }
0x16d9   :  { %v1762_v34 = vperm.slane %v3373_v35, 1  ;;  %v1755_v25 = vperm.slane %v3373_v35, 0 }
0x16db   :  { %1767 = vperm.xlu1 %2640, %v1762_v34   ;;  %1760 = vperm.xlu0 %2639, %v1755_v25  }
0x16e3   :  { %2641 = vset.pattern.permute.xlu1 %v2900_v11  ;;  %2643 = vset.pattern.permute.xlu0 %v2900_v11 }
0x16e4   :  { %1427 = vperm.xlu1 %2641, %v1393_v36   ;;  %1437 = vperm.xlu0 %2643, %v1395_v30   ;;  %v1394_v36 = vld [vmem:[%s3774_s26 + $0xa] sm:$0x3] }
0x16ec   :  { %1442 = vperm.xlu1 %2641, %v1396_v37  }
0x16f4   :  { %2644 = vset.pattern.permute.xlu1 %v3323_v1 }
0x1704   :  { %v1295_v39 = vpop.permute.xlu0 %1294 }
0x1705   :  { %v1297_v40 = vadd.f32 %v1295_v39, %v1287_v38 }
0x1707   :  { %2803 = vtanh.f32 %v1297_v40 }
0x170d   :  { %v2804_v20 = vpop.eup %2803 }
0x170e   :  { %1300 = vrot.lane.b32.xlu2 %v2804_v20, %s2898_s23  ;;  %s2562_s23 = sshll.u32 %s2901_s20, 4  ;;  %s2563_s23 = int_to_ptr.vmem [resolvable:$true] %s2562_s23 }
0x174d   :  { %v1768_v44 = vpop.permute.xlu1 %1767  ;;  %v1761_v45 = vpop.permute.xlu0 %1760 }
0x174e   :  { %v1770_v47 = vadd.f32 %v1768_v44, %v3359_v32  ;;  %v1769_v49 = vadd.f32 %v1761_v45, %v3359_v32 }
0x1750   :  { %v1778_v50 = vadd.f32 %v1774_v46, %v1770_v47  ;;  %v1777_v51 = vadd.f32 %v1773_v48, %v1769_v49 }
0x1752   :  { %v1786_v18 = vsel %vm1648_vm12, %v1778_v50, -inf  ;;  %v1779_v53 = vsel %vm1648_vm12, %v1777_v51, -inf }
0x1753   :  { %v1787_v52 = vrot.slane %v1786_v18, 4  ;;  %v1780_v54 = vrot.slane %v1779_v53, 4 }
0x1755   :  { %v1788_v56 = vmax.f32 %v1786_v18, %v1787_v52  ;;  %v1781_v57 = vmax.f32 %v1779_v53, %v1780_v54  ;;  %v2616_v18 = vld [vmem:[%s3759_s12 + $0x8] sm:$0x3]  ;;  %v2618_v52 = vld [vmem:[%s3759_s12 + $0xa] sm:$0x3] }
0x1756   :  { %v3396_v58 = vpop.permute.xlu1 %1427  ;;  %v3398_v59 = vpop.permute.xlu0 %1437  ;;  %vm2073_vm2 = vcmp.gt.f32.partialorder %v2616_v18, 0.5  ;;  %vm2200_vm3 = vcmp.gt.f32.partialorder %v2618_v52, 0.5 }
0x1757   :  { %v1789_v60 = vrot.slane %v1788_v56, 2  ;;  %v1782_v61 = vrot.slane %v1781_v57, 2  ;;  %v1465_v62 = vmul.f32 %v1457_v55, %v3396_v58  ;;  %v1467_v10 = vmul.f32 %v1459_v9, %v3398_v59  ;;  %v1401_v9 = vld [vmem:[#allocation3 + $0x8] sm:$0x3] }
0x1758   :  { %v2074_v53 = vsel %vm2073_vm2, 1, %v2900_v11  ;;  %v2201_v54 = vsel %vm2200_vm3, 1, %v2900_v11 }
0x1759   :  { %v1790_v2 = vmax.f32 %v1788_v56, %v1789_v60  ;;  %v1783_v3 = vmax.f32 %v1781_v57, %v1782_v61  ;;  %1489 = vst [vmem:[#allocation1 + $0x20] ss:$4 sm:$0xff] %v1465_v62  ;;  %v2620_v56 = vld [vmem:[%s3759_s12 + $0xc] sm:$0x3]  ;;  %v1458_v60 = vld [vmem:[#allocation4 + $0xa] sm:$0x3] }
0x175a   :  { %1493 = vst [vmem:[#allocation1 + $0x22] ss:$4 sm:$0xff] %v1467_v10  ;;  %vm2327_vm4 = vcmp.gt.f32.partialorder %v2620_v56, 0.5 }
0x175b   :  { %v1791_v4 = vrot.slane %v1790_v2, 1  ;;  %v1784_v5 = vrot.slane %v1783_v3, 1  ;;  %v2328_v55 = vsel %vm2327_vm4, 1, %v2900_v11 }
0x175d   :  { %v1792_v6 = vmax.f32 %v1790_v2, %v1791_v4  ;;  %v1785_v7 = vmax.f32 %v1783_v3, %v1784_v5  ;;  %v1449_v2 = vmul.f32 %v3396_v58, %v1401_v9  ;;  %v1402_v3 = vld [vmem:[#allocation3 + $0xa] sm:$0x3]  ;;  %v1403_v5 = vld [vmem:[#allocation3 + $0xc] sm:$0x3] }
0x175e   :  { %v3402_v12 = vpop.permute.xlu1 %1442 }
0x175f   :  { %v1794_v13 = vsub.f32 %v1778_v50, %v1792_v6  ;;  %v1793_v16 = vsub.f32 %v1777_v51, %v1785_v7  ;;  %v1468_v17 = vmul.f32 %v1460_v8, %v3402_v12  ;;  %v2614_v50 = vld [vmem:[%s3759_s12 + $0x6] sm:$0x3] }
0x1760   :  { %vm1946_vm1 = vcmp.gt.f32.partialorder %v2614_v50, 0.5 }
0x1761   :  { %v1797_v19 = vmul.f32 1.442695, %v1794_v13  ;;  %v1795_v21 = vmul.f32 1.442695, %v1793_v16  ;;  %1495 = vst [vmem:[#allocation1 + $0x23] ss:$4 sm:$0xff] %v1468_v17  ;;  %v1451_v13 = vmul.f32 %v3398_v59, %v1403_v5 }
0x1762   :  { %v1947_v51 = vsel %vm1946_vm1, 1, %v2900_v11 }
0x1763   :  { %2805 = vpow2.f32 %v1797_v19  ;;  %1949 = vperm.xlu0 %2643, %v1947_v51  }
0x1764   :  { %2807 = vpow2.f32 %v1795_v21 }
0x1768   :  { %v1301_v23 = vpop.permute.xlu2 %1300 }
0x1769   :  { %v2806_v24 = vpop.eup %2805  ;;  %v1303_v22 = vmul.f32 %v1301_v23, %v3363_v41  ;;  %v2612_v41 = vld [vmem:[%s3759_s12 + $0x4] sm:$0x3] }
0x176a   :  { %v2808_v27 = vpop.eup %2807  ;;  %v1806_v28 = vsel %vm1648_vm12, %v2806_v24, 0.0  ;;  %vm1819_vm0 = vcmp.gt.f32.partialorder %v2612_v41, 0.5 }
0x176b   :  { %v1807_v29 = vrot.slane %v1806_v28, 4  ;;  %v1799_v31 = vsel %vm1648_vm12, %v2808_v27, 0.0  ;;  %1305 = vrot.lane.b32.xlu2 %v1303_v22, %s2899_s29  ;;  %v1820_v42 = vsel %vm1819_vm0, 1, %v2900_v11  ;;  %2076 = vperm.xlu0 %2643, %v2074_v53  }
0x176c   :  { %v1800_v26 = vrot.slane %v1799_v31, 4 }
0x176d   :  { %v1808_v15 = vadd.f32 %v1807_v29, %v1806_v28 }
0x176e   :  { %v1801_v33 = vadd.f32 %v1800_v26, %v1799_v31 }
0x176f   :  { %v1809_v34 = vrot.slane %v1808_v15, 2 }
0x1770   :  { %v1802_v25 = vrot.slane %v1801_v33, 2 }
0x1771   :  { %v1810_v30 = vadd.f32 %v1809_v34, %v1808_v15 }
0x1772   :  { %v1803_v37 = vadd.f32 %v1802_v25, %v1801_v33 }
0x1773   :  { %v1811_v38 = vrot.slane %v1810_v30, 1  ;;  %1432 = vperm.xlu2 %2642, %v1394_v36   ;;  %2203 = vperm.xlu0 %2643, %v2201_v54  }
0x1774   :  { %v1804_v39 = vrot.slane %v1803_v37, 1 }
0x1775   :  { %v1812_v40 = vadd.f32 %v1811_v38, %v1810_v30 }
0x1776   :  { %v1805_v20 = vadd.f32 %v1804_v39, %v1803_v37 }
0x1777   :  { %2809 = vlog2.f32 %v1812_v40 }
0x1778   :  { %2811 = vlog2.f32 %v1805_v20 }
0x177b   :  { %1822 = vperm.xlu2 %2642, %v1820_v42   ;;  %2330 = vperm.xlu0 %2643, %v2328_v55  }
0x177d   :  { %v2810_v43 = vpop.eup %2809 }
0x177e   :  { %v2812_v44 = vpop.eup %2811  ;;  %v1816_v45 = vmul.f32 0.6931472, %v2810_v43 }
0x177f   :  { %v1814_v46 = vmul.f32 0.6931472, %v2812_v44 }
0x1780   :  { %v1818_v47 = vadd.f32 %v1816_v45, %v1792_v6 }
0x1781   :  { %v1817_v48 = vadd.f32 %v1814_v46, %v1785_v7 }
0x1783   :  { %2645 = vset.pattern.permute.xlu2 %v3323_v1  ;;  %v1827_v49 = vsel %vm1697_vm14, %v1818_v47, %v1817_v48  ;;  %2646 = vset.pattern.permute.xlu0 %v3323_v1 }
0x17c5   :  { %v1306_v57 = vpop.permute.xlu2 %1305 }
0x17c6   :  { %1309 = vst.msk [vmem:[#allocation3 + $0xe] sm:$0x3] %vm225_vm5, %v1306_v57 }
0x17cd   :  { %v1433_v61 = vpop.permute.xlu2 %1432  ;;  %v1404_v4 = vld [vmem:[#allocation3 + $0xe] sm:$0x3] }
0x17ce   :  { %v1466_v62 = vmul.f32 %v1458_v60, %v1433_v61  ;;  %v1450_v6 = vmul.f32 %v1433_v61, %v1402_v3  ;;  %v1452_v58 = vmul.f32 %v3402_v12, %v1404_v4 }
0x17d0   :  { %1491 = vst [vmem:[#allocation1 + $0x21] ss:$4 sm:$0xff] %v1466_v62 }
0x17d5   :  { %v1823_v10 = vpop.permute.xlu2 %1822 }
0x17d6   :  { %vm1824_vm8 = vcmp.eq.s32.totalorder %v1823_v10, 1 }
0x17d7   :  { %v3438_v7 = vsel %vm1824_vm8, %v1827_v49, %v3373_v35  ;;  %v1497_v8 = vld.sshfl [vmem:[#allocation1 + $0x20] sm:$0xff pattern:$0x73625140]  ;;  %v3446_v35 = vld [vmem:[#allocation5 + $0x6] sm:$0x3] }
0x17d8   :  { %2606 = vmatmul.msk.f32.gmra.mxu3 %vm155_vm6, %v1497_v8  ;;  %1541 = vst [vmem:[#allocation1 + $0x20] ss:$4 sm:$0xff] %v1449_v2  ;;  %v1889_v16 = vperm.slane %v3438_v7, 1  ;;  %v1882_v17 = vperm.slane %v3438_v7, 0  ;;  %v1899_v59 = vrot.slane %v3446_v35, 1  ;;  %v1900_v36 = vperm.slane %v3446_v35, 0 }
0x17d9   :  { %1543 = vst [vmem:[#allocation1 + $0x21] ss:$4 sm:$0xff] %v1450_v6 }
0x17da   :  { %1545 = vst [vmem:[#allocation1 + $0x22] ss:$4 sm:$0xff] %v1451_v13  ;;  %1894 = vperm.xlu2 %2645, %v1889_v16   ;;  %1887 = vperm.xlu1 %2644, %v1882_v17   ;;  %v1901_v23 = vperm.slane %v1899_v59, 0 }
0x17db   :  { %1547 = vst [vmem:[#allocation1 + $0x23] ss:$4 sm:$0xff] %v1452_v58 }
0x17e2   :  { %v1549_v19 = vld.sshfl [vmem:[#allocation1 + $0x20] sm:$0xff pattern:$0x73625140] }
0x17e3   :  { %2608 = vmatmul.msk.f32.gmra.mxu0 %vm155_vm6, %v1549_v19  ;;  %v1950_v19 = vpop.permute.xlu0 %1949 }
0x17e4   :  { %vm1951_vm5 = vcmp.eq.s32.totalorder %v1950_v19, 1 }
0x1834   :  { %v1895_v21 = vpop.permute.xlu2 %1894 }
0x1835   :  { %v1897_v24 = vadd.f32 %v1895_v21, %v3359_v32 }
0x1837   :  { %v1905_v22 = vadd.f32 %v1901_v23, %v1897_v24 }
0x1839   :  { %v1913_v27 = vsel %vm1648_vm12, %v1905_v22, -inf }
0x183a   :  { %v1914_v12 = vrot.slane %v1913_v27, 4 }
0x183c   :  { %v1915_v28 = vmax.f32 %v1913_v27, %v1914_v12 }
0x183e   :  { %v1916_v29 = vrot.slane %v1915_v28, 2 }
0x1840   :  { %v1917_v31 = vmax.f32 %v1915_v28, %v1916_v29 }
0x1842   :  { %v1918_v26 = vrot.slane %v1917_v31, 1 }
0x1844   :  { %v1919_v15 = vmax.f32 %v1917_v31, %v1918_v26 }
0x1846   :  { %v1921_v33 = vsub.f32 %v1905_v22, %v1919_v15 }
0x1848   :  { %v1924_v34 = vmul.f32 1.442695, %v1921_v33 }
0x184a   :  { %2813 = vpow2.f32 %v1924_v34 }
0x184c   :  { %v1888_v25 = vpop.permute.xlu1 %1887 }
0x184d   :  { %v1896_v30 = vadd.f32 %v1888_v25, %v3359_v32 }
0x184f   :  { %v1904_v37 = vadd.f32 %v1900_v36, %v1896_v30 }
0x1850   :  { %v2814_v39 = vpop.eup %2813 }
0x1851   :  { %v1906_v41 = vsel %vm1648_vm12, %v1904_v37, -inf  ;;  %v1933_v42 = vsel %vm1648_vm12, %v2814_v39, 0.0 }
0x1852   :  { %v1907_v38 = vrot.slane %v1906_v41, 4  ;;  %v1934_v44 = vrot.slane %v1933_v42, 4 }
0x1854   :  { %v1908_v40 = vmax.f32 %v1906_v41, %v1907_v38  ;;  %v1935_v47 = vadd.f32 %v1934_v44, %v1933_v42 }
0x1856   :  { %v1909_v20 = vrot.slane %v1908_v40, 2  ;;  %v1936_v53 = vrot.slane %v1935_v47, 2 }
0x1858   :  { %v1910_v43 = vmax.f32 %v1908_v40, %v1909_v20  ;;  %v1937_v55 = vadd.f32 %v1936_v53, %v1935_v47 }
0x185a   :  { %v1911_v45 = vrot.slane %v1910_v43, 1  ;;  %v1938_v62 = vrot.slane %v1937_v55, 1 }
0x185b   :  { %v1522_v50 = vpop.f32.mrf.mxu3 }
0x185c   :  { %v1912_v46 = vmax.f32 %v1910_v43, %v1911_v45  ;;  %v1939_v2 = vadd.f32 %v1938_v62, %v1937_v55 }
0x185e   :  { %v1920_v48 = vsub.f32 %v1904_v37, %v1912_v46 }
0x1860   :  { %v1922_v49 = vmul.f32 1.442695, %v1920_v48  ;;  %v1574_v51 = vpop.f32.mrf.mxu0 }
0x1861   :  { %v1575_v18 = vadd.f32 %v1574_v51, %v1522_v50 }
0x1862   :  { %2815 = vpow2.f32 %v1922_v49 }
0x1863   :  { %v1582_v52 = vadd.f32 %v3335_v63, %v1575_v18  ;;  %2817 = vlog2.f32 %v1939_v2 }
0x1865   :  { %v1588_v54 = vrot.slane %v1582_v52, 2  ;;  %v1589_v56 = vrot.slane %v1582_v52, 4  ;;  %v1590_v57 = vrot.slane %v1582_v52, 6  ;;  %1602 = vst.msk [vmem:[#allocation5 + $0x8] sm:$0x3] %vm1597_vm7, %v1582_v52 }
0x1867   :  { %1603 = vst.msk [vmem:[#allocation5 + $0xa] sm:$0x3] %vm1597_vm7, %v1588_v54 }
0x1868   :  { %v2816_v60 = vpop.eup %2815  ;;  %1604 = vst.msk [vmem:[#allocation5 + $0xc] sm:$0x3] %vm1597_vm7, %v1589_v56 }
0x1869   :  { %v1926_v61 = vsel %vm1648_vm12, %v2816_v60, 0.0  ;;  %1605 = vst.msk [vmem:[#allocation5 + $0xe] sm:$0x3] %vm1597_vm7, %v1590_v57  ;;  %v2818_v6 = vpop.eup %2817 }
0x186a   :  { %v1927_v9 = vrot.slane %v1926_v61, 4  ;;  %v1943_v8 = vmul.f32 0.6931472, %v2818_v6 }
0x186c   :  { %v1928_v10 = vadd.f32 %v1927_v9, %v1926_v61  ;;  %v1945_v17 = vadd.f32 %v1943_v8, %v1919_v15  ;;  %v3467_v22 = vld [vmem:[#allocation5 + $0x8] sm:$0x3] }
0x186d   :  { %v2026_v27 = vrot.slane %v3467_v22, 1  ;;  %v2027_v38 = vperm.slane %v3467_v22, 0 }
0x186e   :  { %v1929_v63 = vrot.slane %v1928_v10, 2 }
0x186f   :  { %v2028_v28 = vperm.slane %v2026_v27, 0 }
0x1870   :  { %v1930_v3 = vadd.f32 %v1929_v63, %v1928_v10 }
0x1872   :  { %v1931_v4 = vrot.slane %v1930_v3, 1 }
0x1874   :  { %v1932_v5 = vadd.f32 %v1931_v4, %v1930_v3 }
0x1876   :  { %2819 = vlog2.f32 %v1932_v5 }
0x187c   :  { %v2820_v13 = vpop.eup %2819 }
0x187d   :  { %v1941_v16 = vmul.f32 0.6931472, %v2820_v13 }
0x187f   :  { %v1944_v58 = vadd.f32 %v1941_v16, %v1912_v46  ;;  %v2077_v16 = vpop.permute.xlu0 %2076 }
0x1880   :  { %vm2078_vm6 = vcmp.eq.s32.totalorder %v2077_v16, 1 }
0x1881   :  { %v1954_v59 = vsel %vm1697_vm14, %v1945_v17, %v1944_v58 }
0x1882   :  { %v3463_v21 = vsel %vm1951_vm5, %v1954_v59, %v3438_v7 }
0x1883   :  { %v2016_v23 = vperm.slane %v3463_v21, 1  ;;  %v2009_v24 = vperm.slane %v3463_v21, 0 }
0x1885   :  { %2021 = vperm.xlu2 %2645, %v2016_v23   ;;  %2014 = vperm.xlu1 %2644, %v2009_v24   ;;  %v3483_v23 = vld [vmem:[#allocation5 + $0xa] sm:$0x3] }
0x1886   :  { %v2153_v24 = vrot.slane %v3483_v23, 1 }
0x18df   :  { %v2022_v12 = vpop.permute.xlu2 %2021 }
0x18e0   :  { %v2024_v29 = vadd.f32 %v2022_v12, %v3359_v32  ;;  %v2155_v12 = vperm.slane %v2153_v24, 0 }
0x18e2   :  { %v2032_v31 = vadd.f32 %v2028_v28, %v2024_v29 }
0x18e4   :  { %v2040_v26 = vsel %vm1648_vm12, %v2032_v31, -inf }
0x18e5   :  { %v2041_v15 = vrot.slane %v2040_v26, 4 }
0x18e7   :  { %v2042_v7 = vmax.f32 %v2040_v26, %v2041_v15 }
0x18e9   :  { %v2043_v33 = vrot.slane %v2042_v7, 2 }
0x18eb   :  { %v2044_v34 = vmax.f32 %v2042_v7, %v2043_v33 }
0x18ed   :  { %v2045_v25 = vrot.slane %v2044_v34, 1 }
0x18ef   :  { %v2046_v36 = vmax.f32 %v2044_v34, %v2045_v25 }
0x18f1   :  { %v2048_v30 = vsub.f32 %v2032_v31, %v2046_v36 }
0x18f3   :  { %v2051_v37 = vmul.f32 1.442695, %v2048_v30 }
0x18f5   :  { %2821 = vpow2.f32 %v2051_v37  ;;  %v2154_v37 = vperm.slane %v3483_v23, 0 }
0x18f7   :  { %v2015_v41 = vpop.permute.xlu1 %2014 }
0x18f8   :  { %v2023_v39 = vadd.f32 %v2015_v41, %v3359_v32 }
0x18fa   :  { %v2031_v40 = vadd.f32 %v2027_v38, %v2023_v39 }
0x18fb   :  { %v2822_v43 = vpop.eup %2821 }
0x18fc   :  { %v2033_v20 = vsel %vm1648_vm12, %v2031_v40, -inf  ;;  %v2060_v46 = vsel %vm1648_vm12, %v2822_v43, 0.0 }
0x18fd   :  { %v2034_v42 = vrot.slane %v2033_v20, 4  ;;  %v2061_v48 = vrot.slane %v2060_v46, 4 }
0x18ff   :  { %v2035_v44 = vmax.f32 %v2033_v20, %v2034_v42  ;;  %v2062_v51 = vadd.f32 %v2061_v48, %v2060_v46 }
0x1901   :  { %v2036_v45 = vrot.slane %v2035_v44, 2  ;;  %v2063_v52 = vrot.slane %v2062_v51, 2 }
0x1903   :  { %v2037_v47 = vmax.f32 %v2035_v44, %v2036_v45  ;;  %v2064_v54 = vadd.f32 %v2063_v52, %v2062_v51 }
0x1905   :  { %v2038_v49 = vrot.slane %v2037_v47, 1  ;;  %v2065_v55 = vrot.slane %v2064_v54, 1 }
0x1907   :  { %v2039_v50 = vmax.f32 %v2037_v47, %v2038_v49  ;;  %v2066_v62 = vadd.f32 %v2065_v55, %v2064_v54 }
0x1909   :  { %v2047_v18 = vsub.f32 %v2031_v40, %v2039_v50 }
0x190b   :  { %v2049_v53 = vmul.f32 1.442695, %v2047_v18 }
0x190d   :  { %2823 = vpow2.f32 %v2049_v53 }
0x190e   :  { %2825 = vlog2.f32 %v2066_v62 }
0x1913   :  { %v2824_v56 = vpop.eup %2823 }
0x1914   :  { %v2053_v57 = vsel %vm1648_vm12, %v2824_v56, 0.0  ;;  %v2826_v3 = vpop.eup %2825 }
0x1915   :  { %v2054_v60 = vrot.slane %v2053_v57, 4  ;;  %v2070_v4 = vmul.f32 0.6931472, %v2826_v3 }
0x1917   :  { %v2055_v61 = vadd.f32 %v2054_v60, %v2053_v57  ;;  %v2072_v8 = vadd.f32 %v2070_v4, %v2046_v36 }
0x1919   :  { %v2056_v9 = vrot.slane %v2055_v61, 2 }
0x191b   :  { %v2057_v10 = vadd.f32 %v2056_v9, %v2055_v61 }
0x191d   :  { %v2058_v2 = vrot.slane %v2057_v10, 1 }
0x191f   :  { %v2059_v63 = vadd.f32 %v2058_v2, %v2057_v10 }
0x1921   :  { %2827 = vlog2.f32 %v2059_v63 }
0x1927   :  { %v2828_v5 = vpop.eup %2827 }
0x1928   :  { %v2068_v6 = vmul.f32 0.6931472, %v2828_v5 }
0x192a   :  { %v2071_v13 = vadd.f32 %v2068_v6, %v2039_v50 }
0x192c   :  { %v2081_v17 = vsel %vm1697_vm14, %v2072_v8, %v2071_v13  ;;  %v2204_v8 = vpop.permute.xlu0 %2203 }
0x192d   :  { %v3479_v58 = vsel %vm2078_vm6, %v2081_v17, %v3463_v21  ;;  %vm2205_vm9 = vcmp.eq.s32.totalorder %v2204_v8, 1 }
0x192e   :  { %v2143_v19 = vperm.slane %v3479_v58, 1  ;;  %v2136_v59 = vperm.slane %v3479_v58, 0 }
0x1930   :  { %2148 = vperm.xlu2 %2645, %v2143_v19   ;;  %2141 = vperm.xlu1 %2644, %v2136_v59   ;;  %v1608_v59 = vld [vmem:[%s3758_s11] sm:$0x3] }
0x1931   :  { %v1701_v24 = vperm.slane %v1608_v59, 0 }
0x198a   :  { %v2149_v27 = vpop.permute.xlu2 %2148 }
0x198b   :  { %v2151_v28 = vadd.f32 %v2149_v27, %v3359_v32  ;;  %v1708_v27 = vperm.slane %v1608_v59, 1 }
0x198d   :  { %v2159_v29 = vadd.f32 %v2155_v12, %v2151_v28  ;;  %v1614_v12 = vmul.f32 %v3345_v14, %v1608_v59 }
0x198f   :  { %v2167_v31 = vsel %vm1648_vm12, %v2159_v29, -inf  ;;  %v1615_v28 = vsel %vm1597_vm7, %v1614_v12, 0.0 }
0x1990   :  { %v2168_v26 = vrot.slane %v2167_v31, 4 }
0x1992   :  { %v2169_v21 = vmax.f32 %v2167_v31, %v2168_v26 }
0x1994   :  { %v2170_v15 = vrot.slane %v2169_v21, 2 }
0x1996   :  { %v2171_v7 = vmax.f32 %v2169_v21, %v2170_v15 }
0x1998   :  { %v2172_v33 = vrot.slane %v2171_v7, 1 }
0x199a   :  { %v2173_v34 = vmax.f32 %v2171_v7, %v2172_v33 }
0x199c   :  { %v2175_v25 = vsub.f32 %v2159_v29, %v2173_v34 }
0x199e   :  { %v2178_v36 = vmul.f32 1.442695, %v2175_v25 }
0x19a0   :  { %2829 = vpow2.f32 %v2178_v36 }
0x19a2   :  { %v2142_v30 = vpop.permute.xlu1 %2141 }
0x19a3   :  { %v2150_v41 = vadd.f32 %v2142_v30, %v3359_v32 }
0x19a5   :  { %v2158_v38 = vadd.f32 %v2154_v37, %v2150_v41 }
0x19a6   :  { %v2830_v20 = vpop.eup %2829 }
0x19a7   :  { %v2160_v39 = vsel %vm1648_vm12, %v2158_v38, -inf  ;;  %v2187_v44 = vsel %vm1648_vm12, %v2830_v20, 0.0 }
0x19a8   :  { %v2161_v40 = vrot.slane %v2160_v39, 4  ;;  %v2188_v46 = vrot.slane %v2187_v44, 4 }
0x19aa   :  { %v2162_v42 = vmax.f32 %v2160_v39, %v2161_v40  ;;  %v2189_v49 = vadd.f32 %v2188_v46, %v2187_v44 }
0x19ac   :  { %v2163_v43 = vrot.slane %v2162_v42, 2  ;;  %v2190_v18 = vrot.slane %v2189_v49, 2 }
0x19ae   :  { %v2164_v45 = vmax.f32 %v2162_v42, %v2163_v43  ;;  %v2191_v53 = vadd.f32 %v2190_v18, %v2189_v49 }
0x19b0   :  { %v2165_v47 = vrot.slane %v2164_v45, 1  ;;  %v2192_v56 = vrot.slane %v2191_v53, 1 }
0x19b2   :  { %v2166_v48 = vmax.f32 %v2164_v45, %v2165_v47  ;;  %v2193_v60 = vadd.f32 %v2192_v56, %v2191_v53 }
0x19b4   :  { %v2174_v50 = vsub.f32 %v2158_v38, %v2166_v48 }
0x19b6   :  { %v2176_v51 = vmul.f32 1.442695, %v2174_v50 }
0x19b8   :  { %2831 = vpow2.f32 %v2176_v51 }
0x19b9   :  { %2833 = vlog2.f32 %v2193_v60 }
0x19be   :  { %v2832_v52 = vpop.eup %2831 }
0x19bf   :  { %v2180_v54 = vsel %vm1648_vm12, %v2832_v52, 0.0  ;;  %v2834_v2 = vpop.eup %2833 }
0x19c0   :  { %v2181_v57 = vrot.slane %v2180_v54, 4  ;;  %v2197_v63 = vmul.f32 0.6931472, %v2834_v2 }
0x19c2   :  { %v2182_v55 = vadd.f32 %v2181_v57, %v2180_v54  ;;  %v2199_v5 = vadd.f32 %v2197_v63, %v2173_v34 }
0x19c4   :  { %v2183_v61 = vrot.slane %v2182_v55, 2 }
0x19c6   :  { %v2184_v62 = vadd.f32 %v2183_v61, %v2182_v55 }
0x19c8   :  { %v2185_v9 = vrot.slane %v2184_v62, 1 }
0x19ca   :  { %v2186_v10 = vadd.f32 %v2185_v9, %v2184_v62 }
0x19cc   :  { %2835 = vlog2.f32 %v2186_v10 }
0x19d2   :  { %v2836_v3 = vpop.eup %2835 }
0x19d3   :  { %v2195_v4 = vmul.f32 0.6931472, %v2836_v3 }
0x19d5   :  { %v2198_v6 = vadd.f32 %v2195_v4, %v2166_v48 }
0x19d7   :  { %v2208_v13 = vsel %vm1697_vm14, %v2199_v5, %v2198_v6 }
0x19d8   :  { %v3495_v16 = vsel %vm2205_vm9, %v2208_v13, %v3479_v58  ;;  %v3504_v58 = vld [vmem:[#allocation5 + $0xc] sm:$0x3]  ;;  %v2331_v13 = vpop.permute.xlu0 %2330 }
0x19d9   :  { %v2270_v17 = vperm.slane %v3495_v16, 1  ;;  %v2263_v19 = vperm.slane %v3495_v16, 0  ;;  %v2280_v29 = vrot.slane %v3504_v58, 1  ;;  %v2281_v39 = vperm.slane %v3504_v58, 0 }
0x19da   :  { %vm2332_vm10 = vcmp.eq.s32.totalorder %v2331_v13, 1 }
0x19db   :  { %2275 = vperm.xlu2 %2645, %v2270_v17   ;;  %2268 = vperm.xlu1 %2644, %v2263_v19   ;;  %v2282_v26 = vperm.slane %v2280_v29, 0  ;;  %v3524_v29 = vld [vmem:[%s3758_s11 + $0x2] sm:$0x3] }
0x19e3   :  { %1706 = vperm.xlu2 %2645, %v1701_v24  }
0x19eb   :  { %1713 = vperm.xlu2 %2645, %v1708_v27  }
0x1a05   :  { %1616 = vadd.xlane.f32.xlu1 %v1615_v28 }
0x1a35   :  { %v2276_v31 = vpop.permute.xlu2 %2275 }
0x1a36   :  { %v2278_v21 = vadd.f32 %v2276_v31, %v3359_v32  ;;  %v1718_v31 = vrot.slane %v3524_v29, 1 }
0x1a38   :  { %v2286_v15 = vadd.f32 %v2282_v26, %v2278_v21  ;;  %v1720_v21 = vperm.slane %v1718_v31, 0 }
0x1a3a   :  { %v2294_v7 = vsel %vm1648_vm12, %v2286_v15, -inf }
0x1a3b   :  { %v2295_v33 = vrot.slane %v2294_v7, 4 }
0x1a3d   :  { %v2296_v34 = vmax.f32 %v2294_v7, %v2295_v33  ;;  %v1707_v28 = vpop.permute.xlu2 %1706  ;;  %v1719_v7 = vperm.slane %v3524_v29, 0 }
0x1a3f   :  { %v2297_v25 = vrot.slane %v2296_v34, 2 }
0x1a41   :  { %v2298_v36 = vmax.f32 %v2296_v34, %v2297_v25 }
0x1a43   :  { %v2299_v30 = vrot.slane %v2298_v36, 1 }
0x1a45   :  { %v2300_v14 = vmax.f32 %v2298_v36, %v2299_v30  ;;  %v1714_v26 = vpop.permute.xlu2 %1713  ;;  %v3537_v30 = vld [vmem:[%s3759_s12 + $0xe] sm:$0x3] }
0x1a46   :  { %vm2454_vm11 = vcmp.gt.f32.partialorder %v3537_v30, 0.5 }
0x1a47   :  { %v2302_v37 = vsub.f32 %v2286_v15, %v2300_v14  ;;  %v1715_v15 = vmul.f32 %v1707_v28, %v3359_v32 }
0x1a49   :  { %v2305_v41 = vmul.f32 1.442695, %v2302_v37  ;;  %v1723_v34 = vmul.f32 %v1719_v7, %v1715_v15  ;;  %v3545_v37 = vld [vmem:[%s3758_s11 + $0x4] sm:$0x3] }
0x1a4b   :  { %2837 = vpow2.f32 %v2305_v41  ;;  %v1725_v36 = vsel %vm1648_vm12, %v1723_v34, 0.0  ;;  %v1964_v41 = vperm.slane %v3545_v37, 1 }
0x1a4d   :  { %v2269_v38 = vpop.permute.xlu1 %2268 }
0x1a4e   :  { %v2277_v40 = vadd.f32 %v2269_v38, %v3359_v32  ;;  %v3551_v38 = vld [vmem:[%s3758_s11 + $0x8] sm:$0x3] }
0x1a50   :  { %v2285_v20 = vadd.f32 %v2281_v39, %v2277_v40  ;;  %v2102_v39 = vperm.slane %v3551_v38, 0 }
0x1a51   :  { %v2838_v44 = vpop.eup %2837 }
0x1a52   :  { %v2287_v42 = vsel %vm1648_vm12, %v2285_v20, -inf  ;;  %v2314_v47 = vsel %vm1648_vm12, %v2838_v44, 0.0 }
0x1a53   :  { %v2288_v43 = vrot.slane %v2287_v42, 4  ;;  %v2315_v49 = vrot.slane %v2314_v47, 4 }
0x1a55   :  { %v2289_v45 = vmax.f32 %v2287_v42, %v2288_v43  ;;  %v2316_v18 = vadd.f32 %v2315_v49, %v2314_v47 }
0x1a57   :  { %v2290_v46 = vrot.slane %v2289_v45, 2  ;;  %v2317_v54 = vrot.slane %v2316_v18, 2 }
0x1a59   :  { %v2291_v48 = vmax.f32 %v2289_v45, %v2290_v46  ;;  %v2318_v56 = vadd.f32 %v2317_v54, %v2316_v18 }
0x1a5b   :  { %v2292_v50 = vrot.slane %v2291_v48, 1  ;;  %v2319_v60 = vrot.slane %v2318_v56, 1 }
0x1a5d   :  { %v2293_v51 = vmax.f32 %v2291_v48, %v2292_v50  ;;  %v2320_v9 = vadd.f32 %v2319_v60, %v2318_v56 }
0x1a5f   :  { %v2301_v53 = vsub.f32 %v2285_v20, %v2293_v51  ;;  %v3563_v20 = vld [vmem:[#allocation5 + $0xe] sm:$0x3] }
0x1a60   :  { %v2407_v42 = vrot.slane %v3563_v20, 1 }
0x1a61   :  { %v2303_v52 = vmul.f32 1.442695, %v2301_v53 }
0x1a62   :  { %v2409_v44 = vperm.slane %v2407_v42, 0 }
0x1a63   :  { %2839 = vpow2.f32 %v2303_v52 }
0x1a64   :  { %2841 = vlog2.f32 %v2320_v9 }
0x1a69   :  { %v2840_v57 = vpop.eup %2839 }
0x1a6a   :  { %v2307_v55 = vsel %vm1648_vm12, %v2840_v57, 0.0  ;;  %v2842_v4 = vpop.eup %2841  ;;  %v2408_v57 = vperm.slane %v3563_v20, 0 }
0x1a6b   :  { %v2308_v61 = vrot.slane %v2307_v55, 4  ;;  %v2324_v5 = vmul.f32 0.6931472, %v2842_v4 }
0x1a6d   :  { %v2309_v62 = vadd.f32 %v2308_v61, %v2307_v55  ;;  %v2326_v17 = vadd.f32 %v2324_v5, %v2300_v14  ;;  %v1837_v14 = vperm.slane %v3524_v29, 1 }
0x1a6f   :  { %v2310_v10 = vrot.slane %v2309_v62, 2 }
0x1a71   :  { %v2311_v2 = vadd.f32 %v2310_v10, %v2309_v62 }
0x1a73   :  { %v2312_v63 = vrot.slane %v2311_v2, 1 }
0x1a75   :  { %v2313_v3 = vadd.f32 %v2312_v63, %v2311_v2 }
0x1a77   :  { %2843 = vlog2.f32 %v2313_v3 }
0x1a7d   :  { %v2844_v6 = vpop.eup %2843 }
0x1a7e   :  { %v2322_v8 = vmul.f32 0.6931472, %v2844_v6 }
0x1a80   :  { %v2325_v19 = vadd.f32 %v2322_v8, %v2293_v51 }
0x1a82   :  { %v2335_v59 = vsel %vm1697_vm14, %v2326_v17, %v2325_v19 }
0x1a83   :  { %v3516_v24 = vsel %vm2332_vm10, %v2335_v59, %v3495_v16  ;;  %v1716_v16 = vmul.f32 %v1714_v26, %v3359_v32  ;;  %v2455_v32 = vsel %vm2454_vm11, 1, %v2900_v11  ;;  %v3581_v26 = vld [vmem:[%s3758_s11 + $0x6] sm:$0x3] }
0x1a84   :  { %v2397_v27 = vperm.slane %v3516_v24, 1  ;;  %v2390_v12 = vperm.slane %v3516_v24, 0 }
0x1a85   :  { %v1724_v33 = vmul.f32 %v1720_v21, %v1716_v16  ;;  %v1975_v16 = vperm.slane %v3581_v26, 0 }
0x1a86   :  { %2402 = vperm.xlu2 %2645, %v2397_v27   ;;  %2395 = vperm.xlu0 %2646, %v2390_v12  }
0x1a87   :  { %v1728_v25 = vsel %vm1648_vm12, %v1724_v33, 0.0 }
0x1a8e   :  { %2647 = vset.pattern.permute.xlu2 %v2900_v11  ;;  %v3560_v11 = vld [vmem:[%s3758_s11 + $0xa] sm:$0x3] }
0x1a8f   :  { %v2345_v40 = vperm.slane %v3560_v11, 1 }
0x1aaf   :  { %1729 = vadd.xlane.f32.xlu2 %v1728_v25 }
0x1ab0   :  { %1726 = vadd.xlane.f32.xlu0 %v1725_v36  ;;  %v3587_v36 = vand.u32 127, %v1625_v0  ;;  %v3597_v0 = vld [vmem:[%s3758_s11 + $0xc] sm:$0x3] }
0x1ac4   :  { %1842 = vperm.xlu0 %2646, %v1837_v14   ;;  %v2218_v14 = vperm.slane %v3551_v38, 1 }
0x1ac7   :  { %2457 = vperm.xlu2 %2647, %v2455_v32  }
0x1acc   :  { %1969 = vperm.xlu0 %2646, %v1964_v41  }
0x1acf   :  { %2648 = vset.pattern.permute.xlu2 %v3323_v1  ;;  %v3569_v1 = vld [vmem:[%s3763_s16] sm:$0x1f] }
0x1ad4   :  { %2216 = vperm.xlu0 %2646, %v2102_v39  }
0x1ad7   :  { %2089 = vperm.xlu2 %2648, %v1975_v16  }
0x1adc   :  { %2350 = vperm.xlu0 %2646, %v2345_v40  }
0x1adf   :  { %2223 = vperm.xlu2 %2648, %v2218_v14   ;;  %v2861_v14 = vld [vmem:[%s3759_s12 + $0x2] sm:$0x3] }
0x1ae0   :  { %v2403_v43 = vpop.permute.xlu2 %2402 }
0x1ae1   :  { %v2405_v45 = vadd.f32 %v3569_v1, %v2403_v43 }
0x1ae3   :  { %v2413_v46 = vadd.f32 %v2409_v44, %v2405_v45 }
0x1ae5   :  { %v2421_v47 = vsel %vm1648_vm12, %v2413_v46, -inf }
0x1ae6   :  { %v2422_v48 = vrot.slane %v2421_v47, 4 }
0x1ae8   :  { %v2423_v49 = vmax.f32 %v2421_v47, %v2422_v48 }
0x1aea   :  { %v2424_v50 = vrot.slane %v2423_v49, 2 }
0x1aec   :  { %v2425_v51 = vmax.f32 %v2423_v49, %v2424_v50  ;;  %v2356_v50 = vperm.slane %v3597_v0, 0 }
0x1aee   :  { %v2426_v18 = vrot.slane %v2425_v51, 1  ;;  %2470 = vperm.xlu2 %2648, %v2356_v50  }
0x1af0   :  { %v2427_v53 = vmax.f32 %v2425_v51, %v2426_v18 }
0x1af2   :  { %v2429_v52 = vsub.f32 %v2413_v46, %v2427_v53 }
0x1af4   :  { %v2432_v54 = vmul.f32 1.442695, %v2429_v52 }
0x1af6   :  { %2845 = vpow2.f32 %v2432_v54  ;;  %v2860_v54 = vld [vmem:[#allocation5 + $0x2] sm:$0x3] }
0x1af8   :  { %v2396_v56 = vpop.permute.xlu0 %2395 }
0x1af9   :  { %v2404_v55 = vadd.f32 %v3569_v1, %v2396_v56  ;;  %v1742_v56 = vmul.f32 %v2860_v54, %v3524_v29 }
0x1afb   :  { %v2412_v60 = vadd.f32 %v2408_v57, %v2404_v55 }
0x1afc   :  { %v2846_v9 = vpop.eup %2845 }
0x1afd   :  { %v2414_v61 = vsel %vm1648_vm12, %v2412_v60, -inf  ;;  %v2441_v63 = vsel %vm1648_vm12, %v2846_v9, 0.0  ;;  %v1847_v9 = vrot.slane %v3545_v37, 1 }
0x1afe   :  { %v2415_v62 = vrot.slane %v2414_v61, 4  ;;  %v2442_v4 = vrot.slane %v2441_v63, 4 }
0x1b00   :  { %v2416_v10 = vmax.f32 %v2414_v61, %v2415_v62  ;;  %v2443_v8 = vadd.f32 %v2442_v4, %v2441_v63  ;;  %v2091_v61 = vperm.slane %v3581_v26, 1  ;;  %v2229_v62 = vperm.slane %v3560_v11, 0 }
0x1b02   :  { %v2417_v2 = vrot.slane %v2416_v10, 2  ;;  %v2444_v19 = vrot.slane %v2443_v8, 2 }
0x1b04   :  { %v2418_v3 = vmax.f32 %v2416_v10, %v2417_v2  ;;  %v2445_v59 = vadd.f32 %v2444_v19, %v2443_v8 }
0x1b06   :  { %v2419_v5 = vrot.slane %v2418_v3, 1  ;;  %v2446_v28 = vrot.slane %v2445_v59, 1 }
0x1b08   :  { %v2420_v6 = vmax.f32 %v2418_v3, %v2419_v5  ;;  %v2447_v15 = vadd.f32 %v2446_v28, %v2445_v59  ;;  %v1617_v5 = vpop.xlane.xlu1 %1616 }
0x1b0a   :  { %v2428_v13 = vsub.f32 %v2412_v60, %v2420_v6  ;;  %v1743_v60 = vsel %vm1597_vm7, %v1742_v56, 0.0 }
0x1b0c   :  { %v2430_v17 = vmul.f32 1.442695, %v2428_v13  ;;  %v2228_v13 = vrot.slane %v3560_v11, 1 }
0x1b0e   :  { %2847 = vpow2.f32 %v2430_v17  ;;  %v2230_v59 = vperm.slane %v2228_v13, 0 }
0x1b0f   :  { %2849 = vlog2.f32 %v2447_v15 }
0x1b14   :  { %v2848_v27 = vpop.eup %2847 }
0x1b15   :  { %v2434_v12 = vsel %vm1648_vm12, %v2848_v27, 0.0  ;;  %v2850_v43 = vpop.eup %2849 }
0x1b16   :  { %v2435_v31 = vrot.slane %v2434_v12, 4  ;;  %v2451_v46 = vmul.f32 0.6931472, %v2850_v43 }
0x1b18   :  { %v2436_v21 = vadd.f32 %v2435_v31, %v2434_v12  ;;  %v2453_v18 = vadd.f32 %v2451_v46, %v2427_v53  ;;  %v1848_v53 = vperm.slane %v3545_v37, 0  ;;  %v3628_v31 = vld [vmem:[%s3758_s11 + $0xe] sm:$0x3] }
0x1b19   :  { %v2483_v15 = vperm.slane %v3628_v31, 0 }
0x1b1a   :  { %v2437_v33 = vrot.slane %v2436_v21, 2 }
0x1b1c   :  { %v2438_v34 = vadd.f32 %v2437_v33, %v2436_v21 }
0x1b1e   :  { %v2439_v25 = vrot.slane %v2438_v34, 1 }
0x1b20   :  { %v2440_v32 = vadd.f32 %v2439_v25, %v2438_v34 }
0x1b22   :  { %2851 = vlog2.f32 %v2440_v32  ;;  %v1730_v41 = vpop.xlane.xlu2 %1729 }
0x1b23   :  { %v1736_v40 = vperm.slane %v1730_v41, %v3587_v36  ;;  %v1727_v42 = vpop.xlane.xlu0 %1726 }
0x1b24   :  { %v1735_v44 = vperm.slane %v1727_v42, %v3587_v36  ;;  %v2862_v42 = vld [vmem:[#allocation5 + $0x4] sm:$0x3] }
0x1b25   :  { %v1869_v43 = vmul.f32 %v2862_v42, %v3545_v37 }
0x1b26   :  { %v1737_v45 = vsel %vm1697_vm14, %v1736_v40, %v1735_v44 }
0x1b27   :  { %v1739_v47 = vsel %vm1597_vm7, %v1737_v45, 0.0  ;;  %v1870_v44 = vsel %vm1597_vm7, %v1869_v43, 0.0 }
0x1b28   :  { %v2852_v48 = vpop.eup %2851  ;;  %1740 = vadd.xlane.f32.xlu1 %v1739_v47 }
0x1b29   :  { %v2449_v49 = vmul.f32 0.6931472, %v2852_v48  ;;  %v1974_v48 = vrot.slane %v3581_v26, 1 }
0x1b2a   :  { %v2458_v51 = vpop.permute.xlu2 %2457 }
0x1b2b   :  { %v2452_v52 = vadd.f32 %v2449_v49, %v2420_v6  ;;  %vm2459_vm13 = vcmp.eq.s32.totalorder %v2458_v51, 1 }
0x1b2d   :  { %v2462_v57 = vsel %vm1697_vm14, %v2453_v18, %v2452_v52  ;;  %v1976_v52 = vperm.slane %v1974_v48, 0 }
0x1b2e   :  { %v3605_v55 = vsel %vm2459_vm13, %v2462_v57, %v3516_v24  ;;  %v2472_v24 = vperm.slane %v3597_v0, 1 }
0x1b30   :  { %1744 = vadd.xlane.f32.xlu1 %v1743_v60 }
0x1b32   :  { %v2090_v2 = vpop.permute.xlu2 %2089 }
0x1b33   :  { %v2098_v3 = vmul.f32 %v3569_v1, %v2090_v2 }
0x1b35   :  { %v2106_v8 = vmul.f32 %v2102_v39, %v2098_v3 }
0x1b36   :  { %v1843_v10 = vpop.permute.xlu0 %1842 }
0x1b37   :  { %v1845_v29 = vmul.f32 %v3569_v1, %v1843_v10  ;;  %v2108_v17 = vsel %vm1648_vm12, %v2106_v8, 0.0  ;;  %v3662_v8 = vld [vmem:[%s3762_s15] ss:$0 sm:$0xff] }
0x1b3a   :  { %v2224_v6 = vpop.permute.xlu2 %2223 }
0x1b3b   :  { %v2226_v19 = vmul.f32 %v3569_v1, %v2224_v6 }
0x1b3d   :  { %v2234_v12 = vmul.f32 %v2230_v59, %v2226_v19 }
0x1b3e   :  { %v1970_v45 = vpop.permute.xlu0 %1969 }
0x1b3f   :  { %v2238_v21 = vsel %vm1648_vm12, %v2234_v12, 0.0  ;;  %v1972_v51 = vmul.f32 %v3569_v1, %v1970_v45 }
0x1b41   :  { %v1980_v57 = vmul.f32 %v1976_v52, %v1972_v51 }
0x1b46   :  { %v2217_v54 = vpop.permute.xlu0 %2216 }
0x1b48   :  { %v2471_v28 = vpop.permute.xlu2 %2470 }
0x1b49   :  { %1835 = vperm.xlu1 %2644, %v1719_v7   ;;  %v1849_v7 = vperm.slane %v1847_v9, 0  ;;  %v2479_v39 = vmul.f32 %v3569_v1, %v2471_v28  ;;  %v1984_v9 = vsel %vm1648_vm12, %v1980_v57, 0.0 }
0x1b4b   :  { %v1853_v63 = vmul.f32 %v1849_v7, %v1845_v29  ;;  %v2487_v25 = vmul.f32 %v2483_v15, %v2479_v39 }
0x1b4d   :  { %v1857_v4 = vsel %vm1648_vm12, %v1853_v63, 0.0  ;;  %v2489_v40 = vsel %vm1648_vm12, %v2487_v25, 0.0  ;;  %v2355_v63 = vrot.slane %v3597_v0, 1 }
0x1b4f   :  { %v2357_v13 = vperm.slane %v2355_v63, 0 }
0x1b51   :  { %1962 = vperm.xlu1 %2644, %v1848_v53  }
0x1b59   :  { %2096 = vperm.xlu1 %2644, %v2091_v61   ;;  %v2101_v61 = vrot.slane %v3551_v38, 1 }
0x1b5b   :  { %v2103_v10 = vperm.slane %v2101_v61, 0 }
0x1b61   :  { %2343 = vperm.xlu1 %2644, %v2229_v62  }
0x1b69   :  { %2477 = vperm.xlu1 %2644, %v2472_v24   ;;  %v2225_v24 = vmul.f32 %v3569_v1, %v2217_v54 }
0x1b6b   :  { %v2233_v7 = vmul.f32 %v2229_v62, %v2225_v24  ;;  %v2521_v62 = vadd.f32 %v3662_v8, %v3605_v55 }
0x1b6d   :  { %v2235_v6 = vsel %vm1648_vm12, %v2233_v7, 0.0 }
0x1b93   :  { %1858 = vadd.xlane.f32.xlu1 %v1857_v4 }
0x1b9b   :  { %v1741_v27 = vpop.xlane.xlu1 %1740  ;;  %2109 = vadd.xlane.f32.xlu1 %v2108_v17 }
0x1ba3   :  { %v1745_v33 = vpop.xlane.xlu1 %1744  ;;  %2239 = vadd.xlane.f32.xlu1 %v2238_v21  ;;  %v2482_v21 = vrot.slane %v3628_v31, 1 }
0x1ba4   :  { %v1746_v34 = vadd.f32 %v1745_v33, %v1741_v27  ;;  %v2522_v27 = vsel %vm1597_vm7, %v2521_v62, -inf }
0x1ba5   :  { %v2484_v55 = vperm.slane %v2482_v21, 0 }
0x1ba6   :  { %v1747_v32 = vmul.f32 %v2861_v14, %v1746_v34 }
0x1ba8   :  { %v3636_v41 = vadd.f32 %v1747_v32, %v1617_v5 }
0x1bab   :  { %2490 = vadd.xlane.f32.xlu1 %v2489_v40 }
0x1bb3   :  { %1871 = vadd.xlane.f32.xlu1 %v1870_v44 }
0x1bbb   :  { %v1836_v46 = vpop.permute.xlu1 %1835 }
0x1bbc   :  { %v1844_v47 = vmul.f32 %v3569_v1, %v1836_v46  ;;  %v1996_v46 = vmul.f32 %v3581_v26, %v3446_v35  ;;  %v2123_v35 = vmul.f32 %v3551_v38, %v3467_v22  ;;  %v2250_v38 = vmul.f32 %v3560_v11, %v3483_v23  ;;  %v2512_v11 = vld [vmem:[%s3760_s13] sm:$0x3] }
0x1bbe   :  { %v1852_v49 = vmul.f32 %v1848_v53, %v1844_v47  ;;  %v1997_v51 = vsel %vm1597_vm7, %v1996_v46, 0.0  ;;  %v2251_v7 = vsel %vm1597_vm7, %v2250_v38, 0.0 }
0x1bc0   :  { %v1854_v18 = vsel %vm1648_vm12, %v1852_v49, 0.0 }
0x1bc1   :  { %1855 = vadd.xlane.f32.xlu2 %v1854_v18 }
0x1bc3   :  { %v1963_v56 = vpop.permute.xlu1 %1962 }
0x1bc4   :  { %v1971_v37 = vmul.f32 %v3569_v1, %v1963_v56 }
0x1bc6   :  { %v1979_v60 = vmul.f32 %v1975_v16, %v1971_v37  ;;  %v2351_v16 = vpop.permute.xlu0 %2350 }
0x1bc7   :  { %v2353_v4 = vmul.f32 %v3569_v1, %v2351_v16 }
0x1bc8   :  { %v1981_v53 = vsel %vm1648_vm12, %v1979_v60, 0.0 }
0x1bc9   :  { %1982 = vadd.xlane.f32.xlu0 %v1981_v53  ;;  %1985 = vadd.xlane.f32.xlu2 %v1984_v9  ;;  %v2361_v19 = vmul.f32 %v2357_v13, %v2353_v4  ;;  %v2124_v9 = vsel %vm1597_vm7, %v2123_v35, 0.0 }
0x1bcb   :  { %v2097_v2 = vpop.permute.xlu1 %2096  ;;  %v2365_v12 = vsel %vm1648_vm12, %v2361_v19, 0.0  ;;  %v2516_v19 = vmul.f32 %v3662_v8, %v2512_v11 }
0x1bcc   :  { %v2099_v29 = vmul.f32 %v3569_v1, %v2097_v2 }
0x1bcd   :  { %v2517_v21 = vsel %vm1597_vm7, %v2516_v19, 0.0 }
0x1bce   :  { %v2107_v3 = vmul.f32 %v2103_v10, %v2099_v29 }
0x1bd0   :  { %v2111_v5 = vsel %vm1648_vm12, %v2107_v3, 0.0 }
0x1bd1   :  { %2112 = vadd.xlane.f32.xlu0 %v2111_v5  ;;  %2236 = vadd.xlane.f32.xlu2 %v2235_v6  ;;  %v2377_v5 = vmul.f32 %v3597_v0, %v3504_v58  ;;  %v2504_v0 = vmul.f32 %v3628_v31, %v3563_v20 }
0x1bd3   :  { %v2344_v17 = vpop.permute.xlu1 %2343 }
0x1bd4   :  { %v2352_v59 = vmul.f32 %v3569_v1, %v2344_v17 }
0x1bd6   :  { %v2360_v28 = vmul.f32 %v2356_v50, %v2352_v59 }
0x1bd8   :  { %v2362_v33 = vsel %vm1648_vm12, %v2360_v28, 0.0 }
0x1bd9   :  { %2523 = vmax.xlane.f32.xlu0 %v2522_v27  ;;  %2366 = vadd.xlane.f32.xlu2 %v2365_v12 }
0x1bdb   :  { %v2478_v39 = vpop.permute.xlu1 %2477 }
0x1bdc   :  { %v2480_v15 = vmul.f32 %v3569_v1, %v2478_v39  ;;  %v2505_v39 = vsel %vm1597_vm7, %v2504_v0, 0.0 }
0x1bde   :  { %v2488_v34 = vmul.f32 %v2484_v55, %v2480_v15 }
0x1be0   :  { %v2492_v25 = vsel %vm1648_vm12, %v2488_v34, 0.0  ;;  %vm2555_vm12 = vcmask 0  }
0x1be1   :  { %2363 = vadd.xlane.f32.xlu0 %v2362_v33 }
0x1be9   :  { %2493 = vadd.xlane.f32.xlu0 %v2492_v25 }
0x1c06   :  { %v1859_v14 = vpop.xlane.xlu1 %1858 }
0x1c07   :  { %v1863_v40 = vperm.slane %v1859_v14, %v3587_v36 }
0x1c0e   :  { %v2110_v43 = vpop.xlane.xlu1 %2109 }
0x1c0f   :  { %v2116_v54 = vperm.slane %v2110_v43, %v3587_v36 }
0x1c16   :  { %v2240_v52 = vpop.xlane.xlu1 %2239 }
0x1c17   :  { %v2244_v56 = vperm.slane %v2240_v52, %v3587_v36 }
0x1c1e   :  { %v2491_v59 = vpop.xlane.xlu1 %2490 }
0x1c1f   :  { %v2497_v27 = vperm.slane %v2491_v59, %v3587_v36 }
0x1c26   :  { %v1872_v33 = vpop.xlane.xlu1 %1871 }
0x1c34   :  { %v1856_v32 = vpop.xlane.xlu2 %1855 }
0x1c35   :  { %v1862_v42 = vperm.slane %v1856_v32, %v3587_v36 }
0x1c37   :  { %v1864_v50 = vsel %vm1697_vm14, %v1863_v40, %v1862_v42  ;;  %v2863_v40 = vld [vmem:[%s3759_s12 + $0x4] sm:$0x3] }
0x1c38   :  { %v1866_v44 = vsel %vm1597_vm7, %v1864_v50, 0.0 }
0x1c39   :  { %1867 = vadd.xlane.f32.xlu2 %v1866_v44 }
0x1c3c   :  { %v1986_v1 = vpop.xlane.xlu2 %1985  ;;  %v1983_v45 = vpop.xlane.xlu0 %1982 }
0x1c3d   :  { %v1990_v47 = vperm.slane %v1986_v1, %v3587_v36  ;;  %v1989_v48 = vperm.slane %v1983_v45, %v3587_v36  ;;  %v2864_v1 = vld [vmem:[%s3759_s12 + $0x6] sm:$0x3] }
0x1c3f   :  { %v1991_v49 = vsel %vm1697_vm14, %v1990_v47, %v1989_v48 }
0x1c40   :  { %v1993_v18 = vsel %vm1597_vm7, %v1991_v49, 0.0  ;;  %v2865_v49 = vld [vmem:[%s3759_s12 + $0x8] sm:$0x3] }
0x1c41   :  { %1998 = vadd.xlane.f32.xlu2 %v1997_v51  ;;  %1994 = vadd.xlane.f32.xlu0 %v1993_v18 }
0x1c44   :  { %v2237_v37 = vpop.xlane.xlu2 %2236  ;;  %v2113_v57 = vpop.xlane.xlu0 %2112 }
0x1c45   :  { %v2243_v26 = vperm.slane %v2237_v37, %v3587_v36  ;;  %v2117_v60 = vperm.slane %v2113_v57, %v3587_v36  ;;  %v2867_v57 = vld [vmem:[%s3759_s12 + $0xc] sm:$0x3] }
0x1c47   :  { %v2245_v61 = vsel %vm1697_vm14, %v2244_v56, %v2243_v26  ;;  %v2118_v24 = vsel %vm1697_vm14, %v2117_v60, %v2116_v54  ;;  %v2866_v54 = vld [vmem:[%s3759_s12 + $0xa] sm:$0x3] }
0x1c48   :  { %v2247_v53 = vsel %vm1597_vm7, %v2245_v61, 0.0  ;;  %v2120_v10 = vsel %vm1597_vm7, %v2118_v24, 0.0 }
0x1c49   :  { %2248 = vadd.xlane.f32.xlu2 %v2247_v53  ;;  %2125 = vadd.xlane.f32.xlu0 %v2124_v9 }
0x1c4a   :  { %2121 = vadd.xlane.f32.xlu1 %v2120_v10 }
0x1c4c   :  { %v3697_v2 = vpop.xlane.xlu0 %2523  ;;  %v2367_v63 = vpop.xlane.xlu2 %2366 }
0x1c4d   :  { %v2525_v22 = vsub.f32 %v2521_v62, %v3697_v2  ;;  %v2371_v3 = vperm.slane %v2367_v63, %v3587_v36  ;;  %v2378_v62 = vsel %vm1597_vm7, %v2377_v5, 0.0  ;;  %v2535_v63 = vld [vmem:[%s3764_s17] sm:$0x3] }
0x1c4f   :  { %v2526_v29 = vmul.f32 1.442695, %v2525_v22 }
0x1c51   :  { %2853 = vpow2.f32 %v2526_v29 }
0x1c52   :  { %2252 = vadd.xlane.f32.xlu1 %v2251_v7 }
0x1c54   :  { %v2364_v16 = vpop.xlane.xlu0 %2363 }
0x1c55   :  { %v2370_v4 = vperm.slane %v2364_v16, %v3587_v36 }
0x1c57   :  { %v2854_v6 = vpop.eup %2853  ;;  %v2372_v13 = vsel %vm1697_vm14, %v2371_v3, %v2370_v4 }
0x1c58   :  { %v2528_v17 = vsel %vm1597_vm7, %v2854_v6, 0.0  ;;  %v2374_v23 = vsel %vm1597_vm7, %v2372_v13, 0.0 }
0x1c59   :  { %2529 = vadd.xlane.f32.xlu0 %v2528_v17  ;;  %2375 = vadd.xlane.f32.xlu2 %v2374_v23 }
0x1c5a   :  { %2379 = vadd.xlane.f32.xlu1 %v2378_v62 }
0x1c5c   :  { %v2494_v58 = vpop.xlane.xlu0 %2493 }
0x1c5d   :  { %v2498_v12 = vperm.slane %v2494_v58, %v3587_v36 }
0x1c5f   :  { %v2499_v28 = vsel %vm1697_vm14, %v2498_v12, %v2497_v27 }
0x1c60   :  { %v2501_v15 = vsel %vm1597_vm7, %v2499_v28, 0.0  ;;  %vm2543_vm7 = vcmask 1024  }
0x1c61   :  { %2506 = vadd.xlane.f32.xlu2 %v2505_v39  ;;  %2502 = vadd.xlane.f32.xlu0 %v2501_v15 }
0x1c62   :  { %2518 = vadd.xlane.f32.xlu1 %v2517_v21 }
0x1cac   :  { %v1868_v8 = vpop.xlane.xlu2 %1867 }
0x1cad   :  { %v1873_v36 = vadd.f32 %v1872_v33, %v1868_v8 }
0x1caf   :  { %v1874_v42 = vmul.f32 %v2863_v40, %v1873_v36 }
0x1cb1   :  { %v1875_v48 = vadd.f32 %v1874_v42, %v3636_v41 }
0x1cb4   :  { %v1999_v55 = vpop.xlane.xlu2 %1998  ;;  %v1995_v34 = vpop.xlane.xlu0 %1994 }
0x1cb5   :  { %v2000_v32 = vadd.f32 %v1999_v55, %v1995_v34 }
0x1cb7   :  { %v2001_v45 = vmul.f32 %v2864_v1, %v2000_v32 }
0x1cb9   :  { %v2002_v52 = vadd.f32 %v2001_v45, %v1875_v48 }
0x1cbc   :  { %v2249_v31 = vpop.xlane.xlu2 %2248  ;;  %v2126_v25 = vpop.xlane.xlu0 %2125 }
0x1cbd   :  { %v2122_v20 = vpop.xlane.xlu1 %2121 }
0x1cbe   :  { %v2127_v50 = vadd.f32 %v2126_v25, %v2122_v20 }
0x1cc0   :  { %v2128_v51 = vmul.f32 %v2865_v49, %v2127_v50 }
0x1cc2   :  { %v2129_v37 = vadd.f32 %v2128_v51, %v2002_v52 }
0x1cc5   :  { %v2253_v14 = vpop.xlane.xlu1 %2252 }
0x1cc6   :  { %v2254_v46 = vadd.f32 %v2253_v14, %v2249_v31 }
0x1cc8   :  { %v2255_v56 = vmul.f32 %v2866_v54, %v2254_v46 }
0x1cca   :  { %v2256_v61 = vadd.f32 %v2255_v56, %v2129_v37 }
0x1ccc   :  { %v2376_v43 = vpop.xlane.xlu2 %2375  ;;  %v2530_v44 = vpop.xlane.xlu0 %2529 }
0x1ccd   :  { %v2380_v47 = vpop.xlane.xlu1 %2379  ;;  %2855 = vlog2.f32 %v2530_v44 }
0x1cce   :  { %v2381_v18 = vadd.f32 %v2380_v47, %v2376_v43 }
0x1cd0   :  { %v2382_v35 = vmul.f32 %v2867_v57, %v2381_v18 }
0x1cd2   :  { %v2383_v10 = vadd.f32 %v2382_v35, %v2256_v61 }
0x1cd3   :  { %v2856_v26 = vpop.eup %2855 }
0x1cd4   :  { %v2507_v41 = vpop.xlane.xlu2 %2506  ;;  %v2503_v60 = vpop.xlane.xlu0 %2502  ;;  %v2532_v53 = vmul.f32 0.6931472, %v2856_v26 }
0x1cd5   :  { %v2508_v24 = vadd.f32 %v2507_v41, %v2503_v60  ;;  %v2519_v22 = vpop.xlane.xlu1 %2518 }
0x1cd6   :  { %v2533_v29 = vadd.f32 %v2532_v53, %v3697_v2 }
0x1cd7   :  { %v2509_v9 = vmul.f32 %v3537_v30, %v2508_v24 }
0x1cd9   :  { %v2510_v38 = vadd.f32 %v2509_v9, %v2383_v10 }
0x1cdb   :  { %v2520_v7 = vadd.f32 %v2519_v22, %v2510_v38 }
0x1cdd   :  { %v2534_v16 = vsub.f32 %v2533_v29, %v2520_v7 }
0x1cdf   :  { %v2536_v3 = vmul.f32 %v2535_v63, %v2534_v16 }
0x1ce1   :  { %v2537_v4 = vsub.f32 0.0, %v2536_v3 }
0x1ce3   :  { %v2538_v5 = vmul.f32 1.442695, %v2537_v4 }
0x1ce5   :  { %2857 = vpow2.f32 %v2538_v5 }
0x1ceb   :  { %v2858_v6 = vpop.eup %2857 }
0x1cec   :  { %v2540_v13 = vsub.f32 1.0, %v2858_v6 }
0x1cee   :  { %v2541_v17 = vmul.f32 %v2540_v13, %v2540_v13 }
0x1cf0   :  { %v2542_v30 = vmul.f32 %v2541_v17, %v2536_v3 }
0x1cf2   :  { %v2544_v23 = vsel %vm2543_vm7, %v2542_v30, 0.0 }
0x1cf3   :  { %2545 = vadd.xlane.f32.xlu0 %v2544_v23 }
0x1d66   :  { %v2546_v11 = vpop.xlane.xlu0 %2545 }
0x1d67   :  { %v2547_v62 = vrot.slane %v2546_v11, 4 }
0x1d69   :  { %v2548_v2 = vadd.f32 %v2547_v62, %v2546_v11 }
0x1d6b   :  { %v2549_v19 = vrot.slane %v2548_v2, 2 }
0x1d6d   :  { %v2550_v59 = vadd.f32 %v2549_v19, %v2548_v2 }
0x1d6f   :  { %v2551_v58 = vrot.slane %v2550_v59, 1 }
0x1d71   :  { %v2552_v0 = vadd.f32 %v2551_v58, %v2550_v59 }
0x1d73   :  { %2623 = vpush %v2552_v0 }
0x1da4   :  { %s2624_s21 = spop %2623 }
0x1da5   :  { %v2554_v27 = vstv %s2624_s21 }
0x1da6   :  { %2556 = vst.msk [vmem:[#allocation6] sm:$0x1] %vm2555_vm12, %v2554_v27 }
0x1da7   :  { %2567 = dma.vmem_to_hbm [thread:$0]  %s2563_s23, 16, %s2565_s19, [#allocation7]  }
0x1da8   :  { %2892 = dma.done.wait [#allocation7], 16  }
0x1da9   :  { %2893 = vsyncadd [#allocation7], 4294967280 }
0x1daa   :  { %2572 = vsyncpa [#allocation7], 1 }

</bundles_post_ra>
